<compile_context>
chip_gen: v7x
topology: tpu7x:2x2x1
jax: 0.10.0
libtpu: 0.0.40
codegen_flags: <defaults>
</compile_context>

<pallas_src>
import jax
import jax.numpy as jnp
from jax import lax
from jax.experimental import pallas as pl
from jax.experimental.pallas import tpu as pltpu

# Full-precision f32 matmuls everywhere (reference and kernel).
jax.config.update("jax_default_matmul_precision", "highest")

_VMEM = pl.BlockSpec(memory_space=pltpu.MemorySpace.VMEM)


# ---------------------------------------------------------------------------
# Fused Pallas kernel: conv1+ReLU -> conv2 -> BN+ReLU -> conv3+ReLU
#                      -> (NCHW flatten folded) Linear1+ReLU -> Linear2 -> LayerNorm
# ---------------------------------------------------------------------------
def _encoder_kernel(x_ref,
                    s1_ref, t1_ref, b1_ref,
                    s2_ref, t2_ref, b2_ref,
                    gam_ref, bet_ref, pp_ref, pb_ref,
                    s3_ref, t3_ref, b3_ref,
                    g_ref, u_ref, bl1_ref,
                    wl2_ref, bl2_ref,
                    o_ref):
    f32 = jnp.float32

    def dot(a, b):
        return jnp.dot(a, b, preferred_element_type=f32)

    def tap_matmul(x, sel_ref, w_ref, bias_ref):
        # sum over 3 taps of (row-select @ x) @ folded-weight, plus bias row.
        y = dot(dot(sel_ref[0], x), w_ref[0])
        for i in (1, 2):
            y = y + dot(dot(sel_ref[i], x), w_ref[i])
        return y + bias_ref[...]

    x = x_ref[...]                                                # (B*28, 28)

    # conv1 (1->8, s2, p1) + ReLU                                 -> (B*14, 14*8)
    y = jnp.maximum(tap_matmul(x, s1_ref, t1_ref, b1_ref), 0.0)

    # conv2 (8->16, s2, p1)                                       -> (B*7, 7*16)
    y = tap_matmul(y, s2_ref, t2_ref, b2_ref)

    # BatchNorm2d(16): training-mode batch stats, biased var, eps=1e-5; then ReLU.
    # Columns are (wo, c); pool over rows (b,ho) with a mean, over wo with pp.
    mean_b = dot(dot(jnp.mean(y, axis=0, keepdims=True), pp_ref[...]), pb_ref[...])
    xc = y - mean_b
    var_b = dot(dot(jnp.mean(xc * xc, axis=0, keepdims=True), pp_ref[...]), pb_ref[...])
    y = jnp.maximum(xc * lax.rsqrt(var_b + 1e-5) * gam_ref[...] + bet_ref[...], 0.0)

    # conv3 (16->32, s2, p0) + ReLU                               -> (B*3, 3*32)
    y = jnp.maximum(tap_matmul(y, s3_ref, t3_ref, b3_ref), 0.0)

    # Flatten (PyTorch NCHW order, folded into U) + Linear1 + ReLU -> (B, 128)
    z = jnp.maximum(tap_matmul(y, g_ref, u_ref, bl1_ref), 0.0)

    # Linear2                                                      -> (B, D)
    z = dot(z, wl2_ref[...]) + bl2_ref[...]

    # LayerNorm(D, elementwise_affine=False), eps=1e-5, biased var.
    mu = jnp.mean(z, axis=-1, keepdims=True)
    var = jnp.mean((z - mu) ** 2, axis=-1, keepdims=True)
    o_ref[...] = (z - mu) * lax.rsqrt(var + 1e-5)


def encoder_forward(x_nchw, ops):
    """x_nchw: (B, 1, 28, 28) float32; ops: operands from prepare_operands()."""
    B = x_nchw.shape[0]
    D = ops[-2].shape[1]                     # wl2 is (128, D)
    # Cin == 1, so the (B*H, W*Cin) NHWC-2D layout is a free reshape.
    x2d = x_nchw.astype(jnp.float32).reshape(B * 28, 28)
    return pl.pallas_call(
        _encoder_kernel,
        out_shape=jax.ShapeDtypeStruct((B, D), jnp.float32),
        in_specs=[_VMEM] * (1 + len(ops)),
        out_specs=_VMEM,
    )(x2d, *ops)


# ---------------------------------------------------------------------------
# One-time weight folding (done at init, zero per-step cost)
# ---------------------------------------------------------------------------
def _sel_rows(B, H, Ho, stride, pad, i):
    """0/1 matrix (B*Ho, B*H): picks input row stride*ho+i-pad per image (0 if padding)."""
    h_src = stride * jnp.arange(Ho) + i - pad
    per_img = jax.nn.one_hot(h_src, H, dtype=jnp.float32)   # OOB -> all-zero row
    return jnp.kron(jnp.eye(B, dtype=jnp.float32), per_img)


def _fold_w(wconv, W, Wo, stride, pad, i):
    """Fold conv weight tap-row i into a (W*Cin, Wo*Cout) matrix (W-taps/stride/pad)."""
    Cout, Cin, _, kw = wconv.shape
    T = jnp.zeros((W * Cin, Wo * Cout), jnp.float32)
    for wo in range(Wo):
        for j in range(kw):
            w_in = stride * wo + j - pad
            if 0 <= w_in < W:
                T = T.at[w_in * Cin:(w_in + 1) * Cin,
                         wo * Cout:(wo + 1) * Cout].set(wconv[:, :, i, j].T)
    return T


def prepare_operands(p, batch):
    B = batch
    f32 = jnp.float32

    # conv1: 28 -> 14, Cin=1, Cout=8, stride 2, pad 1
    S1 = jnp.stack([_sel_rows(B, 28, 14, 2, 1, i) for i in range(3)])
    T1 = jnp.stack([_fold_w(p["w1"], 28, 14, 2, 1, i) for i in range(3)])
    b1 = jnp.tile(p["b1"], 14)[None, :]

    # conv2: 14 -> 7, Cin=8, Cout=16, stride 2, pad 1
    S2 = jnp.stack([_sel_rows(B, 14, 7, 2, 1, i) for i in range(3)])
    T2 = jnp.stack([_fold_w(p["w2"], 14, 7, 2, 1, i) for i in range(3)])
    b2 = jnp.tile(p["b2"], 7)[None, :]

    # BatchNorm helpers over the (wo, c) columns, Wo=7, C=16
    gam = jnp.tile(p["g_bn"], 7)[None, :]
    bet = jnp.tile(p["beta_bn"], 7)[None, :]
    Ppool = jnp.kron(jnp.ones((7, 1), f32), jnp.eye(16, dtype=f32)) / 7.0   # (112, 16)
    Pbcast = jnp.kron(jnp.ones((1, 7), f32), jnp.eye(16, dtype=f32))        # (16, 112)

    # conv3: 7 -> 3, Cin=16, Cout=32, stride 2, pad 0
    S3 = jnp.stack([_sel_rows(B, 7, 3, 2, 0, i) for i in range(3)])
    T3 = jnp.stack([_fold_w(p["w3"], 7, 3, 2, 0, i) for i in range(3)])
    b3 = jnp.tile(p["b3"], 3)[None, :]

    # Linear1 with the NCHW flatten folded in (treated as 3 "H-taps").
    G = jnp.stack([jnp.kron(jnp.eye(B, dtype=f32),
                            jax.nn.one_hot(jnp.array([h]), 3, dtype=f32))
                   for h in range(3)])                                      # (3, B, 3B)
    def _u(h):
        idx = jnp.array([c * 9 + h * 3 + w for w in range(3) for c in range(32)])
        return p["wl1"][idx, :]                                             # (96, 128)
    U = jnp.stack([_u(h) for h in range(3)])
    bl1 = p["bl1"][None, :]

    wl2 = p["wl2"]                                                          # (128, D)
    bl2 = p["bl2"][None, :]

    return (S1, T1, b1, S2, T2, b2, gam, bet, Ppool, Pbcast,
            S3, T3, b3, G, U, bl1, wl2, bl2)


# ---------------------------------------------------------------------------
# Parameters (deterministic, PyTorch-default-style uniform fan-in init)
# ---------------------------------------------------------------------------
def init_params(key, encoded_space_dim):
    ks = jax.random.split(key, 10)

    def u(k, shape, fan_in):
        bound = 1.0 / jnp.sqrt(jnp.float32(fan_in))
        return jax.random.uniform(k, shape, jnp.float32, -bound, bound)

    p = {}
    p["w1"] = u(ks[0], (8, 1, 3, 3), 1 * 9)
    p["b1"] = u(ks[1], (8,), 1 * 9)
    p["w2"] = u(ks[2], (16, 8, 3, 3), 8 * 9)
    p["b2"] = u(ks[3], (16,), 8 * 9)
    p["g_bn"] = jnp.ones((16,), jnp.float32)
    p["beta_bn"] = jnp.zeros((16,), jnp.float32)
    p["w3"] = u(ks[4], (32, 16, 3, 3), 16 * 9)
    p["b3"] = u(ks[5], (32,), 16 * 9)
    p["wl1"] = u(ks[6], (3 * 3 * 32, 128), 3 * 3 * 32)   # stored as (in, out)
    p["bl1"] = u(ks[7], (128,), 3 * 3 * 32)
    p["wl2"] = u(ks[8], (128, encoded_space_dim), 128)
    p["bl2"] = u(ks[9], (encoded_space_dim,), 128)
    return p


# ---------------------------------------------------------------------------
# Pure-JAX reference (mirrors the PyTorch module) used only for the self-test
# ---------------------------------------------------------------------------
def _conv_ref(x, w, b, stride, pad):
    N, H, W, C = x.shape
    k = w.shape[2]
    xp = jnp.pad(x, ((0, 0), (pad, pad), (pad, pad), (0, 0)))
    Ho = (H + 2 * pad - k) // stride + 1
    Wo = (W + 2 * pad - k) // stride + 1
    patches = []
    for i in range(k):
        for j in range(k):
            patches.append(xp[:, i:i + stride * Ho:stride, j:j + stride * Wo:stride, :])
    cols = jnp.stack(patches, axis=3).reshape(N * Ho * Wo, k * k * C)
    w2 = jnp.transpose(w, (2, 3, 1, 0)).reshape(k * k * C, -1)
    return (cols @ w2 + b).reshape(N, Ho, Wo, -1)


def encoder_reference(x_nchw, p):
    x = jnp.transpose(x_nchw, (0, 2, 3, 1)).astype(jnp.float32)
    x = jax.nn.relu(_conv_ref(x, p["w1"], p["b1"], 2, 1))
    x = _conv_ref(x, p["w2"], p["b2"], 2, 1)
    m = jnp.mean(x, axis=(0, 1, 2))
    v = jnp.mean((x - m) ** 2, axis=(0, 1, 2))
    x = jax.nn.relu((x - m) * lax.rsqrt(v + 1e-5) * p["g_bn"] + p["beta_bn"])
    x = jax.nn.relu(_conv_ref(x, p["w3"], p["b3"], 2, 0))
    N = x.shape[0]
    x = jnp.transpose(x, (0, 3, 1, 2)).reshape(N, -1)     # PyTorch NCHW flatten
    x = jax.nn.relu(x @ p["wl1"] + p["bl1"])
    x = x @ p["wl2"] + p["bl2"]
    mu = jnp.mean(x, axis=-1, keepdims=True)
    var = jnp.mean((x - mu) ** 2, axis=-1, keepdims=True)
    return (x - mu) * lax.rsqrt(var + 1e-5)


if __name__ == "__main__":
    key = jax.random.PRNGKey(0)
    kx, kp = jax.random.split(key)

    encoded_space_dim = 16      # constructor arg; fc2_input_dim unused in Encoder
    batch = 2
    # Encoder requires 28x28 single-channel input (3*3*32 flatten size).
    x = jax.random.normal(kx, (batch, 1, 28, 28), jnp.float32)

    params = init_params(kp, encoded_space_dim)
    ops = prepare_operands(params, batch)        # one-time weight folding

    fwd = jax.jit(encoder_forward)
    out = fwd(x, ops)
    jax.block_until_ready(out)

    assert out.shape == (batch, encoded_space_dim), out.shape
    assert bool(jnp.all(jnp.isfinite(out)))

    ref = encoder_reference(x, params)
    err = float(jnp.max(jnp.abs(out - ref)))
    assert err < 1e-2, f"mismatch vs reference: {err}"

    print("KERNEL_OK")
</pallas_src>

<mosaic_0001>
module attributes {stable_mosaic.version = 11 : i64} {
  func.func @_encoder_kernel(%arg0: memref<56x28xf32, #tpu.memory_space<vmem>>, %arg1: memref<3x28x56xf32, #tpu.memory_space<vmem>>, %arg2: memref<3x28x112xf32, #tpu.memory_space<vmem>>, %arg3: memref<1x112xf32, #tpu.memory_space<vmem>>, %arg4: memref<3x14x28xf32, #tpu.memory_space<vmem>>, %arg5: memref<3x112x112xf32, #tpu.memory_space<vmem>>, %arg6: memref<1x112xf32, #tpu.memory_space<vmem>>, %arg7: memref<1x112xf32, #tpu.memory_space<vmem>>, %arg8: memref<1x112xf32, #tpu.memory_space<vmem>>, %arg9: memref<112x16xf32, #tpu.memory_space<vmem>>, %arg10: memref<16x112xf32, #tpu.memory_space<vmem>>, %arg11: memref<3x6x14xf32, #tpu.memory_space<vmem>>, %arg12: memref<3x112x96xf32, #tpu.memory_space<vmem>>, %arg13: memref<1x96xf32, #tpu.memory_space<vmem>>, %arg14: memref<3x2x6xf32, #tpu.memory_space<vmem>>, %arg15: memref<3x96x128xf32, #tpu.memory_space<vmem>>, %arg16: memref<1x128xf32, #tpu.memory_space<vmem>>, %arg17: memref<128x16xf32, #tpu.memory_space<vmem>>, %arg18: memref<1x16xf32, #tpu.memory_space<vmem>>, %arg19: memref<2x16xf32, #tpu.memory_space<vmem>>) attributes {dimension_semantics = [], scalar_prefetch = 0 : i64, scratch_operands = 0 : i64, tpu.core_type = #tpu.core_type<tc>} {
    %c0 = arith.constant 0 : index
    %c0_0 = arith.constant 0 : index
    %0 = vector.load %arg0[%c0, %c0_0] : memref<56x28xf32, #tpu.memory_space<vmem>>, vector<56x28xf32>
    %c0_1 = arith.constant 0 : index
    %c0_2 = arith.constant 0 : index
    %c0_3 = arith.constant 0 : index
    %1 = vector.load %arg1[%c0_1, %c0_2, %c0_3] : memref<3x28x56xf32, #tpu.memory_space<vmem>>, vector<1x28x56xf32>
    %2 = vector.shape_cast %1 : vector<1x28x56xf32> to vector<28x56xf32>
    %cst = arith.constant dense<0.000000e+00> : vector<28x28xf32>
    %3 = tpu.matmul %2, %0, %cst {dimension_numbers = #tpu.dot_dimension_numbers<[1], [0], [0], [1], [0, 0, 1, 1], [], []>, precision = #tpu.contract_precision<fp32>} : vector<28x56xf32>, vector<56x28xf32>, vector<28x28xf32> -> vector<28x28xf32>
    %c0_4 = arith.constant 0 : index
    %c0_5 = arith.constant 0 : index
    %c0_6 = arith.constant 0 : index
    %4 = vector.load %arg2[%c0_4, %c0_5, %c0_6] : memref<3x28x112xf32, #tpu.memory_space<vmem>>, vector<1x28x112xf32>
    %5 = vector.shape_cast %4 : vector<1x28x112xf32> to vector<28x112xf32>
    %cst_7 = arith.constant dense<0.000000e+00> : vector<28x112xf32>
    %6 = tpu.matmul %3, %5, %cst_7 {dimension_numbers = #tpu.dot_dimension_numbers<[1], [0], [0], [1], [0, 0, 1, 1], [], []>, precision = #tpu.contract_precision<fp32>} : vector<28x28xf32>, vector<28x112xf32>, vector<28x112xf32> -> vector<28x112xf32>
    %c1 = arith.constant 1 : index
    %c0_8 = arith.constant 0 : index
    %c0_9 = arith.constant 0 : index
    %7 = vector.load %arg1[%c1, %c0_8, %c0_9] : memref<3x28x56xf32, #tpu.memory_space<vmem>>, vector<1x28x56xf32>
    %8 = vector.shape_cast %7 : vector<1x28x56xf32> to vector<28x56xf32>
    %cst_10 = arith.constant dense<0.000000e+00> : vector<28x28xf32>
    %9 = tpu.matmul %8, %0, %cst_10 {dimension_numbers = #tpu.dot_dimension_numbers<[1], [0], [0], [1], [0, 0, 1, 1], [], []>, precision = #tpu.contract_precision<fp32>} : vector<28x56xf32>, vector<56x28xf32>, vector<28x28xf32> -> vector<28x28xf32>
    %c1_11 = arith.constant 1 : index
    %c0_12 = arith.constant 0 : index
    %c0_13 = arith.constant 0 : index
    %10 = vector.load %arg2[%c1_11, %c0_12, %c0_13] : memref<3x28x112xf32, #tpu.memory_space<vmem>>, vector<1x28x112xf32>
    %11 = vector.shape_cast %10 : vector<1x28x112xf32> to vector<28x112xf32>
    %cst_14 = arith.constant dense<0.000000e+00> : vector<28x112xf32>
    %12 = tpu.matmul %9, %11, %cst_14 {dimension_numbers = #tpu.dot_dimension_numbers<[1], [0], [0], [1], [0, 0, 1, 1], [], []>, precision = #tpu.contract_precision<fp32>} : vector<28x28xf32>, vector<28x112xf32>, vector<28x112xf32> -> vector<28x112xf32>
    %13 = arith.addf %6, %12 : vector<28x112xf32>
    %c2 = arith.constant 2 : index
    %c0_15 = arith.constant 0 : index
    %c0_16 = arith.constant 0 : index
    %14 = vector.load %arg1[%c2, %c0_15, %c0_16] : memref<3x28x56xf32, #tpu.memory_space<vmem>>, vector<1x28x56xf32>
    %15 = vector.shape_cast %14 : vector<1x28x56xf32> to vector<28x56xf32>
    %cst_17 = arith.constant dense<0.000000e+00> : vector<28x28xf32>
    %16 = tpu.matmul %15, %0, %cst_17 {dimension_numbers = #tpu.dot_dimension_numbers<[1], [0], [0], [1], [0, 0, 1, 1], [], []>, precision = #tpu.contract_precision<fp32>} : vector<28x56xf32>, vector<56x28xf32>, vector<28x28xf32> -> vector<28x28xf32>
    %c2_18 = arith.constant 2 : index
    %c0_19 = arith.constant 0 : index
    %c0_20 = arith.constant 0 : index
    %17 = vector.load %arg2[%c2_18, %c0_19, %c0_20] : memref<3x28x112xf32, #tpu.memory_space<vmem>>, vector<1x28x112xf32>
    %18 = vector.shape_cast %17 : vector<1x28x112xf32> to vector<28x112xf32>
    %cst_21 = arith.constant dense<0.000000e+00> : vector<28x112xf32>
    %19 = tpu.matmul %16, %18, %cst_21 {dimension_numbers = #tpu.dot_dimension_numbers<[1], [0], [0], [1], [0, 0, 1, 1], [], []>, precision = #tpu.contract_precision<fp32>} : vector<28x28xf32>, vector<28x112xf32>, vector<28x112xf32> -> vector<28x112xf32>
    %20 = arith.addf %13, %19 : vector<28x112xf32>
    %c0_22 = arith.constant 0 : index
    %c0_23 = arith.constant 0 : index
    %21 = vector.load %arg3[%c0_22, %c0_23] : memref<1x112xf32, #tpu.memory_space<vmem>>, vector<1x112xf32>
    %22 = vector.broadcast %21 : vector<1x112xf32> to vector<28x112xf32>
    %23 = arith.addf %20, %22 : vector<28x112xf32>
    %cst_24 = arith.constant 0.000000e+00 : f32
    %24 = vector.broadcast %cst_24 : f32 to vector<28x112xf32>
    %25 = arith.maximumf %23, %24 : vector<28x112xf32>
    %c0_25 = arith.constant 0 : index
    %c0_26 = arith.constant 0 : index
    %c0_27 = arith.constant 0 : index
    %26 = vector.load %arg4[%c0_25, %c0_26, %c0_27] : memref<3x14x28xf32, #tpu.memory_space<vmem>>, vector<1x14x28xf32>
    %27 = vector.shape_cast %26 : vector<1x14x28xf32> to vector<14x28xf32>
    %cst_28 = arith.constant dense<0.000000e+00> : vector<14x112xf32>
    %28 = tpu.matmul %27, %25, %cst_28 {dimension_numbers = #tpu.dot_dimension_numbers<[1], [0], [0], [1], [0, 0, 1, 1], [], []>, precision = #tpu.contract_precision<fp32>} : vector<14x28xf32>, vector<28x112xf32>, vector<14x112xf32> -> vector<14x112xf32>
    %c0_29 = arith.constant 0 : index
    %c0_30 = arith.constant 0 : index
    %c0_31 = arith.constant 0 : index
    %29 = vector.load %arg5[%c0_29, %c0_30, %c0_31] : memref<3x112x112xf32, #tpu.memory_space<vmem>>, vector<1x112x112xf32>
    %30 = vector.shape_cast %29 : vector<1x112x112xf32> to vector<112x112xf32>
    %cst_32 = arith.constant dense<0.000000e+00> : vector<14x112xf32>
    %31 = tpu.matmul %28, %30, %cst_32 {dimension_numbers = #tpu.dot_dimension_numbers<[1], [0], [0], [1], [0, 0, 1, 1], [], []>, precision = #tpu.contract_precision<fp32>} : vector<14x112xf32>, vector<112x112xf32>, vector<14x112xf32> -> vector<14x112xf32>
    %c1_33 = arith.constant 1 : index
    %c0_34 = arith.constant 0 : index
    %c0_35 = arith.constant 0 : index
    %32 = vector.load %arg4[%c1_33, %c0_34, %c0_35] : memref<3x14x28xf32, #tpu.memory_space<vmem>>, vector<1x14x28xf32>
    %33 = vector.shape_cast %32 : vector<1x14x28xf32> to vector<14x28xf32>
    %cst_36 = arith.constant dense<0.000000e+00> : vector<14x112xf32>
    %34 = tpu.matmul %33, %25, %cst_36 {dimension_numbers = #tpu.dot_dimension_numbers<[1], [0], [0], [1], [0, 0, 1, 1], [], []>, precision = #tpu.contract_precision<fp32>} : vector<14x28xf32>, vector<28x112xf32>, vector<14x112xf32> -> vector<14x112xf32>
    %c1_37 = arith.constant 1 : index
    %c0_38 = arith.constant 0 : index
    %c0_39 = arith.constant 0 : index
    %35 = vector.load %arg5[%c1_37, %c0_38, %c0_39] : memref<3x112x112xf32, #tpu.memory_space<vmem>>, vector<1x112x112xf32>
    %36 = vector.shape_cast %35 : vector<1x112x112xf32> to vector<112x112xf32>
    %cst_40 = arith.constant dense<0.000000e+00> : vector<14x112xf32>
    %37 = tpu.matmul %34, %36, %cst_40 {dimension_numbers = #tpu.dot_dimension_numbers<[1], [0], [0], [1], [0, 0, 1, 1], [], []>, precision = #tpu.contract_precision<fp32>} : vector<14x112xf32>, vector<112x112xf32>, vector<14x112xf32> -> vector<14x112xf32>
    %38 = arith.addf %31, %37 : vector<14x112xf32>
    %c2_41 = arith.constant 2 : index
    %c0_42 = arith.constant 0 : index
    %c0_43 = arith.constant 0 : index
    %39 = vector.load %arg4[%c2_41, %c0_42, %c0_43] : memref<3x14x28xf32, #tpu.memory_space<vmem>>, vector<1x14x28xf32>
    %40 = vector.shape_cast %39 : vector<1x14x28xf32> to vector<14x28xf32>
    %cst_44 = arith.constant dense<0.000000e+00> : vector<14x112xf32>
    %41 = tpu.matmul %40, %25, %cst_44 {dimension_numbers = #tpu.dot_dimension_numbers<[1], [0], [0], [1], [0, 0, 1, 1], [], []>, precision = #tpu.contract_precision<fp32>} : vector<14x28xf32>, vector<28x112xf32>, vector<14x112xf32> -> vector<14x112xf32>
    %c2_45 = arith.constant 2 : index
    %c0_46 = arith.constant 0 : index
    %c0_47 = arith.constant 0 : index
    %42 = vector.load %arg5[%c2_45, %c0_46, %c0_47] : memref<3x112x112xf32, #tpu.memory_space<vmem>>, vector<1x112x112xf32>
    %43 = vector.shape_cast %42 : vector<1x112x112xf32> to vector<112x112xf32>
    %cst_48 = arith.constant dense<0.000000e+00> : vector<14x112xf32>
    %44 = tpu.matmul %41, %43, %cst_48 {dimension_numbers = #tpu.dot_dimension_numbers<[1], [0], [0], [1], [0, 0, 1, 1], [], []>, precision = #tpu.contract_precision<fp32>} : vector<14x112xf32>, vector<112x112xf32>, vector<14x112xf32> -> vector<14x112xf32>
    %45 = arith.addf %38, %44 : vector<14x112xf32>
    %c0_49 = arith.constant 0 : index
    %c0_50 = arith.constant 0 : index
    %46 = vector.load %arg6[%c0_49, %c0_50] : memref<1x112xf32, #tpu.memory_space<vmem>>, vector<1x112xf32>
    %47 = vector.broadcast %46 : vector<1x112xf32> to vector<14x112xf32>
    %48 = arith.addf %45, %47 : vector<14x112xf32>
    %cst_51 = arith.constant dense<0.000000e+00> : vector<112xf32>
    %49 = vector.multi_reduction <add>, %48, %cst_51 [0] : vector<14x112xf32> to vector<112xf32>
    %50 = vector.shape_cast %49 : vector<112xf32> to vector<1x112xf32>
    %cst_52 = arith.constant 1.400000e+01 : f32
    %51 = vector.broadcast %cst_52 : f32 to vector<1x112xf32>
    %52 = arith.divf %50, %51 : vector<1x112xf32>
    %c0_53 = arith.constant 0 : index
    %c0_54 = arith.constant 0 : index
    %53 = vector.load %arg9[%c0_53, %c0_54] : memref<112x16xf32, #tpu.memory_space<vmem>>, vector<112x16xf32>
    %cst_55 = arith.constant dense<0.000000e+00> : vector<1x16xf32>
    %54 = tpu.matmul %52, %53, %cst_55 {dimension_numbers = #tpu.dot_dimension_numbers<[1], [0], [0], [1], [0, 0, 1, 1], [], []>, precision = #tpu.contract_precision<fp32>} : vector<1x112xf32>, vector<112x16xf32>, vector<1x16xf32> -> vector<1x16xf32>
    %c0_56 = arith.constant 0 : index
    %c0_57 = arith.constant 0 : index
    %55 = vector.load %arg10[%c0_56, %c0_57] : memref<16x112xf32, #tpu.memory_space<vmem>>, vector<16x112xf32>
    %cst_58 = arith.constant dense<0.000000e+00> : vector<1x112xf32>
    %56 = tpu.matmul %54, %55, %cst_58 {dimension_numbers = #tpu.dot_dimension_numbers<[1], [0], [0], [1], [0, 0, 1, 1], [], []>, precision = #tpu.contract_precision<fp32>} : vector<1x16xf32>, vector<16x112xf32>, vector<1x112xf32> -> vector<1x112xf32>
    %57 = vector.broadcast %56 : vector<1x112xf32> to vector<14x112xf32>
    %58 = arith.subf %48, %57 : vector<14x112xf32>
    %59 = arith.mulf %58, %58 : vector<14x112xf32>
    %cst_59 = arith.constant dense<0.000000e+00> : vector<112xf32>
    %60 = vector.multi_reduction <add>, %59, %cst_59 [0] : vector<14x112xf32> to vector<112xf32>
    %61 = vector.shape_cast %60 : vector<112xf32> to vector<1x112xf32>
    %cst_60 = arith.constant 1.400000e+01 : f32
    %62 = vector.broadcast %cst_60 : f32 to vector<1x112xf32>
    %63 = arith.divf %61, %62 : vector<1x112xf32>
    %c0_61 = arith.constant 0 : index
    %c0_62 = arith.constant 0 : index
    %64 = vector.load %arg9[%c0_61, %c0_62] : memref<112x16xf32, #tpu.memory_space<vmem>>, vector<112x16xf32>
    %cst_63 = arith.constant dense<0.000000e+00> : vector<1x16xf32>
    %65 = tpu.matmul %63, %64, %cst_63 {dimension_numbers = #tpu.dot_dimension_numbers<[1], [0], [0], [1], [0, 0, 1, 1], [], []>, precision = #tpu.contract_precision<fp32>} : vector<1x112xf32>, vector<112x16xf32>, vector<1x16xf32> -> vector<1x16xf32>
    %c0_64 = arith.constant 0 : index
    %c0_65 = arith.constant 0 : index
    %66 = vector.load %arg10[%c0_64, %c0_65] : memref<16x112xf32, #tpu.memory_space<vmem>>, vector<16x112xf32>
    %cst_66 = arith.constant dense<0.000000e+00> : vector<1x112xf32>
    %67 = tpu.matmul %65, %66, %cst_66 {dimension_numbers = #tpu.dot_dimension_numbers<[1], [0], [0], [1], [0, 0, 1, 1], [], []>, precision = #tpu.contract_precision<fp32>} : vector<1x16xf32>, vector<16x112xf32>, vector<1x112xf32> -> vector<1x112xf32>
    %cst_67 = arith.constant 9.99999974E-6 : f32
    %68 = vector.broadcast %cst_67 : f32 to vector<1x112xf32>
    %69 = arith.addf %67, %68 : vector<1x112xf32>
    %70 = math.rsqrt %69 : vector<1x112xf32>
    %71 = vector.broadcast %70 : vector<1x112xf32> to vector<14x112xf32>
    %72 = arith.mulf %58, %71 : vector<14x112xf32>
    %c0_68 = arith.constant 0 : index
    %c0_69 = arith.constant 0 : index
    %73 = vector.load %arg7[%c0_68, %c0_69] : memref<1x112xf32, #tpu.memory_space<vmem>>, vector<1x112xf32>
    %74 = vector.broadcast %73 : vector<1x112xf32> to vector<14x112xf32>
    %75 = arith.mulf %72, %74 : vector<14x112xf32>
    %c0_70 = arith.constant 0 : index
    %c0_71 = arith.constant 0 : index
    %76 = vector.load %arg8[%c0_70, %c0_71] : memref<1x112xf32, #tpu.memory_space<vmem>>, vector<1x112xf32>
    %77 = vector.broadcast %76 : vector<1x112xf32> to vector<14x112xf32>
    %78 = arith.addf %75, %77 : vector<14x112xf32>
    %cst_72 = arith.constant 0.000000e+00 : f32
    %79 = vector.broadcast %cst_72 : f32 to vector<14x112xf32>
    %80 = arith.maximumf %78, %79 : vector<14x112xf32>
    %c0_73 = arith.constant 0 : index
    %c0_74 = arith.constant 0 : index
    %c0_75 = arith.constant 0 : index
    %81 = vector.load %arg11[%c0_73, %c0_74, %c0_75] : memref<3x6x14xf32, #tpu.memory_space<vmem>>, vector<1x6x14xf32>
    %82 = vector.shape_cast %81 : vector<1x6x14xf32> to vector<6x14xf32>
    %cst_76 = arith.constant dense<0.000000e+00> : vector<6x112xf32>
    %83 = tpu.matmul %82, %80, %cst_76 {dimension_numbers = #tpu.dot_dimension_numbers<[1], [0], [0], [1], [0, 0, 1, 1], [], []>, precision = #tpu.contract_precision<fp32>} : vector<6x14xf32>, vector<14x112xf32>, vector<6x112xf32> -> vector<6x112xf32>
    %c0_77 = arith.constant 0 : index
    %c0_78 = arith.constant 0 : index
    %c0_79 = arith.constant 0 : index
    %84 = vector.load %arg12[%c0_77, %c0_78, %c0_79] : memref<3x112x96xf32, #tpu.memory_space<vmem>>, vector<1x112x96xf32>
    %85 = vector.shape_cast %84 : vector<1x112x96xf32> to vector<112x96xf32>
    %cst_80 = arith.constant dense<0.000000e+00> : vector<6x96xf32>
    %86 = tpu.matmul %83, %85, %cst_80 {dimension_numbers = #tpu.dot_dimension_numbers<[1], [0], [0], [1], [0, 0, 1, 1], [], []>, precision = #tpu.contract_precision<fp32>} : vector<6x112xf32>, vector<112x96xf32>, vector<6x96xf32> -> vector<6x96xf32>
    %c1_81 = arith.constant 1 : index
    %c0_82 = arith.constant 0 : index
    %c0_83 = arith.constant 0 : index
    %87 = vector.load %arg11[%c1_81, %c0_82, %c0_83] : memref<3x6x14xf32, #tpu.memory_space<vmem>>, vector<1x6x14xf32>
    %88 = vector.shape_cast %87 : vector<1x6x14xf32> to vector<6x14xf32>
    %cst_84 = arith.constant dense<0.000000e+00> : vector<6x112xf32>
    %89 = tpu.matmul %88, %80, %cst_84 {dimension_numbers = #tpu.dot_dimension_numbers<[1], [0], [0], [1], [0, 0, 1, 1], [], []>, precision = #tpu.contract_precision<fp32>} : vector<6x14xf32>, vector<14x112xf32>, vector<6x112xf32> -> vector<6x112xf32>
    %c1_85 = arith.constant 1 : index
    %c0_86 = arith.constant 0 : index
    %c0_87 = arith.constant 0 : index
    %90 = vector.load %arg12[%c1_85, %c0_86, %c0_87] : memref<3x112x96xf32, #tpu.memory_space<vmem>>, vector<1x112x96xf32>
    %91 = vector.shape_cast %90 : vector<1x112x96xf32> to vector<112x96xf32>
    %cst_88 = arith.constant dense<0.000000e+00> : vector<6x96xf32>
    %92 = tpu.matmul %89, %91, %cst_88 {dimension_numbers = #tpu.dot_dimension_numbers<[1], [0], [0], [1], [0, 0, 1, 1], [], []>, precision = #tpu.contract_precision<fp32>} : vector<6x112xf32>, vector<112x96xf32>, vector<6x96xf32> -> vector<6x96xf32>
    %93 = arith.addf %86, %92 : vector<6x96xf32>
    %c2_89 = arith.constant 2 : index
    %c0_90 = arith.constant 0 : index
    %c0_91 = arith.constant 0 : index
    %94 = vector.load %arg11[%c2_89, %c0_90, %c0_91] : memref<3x6x14xf32, #tpu.memory_space<vmem>>, vector<1x6x14xf32>
    %95 = vector.shape_cast %94 : vector<1x6x14xf32> to vector<6x14xf32>
    %cst_92 = arith.constant dense<0.000000e+00> : vector<6x112xf32>
    %96 = tpu.matmul %95, %80, %cst_92 {dimension_numbers = #tpu.dot_dimension_numbers<[1], [0], [0], [1], [0, 0, 1, 1], [], []>, precision = #tpu.contract_precision<fp32>} : vector<6x14xf32>, vector<14x112xf32>, vector<6x112xf32> -> vector<6x112xf32>
    %c2_93 = arith.constant 2 : index
    %c0_94 = arith.constant 0 : index
    %c0_95 = arith.constant 0 : index
    %97 = vector.load %arg12[%c2_93, %c0_94, %c0_95] : memref<3x112x96xf32, #tpu.memory_space<vmem>>, vector<1x112x96xf32>
    %98 = vector.shape_cast %97 : vector<1x112x96xf32> to vector<112x96xf32>
    %cst_96 = arith.constant dense<0.000000e+00> : vector<6x96xf32>
    %99 = tpu.matmul %96, %98, %cst_96 {dimension_numbers = #tpu.dot_dimension_numbers<[1], [0], [0], [1], [0, 0, 1, 1], [], []>, precision = #tpu.contract_precision<fp32>} : vector<6x112xf32>, vector<112x96xf32>, vector<6x96xf32> -> vector<6x96xf32>
    %100 = arith.addf %93, %99 : vector<6x96xf32>
    %c0_97 = arith.constant 0 : index
    %c0_98 = arith.constant 0 : index
    %101 = vector.load %arg13[%c0_97, %c0_98] : memref<1x96xf32, #tpu.memory_space<vmem>>, vector<1x96xf32>
    %102 = vector.broadcast %101 : vector<1x96xf32> to vector<6x96xf32>
    %103 = arith.addf %100, %102 : vector<6x96xf32>
    %cst_99 = arith.constant 0.000000e+00 : f32
    %104 = vector.broadcast %cst_99 : f32 to vector<6x96xf32>
    %105 = arith.maximumf %103, %104 : vector<6x96xf32>
    %c0_100 = arith.constant 0 : index
    %c0_101 = arith.constant 0 : index
    %c0_102 = arith.constant 0 : index
    %106 = vector.load %arg14[%c0_100, %c0_101, %c0_102] : memref<3x2x6xf32, #tpu.memory_space<vmem>>, vector<1x2x6xf32>
    %107 = vector.shape_cast %106 : vector<1x2x6xf32> to vector<2x6xf32>
    %cst_103 = arith.constant dense<0.000000e+00> : vector<2x96xf32>
    %108 = tpu.matmul %107, %105, %cst_103 {dimension_numbers = #tpu.dot_dimension_numbers<[1], [0], [0], [1], [0, 0, 1, 1], [], []>, precision = #tpu.contract_precision<fp32>} : vector<2x6xf32>, vector<6x96xf32>, vector<2x96xf32> -> vector<2x96xf32>
    %c0_104 = arith.constant 0 : index
    %c0_105 = arith.constant 0 : index
    %c0_106 = arith.constant 0 : index
    %109 = vector.load %arg15[%c0_104, %c0_105, %c0_106] : memref<3x96x128xf32, #tpu.memory_space<vmem>>, vector<1x96x128xf32>
    %110 = vector.shape_cast %109 : vector<1x96x128xf32> to vector<96x128xf32>
    %cst_107 = arith.constant dense<0.000000e+00> : vector<2x128xf32>
    %111 = tpu.matmul %108, %110, %cst_107 {dimension_numbers = #tpu.dot_dimension_numbers<[1], [0], [0], [1], [0, 0, 1, 1], [], []>, precision = #tpu.contract_precision<fp32>} : vector<2x96xf32>, vector<96x128xf32>, vector<2x128xf32> -> vector<2x128xf32>
    %c1_108 = arith.constant 1 : index
    %c0_109 = arith.constant 0 : index
    %c0_110 = arith.constant 0 : index
    %112 = vector.load %arg14[%c1_108, %c0_109, %c0_110] : memref<3x2x6xf32, #tpu.memory_space<vmem>>, vector<1x2x6xf32>
    %113 = vector.shape_cast %112 : vector<1x2x6xf32> to vector<2x6xf32>
    %cst_111 = arith.constant dense<0.000000e+00> : vector<2x96xf32>
    %114 = tpu.matmul %113, %105, %cst_111 {dimension_numbers = #tpu.dot_dimension_numbers<[1], [0], [0], [1], [0, 0, 1, 1], [], []>, precision = #tpu.contract_precision<fp32>} : vector<2x6xf32>, vector<6x96xf32>, vector<2x96xf32> -> vector<2x96xf32>
    %c1_112 = arith.constant 1 : index
    %c0_113 = arith.constant 0 : index
    %c0_114 = arith.constant 0 : index
    %115 = vector.load %arg15[%c1_112, %c0_113, %c0_114] : memref<3x96x128xf32, #tpu.memory_space<vmem>>, vector<1x96x128xf32>
    %116 = vector.shape_cast %115 : vector<1x96x128xf32> to vector<96x128xf32>
    %cst_115 = arith.constant dense<0.000000e+00> : vector<2x128xf32>
    %117 = tpu.matmul %114, %116, %cst_115 {dimension_numbers = #tpu.dot_dimension_numbers<[1], [0], [0], [1], [0, 0, 1, 1], [], []>, precision = #tpu.contract_precision<fp32>} : vector<2x96xf32>, vector<96x128xf32>, vector<2x128xf32> -> vector<2x128xf32>
    %118 = arith.addf %111, %117 : vector<2x128xf32>
    %c2_116 = arith.constant 2 : index
    %c0_117 = arith.constant 0 : index
    %c0_118 = arith.constant 0 : index
    %119 = vector.load %arg14[%c2_116, %c0_117, %c0_118] : memref<3x2x6xf32, #tpu.memory_space<vmem>>, vector<1x2x6xf32>
    %120 = vector.shape_cast %119 : vector<1x2x6xf32> to vector<2x6xf32>
    %cst_119 = arith.constant dense<0.000000e+00> : vector<2x96xf32>
    %121 = tpu.matmul %120, %105, %cst_119 {dimension_numbers = #tpu.dot_dimension_numbers<[1], [0], [0], [1], [0, 0, 1, 1], [], []>, precision = #tpu.contract_precision<fp32>} : vector<2x6xf32>, vector<6x96xf32>, vector<2x96xf32> -> vector<2x96xf32>
    %c2_120 = arith.constant 2 : index
    %c0_121 = arith.constant 0 : index
    %c0_122 = arith.constant 0 : index
    %122 = vector.load %arg15[%c2_120, %c0_121, %c0_122] : memref<3x96x128xf32, #tpu.memory_space<vmem>>, vector<1x96x128xf32>
    %123 = vector.shape_cast %122 : vector<1x96x128xf32> to vector<96x128xf32>
    %cst_123 = arith.constant dense<0.000000e+00> : vector<2x128xf32>
    %124 = tpu.matmul %121, %123, %cst_123 {dimension_numbers = #tpu.dot_dimension_numbers<[1], [0], [0], [1], [0, 0, 1, 1], [], []>, precision = #tpu.contract_precision<fp32>} : vector<2x96xf32>, vector<96x128xf32>, vector<2x128xf32> -> vector<2x128xf32>
    %125 = arith.addf %118, %124 : vector<2x128xf32>
    %c0_124 = arith.constant 0 : index
    %c0_125 = arith.constant 0 : index
    %126 = vector.load %arg16[%c0_124, %c0_125] : memref<1x128xf32, #tpu.memory_space<vmem>>, vector<1x128xf32>
    %127 = vector.broadcast %126 : vector<1x128xf32> to vector<2x128xf32>
    %128 = arith.addf %125, %127 : vector<2x128xf32>
    %cst_126 = arith.constant 0.000000e+00 : f32
    %129 = vector.broadcast %cst_126 : f32 to vector<2x128xf32>
    %130 = arith.maximumf %128, %129 : vector<2x128xf32>
    %c0_127 = arith.constant 0 : index
    %c0_128 = arith.constant 0 : index
    %131 = vector.load %arg17[%c0_127, %c0_128] : memref<128x16xf32, #tpu.memory_space<vmem>>, vector<128x16xf32>
    %cst_129 = arith.constant dense<0.000000e+00> : vector<2x16xf32>
    %132 = tpu.matmul %130, %131, %cst_129 {dimension_numbers = #tpu.dot_dimension_numbers<[1], [0], [0], [1], [0, 0, 1, 1], [], []>, precision = #tpu.contract_precision<fp32>} : vector<2x128xf32>, vector<128x16xf32>, vector<2x16xf32> -> vector<2x16xf32>
    %c0_130 = arith.constant 0 : index
    %c0_131 = arith.constant 0 : index
    %133 = vector.load %arg18[%c0_130, %c0_131] : memref<1x16xf32, #tpu.memory_space<vmem>>, vector<1x16xf32>
    %134 = vector.broadcast %133 : vector<1x16xf32> to vector<2x16xf32>
    %135 = arith.addf %132, %134 : vector<2x16xf32>
    %cst_132 = arith.constant dense<0.000000e+00> : vector<2xf32>
    %136 = vector.multi_reduction <add>, %135, %cst_132 [1] : vector<2x16xf32> to vector<2xf32>
    %137 = vector.shape_cast %136 : vector<2xf32> to vector<2x1xf32>
    %cst_133 = arith.constant 1.600000e+01 : f32
    %138 = vector.broadcast %cst_133 : f32 to vector<2x1xf32>
    %139 = arith.divf %137, %138 : vector<2x1xf32>
    %140 = vector.broadcast %139 : vector<2x1xf32> to vector<2x16xf32>
    %141 = arith.subf %135, %140 : vector<2x16xf32>
    %142 = arith.mulf %141, %141 : vector<2x16xf32>
    %cst_134 = arith.constant dense<0.000000e+00> : vector<2xf32>
    %143 = vector.multi_reduction <add>, %142, %cst_134 [1] : vector<2x16xf32> to vector<2xf32>
    %144 = vector.shape_cast %143 : vector<2xf32> to vector<2x1xf32>
    %cst_135 = arith.constant 1.600000e+01 : f32
    %145 = vector.broadcast %cst_135 : f32 to vector<2x1xf32>
    %146 = arith.divf %144, %145 : vector<2x1xf32>
    %147 = vector.broadcast %139 : vector<2x1xf32> to vector<2x16xf32>
    %148 = arith.subf %135, %147 : vector<2x16xf32>
    %cst_136 = arith.constant 9.99999974E-6 : f32
    %149 = vector.broadcast %cst_136 : f32 to vector<2x1xf32>
    %150 = arith.addf %146, %149 : vector<2x1xf32>
    %151 = math.rsqrt %150 : vector<2x1xf32>
    %152 = vector.broadcast %151 : vector<2x1xf32> to vector<2x16xf32>
    %153 = arith.mulf %148, %152 : vector<2x16xf32>
    %c0_137 = arith.constant 0 : index
    %c0_138 = arith.constant 0 : index
    %154 = vector.load %arg19[%c0_137, %c0_138] : memref<2x16xf32, #tpu.memory_space<vmem>>, vector<2x16xf32>
    tpu.vector_store %arg19[%c0_137, %c0_138], %153 {strides = array<i32>} : memref<2x16xf32, #tpu.memory_space<vmem>>, vector<2x16xf32>,
    return
  }
}

</mosaic_0001>

<bundles_post_ra>
// kernel: encoder_forward.1
= control target key start
LH: loop header
LB: loop body
LE: loop exit
PB: predicated region body
PF: predicated region fallthrough
CT: control target
= control target key end

     0   :  { %s29886_s0 = inlined_call_operand.hbm [shape: f32[56,28], index: 0, kind: input, shape index: {}]   ;;  %s29887_s1 = inlined_call_operand.hbm [shape: f32[3,28,56], index: 1, kind: input, shape index: {}]   ;;  %s29888_s2 = inlined_call_operand.hbm [shape: f32[3,28,112], index: 2, kind: input, shape index: {}]   ;;  %s29889_s3 = inlined_call_operand.hbm [shape: f32[1,112], index: 3, kind: input, shape index: {}]   ;;  %s29890_s4 = inlined_call_operand.hbm [shape: f32[3,14,28], index: 4, kind: input, shape index: {}]   ;;  %s29891_s5 = inlined_call_operand.vmem [shape: f32[3,112,112], index: 5, kind: input, shape index: {}]   ;;  %s29892_s6 = inlined_call_operand.hbm [shape: f32[1,112], index: 6, kind: input, shape index: {}]   ;;  %s29893_s7 = inlined_call_operand.hbm [shape: f32[1,112], index: 7, kind: input, shape index: {}]   ;;  %s29894_s8 = inlined_call_operand.hbm [shape: f32[1,112], index: 8, kind: input, shape index: {}]   ;;  %s29895_s9 = inlined_call_operand.vmem [shape: f32[112,16], index: 9, kind: input, shape index: {}]   ;;  %s29896_s10 = inlined_call_operand.hbm [shape: f32[16,112], index: 10, kind: input, shape index: {}]   ;;  %s29897_s11 = inlined_call_operand.vmem [shape: f32[3,6,14], index: 11, kind: input, shape index: {}]   ;;  %s29898_s12 = inlined_call_operand.vmem [shape: f32[3,112,96], index: 12, kind: input, shape index: {}]   ;;  %s29899_s13 = inlined_call_operand.hbm [shape: f32[1,96], index: 13, kind: input, shape index: {}]   ;;  %s29900_s14 = inlined_call_operand.hbm [shape: f32[3,2,6], index: 14, kind: input, shape index: {}]   ;;  %s29901_s15 = inlined_call_operand.vmem [shape: f32[3,96,128], index: 15, kind: input, shape index: {}]   ;;  %s29902_s16 = inlined_call_operand.hbm [shape: f32[1,128], index: 16, kind: input, shape index: {}]   ;;  %s29903_s17 = inlined_call_operand.vmem [shape: f32[128,16], index: 17, kind: input, shape index: {}]   ;;  %s29904_s18 = inlined_call_operand.vmem [shape: f32[1,16], index: 18, kind: input, shape index: {}]   ;;  %s29905_s19 = inlined_call_operand.hbm [shape: f32[2,16], index: 19, kind: output, shape index: {}]  }
   0x1   :  { %29934 = sst [smem:[#allocation31_spill]] %s29886_s0 }
   0x2   :  { %29935 = sst [smem:[#allocation32_spill]] %s29887_s1 }
   0x3   :  { %29936 = sst [smem:[#allocation33_spill]] %s29888_s2 }
   0x4   :  { %29937 = sst [smem:[#allocation34_spill]] %s29889_s3 }
   0x5   :  { %24 = vsyncpa [#allocation3], 0 }
   0x6   :  { %25 = vsyncpa [#allocation6], 0 }
   0x7   :  { %26 = vsyncpa [#allocation9], 0 }
   0x8   :  { %27 = vsyncpa [#allocation12], 0 }
   0x9   :  { %28 = vsyncpa [#allocation15], 0 }
   0xa   :  { %29 = vsyncpa [#allocation18], 0 }
   0xb   :  { %30 = vsyncpa [#allocation21], 0 }
   0xc   :  { %31 = vsyncpa [#allocation4], 0  ;;  %s25092_s0 = smov [#allocation5]   ;;  %s25093_s20 = smov [#allocation8]  }
   0xd   :  { %s49_s30 = sshll.u32 %s25092_s0, 4  ;;  %s74_s21 = sshll.u32 %s25093_s20, 4  ;;  %s50_s30 = int_to_ptr.vmem [resolvable:$true] %s49_s30  ;;  %s25212_s21 = int_to_ptr.vmem [resolvable:$true] %s74_s21 }
   0xe   :  { %s29938_s2 = sld [smem:[#allocation32_spill]] }
  0x14   :  { %s24790_s23 = scalar_lea.hbm %s29938_s2, 1536 }
  0x15   :  { %p24791_p0 = scmp.ne.s32.totalorder %s29938_s2, %s24790_s23  ;;  %p24794_p1 = scmp.lt.u32.totalorder %s24790_s23, %s29938_s2 }
  0x17   :  { %p24796_p2 = pnand %p24794_p1, %p24791_p0 }
  0x19   :  { %24799 = shalt.err (!%p24796_p2)
}
  0x1a   :  { %s24800_s27 = scalar_lea.vmem %s50_s30, 1536  ;;  %p24805_p4 = scmp.lt.s32.totalorder %s50_s30, %s50_s30 }
  0x1b   :  { %p24801_p3 = scmp.ne.s32.totalorder %s50_s30, %s24800_s27  ;;  %p24806_p5 = scmp.lt.s32.totalorder %s24800_s27, %s24800_s27 }
  0x1d   :  { %p24807_p6 = por %p24806_p5, %p24805_p4 }
  0x1f   :  { %p24808_p7 = pnand %p24807_p6, %p24801_p3 }
  0x21   :  { %24811 = shalt.err (!%p24808_p7)
}
  0x22   :  { %s29910_s28 = smov 128   ;;  %s29912_s29 = smov 8  }
  0x23   :  { %55 = dma.hbm_to_vmem [thread:$0]  %s29938_s2, 1536, %s50_s30, [#allocation6], %s29910_s28, %s29910_s28, %s29912_s29  }
  0x24   :  { %s29939_s23 = sld [smem:[#allocation34_spill]] }
  0x2a   :  { %s24812_s24 = scalar_lea.hbm %s29939_s23, 16 }
  0x2b   :  { %p24813_p8 = scmp.ne.s32.totalorder %s29939_s23, %s24812_s24  ;;  %p24816_p9 = scmp.lt.u32.totalorder %s24812_s24, %s29939_s23 }
  0x2d   :  { %p24818_p10 = pnand %p24816_p9, %p24813_p8 }
  0x2f   :  { %24821 = shalt.err (!%p24818_p10)
}
  0x30   :  { %s24822_s0 = scalar_lea.vmem %s25212_s21, 16  ;;  %s24826_s30 = scalar_lea.vmem %s25212_s21, 32 }
  0x31   :  { %p24823_p11 = scmp.ne.s32.totalorder %s25212_s21, %s24822_s0  ;;  %p24827_p12 = scmp.lt.s32.totalorder %s25212_s21, %s25212_s21 }
  0x32   :  { %p24828_p13 = scmp.lt.s32.totalorder %s24826_s30, %s24822_s0 }
  0x34   :  { %p24829_p0 = por %p24828_p13, %p24827_p12 }
  0x36   :  { %p24830_p1 = pnand %p24829_p0, %p24823_p11 }
  0x38   :  { %24833 = shalt.err (!%p24830_p1)
}
  0x39   :  { %77 = dma.hbm_to_vmem [thread:$0]  %s29939_s23, 16, %s25212_s21, [#allocation9]  }
  0x3a   :  { %s25096_s1 = smov [#allocation11]   ;;  %s25097_s24 = smov [#allocation14]  }
  0x3b   :  { %s98_s22 = sshll.u32 %s25096_s1, 4  ;;  %s118_s25 = sshll.u32 %s25097_s24, 4  ;;  %s99_s22 = int_to_ptr.vmem [resolvable:$true] %s98_s22  ;;  %s119_s25 = int_to_ptr.vmem [resolvable:$true] %s118_s25 }
  0x3c   :  { %s24834_s27 = scalar_lea.hbm %s29892_s6, 16 }
  0x3d   :  { %p24835_p2 = scmp.ne.s32.totalorder %s29892_s6, %s24834_s27  ;;  %p24838_p3 = scmp.lt.u32.totalorder %s24834_s27, %s29892_s6 }
  0x3f   :  { %p24840_p4 = pnand %p24838_p3, %p24835_p2 }
  0x41   :  { %24843 = shalt.err (!%p24840_p4)
}
  0x42   :  { %s24844_s21 = scalar_lea.vmem %s99_s22, 16  ;;  %s24848_s23 = scalar_lea.vmem %s99_s22, 32 }
  0x43   :  { %p24845_p5 = scmp.ne.s32.totalorder %s99_s22, %s24844_s21  ;;  %p24849_p6 = scmp.lt.s32.totalorder %s99_s22, %s99_s22 }
  0x44   :  { %p24850_p7 = scmp.lt.s32.totalorder %s24848_s23, %s24844_s21 }
  0x46   :  { %p24851_p8 = por %p24850_p7, %p24849_p6 }
  0x48   :  { %p24852_p9 = pnand %p24851_p8, %p24845_p5 }
  0x4a   :  { %24855 = shalt.err (!%p24852_p9)
}
  0x4b   :  { %101 = dma.hbm_to_vmem [thread:$0]  %s29892_s6, 16, %s99_s22, [#allocation12]  }
  0x4c   :  { %s24856_s24 = scalar_lea.hbm %s29894_s8, 16 }
  0x4d   :  { %p24857_p10 = scmp.ne.s32.totalorder %s29894_s8, %s24856_s24  ;;  %p24860_p11 = scmp.lt.u32.totalorder %s24856_s24, %s29894_s8 }
  0x4f   :  { %p24862_p12 = pnand %p24860_p11, %p24857_p10 }
  0x51   :  { %24865 = shalt.err (!%p24862_p12)
}
  0x52   :  { %s24866_s0 = scalar_lea.vmem %s119_s25, 16  ;;  %s24870_s30 = scalar_lea.vmem %s119_s25, 32 }
  0x53   :  { %p24867_p13 = scmp.ne.s32.totalorder %s119_s25, %s24866_s0  ;;  %p24871_p0 = scmp.lt.s32.totalorder %s119_s25, %s119_s25 }
  0x54   :  { %p24872_p1 = scmp.lt.s32.totalorder %s24870_s30, %s24866_s0 }
  0x56   :  { %p24873_p2 = por %p24872_p1, %p24871_p0 }
  0x58   :  { %p24874_p3 = pnand %p24873_p2, %p24867_p13 }
  0x5a   :  { %24877 = shalt.err (!%p24874_p3)
}
  0x5b   :  { %121 = dma.hbm_to_vmem [thread:$0]  %s29894_s8, 16, %s119_s25, [#allocation15]  }
  0x5c   :  { %s25098_s21 = smov [#allocation17]   ;;  %s25099_s2 = smov [#allocation2]  }
  0x5d   :  { %s146_s23 = sshll.u32 %s25098_s21, 4  ;;  %s37_s20 = sshll.u32 %s25099_s2, 4  ;;  %s147_s23 = int_to_ptr.vmem [resolvable:$true] %s146_s23  ;;  %s25271_s20 = int_to_ptr.vmem [resolvable:$true] %s37_s20 }
  0x5e   :  { %s24878_s24 = scalar_lea.hbm %s29899_s13, 16 }
  0x5f   :  { %p24879_p4 = scmp.ne.s32.totalorder %s29899_s13, %s24878_s24  ;;  %p24882_p5 = scmp.lt.u32.totalorder %s24878_s24, %s29899_s13 }
  0x61   :  { %p24884_p6 = pnand %p24882_p5, %p24879_p4 }
  0x63   :  { %24887 = shalt.err (!%p24884_p6)
}
  0x64   :  { %s24888_s8 = scalar_lea.vmem %s147_s23, 16  ;;  %s24892_s25 = scalar_lea.vmem %s147_s23, 32 }
  0x65   :  { %p24889_p7 = scmp.ne.s32.totalorder %s147_s23, %s24888_s8  ;;  %p24893_p8 = scmp.lt.s32.totalorder %s147_s23, %s147_s23 }
  0x66   :  { %p24894_p9 = scmp.lt.s32.totalorder %s24892_s25, %s24888_s8 }
  0x68   :  { %p24895_p10 = por %p24894_p9, %p24893_p8 }
  0x6a   :  { %p24896_p11 = pnand %p24895_p10, %p24889_p7 }
  0x6c   :  { %24899 = shalt.err (!%p24896_p11)
}
  0x6d   :  { %149 = dma.hbm_to_vmem [thread:$0]  %s29899_s13, 16, %s147_s23, [#allocation18]  }
  0x6e   :  { %s29940_s21 = sld [smem:[#allocation31_spill]] }
  0x74   :  { %s24900_s2 = scalar_lea.hbm %s29940_s21, 896 }
  0x75   :  { %p24901_p12 = scmp.ne.s32.totalorder %s29940_s21, %s24900_s2  ;;  %p24904_p13 = scmp.lt.u32.totalorder %s24900_s2, %s29940_s21 }
  0x77   :  { %p24906_p0 = pnand %p24904_p13, %p24901_p12 }
  0x79   :  { %24909 = shalt.err (!%p24906_p0)
}
  0x7a   :  { %s24910_s3 = scalar_lea.vmem %s25271_s20, 896  ;;  %p24915_p2 = scmp.lt.s32.totalorder %s25271_s20, %s25271_s20 }
  0x7b   :  { %p24911_p1 = scmp.ne.s32.totalorder %s25271_s20, %s24910_s3  ;;  %p24916_p3 = scmp.lt.s32.totalorder %s24910_s3, %s24910_s3 }
  0x7d   :  { %p24917_p4 = por %p24916_p3, %p24915_p2 }
  0x7f   :  { %p24918_p5 = pnand %p24917_p4, %p24911_p1 }
  0x81   :  { %24921 = shalt.err (!%p24918_p5)
}
  0x82   :  { %s29941_s13 = smov 8   ;;  %s29942_s23 = smov 128  }
  0x83   :  { %43 = dma.hbm_to_vmem [thread:$0]  %s29940_s21, 896, %s25271_s20, [#allocation3], %s29942_s23, %s29942_s23, %s29941_s13  }
  0x84   :  { %s25100_s8 = smov [#allocation7]   ;;  %s25101_s0 = smov [#allocation10]  }
  0x85   :  { %s61_s25 = sshll.u32 %s25100_s8, 4  ;;  %s83_s30 = sshll.u32 %s25101_s0, 4  ;;  %s62_s25 = int_to_ptr.vmem [resolvable:$true] %s61_s25  ;;  %s25305_s30 = int_to_ptr.vmem [resolvable:$true] %s83_s30 }
  0x86   :  { %s29943_s2 = sld [smem:[#allocation33_spill]] }
  0x8c   :  { %s24922_s28 = scalar_lea.hbm %s29943_s2, 1536 }
  0x8d   :  { %p24923_p6 = scmp.ne.s32.totalorder %s29943_s2, %s24922_s28  ;;  %p24926_p7 = scmp.lt.u32.totalorder %s24922_s28, %s29943_s2 }
  0x8f   :  { %p24928_p8 = pnand %p24926_p7, %p24923_p6 }
  0x91   :  { %24931 = shalt.err (!%p24928_p8)
}
  0x92   :  { %s24932_s20 = scalar_lea.vmem %s62_s25, 1536  ;;  %p24937_p10 = scmp.lt.s32.totalorder %s62_s25, %s62_s25 }
  0x93   :  { %p24933_p9 = scmp.ne.s32.totalorder %s62_s25, %s24932_s20  ;;  %p24938_p11 = scmp.lt.s32.totalorder %s24932_s20, %s24932_s20 }
  0x95   :  { %p24939_p12 = por %p24938_p11, %p24937_p10 }
  0x97   :  { %p24940_p13 = pnand %p24939_p12, %p24933_p9 }
  0x99   :  { %24943 = shalt.err (!%p24940_p13)
}
  0x9a   :  { %67 = dma.hbm_to_vmem [thread:$0]  %s29943_s2, 1536, %s62_s25, [#allocation6], %s29942_s23, %s29942_s23, %s29941_s13  }
  0x9b   :  { %s24944_s0 = scalar_lea.hbm %s29890_s4, 768 }
  0x9c   :  { %p24945_p0 = scmp.ne.s32.totalorder %s29890_s4, %s24944_s0  ;;  %p24948_p1 = scmp.lt.u32.totalorder %s24944_s0, %s29890_s4 }
  0x9e   :  { %p24950_p2 = pnand %p24948_p1, %p24945_p0 }
  0xa0   :  { %24953 = shalt.err (!%p24950_p2)
}
  0xa1   :  { %s24954_s24 = scalar_lea.vmem %s25305_s30, 768  ;;  %p24959_p4 = scmp.lt.s32.totalorder %s25305_s30, %s25305_s30 }
  0xa2   :  { %p24955_p3 = scmp.ne.s32.totalorder %s25305_s30, %s24954_s24  ;;  %p24960_p5 = scmp.lt.s32.totalorder %s24954_s24, %s24954_s24 }
  0xa4   :  { %p24961_p6 = por %p24960_p5, %p24959_p4 }
  0xa6   :  { %p24962_p7 = pnand %p24961_p6, %p24955_p3 }
  0xa8   :  { %24965 = shalt.err (!%p24962_p7)
}
  0xa9   :  { %89 = dma.hbm_to_vmem [thread:$0]  %s29890_s4, 768, %s25305_s30, [#allocation9], %s29942_s23, %s29942_s23, %s29941_s13  }
  0xaa   :  { %s25102_s29 = smov [#allocation13]   ;;  %s25103_s20 = smov [#allocation16]  }
  0xab   :  { %s108_s3 = sshll.u32 %s25102_s29, 4  ;;  %s129_s21 = sshll.u32 %s25103_s20, 4  ;;  %s109_s3 = int_to_ptr.vmem [resolvable:$true] %s108_s3  ;;  %s25342_s21 = int_to_ptr.vmem [resolvable:$true] %s129_s21 }
  0xac   :  { %s24966_s8 = scalar_lea.hbm %s29893_s7, 16 }
  0xad   :  { %p24967_p8 = scmp.ne.s32.totalorder %s29893_s7, %s24966_s8  ;;  %p24970_p9 = scmp.lt.u32.totalorder %s24966_s8, %s29893_s7 }
  0xaf   :  { %p24972_p10 = pnand %p24970_p9, %p24967_p8 }
  0xb1   :  { %24975 = shalt.err (!%p24972_p10)
}
  0xb2   :  { %s24976_s4 = scalar_lea.vmem %s109_s3, 16  ;;  %s24980_s30 = scalar_lea.vmem %s109_s3, 32 }
  0xb3   :  { %p24977_p11 = scmp.ne.s32.totalorder %s109_s3, %s24976_s4  ;;  %p24981_p12 = scmp.lt.s32.totalorder %s109_s3, %s109_s3 }
  0xb4   :  { %p24982_p13 = scmp.lt.s32.totalorder %s24980_s30, %s24976_s4 }
  0xb6   :  { %p24983_p0 = por %p24982_p13, %p24981_p12 }
  0xb8   :  { %p24984_p1 = pnand %p24983_p0, %p24977_p11 }
  0xba   :  { %24987 = shalt.err (!%p24984_p1)
}
  0xbb   :  { %111 = dma.hbm_to_vmem [thread:$0]  %s29893_s7, 16, %s109_s3, [#allocation12]  }
  0xbc   :  { %s24988_s29 = scalar_lea.hbm %s29896_s10, 256 }
  0xbd   :  { %p24989_p2 = scmp.ne.s32.totalorder %s29896_s10, %s24988_s29  ;;  %p24992_p3 = scmp.lt.u32.totalorder %s24988_s29, %s29896_s10 }
  0xbf   :  { %p24994_p4 = pnand %p24992_p3, %p24989_p2 }
  0xc1   :  { %24997 = shalt.err (!%p24994_p4)
}
  0xc2   :  { %s24998_s0 = scalar_lea.vmem %s25342_s21, 256  ;;  %p25003_p6 = scmp.lt.s32.totalorder %s25342_s21, %s25342_s21 }
  0xc3   :  { %p24999_p5 = scmp.ne.s32.totalorder %s25342_s21, %s24998_s0  ;;  %p25004_p7 = scmp.lt.s32.totalorder %s24998_s0, %s24998_s0 }
  0xc5   :  { %p25005_p8 = por %p25004_p7, %p25003_p6 }
  0xc7   :  { %p25006_p9 = pnand %p25005_p8, %p24999_p5 }
  0xc9   :  { %25009 = shalt.err (!%p25006_p9)
}
  0xca   :  { %135 = dma.hbm_to_vmem [thread:$0]  %s29896_s10, 256, %s25342_s21, [#allocation15], %s29942_s23, %s29942_s23, %s29941_s13  }
  0xcb   :  { %s25104_s6 = smov [#allocation19]   ;;  %s25010_s30 = scalar_lea.hbm %s29900_s14, 96 }
  0xcc   :  { %s155_s22 = sshll.u32 %s25104_s6, 4  ;;  %p25011_p10 = scmp.ne.s32.totalorder %s29900_s14, %s25010_s30  ;;  %s156_s22 = int_to_ptr.vmem [resolvable:$true] %s155_s22 }
  0xcd   :  { %p25014_p11 = scmp.lt.u32.totalorder %s25010_s30, %s29900_s14 }
  0xcf   :  { %p25016_p12 = pnand %p25014_p11, %p25011_p10 }
  0xd1   :  { %25019 = shalt.err (!%p25016_p12)
}
  0xd2   :  { %s25020_s29 = scalar_lea.vmem %s156_s22, 96  ;;  %p25025_p0 = scmp.lt.s32.totalorder %s156_s22, %s156_s22 }
  0xd3   :  { %p25021_p13 = scmp.ne.s32.totalorder %s156_s22, %s25020_s29  ;;  %p25026_p1 = scmp.lt.s32.totalorder %s25020_s29, %s25020_s29 }
  0xd5   :  { %p25027_p2 = por %p25026_p1, %p25025_p0 }
  0xd7   :  { %p25028_p3 = pnand %p25027_p2, %p25021_p13 }
  0xd9   :  { %25031 = shalt.err (!%p25028_p3)
}
  0xda   :  { %s25105_s10 = smov 32   ;;  %s25106_s13 = smov 2  }
  0xdb   :  { %161 = dma.hbm_to_vmem [thread:$0]  %s29900_s14, 96, %s156_s22, [#allocation18], %s25105_s10, %s25105_s10, %s25106_s13  }
  0xdc   :  { %s25107_s20 = smov [#allocation20]   ;;  %s25032_s0 = scalar_lea.hbm %s29902_s16, 16 }
  0xdd   :  { %s170_s26 = sshll.u32 %s25107_s20, 4  ;;  %p25033_p4 = scmp.ne.s32.totalorder %s29902_s16, %s25032_s0  ;;  %s171_s26 = int_to_ptr.vmem [resolvable:$true] %s170_s26 }
  0xde   :  { %p25036_p5 = scmp.lt.u32.totalorder %s25032_s0, %s29902_s16 }
  0xe0   :  { %p25038_p6 = pnand %p25036_p5, %p25033_p4 }
  0xe2   :  { %25041 = shalt.err (!%p25038_p6)
}
  0xe3   :  { %s25042_s4 = scalar_lea.vmem %s171_s26, 16  ;;  %s25046_s14 = scalar_lea.vmem %s171_s26, 32 }
  0xe4   :  { %p25043_p7 = scmp.ne.s32.totalorder %s171_s26, %s25042_s4  ;;  %p25047_p8 = scmp.lt.s32.totalorder %s171_s26, %s171_s26 }
  0xe5   :  { %p25048_p9 = scmp.lt.s32.totalorder %s25046_s14, %s25042_s4 }
  0xe7   :  { %p25049_p10 = por %p25048_p9, %p25047_p8 }
  0xe9   :  { %p25050_p11 = pnand %p25049_p10, %p25043_p7 }
  0xeb   :  { %25053 = shalt.err (!%p25050_p11)
}
  0xec   :  { %173 = dma.hbm_to_vmem [thread:$0]  %s29902_s16, 16, %s171_s26, [#allocation21]  }
  0xed   :  { %25076 = dma.done.wait [#allocation3], 896  }
  0xee   :  { %25077 = vsyncadd [#allocation3], 4294966400 }
  0xef   :  { %25078 = dma.done.wait [#allocation6], 3072  }
  0xf0   :  { %25079 = vsyncadd [#allocation6], 4294964224 }
  0xf1   :  { %25080 = dma.done.wait [#allocation9], 784  }
  0xf2   :  { %25081 = vsyncadd [#allocation9], 4294966512 }
  0xf3   :  { %25082 = dma.done.wait [#allocation12], 32  }
  0xf4   :  { %25083 = vsyncadd [#allocation12], 4294967264 }
  0xf5   :  { %25084 = dma.done.wait [#allocation15], 272  }
  0xf6   :  { %25085 = vsyncadd [#allocation15], 4294967024 }
  0xf7   :  { %25086 = dma.done.wait [#allocation18], 112  }
  0xf8   :  { %25087 = vsyncadd [#allocation18], 4294967184 }
  0xf9   :  { %25088 = dma.done.wait [#allocation21], 16  }
  0xfa   :  { %25089 = vsyncadd [#allocation21], 4294967280  ;;  %v214_v0 = vld [vmem:[#allocation2] sm:$0xff]  ;;  %v215_v1 = vld [vmem:[#allocation2 + $0x8] sm:$0xff]  ;;  %vm225_vm0 = vcmask 457728   ;;  %vm1583_vm1 = vcmask 1043456  }
  0xfb   :  { %v216_v2 = vld [vmem:[#allocation2 + $0x10] sm:$0xff]  ;;  %v239_v3 = vand.u32 4294901760, %v214_v0  ;;  %v242_v4 = vand.u32 4294901760, %v215_v1  ;;  %v217_v5 = vld [vmem:[#allocation2 + $0x18] sm:$0xff]  ;;  %v218_v7 = vld [vmem:[#allocation2 + $0x20] sm:$0xff]  ;;  %vm1570_vm2 = vcmask 228352  }
  0xfc   :  { %v245_v6 = vand.u32 4294901760, %v216_v2  ;;  %v25400_v8 = vld [vmem:[#allocation2 + $0x28] sm:$0xff]  ;;  %v248_v9 = vand.u32 4294901760, %v217_v5  ;;  %v251_v10 = vand.u32 4294901760, %v218_v7  ;;  %v25403_v12 = vld [vmem:[#allocation2 + $0x30] sm:$0xff]  ;;  %v221_v13 = vld [vmem:[#allocation5] sm:$0xff] }
  0xfd   :  { %v254_v11 = vand.u32 4294901760, %v25400_v8  ;;  %v896_v14 = vld [vmem:[#allocation5 + $0x20] sm:$0xff]  ;;  %v25405_v15 = vpack.c.bf16 %v242_v4, %v239_v3  ;;  %v25408_v16 = vand.u32 4294901760, %v25403_v12  ;;  %v227_v17 = vsel %vm225_vm0, %v221_v13, 0  ;;  %v222_v19 = vld [vmem:[#allocation5 + $0x8] sm:$0xff]  ;;  %v223_v53 = vld [vmem:[#allocation5 + $0x10] sm:$0xff] }
  0xfe   :  { %v25411_v18 = vsub.f32 %v214_v0, %v239_v3  ;;  %v897_v20 = vld [vmem:[#allocation5 + $0x28] sm:$0xff]  ;;  %v25413_v21 = vpack.c.bf16 %v248_v9, %v245_v6  ;;  %v25419_v23 = vand.u32 4294901760, %v227_v17  ;;  %v25421_v24 = vsub.f32 %v215_v1, %v242_v4  ;;  %v224_v57 = vld [vmem:[#allocation5 + $0x18] sm:$0xf]  ;;  %v898_v62 = vld [vmem:[#allocation5 + $0x30] sm:$0xff] }
  0xff   :  { %v25417_v22 = vpack.c.bf16 %v254_v11, %v251_v10  ;;  %22268 = vmatprep.subr.bf16.mxu0 %v25405_v15  ;;  %22340 = vmatprep.subr.bf16.mxu1 %v25405_v15  ;;  %v901_v26 = vsel %vm225_vm0, %v896_v14, 0  ;;  %v230_v27 = vsel %vm225_vm0, %v222_v19, 0  ;;  %v904_v28 = vsel %vm225_vm0, %v897_v20, 0  ;;  %v899_v63 = vld [vmem:[#allocation5 + $0x38] sm:$0xf] }
 0x100   :  { %v353_v25 = vand.u32 4294901760, %v25411_v18  ;;  %22270 = vmatpush3.bf16.msra.mxu0 %v25405_v15  ;;  %22342 = vmatpush3.bf16.msra.mxu1 %v25405_v15  ;;  %v25432_v29 = vsub.f32 %v227_v17, %v25419_v23  ;;  %v360_v30 = vand.u32 4294901760, %v25421_v24  ;;  %v25435_v31 = vand.u32 4294901760, %v901_v26 }
 0x101   :  { %v25437_v32 = vand.u32 4294901760, %v230_v27  ;;  %22272 = vmatprep.subr.bf16.mxu0 %v25413_v21  ;;  %22344 = vmatprep.subr.bf16.mxu1 %v25413_v21  ;;  %v25444_v34 = vand.u32 4294901760, %v904_v28  ;;  %v25446_v35 = vsub.f32 %v216_v2, %v245_v6  ;;  %v25448_v36 = vsub.f32 %v217_v5, %v248_v9 }
 0x102   :  { %v354_v33 = vsub.f32 %v25411_v18, %v353_v25  ;;  %v312_v37 = vand.u32 4294901760, %v25432_v29  ;;  %v361_v38 = vsub.f32 %v25421_v24, %v360_v30  ;;  %v25455_v39 = vsub.f32 %v901_v26, %v25435_v31 }
 0x103   :  { %v25458_v40 = vsub.f32 %v230_v27, %v25437_v32  ;;  %v25461_v42 = vsub.f32 %v904_v28, %v25444_v34  ;;  %v367_v43 = vand.u32 4294901760, %v25446_v35  ;;  %v374_v44 = vand.u32 4294901760, %v25448_v36 }
 0x104   :  { %v355_v41 = vand.u32 4294901760, %v354_v33  ;;  %22274 = vmatpush3.bf16.msra.mxu0 %v25413_v21  ;;  %22346 = vmatpush3.bf16.msra.mxu1 %v25413_v21  ;;  %v313_v45 = vsub.f32 %v25432_v29, %v312_v37  ;;  %v362_v46 = vand.u32 4294901760, %v361_v38  ;;  %v986_v47 = vand.u32 4294901760, %v25455_v39 }
 0x105   :  { %v322_v48 = vand.u32 4294901760, %v25458_v40  ;;  %22276 = vmatprep.subr.bf16.mxu0 %v25417_v22  ;;  %22348 = vmatprep.subr.bf16.mxu1 %v25417_v22  ;;  %v996_v49 = vand.u32 4294901760, %v25461_v42  ;;  %v368_v50 = vsub.f32 %v25446_v35, %v367_v43  ;;  %v375_v51 = vsub.f32 %v25448_v36, %v374_v44 }
 0x106   :  { %v25481_v52 = vsub.f32 %v218_v7, %v251_v10  ;;  %v314_v54 = vand.u32 4294901760, %v313_v45  ;;  %v987_v55 = vsub.f32 %v25455_v39, %v986_v47  ;;  %v25495_v0 = vpack.c.bf16 %v362_v46, %v355_v41 }
 0x107   :  { %v323_v56 = vsub.f32 %v25458_v40, %v322_v48  ;;  %v997_v58 = vsub.f32 %v25461_v42, %v996_v49  ;;  %v369_v59 = vand.u32 4294901760, %v368_v50  ;;  %v376_v60 = vand.u32 4294901760, %v375_v51 }
 0x108   :  { %v381_v61 = vand.u32 4294901760, %v25481_v52  ;;  %22278 = vmatpush3.bf16.msra.mxu0 %v25417_v22  ;;  %22350 = vmatpush3.bf16.msra.mxu1 %v25417_v22  ;;  %v988_v1 = vand.u32 4294901760, %v987_v55  ;;  %v25500_v2 = vsub.f32 %v25400_v8, %v254_v11  ;;  %v233_v3 = vsel %vm225_vm0, %v223_v53, 0 }
 0x109   :  { %18985 = vmatprep.subr.mxu0 %v25408_v16  ;;  %19105 = vmatprep.subr.mxu1 %v25408_v16  ;;  %v324_v4 = vand.u32 4294901760, %v323_v56  ;;  %v998_v5 = vand.u32 4294901760, %v997_v58  ;;  %v25508_v7 = vand.u32 4294901760, %v233_v3  ;;  %v907_v8 = vsel %vm225_vm0, %v898_v62, 0 }
 0x10a   :  { %v382_v6 = vsub.f32 %v25481_v52, %v381_v61  ;;  %18987 = vmatprep.mubr.f32.mxu0 %v314_v54  ;;  %19107 = vmatprep.mubr.f32.mxu1 %v988_v1  ;;  %v388_v9 = vand.u32 4294901760, %v25500_v2  ;;  %v236_v10 = vsel %vm225_vm0, %v224_v57, 0  ;;  %v910_v11 = vsel %vm225_vm0, %v899_v63, 0 }
 0x10b   :  { %v25514_v13 = vpack.c.bf16 %v376_v60, %v369_v59  ;;  %v25517_v14 = vsub.f32 %v233_v3, %v25508_v7  ;;  %v25519_v17 = vand.u32 4294901760, %v907_v8  ;;  %v25521_v19 = vand.u32 4294901760, %v236_v10 }
 0x10c   :  { %18986 = vmatpush3.msra.mxu0 %v25408_v16  ;;  %19106 = vmatpush3.msra.mxu1 %v25408_v16  ;;  %v383_v20 = vand.u32 4294901760, %v382_v6  ;;  %v389_v26 = vsub.f32 %v25500_v2, %v388_v9  ;;  %v25528_v27 = vand.u32 4294901760, %v910_v11  ;;  %v25532_v28 = vsub.f32 %v25403_v12, %v25408_v16 }
 0x10d   :  { %22280 = vmatprep.subr.bf16.mxu0 %v25495_v0  ;;  %22352 = vmatprep.subr.bf16.mxu1 %v25495_v0  ;;  %v332_v33 = vand.u32 4294901760, %v25517_v14  ;;  %v25538_v38 = vsub.f32 %v907_v8, %v25519_v17  ;;  %v25541_v41 = vsub.f32 %v236_v10, %v25521_v19  ;;  %v25604_v6 = vpack.c.bf16 %v25500_v2, %v25481_v52 }
 0x10e   :  { %18988 = vmatmul.mubr.f32.vlgmr.msra.gmra.mrb[0].mxu0 %v324_v4  ;;  %19108 = vmatmul.mubr.f32.vlgmr.msra.gmra.mrb[0].mxu1 %v998_v5  ;;  %v390_v45 = vand.u32 4294901760, %v389_v26  ;;  %v25544_v46 = vsub.f32 %v910_v11, %v25528_v27  ;;  %v25547_v12 = vand.u32 4294901760, %v25532_v28  ;;  %v25584_v4 = vpack.c.bf16 %v25421_v24, %v25411_v18  ;;  %v2831_v24 = vld [vmem:[#allocation5 + $0x40] sm:$0xff]  ;;  %v1569_v26 = vld [vmem:[#allocation7 + $0x38] sm:$0xf] }
 0x10f   :  { %22282 = vmatpush3.bf16.msra.mxu0 %v25495_v0  ;;  %22354 = vmatpush3.bf16.msra.mxu1 %v25495_v0  ;;  %v333_v50 = vsub.f32 %v25517_v14, %v332_v33  ;;  %v1006_v51 = vand.u32 4294901760, %v25538_v38  ;;  %v342_v53 = vand.u32 4294901760, %v25541_v41  ;;  %v25592_v5 = vpack.c.bf16 %v25448_v36, %v25446_v35  ;;  %v2832_v36 = vld [vmem:[#allocation5 + $0x48] sm:$0xff] }
 0x110   :  { %22284 = vmatprep.subr.bf16.mxu0 %v25514_v13  ;;  %22356 = vmatprep.subr.bf16.mxu1 %v25514_v13  ;;  %v25558_v54 = vpack.c.bf16 %v390_v45, %v383_v20  ;;  %v1016_v55 = vand.u32 4294901760, %v25544_v46  ;;  %v396_v56 = vsub.f32 %v25532_v28, %v25547_v12  ;;  %v25650_v8 = vpack.c.bf16 %v360_v30, %v353_v25 }
 0x111   :  { %v334_v57 = vand.u32 4294901760, %v333_v50  ;;  %v1007_v58 = vsub.f32 %v25538_v38, %v1006_v51  ;;  %v343_v59 = vsub.f32 %v25541_v41, %v342_v53  ;;  %v25674_v18 = vpack.c.bf16 %v388_v9, %v381_v61 }
 0x112   :  { %v1017_v60 = vsub.f32 %v25544_v46, %v1016_v55  ;;  %v25576_v3 = vand.u32 4294901760, %v396_v56  ;;  %v2836_v25 = vsel %vm225_vm0, %v2831_v24, 0  ;;  %vm5258_vm3 = vcmask 916480  }
 0x113   :  { %22286 = vmatpush3.bf16.msra.mxu0 %v25514_v13  ;;  %22358 = vmatpush3.bf16.msra.mxu1 %v25514_v13  ;;  %v1008_v62 = vand.u32 4294901760, %v1007_v58  ;;  %v344_v63 = vand.u32 4294901760, %v343_v59  ;;  %v25699_v30 = vand.u32 4294901760, %v2836_v25  ;;  %vm25109_vm4 = vmmov 0  }
 0x114   :  { %22288 = vmatprep.subr.bf16.mxu0 %v25558_v54  ;;  %22360 = vmatprep.subr.bf16.mxu1 %v25558_v54  ;;  %v1018_v1 = vand.u32 4294901760, %v1017_v60  ;;  %vm7815_vm5 = vcmask 914432   ;;  %vm8460_vm6 = vcmask 130048   ;;  %vm10049_vm7 = vcmask 113664  }
 0x115   :  { %18990 = vmatprep.mubr.f32.mxu0 %v334_v57  ;;  %19110 = vmatprep.mubr.f32.mxu1 %v1008_v62  ;;  %v25710_v35 = vsub.f32 %v2836_v25, %v25699_v30  ;;  %vm10053_vm8 = vcmask 1045504   ;;  %vm13353_vm9 = vcmask 48128   ;;  %vm14282_vm10 = vcmask 785408  }
 0x116   :  { %18991 = vmatmul.mubr.f32.gmra.mrb[2].mxu0 %v344_v63  ;;  %19111 = vmatmul.mubr.f32.gmra.mrb[2].mxu1 %v1018_v1  ;;  %vm17197_vm11 = vcmask 123904  }
 0x117   :  { %22290 = vmatpush3.bf16.msra.mxu0 %v25558_v54  ;;  %22362 = vmatpush3.bf16.msra.mxu1 %v25558_v54 }
 0x118   :  { %19005 = vmatprep.subr.mxu0 %v25576_v3  ;;  %19125 = vmatprep.subr.mxu1 %v25576_v3 }
 0x119   :  { %19007 = vmatprep.mubr.f32.mxu0 %v25419_v23  ;;  %19127 = vmatprep.mubr.f32.mxu1 %v25435_v31 }
 0x11b   :  { %19006 = vmatpush3.msra.mxu0 %v25576_v3  ;;  %19126 = vmatpush3.msra.mxu1 %v25576_v3 }
 0x11c   :  { %22292 = vmatprep.subr.bf16.mxu0 %v25584_v4  ;;  %22364 = vmatprep.subr.bf16.mxu1 %v25584_v4 }
 0x11d   :  { %19008 = vmatmul.mubr.f32.vlgmr.msra.gmra.mrb[0].mxu0 %v25437_v32  ;;  %19128 = vmatmul.mubr.f32.vlgmr.msra.gmra.mrb[0].mxu1 %v25444_v34 }
 0x11e   :  { %22294 = vmatpush3.bf16.msra.mxu0 %v25584_v4  ;;  %22366 = vmatpush3.bf16.msra.mxu1 %v25584_v4 }
 0x11f   :  { %22296 = vmatprep.subr.bf16.mxu0 %v25592_v5  ;;  %22368 = vmatprep.subr.bf16.mxu1 %v25592_v5 }
 0x120   :  { %19010 = vmatprep.mubr.f32.mxu0 %v25508_v7  ;;  %19130 = vmatprep.mubr.f32.mxu1 %v25519_v17 }
 0x121   :  { %19011 = vmatmul.mubr.f32.gmra.mrb[2].mxu0 %v25521_v19  ;;  %19131 = vmatmul.mubr.f32.gmra.mrb[2].mxu1 %v25528_v27 }
 0x122   :  { %22298 = vmatpush3.bf16.msra.mxu0 %v25592_v5  ;;  %22370 = vmatpush3.bf16.msra.mxu1 %v25592_v5 }
 0x123   :  { %22300 = vmatprep.subr.bf16.mxu0 %v25604_v6  ;;  %22372 = vmatprep.subr.bf16.mxu1 %v25604_v6 }
 0x124   :  { %19027 = vmatprep.mubr.f32.mxu0 %v25432_v29  ;;  %19147 = vmatprep.mubr.f32.mxu1 %v25455_v39  ;;  %v25658_v29 = vpack.c.bf16 %v374_v44, %v367_v43  ;;  %v2839_v39 = vsel %vm225_vm0, %v2832_v36, 0  ;;  %v2834_v43 = vld [vmem:[#allocation5 + $0x58] sm:$0xf] }
 0x125   :  { %v25725_v44 = vand.u32 4294901760, %v2839_v39 }
 0x126   :  { %22302 = vmatpush3.bf16.msra.mxu0 %v25604_v6  ;;  %22374 = vmatpush3.bf16.msra.mxu1 %v25604_v6 }
 0x127   :  { %19025 = vmatprep.subr.mxu0 %v25532_v28  ;;  %19145 = vmatprep.subr.mxu1 %v25532_v28 }
 0x12a   :  { %19026 = vmatpush3.msra.mxu0 %v25532_v28  ;;  %19146 = vmatpush3.msra.mxu1 %v25532_v28 }
 0x12b   :  { %22304 = vmatprep.subr.bf16.mxu0 %v25405_v15  ;;  %22376 = vmatprep.subr.bf16.mxu1 %v25405_v15 }
 0x12c   :  { %19028 = vmatmul.mubr.f32.vlgmr.msra.gmra.mrb[0].mxu0 %v25458_v40  ;;  %19148 = vmatmul.mubr.f32.vlgmr.msra.gmra.mrb[0].mxu1 %v25461_v42  ;;  %v2921_v40 = vand.u32 4294901760, %v25710_v35 }
 0x12d   :  { %22306 = vmatpush3.bf16.msra.mxu0 %v25405_v15  ;;  %22378 = vmatpush3.bf16.msra.mxu1 %v25405_v15 }
 0x12e   :  { %22308 = vmatprep.subr.bf16.mxu0 %v25413_v21  ;;  %22380 = vmatprep.subr.bf16.mxu1 %v25413_v21 }
 0x12f   :  { %19030 = vmatprep.mubr.f32.mxu0 %v25517_v14  ;;  %19150 = vmatprep.mubr.f32.mxu1 %v25538_v38 }
 0x130   :  { %19031 = vmatmul.mubr.f32.gmra.mrb[2].mxu0 %v25541_v41  ;;  %19151 = vmatmul.mubr.f32.gmra.mrb[2].mxu1 %v25544_v46 }
 0x131   :  { %22310 = vmatpush3.bf16.msra.mxu0 %v25413_v21  ;;  %22382 = vmatpush3.bf16.msra.mxu1 %v25413_v21 }
 0x132   :  { %22312 = vmatprep.subr.bf16.mxu0 %v25417_v22  ;;  %22384 = vmatprep.subr.bf16.mxu1 %v25417_v22 }
 0x133   :  { %19047 = vmatprep.mubr.f32.mxu0 %v312_v37  ;;  %19167 = vmatprep.mubr.f32.mxu1 %v986_v47  ;;  %v2833_v37 = vld [vmem:[#allocation5 + $0x50] sm:$0xff] }
 0x134   :  { %v2842_v42 = vsel %vm225_vm0, %v2833_v37, 0 }
 0x135   :  { %22314 = vmatpush3.bf16.msra.mxu0 %v25417_v22  ;;  %22386 = vmatpush3.bf16.msra.mxu1 %v25417_v22  ;;  %v25729_v47 = vand.u32 4294901760, %v2842_v42 }
 0x136   :  { %19045 = vmatprep.subr.mxu0 %v25408_v16  ;;  %19165 = vmatprep.subr.mxu1 %v25408_v16 }
 0x137   :  { %v25745_v52 = vsub.f32 %v2842_v42, %v25729_v47 }
 0x139   :  { %19046 = vmatpush3.msra.mxu0 %v25408_v16  ;;  %19166 = vmatpush3.msra.mxu1 %v25408_v16 }
 0x13a   :  { %22316 = vmatprep.subr.bf16.mxu0 %v25650_v8  ;;  %22388 = vmatprep.subr.bf16.mxu1 %v25650_v8 }
 0x13b   :  { %19048 = vmatmul.mubr.f32.vlgmr.msra.gmra.mrb[0].mxu0 %v322_v48  ;;  %19168 = vmatmul.mubr.f32.vlgmr.msra.gmra.mrb[0].mxu1 %v996_v49  ;;  %v25738_v48 = vsub.f32 %v2839_v39, %v25725_v44 }
 0x13c   :  { %22318 = vmatpush3.bf16.msra.mxu0 %v25650_v8  ;;  %22390 = vmatpush3.bf16.msra.mxu1 %v25650_v8 }
 0x13d   :  { %22320 = vmatprep.subr.bf16.mxu0 %v25658_v29  ;;  %22392 = vmatprep.subr.bf16.mxu1 %v25658_v29  ;;  %v2931_v2 = vand.u32 4294901760, %v25738_v48 }
 0x13e   :  { %19050 = vmatprep.mubr.f32.mxu0 %v332_v33  ;;  %19170 = vmatprep.mubr.f32.mxu1 %v1006_v51  ;;  %v1585_v33 = vsel %vm1583_vm1, %v1569_v26, 0 }
 0x13f   :  { %19051 = vmatmul.mubr.f32.gmra.mrb[2].mxu0 %v342_v53  ;;  %19171 = vmatmul.mubr.f32.gmra.mrb[2].mxu1 %v1016_v55  ;;  %v1597_v38 = vand.u32 4294901760, %v1585_v33 }
 0x140   :  { %22322 = vmatpush3.bf16.msra.mxu0 %v25658_v29  ;;  %22394 = vmatpush3.bf16.msra.mxu1 %v25658_v29 }
 0x141   :  { %22324 = vmatprep.subr.bf16.mxu0 %v25674_v18  ;;  %22396 = vmatprep.subr.bf16.mxu1 %v25674_v18  ;;  %v1719_v53 = vsub.f32 %v1585_v33, %v1597_v38 }
 0x142   :  { %19067 = vmatprep.mubr.f32.mxu0 %v25419_v23  ;;  %19187 = vmatprep.mubr.f32.mxu1 %v25435_v31 }
 0x143   :  { %v1720_v57 = vand.u32 4294901760, %v1719_v53 }
 0x144   :  { %22326 = vmatpush3.bf16.msra.mxu0 %v25674_v18  ;;  %22398 = vmatpush3.bf16.msra.mxu1 %v25674_v18 }
 0x145   :  { %19065 = vmatprep.subr.mxu0 %v25547_v12  ;;  %19185 = vmatprep.subr.mxu1 %v25547_v12  ;;  %v1721_v60 = vsub.f32 %v1719_v53, %v1720_v57 }
 0x147   :  { %v1722_v63 = vand.u32 4294901760, %v1721_v60 }
 0x148   :  { %19066 = vmatpush3.msra.mxu0 %v25547_v12  ;;  %19186 = vmatpush3.msra.mxu1 %v25547_v12 }
 0x149   :  { %22328 = vmatprep.subr.bf16.mxu0 %v25405_v15  ;;  %22400 = vmatprep.subr.bf16.mxu1 %v25405_v15 }
 0x14a   :  { %19068 = vmatmul.mubr.f32.vlgmr.msra.gmra.mrb[0].mxu0 %v25437_v32  ;;  %19188 = vmatmul.mubr.f32.vlgmr.msra.gmra.mrb[0].mxu1 %v25444_v34 }
 0x14b   :  { %22330 = vmatpush3.bf16.msra.mxu0 %v25405_v15  ;;  %22402 = vmatpush3.bf16.msra.mxu1 %v25405_v15 }
 0x14c   :  { %22332 = vmatprep.subr.bf16.mxu0 %v25413_v21  ;;  %22404 = vmatprep.subr.bf16.mxu1 %v25413_v21 }
 0x14d   :  { %19070 = vmatprep.mubr.f32.mxu0 %v25508_v7  ;;  %19190 = vmatprep.mubr.f32.mxu1 %v25519_v17 }
 0x14e   :  { %19071 = vmatmul.mubr.f32.gmra.mrb[2].mxu0 %v25521_v19  ;;  %19191 = vmatmul.mubr.f32.gmra.mrb[2].mxu1 %v25528_v27 }
 0x14f   :  { %22334 = vmatpush3.bf16.msra.mxu0 %v25413_v21  ;;  %22406 = vmatpush3.bf16.msra.mxu1 %v25413_v21 }
 0x150   :  { %22336 = vmatprep.subr.bf16.mxu0 %v25417_v22  ;;  %22408 = vmatprep.subr.bf16.mxu1 %v25417_v22 }
 0x151   :  { %19087 = vmatprep.mubr.f32.mxu0 %v25419_v23  ;;  %19207 = vmatprep.mubr.f32.mxu1 %v25435_v31  ;;  %v2845_v23 = vsel %vm225_vm0, %v2834_v43, 0  ;;  %v2922_v31 = vsub.f32 %v25710_v35, %v2921_v40 }
 0x152   :  { %v25740_v49 = vand.u32 4294901760, %v2845_v23 }
 0x153   :  { %22338 = vmatpush3.bf16.msra.mxu0 %v25417_v22  ;;  %22410 = vmatpush3.bf16.msra.mxu1 %v25417_v22  ;;  %v2923_v61 = vand.u32 4294901760, %v2922_v31 }
 0x154   :  { %19085 = vmatprep.subr.mxu0 %v25408_v16  ;;  %19205 = vmatprep.subr.mxu1 %v25408_v16 }
 0x157   :  { %19086 = vmatpush3.msra.mxu0 %v25408_v16  ;;  %19206 = vmatpush3.msra.mxu1 %v25408_v16 }
 0x158   :  { %19088 = vmatmul.mubr.f32.vlgmr.msra.gmra.mrb[0].mxu0 %v25437_v32  ;;  %19208 = vmatmul.mubr.f32.vlgmr.msra.gmra.mrb[0].mxu1 %v25444_v34  ;;  %v2950_v32 = vsub.f32 %v2845_v23, %v25740_v49  ;;  %v2941_v34 = vand.u32 4294901760, %v25745_v52 }
 0x159   :  { %22508 = vmatprep.subr.bf16.mxu1 %v25405_v15  ;;  %19090 = vmatprep.mubr.f32.mxu0 %v25508_v7  ;;  %v2932_v7 = vsub.f32 %v25738_v48, %v2931_v2 }
 0x15a   :  { %22510 = vmatpush3.bf16.msra.mxu1 %v25405_v15  ;;  %19210 = vmatprep.mubr.f32.mxu1 %v25519_v17  ;;  %v2951_v9 = vand.u32 4294901760, %v2950_v32  ;;  %v2942_v10 = vsub.f32 %v25745_v52, %v2941_v34 }
 0x15b   :  { %22512 = vmatprep.subr.bf16.mxu1 %v25413_v21  ;;  %v2933_v11 = vand.u32 4294901760, %v2932_v7 }
 0x15c   :  { %19091 = vmatmul.mubr.f32.gmra.mrb[2].mxu0 %v25521_v19  ;;  %19211 = vmatmul.mubr.f32.gmra.mrb[2].mxu1 %v25528_v27  ;;  %v2952_v14 = vsub.f32 %v2950_v32, %v2951_v9  ;;  %v2943_v17 = vand.u32 4294901760, %v2942_v10 }
 0x15d   :  { %19395 = vmatprep.mubr.f32.mxu1 %v2923_v61 }
 0x15e   :  { %22514 = vmatpush3.bf16.msra.mxu1 %v25413_v21  ;;  %v2953_v19 = vand.u32 4294901760, %v2952_v14 }
 0x15f   :  { %22516 = vmatprep.subr.bf16.mxu1 %v25417_v22 }
 0x162   :  { %22518 = vmatpush3.bf16.msra.mxu1 %v25417_v22 }
 0x163   :  { %19393 = vmatprep.subr.mxu1 %v25408_v16 }
 0x166   :  { %19394 = vmatpush3.msra.mxu1 %v25408_v16 }
 0x167   :  { %22520 = vmatprep.subr.bf16.mxu1 %v25495_v0  ;;  %19396 = vmatmul.mubr.f32.vlgmr.msra.gmra.mrb[4].mxu1 %v2933_v11 }
 0x168   :  { %22522 = vmatpush3.bf16.msra.mxu1 %v25495_v0  ;;  %19398 = vmatprep.mubr.f32.mxu1 %v2943_v17  ;;  %v1567_v0 = vld [vmem:[#allocation7 + $0x28] sm:$0xff] }
 0x169   :  { %22524 = vmatprep.subr.bf16.mxu1 %v25514_v13  ;;  %v1591_v20 = vand.u32 4294901760, %v1567_v0 }
 0x16b   :  { %19399 = vmatmul.mubr.f32.gmra.mrb[6].mxu1 %v2953_v19 }
 0x16c   :  { %22526 = vmatpush3.bf16.msra.mxu1 %v25514_v13  ;;  %19415 = vmatprep.mubr.f32.mxu1 %v25699_v30 }
 0x16d   :  { %22528 = vmatprep.subr.bf16.mxu1 %v25558_v54 }
 0x170   :  { %22530 = vmatpush3.bf16.msra.mxu1 %v25558_v54 }
 0x171   :  { %19413 = vmatprep.subr.mxu1 %v25576_v3 }
 0x174   :  { %19414 = vmatpush3.msra.mxu1 %v25576_v3 }
 0x175   :  { %22532 = vmatprep.subr.bf16.mxu1 %v25584_v4  ;;  %19416 = vmatmul.mubr.f32.vlgmr.msra.gmra.mrb[4].mxu1 %v25725_v44 }
 0x176   :  { %22534 = vmatpush3.bf16.msra.mxu1 %v25584_v4  ;;  %19418 = vmatprep.mubr.f32.mxu1 %v25729_v47 }
 0x177   :  { %22536 = vmatprep.subr.bf16.mxu1 %v25592_v5 }
 0x179   :  { %19419 = vmatmul.mubr.f32.gmra.mrb[6].mxu1 %v25740_v49 }
 0x17a   :  { %22538 = vmatpush3.bf16.msra.mxu1 %v25592_v5  ;;  %19435 = vmatprep.mubr.f32.mxu1 %v25710_v35 }
 0x17b   :  { %22540 = vmatprep.subr.bf16.mxu1 %v25604_v6 }
 0x17e   :  { %22542 = vmatpush3.bf16.msra.mxu1 %v25604_v6 }
 0x17f   :  { %19433 = vmatprep.subr.mxu1 %v25532_v28 }
 0x182   :  { %19434 = vmatpush3.msra.mxu1 %v25532_v28  ;;  %v1568_v28 = vld [vmem:[#allocation7 + $0x30] sm:$0xff] }
 0x183   :  { %22544 = vmatprep.subr.bf16.mxu1 %v25405_v15  ;;  %19436 = vmatmul.mubr.f32.vlgmr.msra.gmra.mrb[4].mxu1 %v25738_v48 }
 0x184   :  { %22546 = vmatpush3.bf16.msra.mxu1 %v25405_v15  ;;  %19438 = vmatprep.mubr.f32.mxu1 %v25745_v52 }
 0x185   :  { %22548 = vmatprep.subr.bf16.mxu1 %v25413_v21 }
 0x187   :  { %19439 = vmatmul.mubr.f32.gmra.mrb[6].mxu1 %v2950_v32 }
 0x188   :  { %22550 = vmatpush3.bf16.msra.mxu1 %v25413_v21  ;;  %19455 = vmatprep.mubr.f32.mxu1 %v2921_v40 }
 0x189   :  { %22552 = vmatprep.subr.bf16.mxu1 %v25417_v22 }
 0x18c   :  { %22554 = vmatpush3.bf16.msra.mxu1 %v25417_v22 }
 0x18d   :  { %19453 = vmatprep.subr.mxu1 %v25408_v16 }
 0x190   :  { %19454 = vmatpush3.msra.mxu1 %v25408_v16 }
 0x191   :  { %22556 = vmatprep.subr.bf16.mxu1 %v25650_v8  ;;  %19456 = vmatmul.mubr.f32.vlgmr.msra.gmra.mrb[4].mxu1 %v2931_v2 }
 0x192   :  { %22558 = vmatpush3.bf16.msra.mxu1 %v25650_v8  ;;  %19458 = vmatprep.mubr.f32.mxu1 %v2941_v34 }
 0x193   :  { %22560 = vmatprep.subr.bf16.mxu1 %v25658_v29 }
 0x195   :  { %19459 = vmatmul.mubr.f32.gmra.mrb[6].mxu1 %v2951_v9 }
 0x196   :  { %22562 = vmatpush3.bf16.msra.mxu1 %v25658_v29  ;;  %19475 = vmatprep.mubr.f32.mxu1 %v25699_v30 }
 0x197   :  { %22564 = vmatprep.subr.bf16.mxu1 %v25674_v18 }
 0x19a   :  { %22566 = vmatpush3.bf16.msra.mxu1 %v25674_v18 }
 0x19b   :  { %19473 = vmatprep.subr.mxu1 %v25547_v12 }
 0x19e   :  { %19474 = vmatpush3.msra.mxu1 %v25547_v12 }
 0x19f   :  { %22568 = vmatprep.subr.bf16.mxu1 %v25405_v15  ;;  %19476 = vmatmul.mubr.f32.vlgmr.msra.gmra.mrb[4].mxu1 %v25725_v44 }
 0x1a0   :  { %22570 = vmatpush3.bf16.msra.mxu1 %v25405_v15  ;;  %19478 = vmatprep.mubr.f32.mxu1 %v25729_v47  ;;  %v1566_v15 = vld [vmem:[#allocation7 + $0x20] sm:$0xff] }
 0x1a1   :  { %22572 = vmatprep.subr.bf16.mxu1 %v25413_v21  ;;  %v1588_v13 = vand.u32 4294901760, %v1566_v15 }
 0x1a3   :  { %19479 = vmatmul.mubr.f32.gmra.mrb[6].mxu1 %v25740_v49  ;;  %v1698_v27 = vsub.f32 %v1566_v15, %v1588_v13 }
 0x1a4   :  { %22574 = vmatpush3.bf16.msra.mxu1 %v25413_v21  ;;  %19495 = vmatprep.mubr.f32.mxu1 %v25699_v30  ;;  %v25821_v21 = vpack.c.bf16 %v1591_v20, %v1588_v13  ;;  %v892_v13 = vld [vmem:[#allocation7 + $0x8] sm:$0xff] }
 0x1a5   :  { %22576 = vmatprep.subr.bf16.mxu1 %v25417_v22  ;;  %v1699_v41 = vand.u32 4294901760, %v1698_v27 }
 0x1a6   :  { %22412 = vmatprep.subr.bf16.mxu0 %v25821_v21 }
 0x1a7   :  { %22414 = vmatpush3.bf16.msra.mxu0 %v25821_v21  ;;  %v1700_v12 = vsub.f32 %v1698_v27, %v1699_v41 }
 0x1a8   :  { %22578 = vmatpush3.bf16.msra.mxu1 %v25417_v22  ;;  %v1705_v22 = vsub.f32 %v1567_v0, %v1591_v20  ;;  %v891_v0 = vld [vmem:[#allocation7] sm:$0xff]  ;;  %v894_v20 = vld [vmem:[#allocation7 + $0x18] sm:$0xf] }
 0x1a9   :  { %19493 = vmatprep.subr.mxu1 %v25408_v16  ;;  %v1701_v54 = vand.u32 4294901760, %v1700_v12  ;;  %v2217_v26 = vand.u32 4294901760, %v891_v0 }
 0x1aa   :  { %v1706_v45 = vand.u32 4294901760, %v1705_v22  ;;  %v22427_v3 = vpack.c.bf16 %v1705_v22, %v1698_v27  ;;  %v2220_v27 = vand.u32 4294901760, %v892_v13 }
 0x1ac   :  { %19494 = vmatpush3.msra.mxu1 %v25408_v16  ;;  %v1594_v16 = vand.u32 4294901760, %v1568_v28  ;;  %v1707_v50 = vsub.f32 %v1705_v22, %v1706_v45  ;;  %v25830_v5 = vpack.c.bf16 %v1706_v45, %v1699_v41  ;;  %v893_v22 = vld [vmem:[#allocation7 + $0x10] sm:$0xff] }
 0x1ad   :  { %19496 = vmatmul.mubr.f32.vlgmr.msra.gmra.mrb[4].mxu1 %v25725_v44  ;;  %v2223_v41 = vand.u32 4294901760, %v893_v22 }
 0x1ae   :  { %19498 = vmatprep.mubr.f32.mxu1 %v25729_v47  ;;  %v25826_v46 = vpack.c.bf16 %v1597_v38, %v1594_v16  ;;  %v1712_v51 = vsub.f32 %v1568_v28, %v1594_v16  ;;  %v1708_v55 = vand.u32 4294901760, %v1707_v50  ;;  %v2214_v28 = vsel %vm1583_vm1, %v894_v20, 0 }
 0x1af   :  { %v25866_v16 = vsub.f32 %v891_v0, %v2217_v26  ;;  %v25868_v38 = vsub.f32 %v892_v13, %v2220_v27  ;;  %v2226_v45 = vand.u32 4294901760, %v2214_v28  ;;  %v3503_v0 = vld [vmem:[#allocation7 + $0x50] sm:$0xff] }
 0x1b0   :  { %22416 = vmatprep.subr.bf16.mxu0 %v25826_v46  ;;  %v1713_v56 = vand.u32 4294901760, %v1712_v51  ;;  %v22419_v58 = vpack.c.bf16 %v1708_v55, %v1701_v54  ;;  %v22431_v4 = vpack.c.bf16 %v1719_v53, %v1712_v51 }
 0x1b1   :  { %19499 = vmatmul.mubr.f32.gmra.mrb[6].mxu1 %v25740_v49  ;;  %22418 = vmatpush3.bf16.msra.mxu0 %v25826_v46  ;;  %v2328_v53 = vand.u32 4294901760, %v25866_v16  ;;  %v2335_v54 = vand.u32 4294901760, %v25868_v38 }
 0x1b2   :  { %v1714_v59 = vsub.f32 %v1712_v51, %v1713_v56  ;;  %22420 = vmatprep.subr.bf16.mxu0 %v22419_v58  ;;  %v25832_v6 = vpack.c.bf16 %v1720_v57, %v1713_v56  ;;  %v25883_v56 = vsub.f32 %v893_v22, %v2223_v41  ;;  %v25885_v57 = vsub.f32 %v2214_v28, %v2226_v45 }
 0x1b4   :  { %v1715_v62 = vand.u32 4294901760, %v1714_v59 }
 0x1b6   :  { %v22423_v1 = vpack.c.bf16 %v1722_v63, %v1715_v62  ;;  %v25897_v62 = vpack.c.bf16 %v2220_v27, %v2217_v26  ;;  %v2329_v63 = vsub.f32 %v25866_v16, %v2328_v53 }
 0x22b   :  { %v25834_v8 = vpop.f32.mrb[0].mxu0  ;;  %v19209_v29 = vpop.f32.mrb[0].mxu1 }
 0x22c   :  { %v1575_v18 = vsel %vm1570_vm2, %v19209_v29, 0  ;;  %v869_v24 = vpop.f32.mrb[1].mxu0  ;;  %v1543_v25 = vpop.f32.mrb[1].mxu1  ;;  %v2205_v12 = vsel %vm1570_vm2, %v25834_v8, 0  ;;  %v25920_v29 = vpack.c.bf16 %v2226_v45, %v2223_v41 }
 0x22d   :  { %v25837_v30 = vand.u32 4294901760, %v1575_v18  ;;  %v1572_v35 = vsel %vm1570_vm2, %v1543_v25, 0  ;;  %v2202_v33 = vsel %vm1570_vm2, %v869_v24, 0  ;;  %v25880_v55 = vand.u32 4294901760, %v2205_v12 }
 0x22e   :  { %v25840_v36 = vand.u32 4294901760, %v1572_v35  ;;  %v25873_v50 = vand.u32 4294901760, %v2202_v33 }
 0x22f   :  { %v1667_v37 = vsub.f32 %v1575_v18, %v25837_v30  ;;  %v25843_v39 = vpop.f32.mrb[2].mxu0  ;;  %v19212_v40 = vpop.f32.mrb[2].mxu1  ;;  %v2330_v18 = vand.u32 4294901760, %v2329_v63 }
 0x230   :  { %v1657_v42 = vsub.f32 %v1572_v35, %v25840_v36  ;;  %v1581_v43 = vsel %vm1570_vm2, %v19212_v40, 0  ;;  %v881_v44 = vpop.f32.mrb[3].mxu0  ;;  %v1555_v47 = vpop.f32.mrb[3].mxu1  ;;  %v2211_v59 = vsel %vm1570_vm2, %v25843_v39, 0 }
 0x231   :  { %v1668_v23 = vand.u32 4294901760, %v1667_v37  ;;  %v25847_v31 = vand.u32 4294901760, %v1581_v43  ;;  %v1578_v49 = vsel %vm1570_vm2, %v1555_v47, 0  ;;  %v2208_v51 = vsel %vm1570_vm2, %v881_v44, 0 }
 0x232   :  { %v1658_v48 = vand.u32 4294901760, %v1657_v42  ;;  %v25851_v2 = vand.u32 4294901760, %v1578_v49  ;;  %v25892_v60 = vand.u32 4294901760, %v2208_v51 }
 0x233   :  { %v1669_v52 = vsub.f32 %v1667_v37, %v1668_v23  ;;  %v1687_v61 = vsub.f32 %v1581_v43, %v25847_v31 }
 0x234   :  { %v1659_v32 = vsub.f32 %v1657_v42, %v1658_v48  ;;  %v1677_v7 = vsub.f32 %v1578_v49, %v25851_v2  ;;  %v25915_v8 = vsub.f32 %v2208_v51, %v25892_v60 }
 0x235   :  { %v1688_v34 = vand.u32 4294901760, %v1687_v61  ;;  %v1670_v10 = vand.u32 4294901760, %v1669_v52 }
 0x236   :  { %v1660_v9 = vand.u32 4294901760, %v1659_v32  ;;  %v1678_v11 = vand.u32 4294901760, %v1677_v7  ;;  %v22475_v32 = vpack.c.bf16 %v25868_v38, %v25866_v16 }
 0x237   :  { %v1689_v14 = vsub.f32 %v1687_v61, %v1688_v34 }
 0x238   :  { %19221 = vmatprep.mubr.f32.mxu0 %v1660_v9  ;;  %v1679_v17 = vsub.f32 %v1677_v7, %v1678_v11  ;;  %v3502_v9 = vld [vmem:[#allocation7 + $0x48] sm:$0xff] }
 0x239   :  { %19222 = vmatmul.mubr.f32.vlgmr.msra.gmra.mrb[4].mxu0 %v1670_v10  ;;  %v1690_v15 = vand.u32 4294901760, %v1689_v14  ;;  %v3504_v10 = vld [vmem:[#allocation7 + $0x58] sm:$0xf] }
 0x23a   :  { %22422 = vmatpush3.bf16.msra.mxu0 %v22419_v58  ;;  %v1680_v19 = vand.u32 4294901760, %v1679_v17  ;;  %v25888_v58 = vsub.f32 %v2202_v33, %v25873_v50  ;;  %v3524_v17 = vand.u32 4294901760, %v3502_v9  ;;  %v3518_v13 = vsel %vm1583_vm1, %v3504_v10, 0 }
 0x23b   :  { %22424 = vmatprep.subr.bf16.mxu0 %v22423_v1  ;;  %v3527_v33 = vand.u32 4294901760, %v3503_v0  ;;  %v3530_v16 = vand.u32 4294901760, %v3518_v13 }
 0x23c   :  { %19224 = vmatprep.mubr.f32.mxu0 %v1680_v19  ;;  %v25979_v22 = vsub.f32 %v3502_v9, %v3524_v17 }
 0x23d   :  { %19225 = vmatmul.mubr.f32.gmra.mrb[6].mxu0 %v1690_v15 }
 0x23e   :  { %22426 = vmatpush3.bf16.msra.mxu0 %v22423_v1  ;;  %19235 = vmatprep.mubr.f32.mxu0 %v25840_v36  ;;  %v2336_v1 = vsub.f32 %v25868_v38, %v2335_v54  ;;  %v3639_v51 = vand.u32 4294901760, %v25979_v22 }
 0x23f   :  { %22428 = vmatprep.subr.bf16.mxu0 %v22427_v3 }
 0x240   :  { %v2337_v24 = vand.u32 4294901760, %v2336_v1 }
 0x241   :  { %19236 = vmatmul.mubr.f32.vlgmr.msra.gmra.mrb[4].mxu0 %v25837_v30 }
 0x242   :  { %19238 = vmatprep.mubr.f32.mxu0 %v25851_v2  ;;  %22430 = vmatpush3.bf16.msra.mxu0 %v22427_v3  ;;  %v25906_v3 = vsub.f32 %v2205_v12, %v25880_v55  ;;  %v22467_v40 = vpack.c.bf16 %v2337_v24, %v2330_v18  ;;  %v26029_v24 = vpack.c.bf16 %v3530_v16, %v3527_v33 }
 0x243   :  { %22432 = vmatprep.subr.bf16.mxu0 %v22431_v4 }
 0x244   :  { %v2297_v25 = vand.u32 4294901760, %v25906_v3 }
 0x245   :  { %19239 = vmatmul.mubr.f32.gmra.mrb[6].mxu0 %v25847_v31 }
 0x246   :  { %22434 = vmatpush3.bf16.msra.mxu0 %v22431_v4  ;;  %19249 = vmatprep.mubr.f32.mxu0 %v1657_v42  ;;  %v25908_v4 = vand.u32 4294901760, %v2211_v59  ;;  %v2298_v42 = vsub.f32 %v25906_v3, %v2297_v25 }
 0x247   :  { %22436 = vmatprep.subr.bf16.mxu0 %v25821_v21 }
 0x248   :  { %v25924_v35 = vsub.f32 %v2211_v59, %v25908_v4 }
 0x249   :  { %19250 = vmatmul.mubr.f32.vlgmr.msra.gmra.mrb[4].mxu0 %v1667_v37 }
 0x24a   :  { %19252 = vmatprep.mubr.f32.mxu0 %v1677_v7  ;;  %22438 = vmatpush3.bf16.msra.mxu0 %v25821_v21  ;;  %v2317_v43 = vand.u32 4294901760, %v25924_v35  ;;  %v3501_v7 = vld [vmem:[#allocation7 + $0x40] sm:$0xff] }
 0x24b   :  { %22440 = vmatprep.subr.bf16.mxu0 %v25826_v46  ;;  %v3521_v14 = vand.u32 4294901760, %v3501_v7 }
 0x24c   :  { %v2318_v49 = vsub.f32 %v25924_v35, %v2317_v43 }
 0x24d   :  { %19253 = vmatmul.mubr.f32.gmra.mrb[6].mxu0 %v1687_v61  ;;  %v25977_v27 = vsub.f32 %v3501_v7, %v3521_v14  ;;  %v26006_v63 = vpack.c.bf16 %v3524_v17, %v3521_v14  ;;  %v4154_v17 = vld [vmem:[#allocation10 + $0x8] sm:$0x3f] }
 0x24e   :  { %22442 = vmatpush3.bf16.msra.mxu0 %v25826_v46  ;;  %19263 = vmatprep.mubr.f32.mxu0 %v1658_v48 }
 0x24f   :  { %22444 = vmatprep.subr.bf16.mxu0 %v25830_v5  ;;  %v3632_v12 = vand.u32 4294901760, %v25977_v27 }
 0x251   :  { %19264 = vmatmul.mubr.f32.vlgmr.msra.gmra.mrb[4].mxu0 %v1668_v23  ;;  %v3633_v1 = vsub.f32 %v25977_v27, %v3632_v12 }
 0x252   :  { %19266 = vmatprep.mubr.f32.mxu0 %v1678_v11  ;;  %22446 = vmatpush3.bf16.msra.mxu0 %v25830_v5  ;;  %v2342_v5 = vand.u32 4294901760, %v25883_v56 }
 0x253   :  { %22448 = vmatprep.subr.bf16.mxu0 %v25832_v6 }
 0x254   :  { %v2343_v37 = vsub.f32 %v25883_v56, %v2342_v5 }
 0x255   :  { %19267 = vmatmul.mubr.f32.gmra.mrb[6].mxu0 %v1688_v34  ;;  %v22491_v34 = vpack.c.bf16 %v2335_v54, %v2328_v53  ;;  %v25993_v54 = vsub.f32 %v3503_v0, %v3527_v33  ;;  %v17234_v0 = vld [vmem:[#allocation8] ss:$0 sm:$0xff] }
 0x256   :  { %22450 = vmatpush3.bf16.msra.mxu0 %v25832_v6  ;;  %19277 = vmatprep.mubr.f32.mxu0 %v25840_v36  ;;  %v2287_v6 = vand.u32 4294901760, %v25888_v58  ;;  %v2344_v44 = vand.u32 4294901760, %v2343_v37 }
 0x257   :  { %22452 = vmatprep.subr.bf16.mxu0 %v25821_v21 }
 0x258   :  { %v2288_v39 = vsub.f32 %v25888_v58, %v2287_v6 }
 0x259   :  { %19278 = vmatmul.mubr.f32.vlgmr.msra.gmra.mrb[4].mxu0 %v25837_v30 }
 0x25a   :  { %19280 = vmatprep.mubr.f32.mxu0 %v25851_v2  ;;  %22454 = vmatpush3.bf16.msra.mxu0 %v25821_v21  ;;  %v2349_v21 = vand.u32 4294901760, %v25885_v57  ;;  %v2289_v23 = vand.u32 4294901760, %v2288_v39 }
 0x25b   :  { %22456 = vmatprep.subr.bf16.mxu0 %v25826_v46 }
 0x25c   :  { %v22495_v15 = vpack.c.bf16 %v2349_v21, %v2342_v5 }
 0x25d   :  { %19281 = vmatmul.mubr.f32.gmra.mrb[6].mxu0 %v25847_v31 }
 0x25e   :  { %22458 = vmatpush3.bf16.msra.mxu0 %v25826_v46  ;;  %19291 = vmatprep.mubr.f32.mxu0 %v25840_v36  ;;  %v2350_v46 = vsub.f32 %v25885_v57, %v2349_v21  ;;  %v2307_v36 = vand.u32 4294901760, %v25915_v8 }
 0x25f   :  { %22460 = vmatprep.subr.bf16.mxu0 %v25897_v62 }
 0x260   :  { %v2351_v47 = vand.u32 4294901760, %v2350_v46  ;;  %v2308_v48 = vsub.f32 %v25915_v8, %v2307_v36 }
 0x261   :  { %19292 = vmatmul.mubr.f32.vlgmr.msra.gmra.mrb[4].mxu0 %v25837_v30  ;;  %v2299_v30 = vand.u32 4294901760, %v2298_v42 }
 0x262   :  { %19294 = vmatprep.mubr.f32.mxu0 %v25851_v2  ;;  %22462 = vmatpush3.bf16.msra.mxu0 %v25897_v62  ;;  %v22471_v52 = vpack.c.bf16 %v2351_v47, %v2344_v44  ;;  %v2309_v61 = vand.u32 4294901760, %v2308_v48  ;;  %v2319_v2 = vand.u32 4294901760, %v2318_v49 }
 0x263   :  { %22464 = vmatprep.subr.bf16.mxu0 %v25920_v29 }
 0x265   :  { %19295 = vmatmul.mubr.f32.gmra.mrb[6].mxu0 %v25847_v31  ;;  %v22479_v31 = vpack.c.bf16 %v25885_v57, %v25883_v56  ;;  %v25995_v56 = vsub.f32 %v3518_v13, %v3530_v16 }
 0x266   :  { %22466 = vmatpush3.bf16.msra.mxu0 %v25920_v29  ;;  %19305 = vmatprep.mubr.f32.mxu0 %v2289_v23 }
 0x267   :  { %22468 = vmatprep.subr.bf16.mxu0 %v22467_v40 }
 0x269   :  { %19306 = vmatmul.mubr.f32.vlgmr.msra.gmra.mrb[4].mxu0 %v2299_v30 }
 0x26a   :  { %19308 = vmatprep.mubr.f32.mxu0 %v2309_v61  ;;  %22470 = vmatpush3.bf16.msra.mxu0 %v22467_v40  ;;  %v22595_v61 = vpack.c.bf16 %v25979_v22, %v25977_v27 }
 0x26b   :  { %22472 = vmatprep.subr.bf16.mxu0 %v22471_v52 }
 0x26d   :  { %19309 = vmatmul.mubr.f32.gmra.mrb[6].mxu0 %v2319_v2  ;;  %v22611_v2 = vpack.c.bf16 %v3639_v51, %v3632_v12 }
 0x26e   :  { %22474 = vmatpush3.bf16.msra.mxu0 %v22471_v52  ;;  %19319 = vmatprep.mubr.f32.mxu0 %v25873_v50 }
 0x26f   :  { %22476 = vmatprep.subr.bf16.mxu0 %v22475_v32 }
 0x271   :  { %19320 = vmatmul.mubr.f32.vlgmr.msra.gmra.mrb[4].mxu0 %v25880_v55 }
 0x272   :  { %19322 = vmatprep.mubr.f32.mxu0 %v25892_v60  ;;  %22478 = vmatpush3.bf16.msra.mxu0 %v22475_v32 }
 0x273   :  { %22480 = vmatprep.subr.bf16.mxu0 %v22479_v31 }
 0x275   :  { %19323 = vmatmul.mubr.f32.gmra.mrb[6].mxu0 %v25908_v4 }
 0x276   :  { %22482 = vmatpush3.bf16.msra.mxu0 %v22479_v31  ;;  %19333 = vmatprep.mubr.f32.mxu0 %v25888_v58  ;;  %v4153_v31 = vld [vmem:[#allocation10] sm:$0xff] }
 0x277   :  { %22484 = vmatprep.subr.bf16.mxu0 %v25897_v62 }
 0x279   :  { %19334 = vmatmul.mubr.f32.vlgmr.msra.gmra.mrb[4].mxu0 %v25906_v3  ;;  %v3640_v3 = vsub.f32 %v25979_v22, %v3639_v51 }
 0x27a   :  { %19336 = vmatprep.mubr.f32.mxu0 %v25915_v8  ;;  %22486 = vmatpush3.bf16.msra.mxu0 %v25897_v62 }
 0x27b   :  { %22488 = vmatprep.subr.bf16.mxu0 %v25920_v29 }
 0x27d   :  { %19337 = vmatmul.mubr.f32.gmra.mrb[6].mxu0 %v25924_v35  ;;  %v3641_v35 = vand.u32 4294901760, %v3640_v3 }
 0x27e   :  { %22490 = vmatpush3.bf16.msra.mxu0 %v25920_v29  ;;  %19347 = vmatprep.mubr.f32.mxu0 %v2287_v6  ;;  %v3646_v6 = vand.u32 4294901760, %v25993_v54 }
 0x27f   :  { %22492 = vmatprep.subr.bf16.mxu0 %v22491_v34 }
 0x280   :  { %v19497_v11 = vpop.f32.mrb[4].mxu1 }
 0x281   :  { %v3478_v19 = vpop.f32.mrb[5].mxu1  ;;  %19348 = vmatmul.mubr.f32.vlgmr.msra.gmra.mrb[4].mxu0 %v2297_v25  ;;  %v3509_v38 = vsel %vm1570_vm2, %v19497_v11, 0  ;;  %v3634_v25 = vand.u32 4294901760, %v3633_v1 }
 0x282   :  { %v3506_v20 = vsel %vm1570_vm2, %v3478_v19, 0  ;;  %19350 = vmatprep.mubr.f32.mxu0 %v2307_v36  ;;  %22494 = vmatpush3.bf16.msra.mxu0 %v22491_v34  ;;  %v25990_v53 = vand.u32 4294901760, %v3509_v38  ;;  %v3647_v36 = vsub.f32 %v25993_v54, %v3646_v6  ;;  %v4156_v34 = vsel %vm1570_vm2, %v4153_v31, 0 }
 0x283   :  { %22496 = vmatprep.subr.bf16.mxu0 %v22495_v15  ;;  %v25982_v41 = vand.u32 4294901760, %v3506_v20  ;;  %v22587_v40 = vpack.c.bf16 %v3641_v35, %v3634_v25  ;;  %v26086_v7 = vand.u32 4294901760, %v4156_v34  ;;  %v4159_v19 = vsel %vm1570_vm2, %v4154_v17, 0  ;;  %v17236_v17 = vld [vmem:[%s29891_s5 + $0x78] sm:$0xff] }
 0x284   :  { %v19500_v26 = vpop.f32.mrb[6].mxu1  ;;  %v26015_v5 = vsub.f32 %v3509_v38, %v25990_v53  ;;  %v3648_v44 = vand.u32 4294901760, %v3647_v36 }
 0x285   :  { %v3490_v28 = vpop.f32.mrb[7].mxu1  ;;  %19351 = vmatmul.mubr.f32.gmra.mrb[6].mxu0 %v2317_v43  ;;  %v25998_v57 = vsub.f32 %v3506_v20, %v25982_v41  ;;  %v3515_v58 = vsel %vm1570_vm2, %v19500_v26, 0  ;;  %v26089_v9 = vsub.f32 %v4156_v34, %v26086_v7 }
 0x286   :  { %v3512_v45 = vsel %vm1570_vm2, %v3490_v28, 0  ;;  %22498 = vmatpush3.bf16.msra.mxu0 %v22495_v15  ;;  %19361 = vmatprep.mubr.f32.mxu0 %v25873_v50  ;;  %v26017_v21 = vand.u32 4294901760, %v3515_v58  ;;  %v3601_v37 = vand.u32 4294901760, %v26015_v5  ;;  %v26096_v15 = vand.u32 4294901760, %v4159_v19 }
 0x287   :  { %22500 = vmatprep.subr.bf16.mxu0 %v25897_v62  ;;  %v26001_v59 = vand.u32 4294901760, %v3512_v45  ;;  %v3591_v8 = vand.u32 4294901760, %v25998_v57  ;;  %v4235_v10 = vand.u32 4294901760, %v26089_v9 }
 0x288   :  { %v3620_v46 = vsub.f32 %v3515_v58, %v26017_v21  ;;  %v3602_v42 = vsub.f32 %v26015_v5, %v3601_v37  ;;  %v26099_v27 = vsub.f32 %v4159_v19, %v26096_v15 }
 0x289   :  { %19362 = vmatmul.mubr.f32.vlgmr.msra.gmra.mrb[4].mxu0 %v25880_v55  ;;  %v26024_v18 = vsub.f32 %v3512_v45, %v26001_v59  ;;  %v3592_v39 = vsub.f32 %v25998_v57, %v3591_v8  ;;  %v4236_v11 = vsub.f32 %v26089_v9, %v4235_v10 }
 0x28a   :  { %19364 = vmatprep.mubr.f32.mxu0 %v25892_v60  ;;  %22502 = vmatpush3.bf16.msra.mxu0 %v25897_v62  ;;  %v3653_v62 = vand.u32 4294901760, %v25995_v56  ;;  %v3621_v43 = vand.u32 4294901760, %v3620_v46  ;;  %v4245_v12 = vand.u32 4294901760, %v26099_v27 }
 0x28b   :  { %22504 = vmatprep.subr.bf16.mxu0 %v25920_v29  ;;  %v3593_v23 = vand.u32 4294901760, %v3592_v39  ;;  %v4237_v14 = vand.u32 4294901760, %v4236_v11 }
 0x28c   :  { %v22615_v32 = vpack.c.bf16 %v3653_v62, %v3646_v6  ;;  %v4246_v3 = vsub.f32 %v26099_v27, %v4245_v12 }
 0x28d   :  { %19365 = vmatmul.mubr.f32.gmra.mrb[6].mxu0 %v25908_v4  ;;  %19593 = vmatprep.mubr.f32.mxu1 %v4237_v14 }
 0x28e   :  { %22506 = vmatpush3.bf16.msra.mxu0 %v25920_v29  ;;  %19375 = vmatprep.mubr.f32.mxu0 %v25873_v50  ;;  %v3654_v29 = vsub.f32 %v25995_v56, %v3653_v62  ;;  %v3611_v50 = vand.u32 4294901760, %v26024_v18 }
 0x28f   :  { %22580 = vmatprep.subr.bf16.mxu0 %v26006_v63 }
 0x290   :  { %v3655_v47 = vand.u32 4294901760, %v3654_v29  ;;  %v3612_v48 = vsub.f32 %v26024_v18, %v3611_v50 }
 0x291   :  { %19376 = vmatmul.mubr.f32.vlgmr.msra.gmra.mrb[4].mxu0 %v25880_v55  ;;  %v3603_v55 = vand.u32 4294901760, %v3602_v42 }
 0x292   :  { %19378 = vmatprep.mubr.f32.mxu0 %v25892_v60  ;;  %22582 = vmatpush3.bf16.msra.mxu0 %v26006_v63  ;;  %v3622_v60 = vsub.f32 %v3620_v46, %v3621_v43  ;;  %v22591_v30 = vpack.c.bf16 %v3655_v47, %v3648_v44  ;;  %v3613_v49 = vand.u32 4294901760, %v3612_v48 }
 0x293   :  { %22584 = vmatprep.subr.bf16.mxu0 %v26029_v24 }
 0x294   :  { %v3623_v52 = vand.u32 4294901760, %v3622_v60  ;;  %v4707_v60 = vld [vmem:[#allocation10 + $0x10] sm:$0xff] }
 0x295   :  { %19379 = vmatmul.mubr.f32.gmra.mrb[6].mxu0 %v25908_v4  ;;  %v22599_v4 = vpack.c.bf16 %v25995_v56, %v25993_v54 }
 0x296   :  { %22586 = vmatpush3.bf16.msra.mxu0 %v26029_v24  ;;  %19509 = vmatprep.mubr.f32.mxu0 %v3593_v23 }
 0x297   :  { %22588 = vmatprep.subr.bf16.mxu0 %v22587_v40 }
 0x299   :  { %19510 = vmatmul.mubr.f32.vlgmr.msra.gmra.mrb[4].mxu0 %v3603_v55 }
 0x29a   :  { %19512 = vmatprep.mubr.f32.mxu0 %v3613_v49  ;;  %22590 = vmatpush3.bf16.msra.mxu0 %v22587_v40 }
 0x29b   :  { %22592 = vmatprep.subr.bf16.mxu0 %v22591_v30 }
 0x29d   :  { %19513 = vmatmul.mubr.f32.gmra.mrb[6].mxu0 %v3623_v52  ;;  %v4708_v52 = vld [vmem:[#allocation10 + $0x18] sm:$0x3f] }
 0x29e   :  { %22594 = vmatpush3.bf16.msra.mxu0 %v22591_v30  ;;  %19523 = vmatprep.mubr.f32.mxu0 %v25982_v41  ;;  %v4710_v30 = vsel %vm1570_vm2, %v4707_v60, 0 }
 0x29f   :  { %22596 = vmatprep.subr.bf16.mxu0 %v22595_v61  ;;  %v4784_v49 = vand.u32 4294901760, %v4710_v30 }
 0x2a1   :  { %19524 = vmatmul.mubr.f32.vlgmr.msra.gmra.mrb[4].mxu0 %v25990_v53 }
 0x2a2   :  { %19526 = vmatprep.mubr.f32.mxu0 %v26001_v59  ;;  %22598 = vmatpush3.bf16.msra.mxu0 %v22595_v61  ;;  %v4785_v61 = vsub.f32 %v4710_v30, %v4784_v49 }
 0x2a3   :  { %22600 = vmatprep.subr.bf16.mxu0 %v22599_v4 }
 0x2a5   :  { %19527 = vmatmul.mubr.f32.gmra.mrb[6].mxu0 %v26017_v21 }
 0x2a6   :  { %22602 = vmatpush3.bf16.msra.mxu0 %v22599_v4  ;;  %19537 = vmatprep.mubr.f32.mxu0 %v25998_v57  ;;  %v4713_v4 = vsel %vm1570_vm2, %v4708_v52, 0 }
 0x2a7   :  { %22604 = vmatprep.subr.bf16.mxu0 %v26006_v63 }
 0x2a9   :  { %19538 = vmatmul.mubr.f32.vlgmr.msra.gmra.mrb[4].mxu0 %v26015_v5 }
 0x2aa   :  { %19540 = vmatprep.mubr.f32.mxu0 %v26024_v18  ;;  %22606 = vmatpush3.bf16.msra.mxu0 %v26006_v63 }
 0x2ab   :  { %22608 = vmatprep.subr.bf16.mxu0 %v26029_v24 }
 0x2ad   :  { %19541 = vmatmul.mubr.f32.gmra.mrb[6].mxu0 %v3620_v46 }
 0x2ae   :  { %22610 = vmatpush3.bf16.msra.mxu0 %v26029_v24  ;;  %19551 = vmatprep.mubr.f32.mxu0 %v3591_v8 }
 0x2af   :  { %22612 = vmatprep.subr.bf16.mxu0 %v22611_v2 }
 0x2b1   :  { %19552 = vmatmul.mubr.f32.vlgmr.msra.gmra.mrb[4].mxu0 %v3601_v37 }
 0x2b2   :  { %19554 = vmatprep.mubr.f32.mxu0 %v3611_v50  ;;  %22614 = vmatpush3.bf16.msra.mxu0 %v22611_v2  ;;  %v4247_v50 = vand.u32 4294901760, %v4246_v3  ;;  %v26148_v2 = vand.u32 4294901760, %v4713_v4  ;;  %v17246_v3 = vld [vmem:[%s29891_s5 + $0xc8] sm:$0xff] }
 0x2b3   :  { %22616 = vmatprep.subr.bf16.mxu0 %v22615_v32 }
 0x2b4   :  { %v4795_v31 = vsub.f32 %v4713_v4, %v26148_v2 }
 0x2b5   :  { %19555 = vmatmul.mubr.f32.gmra.mrb[6].mxu0 %v3621_v43 }
 0x2b6   :  { %22618 = vmatpush3.bf16.msra.mxu0 %v22615_v32  ;;  %19565 = vmatprep.mubr.f32.mxu0 %v25982_v41  ;;  %v4786_v32 = vand.u32 4294901760, %v4785_v61 }
 0x2b7   :  { %22620 = vmatprep.subr.bf16.mxu0 %v26006_v63 }
 0x2b8   :  { %v4787_v34 = vsub.f32 %v4785_v61, %v4786_v32 }
 0x2b9   :  { %19566 = vmatmul.mubr.f32.vlgmr.msra.gmra.mrb[4].mxu0 %v25990_v53 }
 0x2ba   :  { %19568 = vmatprep.mubr.f32.mxu0 %v26001_v59  ;;  %22622 = vmatpush3.bf16.msra.mxu0 %v26006_v63 }
 0x2bb   :  { %22624 = vmatprep.subr.bf16.mxu0 %v26029_v24 }
 0x2bd   :  { %19569 = vmatmul.mubr.f32.gmra.mrb[6].mxu0 %v26017_v21 }
 0x2be   :  { %22626 = vmatpush3.bf16.msra.mxu0 %v26029_v24  ;;  %19579 = vmatprep.mubr.f32.mxu0 %v25982_v41 }
 0x2c1   :  { %19580 = vmatmul.mubr.f32.vlgmr.msra.gmra.mrb[4].mxu0 %v25990_v53 }
 0x2c2   :  { %19582 = vmatprep.mubr.f32.mxu0 %v26001_v59 }
 0x2c5   :  { %19583 = vmatmul.mubr.f32.gmra.mrb[6].mxu0 %v26017_v21 }
 0x394   :  { %v19581_v13 = vpop.f32.mrb[4].mxu0 }
 0x395   :  { %v4146_v20 = vadd.f32 %v19581_v13, %v17234_v0  ;;  %v4112_v26 = vpop.f32.mrb[5].mxu0  ;;  %v17238_v13 = vld [vmem:[%s29891_s5 + $0x88] sm:$0xff] }
 0x396   :  { %v4145_v22 = vadd.f32 %v17234_v0, %v4112_v26 }
 0x397   :  { %v4150_v28 = vmax.f32 %v4146_v20, 0.0 }
 0x398   :  { %v4149_v33 = vmax.f32 %v4145_v22, 0.0  ;;  %v19584_v16 = vpop.f32.mrb[6].mxu0  ;;  %v17239_v22 = vld [vmem:[%s29891_s5 + $0x90] sm:$0xff] }
 0x399   :  { %v4168_v38 = vand.u32 4294901760, %v4150_v28  ;;  %v4148_v41 = vadd.f32 %v19584_v16, %v17234_v0  ;;  %v4124_v45 = vpop.f32.mrb[7].mxu0  ;;  %v5278_v16 = vand.u32 4294901760, %v17239_v22 }
 0x39a   :  { %v4165_v51 = vand.u32 4294901760, %v4149_v33  ;;  %v4147_v53 = vadd.f32 %v17234_v0, %v4124_v45  ;;  %v17237_v0 = vld [vmem:[%s29891_s5 + $0x80] sm:$0xff]  ;;  %v17242_v45 = vld [vmem:[%s29891_s5 + $0xa8] sm:$0xff] }
 0x39b   :  { %v4262_v54 = vsub.f32 %v4150_v28, %v4168_v38  ;;  %v4152_v56 = vmax.f32 %v4148_v41, 0.0  ;;  %v5272_v26 = vand.u32 4294901760, %v17237_v0  ;;  %v17240_v28 = vld [vmem:[%s29891_s5 + $0x98] sm:$0xff]  ;;  %v17241_v41 = vld [vmem:[%s29891_s5 + $0xa0] sm:$0xff] }
 0x39c   :  { %v26102_v57 = vpack.c.bf16 %v4168_v38, %v4165_v51  ;;  %v4255_v58 = vsub.f32 %v4149_v33, %v4165_v51  ;;  %v4151_v59 = vmax.f32 %v4147_v53, 0.0  ;;  %v5281_v38 = vand.u32 4294901760, %v17240_v28 }
 0x39d   :  { %v4263_v63 = vand.u32 4294901760, %v4262_v54  ;;  %v4162_v1 = vsel %vm1583_vm1, %v4152_v56, 0  ;;  %v5284_v51 = vand.u32 4294901760, %v17241_v41  ;;  %v5287_v53 = vand.u32 4294901760, %v17242_v45  ;;  %v17244_v56 = vld [vmem:[%s29891_s5 + $0xb8] sm:$0xff] }
 0x39e   :  { %v4256_v5 = vand.u32 4294901760, %v4255_v58  ;;  %v26106_v21 = vpack.c.bf16 %v4262_v54, %v4255_v58  ;;  %v4174_v6 = vand.u32 4294901760, %v4162_v1  ;;  %v4171_v62 = vand.u32 4294901760, %v4151_v59  ;;  %22628 = vmatprep.subr.bf16.mxu1 %v26102_v57 }
 0x39f   :  { %v4264_v8 = vsub.f32 %v4262_v54, %v4263_v63  ;;  %22630 = vmatpush3.bf16.msra.mxu1 %v26102_v57  ;;  %v17243_v54 = vld [vmem:[%s29891_s5 + $0xb0] sm:$0xff]  ;;  %v26281_v60 = vsub.f32 %v17242_v45, %v5287_v53 }
 0x3a0   :  { %v4257_v18 = vsub.f32 %v4255_v58, %v4256_v5  ;;  %v26110_v24 = vpack.c.bf16 %v4263_v63, %v4256_v5  ;;  %v4276_v25 = vsub.f32 %v4162_v1, %v4174_v6  ;;  %v26112_v35 = vpack.c.bf16 %v4174_v6, %v4171_v62  ;;  %v17245_v1 = vld [vmem:[%s29891_s5 + $0xc0] sm:$0xff] }
 0x3a1   :  { %v4265_v37 = vand.u32 4294901760, %v4264_v8  ;;  %v4269_v46 = vsub.f32 %v4151_v59, %v4171_v62  ;;  %v26227_v58 = vpack.c.bf16 %v5287_v53, %v5284_v51  ;;  %v5290_v59 = vand.u32 4294901760, %v17243_v54  ;;  %v26242_v8 = vld [vmem:[%s29891_s5 + $0xd0] sm:$0xff] }
 0x3a2   :  { %v4258_v36 = vand.u32 4294901760, %v4257_v18  ;;  %v4277_v29 = vand.u32 4294901760, %v4276_v25  ;;  %22632 = vmatprep.subr.bf16.mxu1 %v26112_v35  ;;  %v5293_v63 = vand.u32 4294901760, %v17244_v56  ;;  %v5296_v6 = vand.u32 4294901760, %v17245_v1  ;;  %v26247_v18 = vld [vmem:[%s29891_s5 + $0xd8] sm:$0xff] }
 0x3a3   :  { %v4270_v39 = vand.u32 4294901760, %v4269_v46  ;;  %v26115_v40 = vpack.c.bf16 %v4276_v25, %v4269_v46  ;;  %22634 = vmatpush3.bf16.msra.mxu1 %v26112_v35  ;;  %v5299_v62 = vand.u32 4294901760, %v17246_v3 }
 0x3a4   :  { %v26118_v42 = vpack.c.bf16 %v4265_v37, %v4258_v36  ;;  %v4278_v43 = vsub.f32 %v4276_v25, %v4277_v29  ;;  %v26237_v5 = vpack.c.bf16 %v5293_v63, %v5290_v59  ;;  %v5302_v37 = vand.u32 4294901760, %v26242_v8 }
 0x3a5   :  { %v4271_v44 = vsub.f32 %v4269_v46, %v4270_v39  ;;  %v26120_v47 = vpack.c.bf16 %v4277_v29, %v4270_v39  ;;  %v26251_v25 = vpack.c.bf16 %v5299_v62, %v5296_v6  ;;  %v5305_v46 = vand.u32 4294901760, %v26247_v18 }
 0x3a6   :  { %v4279_v23 = vand.u32 4294901760, %v4278_v43  ;;  %19594 = vmatmul.mubr.f32.vlgmr.msra.gmra.mrb[8].mxu1 %v4247_v50  ;;  %22636 = vmatprep.subr.bf16.mxu1 %v26118_v42  ;;  %v26271_v39 = vsub.f32 %v17237_v0, %v5272_v26  ;;  %v26319_v45 = vsub.f32 %v17245_v1, %v5296_v6 }
 0x3a7   :  { %v4272_v48 = vand.u32 4294901760, %v4271_v44  ;;  %22638 = vmatpush3.bf16.msra.mxu1 %v26118_v42  ;;  %19604 = vmatprep.mubr.f32.mxu1 %v26086_v7  ;;  %v26261_v36 = vpack.c.bf16 %v5305_v46, %v5302_v37  ;;  %v26275_v44 = vsub.f32 %v17239_v22, %v5278_v16 }
 0x3a8   :  { %v5381_v52 = vand.u32 4294901760, %v26271_v39 }
 0x3a9   :  { %v26125_v55 = vpack.c.bf16 %v4279_v23, %v4272_v48  ;;  %v26277_v23 = vsub.f32 %v17240_v28, %v5281_v38  ;;  %v26279_v48 = vsub.f32 %v17241_v41, %v5284_v51  ;;  %v5395_v4 = vand.u32 4294901760, %v26275_v44 }
 0x3aa   :  { %v26317_v41 = vsub.f32 %v17244_v56, %v5293_v63  ;;  %v26321_v51 = vsub.f32 %v17246_v3, %v5299_v62 }
 0x3ab   :  { %22640 = vmatprep.subr.bf16.mxu1 %v26125_v55 }
 0x3ac   :  { %22642 = vmatpush3.bf16.msra.mxu1 %v26125_v55  ;;  %v29916_v63 = vand.u32 4294901760, %v26321_v51 }
 0x3ad   :  { %22644 = vmatprep.subr.bf16.mxu1 %v26106_v21 }
 0x3af   :  { %19605 = vmatmul.mubr.f32.vlgmr.msra.gmra.mrb[8].mxu1 %v26096_v15 }
 0x3b0   :  { %22646 = vmatpush3.bf16.msra.mxu1 %v26106_v21  ;;  %19615 = vmatprep.mubr.f32.mxu1 %v26089_v9  ;;  %v4796_v9 = vand.u32 4294901760, %v4795_v31 }
 0x3b1   :  { %22648 = vmatprep.subr.bf16.mxu1 %v26115_v40 }
 0x3b2   :  { %v4797_v11 = vsub.f32 %v4795_v31, %v4796_v9 }
 0x3b4   :  { %22650 = vmatpush3.bf16.msra.mxu1 %v26115_v40  ;;  %v4798_v14 = vand.u32 4294901760, %v4797_v11 }
 0x3b5   :  { %22652 = vmatprep.subr.bf16.mxu1 %v26102_v57 }
 0x3b7   :  { %19616 = vmatmul.mubr.f32.vlgmr.msra.gmra.mrb[8].mxu1 %v26099_v27  ;;  %v5275_v27 = vand.u32 4294901760, %v17238_v13 }
 0x3b8   :  { %22654 = vmatpush3.bf16.msra.mxu1 %v26102_v57  ;;  %19626 = vmatprep.mubr.f32.mxu1 %v4235_v10  ;;  %v4788_v10 = vand.u32 4294901760, %v4787_v34 }
 0x3b9   :  { %22656 = vmatprep.subr.bf16.mxu1 %v26112_v35  ;;  %v26206_v33 = vpack.c.bf16 %v5275_v27, %v5272_v26  ;;  %v26273_v43 = vsub.f32 %v17238_v13, %v5275_v27 }
 0x3bc   :  { %22658 = vmatpush3.bf16.msra.mxu1 %v26112_v35 }
 0x3bd   :  { %22660 = vmatprep.subr.bf16.mxu1 %v26110_v24 }
 0x3bf   :  { %19627 = vmatmul.mubr.f32.vlgmr.msra.gmra.mrb[8].mxu1 %v4245_v12  ;;  %v26217_v12 = vpack.c.bf16 %v5281_v38, %v5278_v16  ;;  %v26315_v38 = vsub.f32 %v17243_v54, %v5290_v59  ;;  %v29917_v59 = vand.u32 4294901760, %v26319_v45 }
 0x3c0   :  { %22662 = vmatpush3.bf16.msra.mxu1 %v26110_v24  ;;  %19637 = vmatprep.mubr.f32.mxu1 %v26086_v7 }
 0x3c1   :  { %22664 = vmatprep.subr.bf16.mxu1 %v26120_v47  ;;  %v29919_v53 = vand.u32 4294901760, %v26315_v38  ;;  %v5438_v62 = vsub.f32 %v26319_v45, %v29917_v59 }
 0x3c3   :  { %v5424_v54 = vsub.f32 %v26315_v38, %v29919_v53 }
 0x3c4   :  { %22666 = vmatpush3.bf16.msra.mxu1 %v26120_v47 }
 0x3c5   :  { %22668 = vmatprep.subr.bf16.mxu1 %v26102_v57  ;;  %v5425_v3 = vand.u32 4294901760, %v5424_v54  ;;  %v22799_v54 = vpack.c.bf16 %v26321_v51, %v26319_v45 }
 0x3c7   :  { %19638 = vmatmul.mubr.f32.vlgmr.msra.gmra.mrb[8].mxu1 %v26096_v15 }
 0x3c8   :  { %22670 = vmatpush3.bf16.msra.mxu1 %v26102_v57  ;;  %19648 = vmatprep.mubr.f32.mxu1 %v26086_v7  ;;  %v17235_v7 = vld [vmem:[%s29891_s5 + $0x70] sm:$0xff] }
 0x3c9   :  { %22672 = vmatprep.subr.bf16.mxu1 %v26112_v35  ;;  %v5266_v19 = vand.u32 4294901760, %v17235_v7 }
 0x3cb   :  { %v26267_v29 = vsub.f32 %v17235_v7, %v5266_v19 }
 0x3cc   :  { %22674 = vmatpush3.bf16.msra.mxu1 %v26112_v35 }
 0x3cd   :  { %22676 = vmatprep.subr.bf16.mxu1 %v26102_v57  ;;  %v5367_v30 = vand.u32 4294901760, %v26267_v29 }
 0x3cf   :  { %19649 = vmatmul.mubr.f32.vlgmr.msra.gmra.mrb[8].mxu1 %v26096_v15  ;;  %v5269_v15 = vand.u32 4294901760, %v17236_v17  ;;  %v5368_v34 = vsub.f32 %v26267_v29, %v5367_v30 }
 0x3d0   :  { %22678 = vmatpush3.bf16.msra.mxu1 %v26102_v57  ;;  %19659 = vmatprep.mubr.f32.mxu1 %v4788_v10  ;;  %v5382_v10 = vsub.f32 %v26271_v39, %v5381_v52 }
 0x3d1   :  { %22680 = vmatprep.subr.bf16.mxu1 %v26112_v35  ;;  %v26196_v20 = vpack.c.bf16 %v5269_v15, %v5266_v19  ;;  %v26269_v50 = vsub.f32 %v17236_v17, %v5269_v15  ;;  %v5369_v17 = vand.u32 4294901760, %v5368_v34  ;;  %v29918_v34 = vand.u32 4294901760, %v26317_v41 }
 0x3d2   :  { %v5383_v15 = vand.u32 4294901760, %v5382_v10 }
 0x3d3   :  { %v5431_v56 = vsub.f32 %v26317_v41, %v29918_v34 }
 0x3d4   :  { %22682 = vmatpush3.bf16.msra.mxu1 %v26112_v35 }
 0x3d5   :  { %22684 = vmatprep.subr.bf16.mxu1 %v26118_v42  ;;  %v5432_v6 = vand.u32 4294901760, %v5431_v56 }
 0x3d7   :  { %19660 = vmatmul.mubr.f32.vlgmr.msra.gmra.mrb[10].mxu1 %v4798_v14  ;;  %v5396_v14 = vsub.f32 %v26275_v44, %v5395_v4 }
 0x3d8   :  { %22686 = vmatpush3.bf16.msra.mxu1 %v26118_v42  ;;  %19670 = vmatprep.mubr.f32.mxu1 %v4784_v49 }
 0x3d9   :  { %22688 = vmatprep.subr.bf16.mxu1 %v26125_v55  ;;  %v5397_v13 = vand.u32 4294901760, %v5396_v14  ;;  %v5445_v14 = vsub.f32 %v26321_v51, %v29916_v63 }
 0x3dc   :  { %22690 = vmatpush3.bf16.msra.mxu1 %v26125_v55 }
 0x3dd   :  { %22692 = vmatprep.subr.bf16.mxu1 %v26106_v21 }
 0x3df   :  { %19671 = vmatmul.mubr.f32.vlgmr.msra.gmra.mrb[10].mxu1 %v26148_v2 }
 0x3e0   :  { %22694 = vmatpush3.bf16.msra.mxu1 %v26106_v21  ;;  %19681 = vmatprep.mubr.f32.mxu1 %v4785_v61  ;;  %v5388_v61 = vand.u32 4294901760, %v26273_v43 }
 0x3e1   :  { %22696 = vmatprep.subr.bf16.mxu1 %v26115_v40 }
 0x3e2   :  { %v5389_v11 = vsub.f32 %v26273_v43, %v5388_v61 }
 0x3e4   :  { %22698 = vmatpush3.bf16.msra.mxu1 %v26115_v40  ;;  %v5390_v0 = vand.u32 4294901760, %v5389_v11 }
 0x3e5   :  { %22700 = vmatprep.subr.bf16.mxu1 %v26102_v57 }
 0x3e6   :  { %v22755_v16 = vpack.c.bf16 %v5390_v0, %v5383_v15  ;;  %v26342_v0 = vsub.f32 %v26242_v8, %v5302_v37 }
 0x3e7   :  { %19682 = vmatmul.mubr.f32.vlgmr.msra.gmra.mrb[10].mxu1 %v4795_v31  ;;  %v29920_v31 = vand.u32 4294901760, %v26281_v60 }
 0x3e8   :  { %22702 = vmatpush3.bf16.msra.mxu1 %v26102_v57  ;;  %19692 = vmatprep.mubr.f32.mxu1 %v4786_v32  ;;  %v5409_v32 = vand.u32 4294901760, %v26279_v48 }
 0x3e9   :  { %22704 = vmatprep.subr.bf16.mxu1 %v26112_v35  ;;  %v5417_v22 = vsub.f32 %v26281_v60, %v29920_v31 }
 0x3ea   :  { %v5410_v27 = vsub.f32 %v26279_v48, %v5409_v32 }
 0x3eb   :  { %v5418_v11 = vand.u32 4294901760, %v5417_v22 }
 0x3ec   :  { %22706 = vmatpush3.bf16.msra.mxu1 %v26112_v35  ;;  %v5411_v10 = vand.u32 4294901760, %v5410_v27 }
 0x3ed   :  { %22708 = vmatprep.subr.bf16.mxu1 %v26110_v24 }
 0x3ee   :  { %v22763_v1 = vpack.c.bf16 %v5418_v11, %v5411_v10  ;;  %v22791_v10 = vpack.c.bf16 %v26281_v60, %v26279_v48  ;;  %v22795_v11 = vpack.c.bf16 %v26317_v41, %v26315_v38 }
 0x3ef   :  { %19693 = vmatmul.mubr.f32.vlgmr.msra.gmra.mrb[10].mxu1 %v4796_v9 }
 0x3f0   :  { %22710 = vmatpush3.bf16.msra.mxu1 %v26110_v24  ;;  %19703 = vmatprep.mubr.f32.mxu1 %v4784_v49 }
 0x3f1   :  { %22712 = vmatprep.subr.bf16.mxu1 %v26120_v47 }
 0x3f4   :  { %22714 = vmatpush3.bf16.msra.mxu1 %v26120_v47 }
 0x3f5   :  { %22716 = vmatprep.subr.bf16.mxu1 %v26102_v57 }
 0x3f7   :  { %19704 = vmatmul.mubr.f32.vlgmr.msra.gmra.mrb[10].mxu1 %v26148_v2 }
 0x3f8   :  { %22718 = vmatpush3.bf16.msra.mxu1 %v26102_v57  ;;  %19714 = vmatprep.mubr.f32.mxu1 %v4784_v49  ;;  %v5374_v49 = vand.u32 4294901760, %v26269_v50 }
 0x3f9   :  { %22720 = vmatprep.subr.bf16.mxu1 %v26112_v35 }
 0x3fa   :  { %v5375_v9 = vsub.f32 %v26269_v50, %v5374_v49 }
 0x3fc   :  { %22722 = vmatpush3.bf16.msra.mxu1 %v26112_v35  ;;  %v5376_v19 = vand.u32 4294901760, %v5375_v9 }
 0x3fd   :  { %22724 = vmatprep.subr.bf16.mxu1 %v26196_v20 }
 0x3fe   :  { %v22751_v28 = vpack.c.bf16 %v5376_v19, %v5369_v17  ;;  %v5439_v17 = vand.u32 4294901760, %v5438_v62  ;;  %v5446_v19 = vand.u32 4294901760, %v5445_v14  ;;  %v6589_v14 = vld [vmem:[#allocation10 + $0x28] sm:$0x3f] }
 0x3ff   :  { %19715 = vmatmul.mubr.f32.vlgmr.msra.gmra.mrb[10].mxu1 %v26148_v2  ;;  %v5402_v2 = vand.u32 4294901760, %v26277_v23 }
 0x400   :  { %22726 = vmatpush3.bf16.msra.mxu1 %v26196_v20  ;;  %22752 = vmatprep.subr.bf16.mxu0 %v22751_v28  ;;  %v22771_v15 = vpack.c.bf16 %v5446_v19, %v5439_v17  ;;  %v6594_v17 = vsel %vm1570_vm2, %v6589_v14, 0 }
 0x401   :  { %22728 = vmatprep.subr.bf16.mxu1 %v26206_v33  ;;  %v5403_v7 = vsub.f32 %v26277_v23, %v5402_v2  ;;  %22754 = vmatpush3.bf16.msra.mxu0 %v22751_v28 }
 0x402   :  { %22756 = vmatprep.subr.bf16.mxu0 %v22755_v16 }
 0x403   :  { %v5404_v26 = vand.u32 4294901760, %v5403_v7  ;;  %v22767_v7 = vpack.c.bf16 %v5432_v6, %v5425_v3  ;;  %v6588_v6 = vld [vmem:[#allocation10 + $0x20] sm:$0xff] }
 0x404   :  { %22730 = vmatpush3.bf16.msra.mxu1 %v26206_v33  ;;  %v6591_v62 = vsel %vm1570_vm2, %v6588_v6, 0 }
 0x405   :  { %22732 = vmatprep.subr.bf16.mxu1 %v26217_v12  ;;  %v22759_v9 = vpack.c.bf16 %v5404_v26, %v5397_v13  ;;  %22758 = vmatpush3.bf16.msra.mxu0 %v22755_v16  ;;  %v26347_v13 = vsub.f32 %v26247_v18, %v5305_v46  ;;  %v29915_v26 = vand.u32 4294901760, %v26342_v0  ;;  %v22779_v18 = vpack.c.bf16 %v26269_v50, %v26267_v29 }
 0x406   :  { %v22783_v46 = vpack.c.bf16 %v26273_v43, %v26271_v39  ;;  %v29947_v29 = vand.u32 4294901760, %v26319_v45  ;;  %v29948_v50 = vand.u32 4294901760, %v26321_v51  ;;  %v29949_v43 = vand.u32 4294901760, %v26342_v0 }
 0x407   :  { %22760 = vmatprep.subr.bf16.mxu0 %v22759_v9  ;;  %v29914_v27 = vand.u32 4294901760, %v26347_v13  ;;  %v5452_v22 = vsub.f32 %v26342_v0, %v29915_v26  ;;  %v22803_v56 = vpack.c.bf16 %v26347_v13, %v26342_v0  ;;  %v4700_v0 = vld [vmem:[%s29891_s5 + $0x40] sm:$0xff] }
 0x408   :  { %22734 = vmatpush3.bf16.msra.mxu1 %v26217_v12  ;;  %v22855_v39 = vpack.c.bf16 %v29948_v50, %v29947_v29 }
 0x409   :  { %22736 = vmatprep.subr.bf16.mxu1 %v26227_v58  ;;  %22762 = vmatpush3.bf16.msra.mxu0 %v22759_v9  ;;  %v5459_v28 = vsub.f32 %v26347_v13, %v29914_v27  ;;  %v5453_v8 = vand.u32 4294901760, %v5452_v22  ;;  %v22787_v9 = vpack.c.bf16 %v26277_v23, %v26275_v44  ;;  %v29950_v44 = vand.u32 4294901760, %v26347_v13  ;;  %v4701_v13 = vld [vmem:[%s29891_s5 + $0x48] sm:$0xff] }
 0x40a   :  { %22764 = vmatprep.subr.bf16.mxu0 %v22763_v1 }
 0x40b   :  { %v5460_v37 = vand.u32 4294901760, %v5459_v28  ;;  %v22859_v23 = vpack.c.bf16 %v29950_v44, %v29949_v43 }
 0x40c   :  { %22738 = vmatpush3.bf16.msra.mxu1 %v26227_v58 }
 0x40d   :  { %22740 = vmatprep.subr.bf16.mxu1 %v26237_v5  ;;  %22766 = vmatpush3.bf16.msra.mxu0 %v22763_v1  ;;  %v22775_v16 = vpack.c.bf16 %v5460_v37, %v5453_v8 }
 0x40e   :  { %22768 = vmatprep.subr.bf16.mxu0 %v22767_v7 }
 0x410   :  { %22742 = vmatpush3.bf16.msra.mxu1 %v26237_v5 }
 0x411   :  { %22744 = vmatprep.subr.bf16.mxu1 %v26251_v25  ;;  %22770 = vmatpush3.bf16.msra.mxu0 %v22767_v7  ;;  %v26376_v7 = vand.u32 4294901760, %v6591_v62 }
 0x412   :  { %22772 = vmatprep.subr.bf16.mxu0 %v22771_v15 }
 0x413   :  { %v26381_v28 = vsub.f32 %v6591_v62, %v26376_v7 }
 0x414   :  { %22746 = vmatpush3.bf16.msra.mxu1 %v26251_v25 }
 0x415   :  { %22748 = vmatprep.subr.bf16.mxu1 %v26261_v36  ;;  %22774 = vmatpush3.bf16.msra.mxu0 %v22771_v15 }
 0x416   :  { %22776 = vmatprep.subr.bf16.mxu0 %v22775_v16 }
 0x418   :  { %22750 = vmatpush3.bf16.msra.mxu1 %v26261_v36 }
 0x419   :  { %23060 = vmatprep.subr.bf16.mxu1 %v26102_v57  ;;  %22778 = vmatpush3.bf16.msra.mxu0 %v22775_v16  ;;  %v26386_v16 = vand.u32 4294901760, %v6594_v17 }
 0x41a   :  { %22780 = vmatprep.subr.bf16.mxu0 %v22779_v18 }
 0x41b   :  { %v6676_v26 = vsub.f32 %v6594_v17, %v26386_v16 }
 0x41d   :  { %v6677_v59 = vand.u32 4294901760, %v6676_v26 }
 0x41f   :  { %v6678_v17 = vsub.f32 %v6676_v26, %v6677_v59 }
 0x4a2   :  { %v26371_v1 = vpop.f32.mrb[8].mxu1 }
 0x4a3   :  { %v26373_v3 = vpop.f32.mrb[9].mxu1 }
 0x4a4   :  { %v5924_v48 = vsel %vm5258_vm3, %v26373_v3, 0 }
 0x4d2   :  { %v19716_v19 = vpop.f32.mrb[10].mxu1 }
 0x4d3   :  { %v5263_v15 = vsel %vm5258_vm3, %v19716_v19, 0  ;;  %v5233_v22 = vpop.f32.mrb[11].mxu1  ;;  %v6667_v19 = vand.u32 4294901760, %v26381_v28 }
 0x4d4   :  { %v26383_v8 = vand.u32 4294901760, %v5263_v15  ;;  %v5260_v37 = vsel %vm5258_vm3, %v5233_v22, 0 }
 0x4d5   :  { %v26388_v6 = vand.u32 4294901760, %v5260_v37 }
 0x4d6   :  { %v26391_v27 = vsub.f32 %v5263_v15, %v26383_v8 }
 0x4d7   :  { %v5345_v14 = vsub.f32 %v5260_v37, %v26388_v6  ;;  %19776 = vmatprep.mubr.f32.mxu0 %v26388_v6  ;;  %v6668_v37 = vsub.f32 %v26381_v28, %v6667_v19 }
 0x4d8   :  { %v5356_v62 = vand.u32 4294901760, %v26391_v27  ;;  %19777 = vmatmul.mubr.f32.vlgmr.msra.gmra.mrb[8].mxu0 %v26383_v8 }
 0x4d9   :  { %v5346_v22 = vand.u32 4294901760, %v5345_v14  ;;  %22782 = vmatpush3.bf16.msra.mxu0 %v22779_v18  ;;  %19807 = vmatprep.mubr.f32.mxu0 %v5345_v14  ;;  %v6669_v31 = vand.u32 4294901760, %v6668_v37  ;;  %v6679_v18 = vand.u32 4294901760, %v6678_v17 }
 0x4da   :  { %v5357_v15 = vsub.f32 %v26391_v27, %v5356_v62  ;;  %22784 = vmatprep.subr.bf16.mxu0 %v22783_v46 }
 0x4db   :  { %v5347_v63 = vsub.f32 %v5345_v14, %v5346_v22 }
 0x4dc   :  { %v5358_v53 = vand.u32 4294901760, %v5357_v15 }
 0x4dd   :  { %22786 = vmatpush3.bf16.msra.mxu0 %v22783_v46  ;;  %v5348_v34 = vand.u32 4294901760, %v5347_v63  ;;  %v5927_v46 = vsel %vm5258_vm3, %v26371_v1, 0 }
 0x4de   :  { %22788 = vmatprep.subr.bf16.mxu0 %v22787_v9  ;;  %v26562_v3 = vand.u32 4294901760, %v5927_v46 }
 0x4df   :  { %19745 = vmatprep.mubr.f32.mxu1 %v5348_v34  ;;  %v4699_v34 = vld [vmem:[%s29891_s5 + $0x38] sm:$0xff] }
 0x4e0   :  { %19746 = vmatmul.mubr.f32.vlgmr.msra.gmra.mrb[12].mxu1 %v5358_v53  ;;  %v4698_v53 = vld [vmem:[%s29891_s5 + $0x30] sm:$0xff]  ;;  %v5951_v63 = vand.u32 4294901760, %v4699_v34  ;;  %v26589_v37 = vsub.f32 %v5927_v46, %v26562_v3 }
 0x4e1   :  { %22790 = vmatpush3.bf16.msra.mxu0 %v22787_v9  ;;  %23062 = vmatpush3.bf16.msra.mxu1 %v26102_v57 }
 0x4e2   :  { %23064 = vmatprep.subr.bf16.mxu1 %v26112_v35  ;;  %22792 = vmatprep.subr.bf16.mxu0 %v22791_v10 }
 0x4e3   :  { %20097 = vmatprep.mubr.f32.mxu1 %v6669_v31  ;;  %v4696_v31 = vld [vmem:[%s29891_s5 + $0x20] sm:$0xff] }
 0x4e5   :  { %22794 = vmatpush3.bf16.msra.mxu0 %v22791_v10  ;;  %23066 = vmatpush3.bf16.msra.mxu1 %v26112_v35  ;;  %v4702_v10 = vld [vmem:[%s29891_s5 + $0x50] sm:$0xff] }
 0x4e6   :  { %23068 = vmatprep.subr.bf16.mxu1 %v26118_v42  ;;  %22796 = vmatprep.subr.bf16.mxu0 %v22795_v11 }
 0x4e8   :  { %20098 = vmatmul.mubr.f32.vlgmr.msra.gmra.mrb[14].mxu1 %v6679_v18 }
 0x4e9   :  { %22798 = vmatpush3.bf16.msra.mxu0 %v22795_v11  ;;  %23070 = vmatpush3.bf16.msra.mxu1 %v26118_v42  ;;  %v29945_v42 = vand.u32 4294901760, %v26315_v38  ;;  %v4697_v38 = vld [vmem:[%s29891_s5 + $0x28] sm:$0xff]  ;;  %v4703_v11 = vld [vmem:[%s29891_s5 + $0x58] sm:$0xff] }
 0x4ea   :  { %23072 = vmatprep.subr.bf16.mxu1 %v26125_v55  ;;  %22800 = vmatprep.subr.bf16.mxu0 %v22799_v54  ;;  %v5945_v45 = vand.u32 4294901760, %v4697_v38 }
 0x4eb   :  { %20108 = vmatprep.mubr.f32.mxu1 %v26376_v7 }
 0x4ec   :  { %v26586_v15 = vsub.f32 %v4697_v38, %v5945_v45 }
 0x4ed   :  { %22802 = vmatpush3.bf16.msra.mxu0 %v22799_v54  ;;  %23074 = vmatpush3.bf16.msra.mxu1 %v26125_v55 }
 0x4ee   :  { %23076 = vmatprep.subr.bf16.mxu1 %v26106_v21  ;;  %22804 = vmatprep.subr.bf16.mxu0 %v22803_v56 }
 0x4f0   :  { %20109 = vmatmul.mubr.f32.vlgmr.msra.gmra.mrb[14].mxu1 %v26386_v16 }
 0x4f1   :  { %22806 = vmatpush3.bf16.msra.mxu0 %v22803_v56  ;;  %23078 = vmatpush3.bf16.msra.mxu1 %v26106_v21  ;;  %v22835_v21 = vpack.c.bf16 %v5374_v49, %v5367_v30  ;;  %v4693_v30 = vld [vmem:[%s29891_s5 + $0x8] sm:$0xff] }
 0x4f2   :  { %23080 = vmatprep.subr.bf16.mxu1 %v26115_v40  ;;  %22808 = vmatprep.subr.bf16.mxu0 %v26196_v20  ;;  %v5933_v49 = vand.u32 4294901760, %v4693_v30 }
 0x4f3   :  { %20119 = vmatprep.mubr.f32.mxu1 %v26381_v28  ;;  %v5963_v28 = vand.u32 4294901760, %v4703_v11 }
 0x4f4   :  { %19808 = vmatmul.mubr.f32.vlgmr.msra.gmra.mrb[8].mxu0 %v26391_v27  ;;  %v5957_v27 = vand.u32 4294901760, %v4701_v13  ;;  %v26560_v56 = vsub.f32 %v4693_v30, %v5933_v49 }
 0x4f5   :  { %22810 = vmatpush3.bf16.msra.mxu0 %v26196_v20  ;;  %19838 = vmatprep.mubr.f32.mxu0 %v5346_v22 }
 0x4f6   :  { %23082 = vmatpush3.bf16.msra.mxu1 %v26115_v40  ;;  %22812 = vmatprep.subr.bf16.mxu0 %v26206_v33  ;;  %v6038_v14 = vand.u32 4294901760, %v26560_v56 }
 0x4f7   :  { %23084 = vmatprep.subr.bf16.mxu1 %v26102_v57 }
 0x4f9   :  { %20120 = vmatmul.mubr.f32.vlgmr.msra.gmra.mrb[14].mxu1 %v6676_v26  ;;  %22814 = vmatpush3.bf16.msra.mxu0 %v26206_v33  ;;  %v5954_v26 = vand.u32 4294901760, %v4700_v0 }
 0x4fa   :  { %23086 = vmatpush3.bf16.msra.mxu1 %v26102_v57  ;;  %22816 = vmatprep.subr.bf16.mxu0 %v26217_v12 }
 0x4fb   :  { %23088 = vmatprep.subr.bf16.mxu1 %v26112_v35  ;;  %20130 = vmatprep.mubr.f32.mxu1 %v6667_v19  ;;  %v26565_v1 = vpack.c.bf16 %v5957_v27, %v5954_v26 }
 0x4fd   :  { %22818 = vmatpush3.bf16.msra.mxu0 %v26217_v12 }
 0x4fe   :  { %23090 = vmatpush3.bf16.msra.mxu1 %v26112_v35  ;;  %22820 = vmatprep.subr.bf16.mxu0 %v26227_v58 }
 0x4ff   :  { %23092 = vmatprep.subr.bf16.mxu1 %v26110_v24 }
 0x501   :  { %20131 = vmatmul.mubr.f32.vlgmr.msra.gmra.mrb[14].mxu1 %v6677_v59  ;;  %22822 = vmatpush3.bf16.msra.mxu0 %v26227_v58  ;;  %v5948_v59 = vand.u32 4294901760, %v4698_v53 }
 0x502   :  { %23094 = vmatpush3.bf16.msra.mxu1 %v26110_v24  ;;  %22824 = vmatprep.subr.bf16.mxu0 %v26237_v5  ;;  %v22843_v24 = vpack.c.bf16 %v5402_v2, %v5395_v4 }
 0x503   :  { %23096 = vmatprep.subr.bf16.mxu1 %v26120_v47  ;;  %20141 = vmatprep.mubr.f32.mxu1 %v26376_v7  ;;  %v26550_v9 = vpack.c.bf16 %v5951_v63, %v5948_v59  ;;  %v26611_v50 = vsub.f32 %v4698_v53, %v5948_v59 }
 0x505   :  { %22826 = vmatpush3.bf16.msra.mxu0 %v26237_v5 }
 0x506   :  { %23098 = vmatpush3.bf16.msra.mxu1 %v26120_v47  ;;  %22828 = vmatprep.subr.bf16.mxu0 %v26251_v25  ;;  %v29946_v47 = vand.u32 4294901760, %v26317_v41  ;;  %v5942_v41 = vand.u32 4294901760, %v4696_v31 }
 0x507   :  { %23100 = vmatprep.subr.bf16.mxu1 %v26102_v57 }
 0x508   :  { %v22851_v55 = vpack.c.bf16 %v29946_v47, %v29945_v42  ;;  %v26584_v22 = vsub.f32 %v4696_v31, %v5942_v41  ;;  %v6066_v47 = vand.u32 4294901760, %v26586_v15 }
 0x509   :  { %20142 = vmatmul.mubr.f32.vlgmr.msra.gmra.mrb[14].mxu1 %v26386_v16  ;;  %22830 = vmatpush3.bf16.msra.mxu0 %v26251_v25 }
 0x50a   :  { %23102 = vmatpush3.bf16.msra.mxu1 %v26102_v57  ;;  %22832 = vmatprep.subr.bf16.mxu0 %v26261_v36  ;;  %v22839_v57 = vpack.c.bf16 %v5388_v61, %v5381_v52  ;;  %v4694_v52 = vld [vmem:[%s29891_s5 + $0x10] sm:$0xff]  ;;  %v4695_v61 = vld [vmem:[%s29891_s5 + $0x18] sm:$0xff]  ;;  %v6059_v42 = vand.u32 4294901760, %v26584_v22  ;;  %v6067_v30 = vsub.f32 %v26586_v15, %v6066_v47 }
 0x50b   :  { %23104 = vmatprep.subr.bf16.mxu1 %v26112_v35  ;;  %20152 = vmatprep.mubr.f32.mxu1 %v26376_v7  ;;  %v5939_v2 = vand.u32 4294901760, %v4695_v61  ;;  %v5960_v7 = vand.u32 4294901760, %v4702_v10 }
 0x50d   :  { %22834 = vmatpush3.bf16.msra.mxu0 %v26261_v36  ;;  %v26592_v17 = vpack.c.bf16 %v5963_v28, %v5960_v7 }
 0x50e   :  { %23106 = vmatpush3.bf16.msra.mxu1 %v26112_v35  ;;  %22836 = vmatprep.subr.bf16.mxu0 %v22835_v21  ;;  %v29944_v35 = vand.u32 4294901760, %v26281_v60  ;;  %v26490_v60 = vand.u32 4294901760, %v5924_v48 }
 0x510   :  { %19839 = vmatmul.mubr.f32.vlgmr.msra.gmra.mrb[8].mxu0 %v5356_v62  ;;  %v22847_v40 = vpack.c.bf16 %v29944_v35, %v5409_v32  ;;  %v26582_v62 = vsub.f32 %v4695_v61, %v5939_v2  ;;  %v26633_v61 = vsub.f32 %v4701_v13, %v5957_v27  ;;  %v26650_v13 = vsub.f32 %v4703_v11, %v5963_v28 }
 0x511   :  { %20153 = vmatmul.mubr.f32.vlgmr.msra.gmra.mrb[14].mxu1 %v26386_v16  ;;  %22838 = vmatpush3.bf16.msra.mxu0 %v22835_v21  ;;  %v26576_v16 = vld [vmem:[%s29891_s5 + $0x68] sm:$0xff] }
 0x512   :  { %19869 = vmatprep.mubr.f32.mxu0 %v26388_v6  ;;  %22840 = vmatprep.subr.bf16.mxu0 %v22839_v57  ;;  %v5969_v21 = vand.u32 4294901760, %v26576_v16  ;;  %v6108_v11 = vand.u32 4294901760, %v26650_v13 }
 0x514   :  { %v26665_v28 = vsub.f32 %v26576_v16, %v5969_v21 }
 0x515   :  { %22842 = vmatpush3.bf16.msra.mxu0 %v22839_v57 }
 0x516   :  { %22844 = vmatprep.subr.bf16.mxu0 %v22843_v24 }
 0x519   :  { %22846 = vmatpush3.bf16.msra.mxu0 %v22843_v24  ;;  %v6039_v24 = vsub.f32 %v26560_v56, %v6038_v14 }
 0x51a   :  { %22848 = vmatprep.subr.bf16.mxu0 %v22847_v40 }
 0x51b   :  { %v6040_v44 = vand.u32 4294901760, %v6039_v24 }
 0x51d   :  { %22850 = vmatpush3.bf16.msra.mxu0 %v22847_v40  ;;  %v6052_v40 = vand.u32 4294901760, %v26582_v62 }
 0x51e   :  { %22852 = vmatprep.subr.bf16.mxu0 %v22851_v55 }
 0x521   :  { %22854 = vmatpush3.bf16.msra.mxu0 %v22851_v55  ;;  %v6020_v55 = vand.u32 4294901760, %v26589_v37 }
 0x522   :  { %22856 = vmatprep.subr.bf16.mxu0 %v22855_v39 }
 0x525   :  { %22858 = vmatpush3.bf16.msra.mxu0 %v22855_v39  ;;  %v26613_v39 = vsub.f32 %v4699_v34, %v5951_v63  ;;  %v6094_v34 = vand.u32 4294901760, %v26633_v61 }
 0x526   :  { %22860 = vmatprep.subr.bf16.mxu0 %v22859_v23 }
 0x527   :  { %v6095_v24 = vsub.f32 %v26633_v61, %v6094_v34 }
 0x529   :  { %22862 = vmatpush3.bf16.msra.mxu0 %v22859_v23 }
 0x52a   :  { %22864 = vmatprep.subr.bf16.mxu0 %v26196_v20 }
 0x52c   :  { %19870 = vmatmul.mubr.f32.vlgmr.msra.gmra.mrb[8].mxu0 %v26383_v8 }
 0x52d   :  { %22866 = vmatpush3.bf16.msra.mxu0 %v26196_v20  ;;  %19900 = vmatprep.mubr.f32.mxu0 %v26388_v6  ;;  %v26495_v20 = vsub.f32 %v5924_v48, %v26490_v60  ;;  %v6053_v48 = vsub.f32 %v26582_v62, %v6052_v40 }
 0x52e   :  { %22868 = vmatprep.subr.bf16.mxu0 %v26206_v33 }
 0x52f   :  { %v6054_v31 = vand.u32 4294901760, %v6053_v48 }
 0x531   :  { %22870 = vmatpush3.bf16.msra.mxu0 %v26206_v33  ;;  %v4692_v33 = vld [vmem:[%s29891_s5] sm:$0xff] }
 0x532   :  { %22872 = vmatprep.subr.bf16.mxu0 %v26217_v12 }
 0x535   :  { %22874 = vmatpush3.bf16.msra.mxu0 %v26217_v12  ;;  %v5930_v12 = vand.u32 4294901760, %v4692_v33 }
 0x536   :  { %22876 = vmatprep.subr.bf16.mxu0 %v26227_v58 }
 0x537   :  { %v26514_v4 = vpack.c.bf16 %v5933_v49, %v5930_v12  ;;  %v26558_v54 = vsub.f32 %v4692_v33, %v5930_v12  ;;  %v6060_v33 = vsub.f32 %v26584_v22, %v6059_v42  ;;  %v6073_v12 = vand.u32 4294901760, %v26611_v50 }
 0x538   :  { %v6080_v49 = vand.u32 4294901760, %v26613_v39 }
 0x539   :  { %22878 = vmatpush3.bf16.msra.mxu0 %v26227_v58  ;;  %v6010_v58 = vand.u32 4294901760, %v26495_v20  ;;  %v6031_v6 = vand.u32 4294901760, %v26558_v54  ;;  %v6061_v38 = vand.u32 4294901760, %v6060_v33  ;;  %v6109_v33 = vsub.f32 %v26650_v13, %v6108_v11 }
 0x53a   :  { %22880 = vmatprep.subr.bf16.mxu0 %v26237_v5 }
 0x53b   :  { %v6011_v32 = vsub.f32 %v26495_v20, %v6010_v58  ;;  %v6032_v57 = vsub.f32 %v26558_v54, %v6031_v6 }
 0x53d   :  { %22882 = vmatpush3.bf16.msra.mxu0 %v26237_v5  ;;  %v5936_v5 = vand.u32 4294901760, %v4694_v52  ;;  %v6012_v51 = vand.u32 4294901760, %v6011_v32  ;;  %v6033_v43 = vand.u32 4294901760, %v6032_v57 }
 0x53e   :  { %22884 = vmatprep.subr.bf16.mxu0 %v26251_v25 }
 0x53f   :  { %v26580_v19 = vsub.f32 %v4694_v52, %v5936_v5  ;;  %v26631_v52 = vsub.f32 %v4700_v0, %v5954_v26  ;;  %v26648_v0 = vsub.f32 %v4702_v10, %v5960_v7 }
 0x541   :  { %22886 = vmatpush3.bf16.msra.mxu0 %v26251_v25  ;;  %v26527_v25 = vpack.c.bf16 %v5939_v2, %v5936_v5  ;;  %v6045_v35 = vand.u32 4294901760, %v26580_v19  ;;  %v6021_v5 = vsub.f32 %v26589_v37, %v6020_v55  ;;  %v22919_v2 = vpack.c.bf16 %v6040_v44, %v6033_v43 }
 0x542   :  { %22888 = vmatprep.subr.bf16.mxu0 %v26261_v36  ;;  %v6087_v53 = vand.u32 4294901760, %v26631_v52  ;;  %v6101_v10 = vand.u32 4294901760, %v26648_v0 }
 0x543   :  { %v6046_v23 = vsub.f32 %v26580_v19, %v6045_v35  ;;  %v6022_v59 = vand.u32 4294901760, %v6021_v5 }
 0x544   :  { %v6088_v57 = vsub.f32 %v26631_v52, %v6087_v53  ;;  %v6102_v48 = vsub.f32 %v26648_v0, %v6101_v10 }
 0x545   :  { %22890 = vmatpush3.bf16.msra.mxu0 %v26261_v36  ;;  %v26538_v36 = vpack.c.bf16 %v5945_v45, %v5942_v41  ;;  %v6047_v32 = vand.u32 4294901760, %v6046_v23  ;;  %v6068_v41 = vand.u32 4294901760, %v6067_v30  ;;  %v6074_v45 = vsub.f32 %v26611_v50, %v6073_v12 }
 0x546   :  { %22892 = vmatprep.subr.bf16.mxu0 %v26514_v4  ;;  %v6089_v44 = vand.u32 4294901760, %v6088_v57  ;;  %v6096_v23 = vand.u32 4294901760, %v6095_v24  ;;  %v23007_v24 = vpack.c.bf16 %v6052_v40, %v6045_v35  ;;  %v17252_v35 = vld [vmem:[%s29891_s5 + $0xf8] sm:$0xff] }
 0x547   :  { %v22923_v63 = vpack.c.bf16 %v6054_v31, %v6047_v32  ;;  %v22927_v26 = vpack.c.bf16 %v6068_v41, %v6061_v38  ;;  %v6075_v27 = vand.u32 4294901760, %v6074_v45  ;;  %v22947_v45 = vpack.c.bf16 %v26560_v56, %v26558_v54 }
 0x548   :  { %19901 = vmatmul.mubr.f32.vlgmr.msra.gmra.mrb[8].mxu0 %v26383_v8  ;;  %v26571_v8 = vld [vmem:[%s29891_s5 + $0x60] sm:$0xff]  ;;  %v22935_v16 = vpack.c.bf16 %v6096_v23, %v6089_v44  ;;  %v23011_v54 = vpack.c.bf16 %v6066_v47, %v6059_v42  ;;  %v23015_v56 = vpack.c.bf16 %v6080_v49, %v6073_v12  ;;  %v7155_v47 = vand.u32 4294901760, %v17252_v35  ;;  %v17259_v44 = vld [vmem:[%s29891_s5 + $0x130] sm:$0xff]  ;;  %v17260_v23 = vld [vmem:[%s29891_s5 + $0x138] sm:$0xff] }
 0x549   :  { %22894 = vmatpush3.bf16.msra.mxu0 %v26514_v4  ;;  %19931 = vmatprep.mubr.f32.mxu0 %v6012_v51  ;;  %v5966_v18 = vand.u32 4294901760, %v26571_v8  ;;  %v6081_v51 = vsub.f32 %v26613_v39, %v6080_v49 }
 0x54a   :  { %22896 = vmatprep.subr.bf16.mxu0 %v26527_v25 }
 0x54b   :  { %v26609_v29 = vpack.c.bf16 %v5969_v21, %v5966_v18  ;;  %v6082_v46 = vand.u32 4294901760, %v6081_v51  ;;  %v26662_v7 = vsub.f32 %v26571_v8, %v5966_v18  ;;  %v6122_v8 = vand.u32 4294901760, %v26665_v28 }
 0x54c   :  { %v6103_v18 = vand.u32 4294901760, %v6102_v48  ;;  %v6110_v21 = vand.u32 4294901760, %v6109_v33  ;;  %v22951_v51 = vpack.c.bf16 %v26582_v62, %v26580_v19 }
 0x54d   :  { %22898 = vmatpush3.bf16.msra.mxu0 %v26527_v25  ;;  %v22931_v43 = vpack.c.bf16 %v6082_v46, %v6075_v27  ;;  %v6115_v30 = vand.u32 4294901760, %v26662_v7  ;;  %v22967_v27 = vpack.c.bf16 %v26650_v13, %v26648_v0  ;;  %v22971_v46 = vpack.c.bf16 %v26665_v28, %v26662_v7 }
 0x54e   :  { %22900 = vmatprep.subr.bf16.mxu0 %v26538_v36  ;;  %v22939_v32 = vpack.c.bf16 %v6110_v21, %v6103_v18 }
 0x54f   :  { %v6116_v5 = vsub.f32 %v26662_v7, %v6115_v30  ;;  %v23027_v19 = vpack.c.bf16 %v6122_v8, %v6115_v30 }
 0x551   :  { %22902 = vmatpush3.bf16.msra.mxu0 %v26538_v36  ;;  %v6117_v31 = vand.u32 4294901760, %v6116_v5  ;;  %v26840_v5 = vld [vmem:[%s29891_s5 + $0x140] sm:$0xff] }
 0x552   :  { %22904 = vmatprep.subr.bf16.mxu0 %v26550_v9 }
 0x555   :  { %22906 = vmatpush3.bf16.msra.mxu0 %v26550_v9 }
 0x556   :  { %22908 = vmatprep.subr.bf16.mxu0 %v26565_v1 }
 0x559   :  { %22910 = vmatpush3.bf16.msra.mxu0 %v26565_v1 }
 0x55a   :  { %22912 = vmatprep.subr.bf16.mxu0 %v26592_v17 }
 0x55d   :  { %22914 = vmatpush3.bf16.msra.mxu0 %v26592_v17 }
 0x55e   :  { %22916 = vmatprep.subr.bf16.mxu0 %v26609_v29 }
 0x561   :  { %22918 = vmatpush3.bf16.msra.mxu0 %v26609_v29 }
 0x562   :  { %22920 = vmatprep.subr.bf16.mxu0 %v22919_v2 }
 0x564   :  { %19932 = vmatmul.mubr.f32.vlgmr.msra.gmra.mrb[8].mxu0 %v6022_v59  ;;  %v22955_v59 = vpack.c.bf16 %v26586_v15, %v26584_v22 }
 0x565   :  { %22922 = vmatpush3.bf16.msra.mxu0 %v22919_v2  ;;  %19962 = vmatprep.mubr.f32.mxu0 %v26490_v60  ;;  %v6123_v2 = vsub.f32 %v26665_v28, %v6122_v8  ;;  %v7176_v8 = vand.u32 4294901760, %v17259_v44 }
 0x566   :  { %22924 = vmatprep.subr.bf16.mxu0 %v22923_v63 }
 0x567   :  { %v6124_v38 = vand.u32 4294901760, %v6123_v2  ;;  %v26845_v2 = vld [vmem:[%s29891_s5 + $0x148] sm:$0xff] }
 0x569   :  { %22926 = vmatpush3.bf16.msra.mxu0 %v22923_v63  ;;  %v22943_v41 = vpack.c.bf16 %v6124_v38, %v6117_v31  ;;  %v22959_v63 = vpack.c.bf16 %v26613_v39, %v26611_v50  ;;  %v17253_v50 = vld [vmem:[%s29891_s5 + $0x100] sm:$0xff]  ;;  %v17254_v39 = vld [vmem:[%s29891_s5 + $0x108] sm:$0xff]  ;;  %v26850_v38 = vsub.f32 %v17252_v35, %v7155_v47 }
 0x56a   :  { %22928 = vmatprep.subr.bf16.mxu0 %v22927_v26  ;;  %v7158_v49 = vand.u32 4294901760, %v17253_v50 }
 0x56d   :  { %22930 = vmatpush3.bf16.msra.mxu0 %v22927_v26  ;;  %v22963_v26 = vpack.c.bf16 %v26633_v61, %v26631_v52  ;;  %v7161_v52 = vand.u32 4294901760, %v17254_v39 }
 0x56e   :  { %22932 = vmatprep.subr.bf16.mxu0 %v22931_v43 }
 0x571   :  { %22934 = vmatpush3.bf16.msra.mxu0 %v22931_v43 }
 0x572   :  { %22936 = vmatprep.subr.bf16.mxu0 %v22935_v16 }
 0x575   :  { %22938 = vmatpush3.bf16.msra.mxu0 %v22935_v16  ;;  %v7179_v16 = vand.u32 4294901760, %v17260_v23 }
 0x576   :  { %22940 = vmatprep.subr.bf16.mxu0 %v22939_v32 }
 0x579   :  { %22942 = vmatpush3.bf16.msra.mxu0 %v22939_v32 }
 0x57a   :  { %22944 = vmatprep.subr.bf16.mxu0 %v22943_v41 }
 0x57d   :  { %22946 = vmatpush3.bf16.msra.mxu0 %v22943_v41  ;;  %v26852_v41 = vsub.f32 %v17253_v50, %v7158_v49 }
 0x57e   :  { %22948 = vmatprep.subr.bf16.mxu0 %v22947_v45 }
 0x580   :  { %19963 = vmatmul.mubr.f32.vlgmr.msra.gmra.mrb[8].mxu0 %v26562_v3 }
 0x581   :  { %22950 = vmatpush3.bf16.msra.mxu0 %v22947_v45  ;;  %19993 = vmatprep.mubr.f32.mxu0 %v26495_v20  ;;  %v23003_v20 = vpack.c.bf16 %v6038_v14, %v6031_v6  ;;  %v23019_v6 = vpack.c.bf16 %v6094_v34, %v6087_v53  ;;  %v23023_v14 = vpack.c.bf16 %v6108_v11, %v6101_v10  ;;  %v17255_v53 = vld [vmem:[%s29891_s5 + $0x110] sm:$0xff]  ;;  %v17256_v34 = vld [vmem:[%s29891_s5 + $0x118] sm:$0xff]  ;;  %v17257_v10 = vld [vmem:[%s29891_s5 + $0x120] sm:$0xff] }
 0x582   :  { %22952 = vmatprep.subr.bf16.mxu0 %v22951_v51  ;;  %v7164_v0 = vand.u32 4294901760, %v17255_v53  ;;  %v7167_v13 = vand.u32 4294901760, %v17256_v34  ;;  %v17258_v11 = vld [vmem:[%s29891_s5 + $0x128] sm:$0xff]  ;;  %v26854_v45 = vsub.f32 %v17254_v39, %v7161_v52 }
 0x583   :  { %v7173_v7 = vand.u32 4294901760, %v17258_v11 }
 0x584   :  { %v26819_v43 = vpack.c.bf16 %v7167_v13, %v7164_v0 }
 0x585   :  { %22954 = vmatpush3.bf16.msra.mxu0 %v22951_v51  ;;  %v26857_v51 = vpack.c.bf16 %v7179_v16, %v7176_v8 }
 0x586   :  { %22956 = vmatprep.subr.bf16.mxu0 %v22955_v59 }
 0x589   :  { %22958 = vmatpush3.bf16.msra.mxu0 %v22955_v59  ;;  %v7182_v59 = vand.u32 4294901760, %v26840_v5 }
 0x58a   :  { %22960 = vmatprep.subr.bf16.mxu0 %v22959_v63 }
 0x58d   :  { %22962 = vmatpush3.bf16.msra.mxu0 %v22959_v63  ;;  %v7185_v63 = vand.u32 4294901760, %v26845_v2 }
 0x58e   :  { %22964 = vmatprep.subr.bf16.mxu0 %v22963_v26 }
 0x591   :  { %22966 = vmatpush3.bf16.msra.mxu0 %v22963_v26 }
 0x592   :  { %22968 = vmatprep.subr.bf16.mxu0 %v22967_v27 }
 0x595   :  { %22970 = vmatpush3.bf16.msra.mxu0 %v22967_v27 }
 0x596   :  { %22972 = vmatprep.subr.bf16.mxu0 %v22971_v46 }
 0x599   :  { %22974 = vmatpush3.bf16.msra.mxu0 %v22971_v46 }
 0x59a   :  { %22976 = vmatprep.subr.bf16.mxu0 %v26514_v4 }
 0x59c   :  { %19994 = vmatmul.mubr.f32.vlgmr.msra.gmra.mrb[8].mxu0 %v26589_v37  ;;  %v17251_v37 = vld [vmem:[%s29891_s5 + $0xf0] sm:$0xff] }
 0x59d   :  { %22978 = vmatpush3.bf16.msra.mxu0 %v26514_v4  ;;  %20024 = vmatprep.mubr.f32.mxu0 %v6010_v58  ;;  %v7152_v42 = vand.u32 4294901760, %v17251_v37 }
 0x59e   :  { %22980 = vmatprep.subr.bf16.mxu0 %v26527_v25 }
 0x59f   :  { %v26796_v12 = vpack.c.bf16 %v7155_v47, %v7152_v42  ;;  %v26848_v31 = vsub.f32 %v17251_v37, %v7152_v42  ;;  %v26901_v47 = vsub.f32 %v17258_v11, %v7173_v7 }
 0x5a1   :  { %22982 = vmatpush3.bf16.msra.mxu0 %v26527_v25 }
 0x5a2   :  { %22984 = vmatprep.subr.bf16.mxu0 %v26538_v36 }
 0x5a5   :  { %22986 = vmatpush3.bf16.msra.mxu0 %v26538_v36 }
 0x5a6   :  { %22988 = vmatprep.subr.bf16.mxu0 %v26550_v9 }
 0x5a9   :  { %22990 = vmatpush3.bf16.msra.mxu0 %v26550_v9 }
 0x5aa   :  { %22992 = vmatprep.subr.bf16.mxu0 %v26565_v1 }
 0x5ad   :  { %22994 = vmatpush3.bf16.msra.mxu0 %v26565_v1 }
 0x5ae   :  { %22996 = vmatprep.subr.bf16.mxu0 %v26592_v17 }
 0x5b1   :  { %22998 = vmatpush3.bf16.msra.mxu0 %v26592_v17 }
 0x5b2   :  { %23000 = vmatprep.subr.bf16.mxu0 %v26609_v29 }
 0x5b3   :  { %v26717_v58 = vpop.f32.mrb[12].mxu1 }
 0x5b4   :  { %v26719_v57 = vpop.f32.mrb[13].mxu1 }
 0x5b5   :  { %23002 = vmatpush3.bf16.msra.mxu0 %v26609_v29 }
 0x5b6   :  { %23004 = vmatprep.subr.bf16.mxu0 %v23003_v20 }
 0x5b8   :  { %20025 = vmatmul.mubr.f32.vlgmr.msra.gmra.mrb[8].mxu0 %v6020_v55 }
 0x5b9   :  { %23006 = vmatpush3.bf16.msra.mxu0 %v23003_v20  ;;  %20055 = vmatprep.mubr.f32.mxu0 %v26490_v60  ;;  %v7261_v20 = vand.u32 4294901760, %v26848_v31 }
 0x5ba   :  { %23008 = vmatprep.subr.bf16.mxu0 %v23007_v24 }
 0x5bd   :  { %23010 = vmatpush3.bf16.msra.mxu0 %v23007_v24  ;;  %v7268_v24 = vand.u32 4294901760, %v26850_v38 }
 0x5be   :  { %23012 = vmatprep.subr.bf16.mxu0 %v23011_v54 }
 0x5c1   :  { %23014 = vmatpush3.bf16.msra.mxu0 %v23011_v54  ;;  %v7275_v54 = vand.u32 4294901760, %v26852_v41 }
 0x5c2   :  { %23016 = vmatprep.subr.bf16.mxu0 %v23015_v56 }
 0x5c5   :  { %23018 = vmatpush3.bf16.msra.mxu0 %v23015_v56  ;;  %v7282_v56 = vand.u32 4294901760, %v26854_v45 }
 0x5c6   :  { %23020 = vmatprep.subr.bf16.mxu0 %v23019_v6 }
 0x5c9   :  { %23022 = vmatpush3.bf16.msra.mxu0 %v23019_v6  ;;  %v26876_v6 = vpack.c.bf16 %v7185_v63, %v7182_v59 }
 0x5ca   :  { %23024 = vmatprep.subr.bf16.mxu0 %v23023_v14 }
 0x5cd   :  { %23026 = vmatpush3.bf16.msra.mxu0 %v23023_v14 }
 0x5ce   :  { %23028 = vmatprep.subr.bf16.mxu0 %v23027_v19 }
 0x5d1   :  { %23030 = vmatpush3.bf16.msra.mxu0 %v23027_v19  ;;  %v26878_v19 = vsub.f32 %v17255_v53, %v7164_v0 }
 0x5d2   :  { %23032 = vmatprep.subr.bf16.mxu0 %v26514_v4 }
 0x5d3   :  { %v7289_v37 = vand.u32 4294901760, %v26878_v19 }
 0x5d4   :  { %20056 = vmatmul.mubr.f32.vlgmr.msra.gmra.mrb[8].mxu0 %v26562_v3 }
 0x5d5   :  { %23034 = vmatpush3.bf16.msra.mxu0 %v26514_v4  ;;  %20086 = vmatprep.mubr.f32.mxu0 %v26490_v60  ;;  %v17249_v4 = vld [vmem:[%s29891_s5 + $0xe0] sm:$0xff]  ;;  %v17250_v60 = vld [vmem:[%s29891_s5 + $0xe8] sm:$0xff]  ;;  %v7290_v53 = vsub.f32 %v26878_v19, %v7289_v37 }
 0x5d6   :  { %23036 = vmatprep.subr.bf16.mxu0 %v26527_v25  ;;  %v7146_v22 = vand.u32 4294901760, %v17249_v4 }
 0x5d8   :  { %v26816_v28 = vsub.f32 %v17249_v4, %v7146_v22  ;;  %v26880_v4 = vsub.f32 %v17256_v34, %v7167_v13  ;;  %v7310_v13 = vand.u32 4294901760, %v26901_v47 }
 0x5d9   :  { %23038 = vmatpush3.bf16.msra.mxu0 %v26527_v25 }
 0x5da   :  { %23040 = vmatprep.subr.bf16.mxu0 %v26538_v36  ;;  %v7247_v18 = vand.u32 4294901760, %v26816_v28  ;;  %v7296_v35 = vand.u32 4294901760, %v26880_v4 }
 0x5dc   :  { %v7248_v26 = vsub.f32 %v26816_v28, %v7247_v18  ;;  %v7297_v34 = vsub.f32 %v26880_v4, %v7296_v35 }
 0x5dd   :  { %23042 = vmatpush3.bf16.msra.mxu0 %v26538_v36 }
 0x5de   :  { %23044 = vmatprep.subr.bf16.mxu0 %v26550_v9  ;;  %v7249_v14 = vand.u32 4294901760, %v7248_v26  ;;  %v7291_v26 = vand.u32 4294901760, %v7290_v53 }
 0x5e1   :  { %23046 = vmatpush3.bf16.msra.mxu0 %v26550_v9  ;;  %v7149_v9 = vand.u32 4294901760, %v17250_v60 }
 0x5e2   :  { %23048 = vmatprep.subr.bf16.mxu0 %v26565_v1 }
 0x5e3   :  { %v26827_v48 = vsub.f32 %v17250_v60, %v7149_v9 }
 0x5e4   :  { %v20154_v62 = vpop.f32.mrb[14].mxu1 }
 0x5e5   :  { %v7114_v25 = vpop.f32.mrb[15].mxu1  ;;  %23050 = vmatpush3.bf16.msra.mxu0 %v26565_v1  ;;  %v26782_v1 = vpack.c.bf16 %v7149_v9, %v7146_v22  ;;  %v7143_v33 = vsel %vm5258_vm3, %v20154_v62, 0  ;;  %v7254_v32 = vand.u32 4294901760, %v26827_v48  ;;  %v7276_v22 = vsub.f32 %v26852_v41, %v7275_v54 }
 0x5e6   :  { %v7140_v36 = vsel %vm5258_vm3, %v7114_v25, 0  ;;  %23052 = vmatprep.subr.bf16.mxu0 %v26592_v17  ;;  %v26834_v21 = vand.u32 4294901760, %v7143_v33  ;;  %v7262_v25 = vsub.f32 %v26848_v31, %v7261_v20  ;;  %v7283_v9 = vsub.f32 %v26854_v45, %v7282_v56 }
 0x5e7   :  { %v26769_v15 = vand.u32 4294901760, %v7140_v36  ;;  %v7255_v46 = vsub.f32 %v26827_v48, %v7254_v32 }
 0x5e8   :  { %v26865_v27 = vsub.f32 %v7143_v33, %v26834_v21 }
 0x5e9   :  { %v26778_v40 = vsub.f32 %v7140_v36, %v26769_v15  ;;  %23054 = vmatpush3.bf16.msra.mxu0 %v26592_v17  ;;  %v7256_v62 = vand.u32 4294901760, %v7255_v46  ;;  %v7269_v36 = vsub.f32 %v26850_v38, %v7268_v24  ;;  %v7298_v46 = vand.u32 4294901760, %v7297_v34 }
 0x5ea   :  { %23056 = vmatprep.subr.bf16.mxu0 %v26609_v29  ;;  %v7236_v60 = vand.u32 4294901760, %v26865_v27 }
 0x5eb   :  { %v7226_v55 = vand.u32 4294901760, %v26778_v40  ;;  %v23135_v39 = vpack.c.bf16 %v7256_v62, %v7249_v14  ;;  %v7311_v62 = vsub.f32 %v26901_v47, %v7310_v13 }
 0x5ec   :  { %v7237_v50 = vsub.f32 %v26865_v27, %v7236_v60 }
 0x5ed   :  { %23058 = vmatpush3.bf16.msra.mxu0 %v26609_v29  ;;  %v7227_v17 = vsub.f32 %v26778_v40, %v7226_v55  ;;  %v26807_v29 = vpack.c.bf16 %v7161_v52, %v7158_v49  ;;  %v7270_v49 = vand.u32 4294901760, %v7269_v36  ;;  %v7277_v52 = vand.u32 4294901760, %v7276_v22 }
 0x5ee   :  { %23108 = vmatprep.subr.bf16.mxu0 %v26782_v1  ;;  %v7312_v22 = vand.u32 4294901760, %v7311_v62 }
 0x5ef   :  { %v7228_v61 = vand.u32 4294901760, %v7227_v17  ;;  %v7263_v17 = vand.u32 4294901760, %v7262_v25  ;;  %v23147_v25 = vpack.c.bf16 %v7298_v46, %v7291_v26  ;;  %v23175_v26 = vpack.c.bf16 %v26880_v4, %v26878_v19  ;;  %v7833_v19 = vld [vmem:[%s29895_s9 + $0x38] sm:$0xff] }
 0x5f0   :  { %20087 = vmatmul.mubr.f32.vlgmr.msra.gmra.mrb[8].mxu0 %v26562_v3  ;;  %v7170_v3 = vand.u32 4294901760, %v17257_v10 }
 0x5f1   :  { %23110 = vmatpush3.bf16.msra.mxu0 %v26782_v1  ;;  %20183 = vmatprep.mubr.f32.mxu0 %v7228_v61  ;;  %v7284_v61 = vand.u32 4294901760, %v7283_v9  ;;  %v23139_v11 = vpack.c.bf16 %v7270_v49, %v7263_v17 }
 0x5f2   :  { %23112 = vmatprep.subr.bf16.mxu0 %v26796_v12  ;;  %v26831_v30 = vpack.c.bf16 %v7173_v7, %v7170_v3  ;;  %v26899_v42 = vsub.f32 %v17257_v10, %v7170_v3  ;;  %v7238_v10 = vand.u32 4294901760, %v7237_v50  ;;  %v26916_v3 = vsub.f32 %v17259_v44, %v7176_v8 }
 0x5f3   :  { %v26918_v7 = vsub.f32 %v17260_v23, %v7179_v16  ;;  %v23143_v33 = vpack.c.bf16 %v7284_v61, %v7277_v52  ;;  %v26930_v8 = vsub.f32 %v26840_v5, %v7182_v59  ;;  %v26933_v16 = vsub.f32 %v26845_v2, %v7185_v63 }
 0x5f4   :  { %v7303_v0 = vand.u32 4294901760, %v26899_v42  ;;  %v7317_v44 = vand.u32 4294901760, %v26916_v3  ;;  %v23179_v46 = vpack.c.bf16 %v26901_v47, %v26899_v42 }
 0x5f5   :  { %23114 = vmatpush3.bf16.msra.mxu0 %v26796_v12  ;;  %v7324_v23 = vand.u32 4294901760, %v26918_v7  ;;  %v7338_v5 = vand.u32 4294901760, %v26933_v16  ;;  %v23187_v62 = vpack.c.bf16 %v26933_v16, %v26930_v8 }
 0x5f6   :  { %23116 = vmatprep.subr.bf16.mxu0 %v26807_v29  ;;  %v7304_v14 = vsub.f32 %v26899_v42, %v7303_v0  ;;  %v7318_v9 = vsub.f32 %v26916_v3, %v7317_v44  ;;  %v7835_v42 = vld [vmem:[%s29895_s9 + $0x48] sm:$0xff] }
 0x5f7   :  { %v7325_v50 = vsub.f32 %v26918_v7, %v7324_v23  ;;  %v7339_v49 = vsub.f32 %v26933_v16, %v7338_v5  ;;  %v27094_v16 = vld [vmem:[%s29895_s9 + $0x68] sm:$0xff] }
 0x5f8   :  { %v7305_v36 = vand.u32 4294901760, %v7304_v14  ;;  %v7319_v59 = vand.u32 4294901760, %v7318_v9  ;;  %v23183_v14 = vpack.c.bf16 %v26918_v7, %v26916_v3  ;;  %v7836_v3 = vld [vmem:[%s29895_s9 + $0x50] sm:$0xff]  ;;  %v7837_v7 = vld [vmem:[%s29895_s9 + $0x58] sm:$0xff] }
 0x5f9   :  { %23118 = vmatpush3.bf16.msra.mxu0 %v26807_v29  ;;  %v7326_v63 = vand.u32 4294901760, %v7325_v50  ;;  %v7340_v53 = vand.u32 4294901760, %v7339_v49 }
 0x5fa   :  { %23120 = vmatprep.subr.bf16.mxu0 %v26819_v43  ;;  %v23151_v2 = vpack.c.bf16 %v7312_v22, %v7305_v36  ;;  %v7883_v22 = vand.u32 4294901760, %v27094_v16 }
 0x5fb   :  { %v23155_v52 = vpack.c.bf16 %v7326_v63, %v7319_v59 }
 0x5fd   :  { %23122 = vmatpush3.bf16.msra.mxu0 %v26819_v43 }
 0x5fe   :  { %23124 = vmatprep.subr.bf16.mxu0 %v26831_v30 }
 0x601   :  { %23126 = vmatpush3.bf16.msra.mxu0 %v26831_v30 }
 0x602   :  { %23128 = vmatprep.subr.bf16.mxu0 %v26857_v51 }
 0x605   :  { %23130 = vmatpush3.bf16.msra.mxu0 %v26857_v51 }
 0x606   :  { %23132 = vmatprep.subr.bf16.mxu0 %v26876_v6 }
 0x609   :  { %23134 = vmatpush3.bf16.msra.mxu0 %v26876_v6 }
 0x60a   :  { %23136 = vmatprep.subr.bf16.mxu0 %v23135_v39 }
 0x60c   :  { %20184 = vmatmul.mubr.f32.vlgmr.msra.gmra.mrb[8].mxu0 %v7238_v10  ;;  %v23163_v10 = vpack.c.bf16 %v26827_v48, %v26816_v28  ;;  %v23227_v28 = vpack.c.bf16 %v7282_v56, %v7275_v54  ;;  %v23231_v48 = vpack.c.bf16 %v7296_v35, %v7289_v37  ;;  %v7834_v35 = vld [vmem:[%s29895_s9 + $0x40] sm:$0xff] }
 0x60d   :  { %23138 = vmatpush3.bf16.msra.mxu0 %v23135_v39  ;;  %20214 = vmatprep.mubr.f32.mxu0 %v26769_v15  ;;  %v7331_v39 = vand.u32 4294901760, %v26930_v8  ;;  %v7868_v47 = vand.u32 4294901760, %v7834_v35 }
 0x60e   :  { %23140 = vmatprep.subr.bf16.mxu0 %v23139_v11 }
 0x60f   :  { %v7332_v17 = vsub.f32 %v26930_v8, %v7331_v39  ;;  %v7877_v8 = vand.u32 4294901760, %v7837_v7 }
 0x611   :  { %23142 = vmatpush3.bf16.msra.mxu0 %v23139_v11  ;;  %v7333_v61 = vand.u32 4294901760, %v7332_v17  ;;  %v23167_v11 = vpack.c.bf16 %v26850_v38, %v26848_v31  ;;  %v23243_v31 = vpack.c.bf16 %v7338_v5, %v7331_v39  ;;  %v7828_v38 = vld [vmem:[%s29895_s9 + $0x10] sm:$0xff] }
 0x612   :  { %23144 = vmatprep.subr.bf16.mxu0 %v23143_v33 }
 0x613   :  { %v23159_v34 = vpack.c.bf16 %v7340_v53, %v7333_v61 }
 0x615   :  { %23146 = vmatpush3.bf16.msra.mxu0 %v23143_v33  ;;  %v23171_v33 = vpack.c.bf16 %v26854_v45, %v26852_v41  ;;  %v7850_v41 = vand.u32 4294901760, %v7828_v38 }
 0x616   :  { %23148 = vmatprep.subr.bf16.mxu0 %v23147_v25 }
 0x617   :  { %v27122_v49 = vsub.f32 %v7828_v38, %v7850_v41 }
 0x619   :  { %23150 = vmatpush3.bf16.msra.mxu0 %v23147_v25  ;;  %v25110_v25 = vmov 0.0  }
 0x61a   :  { %23152 = vmatprep.subr.bf16.mxu0 %v23151_v2  ;;  %20369 = vmatprep.mubr.msk.f32.mxu1 %vm25109_vm4, %v25110_v25 }
 0x61d   :  { %23154 = vmatpush3.bf16.msra.mxu0 %v23151_v2 }
 0x61e   :  { %23156 = vmatprep.subr.bf16.mxu0 %v23155_v52 }
 0x621   :  { %23158 = vmatpush3.bf16.msra.mxu0 %v23155_v52 }
 0x622   :  { %23160 = vmatprep.subr.bf16.mxu0 %v23159_v34 }
 0x625   :  { %23162 = vmatpush3.bf16.msra.mxu0 %v23159_v34  ;;  %v7949_v34 = vand.u32 4294901760, %v27122_v49 }
 0x626   :  { %23164 = vmatprep.subr.bf16.mxu0 %v23163_v10 }
 0x628   :  { %20215 = vmatmul.mubr.f32.vlgmr.msra.gmra.mrb[8].mxu0 %v26834_v21 }
 0x629   :  { %23166 = vmatpush3.bf16.msra.mxu0 %v23163_v10  ;;  %20245 = vmatprep.mubr.f32.mxu0 %v26778_v40  ;;  %v23219_v40 = vpack.c.bf16 %v7254_v32, %v7247_v18  ;;  %v23235_v18 = vpack.c.bf16 %v7310_v13, %v7303_v0  ;;  %v23239_v32 = vpack.c.bf16 %v7324_v23, %v7317_v44  ;;  %v7871_v0 = vand.u32 4294901760, %v7835_v42  ;;  %v27089_v44 = vld [vmem:[%s29895_s9 + $0x60] sm:$0xff] }
 0x62a   :  { %23168 = vmatprep.subr.bf16.mxu0 %v23167_v11  ;;  %v7874_v23 = vand.u32 4294901760, %v7836_v3  ;;  %v7880_v36 = vand.u32 4294901760, %v27089_v44 }
 0x62b   :  { %v27078_v13 = vpack.c.bf16 %v7871_v0, %v7868_v47 }
 0x62c   :  { %v27104_v9 = vpack.c.bf16 %v7877_v8, %v7874_v23  ;;  %v27111_v5 = vpack.c.bf16 %v7883_v22, %v7880_v36 }
 0x62d   :  { %23170 = vmatpush3.bf16.msra.mxu0 %v23167_v11 }
 0x62e   :  { %23172 = vmatprep.subr.bf16.mxu0 %v23171_v33 }
 0x631   :  { %23174 = vmatpush3.bf16.msra.mxu0 %v23171_v33  ;;  %v7950_v33 = vsub.f32 %v27122_v49, %v7949_v34 }
 0x632   :  { %23176 = vmatprep.subr.bf16.mxu0 %v23175_v26 }
 0x635   :  { %23178 = vmatpush3.bf16.msra.mxu0 %v23175_v26 }
 0x636   :  { %23180 = vmatprep.subr.bf16.mxu0 %v23179_v46 }
 0x639   :  { %23182 = vmatpush3.bf16.msra.mxu0 %v23179_v46 }
 0x63a   :  { %23184 = vmatprep.subr.bf16.mxu0 %v23183_v14 }
 0x63d   :  { %23186 = vmatpush3.bf16.msra.mxu0 %v23183_v14 }
 0x63e   :  { %23188 = vmatprep.subr.bf16.mxu0 %v23187_v62 }
 0x641   :  { %23190 = vmatpush3.bf16.msra.mxu0 %v23187_v62  ;;  %v7951_v62 = vand.u32 4294901760, %v7950_v33 }
 0x642   :  { %23192 = vmatprep.subr.bf16.mxu0 %v26782_v1 }
 0x644   :  { %20246 = vmatmul.mubr.f32.vlgmr.msra.gmra.mrb[8].mxu0 %v26865_v27  ;;  %v7830_v27 = vld [vmem:[%s29895_s9 + $0x20] sm:$0xff] }
 0x645   :  { %23194 = vmatpush3.bf16.msra.mxu0 %v26782_v1  ;;  %20276 = vmatprep.mubr.f32.mxu0 %v7226_v55  ;;  %v23223_v55 = vpack.c.bf16 %v7268_v24, %v7261_v20  ;;  %v7831_v20 = vld [vmem:[%s29895_s9 + $0x28] sm:$0xff]  ;;  %v7856_v24 = vand.u32 4294901760, %v7830_v27 }
 0x646   :  { %23196 = vmatprep.subr.bf16.mxu0 %v26796_v12  ;;  %v7859_v54 = vand.u32 4294901760, %v7831_v20 }
 0x647   :  { %v27138_v46 = vsub.f32 %v7830_v27, %v7856_v24  ;;  %v27166_v27 = vsub.f32 %v7835_v42, %v7871_v0  ;;  %v27180_v42 = vsub.f32 %v7836_v3, %v7874_v23  ;;  %v27195_v3 = vsub.f32 %v27094_v16, %v7883_v22 }
 0x648   :  { %v27058_v56 = vpack.c.bf16 %v7859_v54, %v7856_v24  ;;  %v27140_v14 = vsub.f32 %v7831_v20, %v7859_v54 }
 0x649   :  { %23198 = vmatpush3.bf16.msra.mxu0 %v26796_v12 }
 0x64a   :  { %23200 = vmatprep.subr.bf16.mxu0 %v26807_v29 }
 0x64d   :  { %23202 = vmatpush3.bf16.msra.mxu0 %v26807_v29 }
 0x64e   :  { %23204 = vmatprep.subr.bf16.mxu0 %v26819_v43 }
 0x651   :  { %23206 = vmatpush3.bf16.msra.mxu0 %v26819_v43 }
 0x652   :  { %23208 = vmatprep.subr.bf16.mxu0 %v26831_v30 }
 0x655   :  { %23210 = vmatpush3.bf16.msra.mxu0 %v26831_v30 }
 0x656   :  { %23212 = vmatprep.subr.bf16.mxu0 %v26857_v51 }
 0x659   :  { %23214 = vmatpush3.bf16.msra.mxu0 %v26857_v51 }
 0x65a   :  { %23216 = vmatprep.subr.bf16.mxu0 %v26876_v6 }
 0x65d   :  { %23218 = vmatpush3.bf16.msra.mxu0 %v26876_v6 }
 0x65e   :  { %23220 = vmatprep.subr.bf16.mxu0 %v23219_v40 }
 0x660   :  { %20277 = vmatmul.mubr.f32.vlgmr.msra.gmra.mrb[8].mxu0 %v7236_v60  ;;  %v7865_v60 = vand.u32 4294901760, %v7833_v19 }
 0x661   :  { %23222 = vmatpush3.bf16.msra.mxu0 %v23219_v40  ;;  %20307 = vmatprep.mubr.f32.mxu0 %v26769_v15 }
 0x662   :  { %23224 = vmatprep.subr.bf16.mxu0 %v23223_v55 }
 0x665   :  { %23226 = vmatpush3.bf16.msra.mxu0 %v23223_v55  ;;  %v7963_v55 = vand.u32 4294901760, %v27138_v46 }
 0x666   :  { %23228 = vmatprep.subr.bf16.mxu0 %v23227_v28 }
 0x669   :  { %23230 = vmatpush3.bf16.msra.mxu0 %v23227_v28  ;;  %v7970_v28 = vand.u32 4294901760, %v27140_v14 }
 0x66a   :  { %23232 = vmatprep.subr.bf16.mxu0 %v23231_v48 }
 0x66d   :  { %23234 = vmatpush3.bf16.msra.mxu0 %v23231_v48 }
 0x66e   :  { %23236 = vmatprep.subr.bf16.mxu0 %v23235_v18 }
 0x671   :  { %23238 = vmatpush3.bf16.msra.mxu0 %v23235_v18  ;;  %v7964_v18 = vsub.f32 %v27138_v46, %v7963_v55 }
 0x672   :  { %23240 = vmatprep.subr.bf16.mxu0 %v23239_v32 }
 0x675   :  { %23242 = vmatpush3.bf16.msra.mxu0 %v23239_v32 }
 0x676   :  { %23244 = vmatprep.subr.bf16.mxu0 %v23243_v31 }
 0x679   :  { %23246 = vmatpush3.bf16.msra.mxu0 %v23243_v31  ;;  %v27151_v31 = vsub.f32 %v7833_v19, %v7865_v60  ;;  %v29925_v19 = vand.u32 4294901760, %v27166_v27 }
 0x67a   :  { %23248 = vmatprep.subr.bf16.mxu0 %v26782_v1 }
 0x67c   :  { %20308 = vmatmul.mubr.f32.vlgmr.msra.gmra.mrb[8].mxu0 %v26834_v21 }
 0x67d   :  { %23250 = vmatpush3.bf16.msra.mxu0 %v26782_v1  ;;  %20338 = vmatprep.mubr.f32.mxu0 %v26769_v15  ;;  %v7826_v15 = vld [vmem:[%s29895_s9] sm:$0xff]  ;;  %v7827_v1 = vld [vmem:[%s29895_s9 + $0x8] sm:$0xff] }
 0x67e   :  { %23252 = vmatprep.subr.bf16.mxu0 %v26796_v12 }
 0x681   :  { %23254 = vmatpush3.bf16.msra.mxu0 %v26796_v12  ;;  %v7844_v12 = vand.u32 4294901760, %v7826_v15 }
 0x682   :  { %23256 = vmatprep.subr.bf16.mxu0 %v26807_v29 }
 0x683   :  { %v27106_v50 = vsub.f32 %v7826_v15, %v7844_v12  ;;  %v7971_v15 = vsub.f32 %v27140_v14, %v7970_v28 }
 0x685   :  { %23258 = vmatpush3.bf16.msra.mxu0 %v26807_v29  ;;  %v7847_v29 = vand.u32 4294901760, %v7827_v1  ;;  %v7935_v2 = vand.u32 4294901760, %v27106_v50  ;;  %v7972_v38 = vand.u32 4294901760, %v7971_v15 }
 0x686   :  { %23260 = vmatprep.subr.bf16.mxu0 %v26819_v43 }
 0x687   :  { %v27108_v39 = vsub.f32 %v7827_v1, %v7847_v29  ;;  %v7936_v63 = vsub.f32 %v27106_v50, %v7935_v2  ;;  %v7965_v1 = vand.u32 4294901760, %v7964_v18 }
 0x689   :  { %23262 = vmatpush3.bf16.msra.mxu0 %v26819_v43  ;;  %v27036_v43 = vpack.c.bf16 %v7847_v29, %v7844_v12  ;;  %v7942_v59 = vand.u32 4294901760, %v27108_v39  ;;  %v7937_v61 = vand.u32 4294901760, %v7936_v63  ;;  %v7984_v29 = vand.u32 4294901760, %v27151_v31 }
 0x68a   :  { %23264 = vmatprep.subr.bf16.mxu0 %v26831_v30  ;;  %v27168_v20 = vpack.c.bf16 %v7972_v38, %v7965_v1  ;;  %v27214_v1 = vpack.c.bf16 %v27108_v39, %v27106_v50  ;;  %v27324_v50 = vpack.c.bf16 %v7970_v28, %v7963_v55  ;;  %v8458_v55 = vld [vmem:[#allocation16] sm:$0xff]  ;;  %v8459_v28 = vld [vmem:[#allocation16 + $0x8] sm:$0xff] }
 0x68b   :  { %v7943_v17 = vsub.f32 %v27108_v39, %v7942_v59 }
 0x68d   :  { %23266 = vmatpush3.bf16.msra.mxu0 %v26831_v30  ;;  %v25108_v30 = vmov 0.0|0.0   ;;  %v7944_v53 = vand.u32 4294901760, %v7943_v17  ;;  %v29924_v17 = vand.u32 4294901760, %v27180_v42 }
 0x68e   :  { %23268 = vmatprep.subr.bf16.mxu0 %v26857_v51  ;;  %23275 = vmatprep.subr.bf16.mxu1 %v25108_v30 }
 0x68f   :  { %23277 = vmatpush3.bf16.msra.mxu1 %v27036_v43  ;;  %v27130_v11 = vpack.c.bf16 %v7944_v53, %v7937_v61  ;;  %v8006_v33 = vsub.f32 %v27180_v42, %v29924_v17 }
 0x690   :  { %23278 = vmatprep.subr.bf16.mxu1 %v25108_v30 }
 0x691   :  { %23270 = vmatpush3.bf16.msra.mxu0 %v26857_v51  ;;  %v8007_v23 = vand.u32 4294901760, %v8006_v33 }
 0x692   :  { %23272 = vmatprep.subr.bf16.mxu0 %v26876_v6 }
 0x695   :  { %23274 = vmatpush3.bf16.msra.mxu0 %v26876_v6  ;;  %v7832_v6 = vld [vmem:[%s29895_s9 + $0x30] sm:$0xff] }
 0x696   :  { %23599 = vmatprep.subr.bf16.mxu0 %v25108_v30  ;;  %v7862_v4 = vand.u32 4294901760, %v7832_v6 }
 0x698   :  { %20339 = vmatmul.mubr.f32.vlgmr.msra.gmra.mrb[8].mxu0 %v26834_v21  ;;  %v7829_v21 = vld [vmem:[%s29895_s9 + $0x18] sm:$0xff]  ;;  %v27068_v37 = vpack.c.bf16 %v7865_v60, %v7862_v4  ;;  %v27149_v32 = vsub.f32 %v7832_v6, %v7862_v4 }
 0x699   :  { %v7853_v45 = vand.u32 4294901760, %v7829_v21  ;;  %20909 = vmatprep.mubr.msk.f32.mxu0 %vm25109_vm4, %v25110_v25 }
 0x69a   :  { %v7977_v12 = vand.u32 4294901760, %v27149_v32 }
 0x69b   :  { %v27048_v51 = vpack.c.bf16 %v7853_v45, %v7850_v41  ;;  %v27124_v52 = vsub.f32 %v7829_v21, %v7853_v45  ;;  %v7985_v41 = vsub.f32 %v27151_v31, %v7984_v29  ;;  %v27164_v45 = vsub.f32 %v7834_v35, %v7868_v47 }
 0x69c   :  { %v7978_v21 = vsub.f32 %v27149_v32, %v7977_v12  ;;  %v7999_v35 = vsub.f32 %v27166_v27, %v29925_v19  ;;  %v27182_v47 = vsub.f32 %v7837_v7, %v7877_v8  ;;  %v27332_v39 = vpack.c.bf16 %v7984_v29, %v7977_v12 }
 0x69d   :  { %23280 = vmatpush3.bf16.msra.mxu1 %v27048_v51  ;;  %v7956_v10 = vand.u32 4294901760, %v27124_v52  ;;  %v7986_v54 = vand.u32 4294901760, %v7985_v41  ;;  %v7991_v6 = vand.u32 4294901760, %v27164_v45  ;;  %v27218_v38 = vpack.c.bf16 %v27124_v52, %v27122_v49 }
 0x69e   :  { %23281 = vmatprep.subr.bf16.mxu1 %v25108_v30  ;;  %v7979_v24 = vand.u32 4294901760, %v7978_v21  ;;  %v8000_v63 = vand.u32 4294901760, %v7999_v35  ;;  %v29923_v61 = vand.u32 4294901760, %v27182_v47  ;;  %v27222_v21 = vpack.c.bf16 %v27140_v14, %v27138_v46 }
 0x69f   :  { %v7957_v26 = vsub.f32 %v27124_v52, %v7956_v10  ;;  %v7992_v60 = vsub.f32 %v27164_v45, %v7991_v6  ;;  %v27226_v41 = vpack.c.bf16 %v27151_v31, %v27149_v32  ;;  %v29952_v49 = vand.u32 4294901760, %v27180_v42 }
 0x6a0   :  { %v27172_v4 = vpack.c.bf16 %v7986_v54, %v7979_v24  ;;  %v8013_v7 = vsub.f32 %v27182_v47, %v29923_v61  ;;  %v27230_v24 = vpack.c.bf16 %v27166_v27, %v27164_v45  ;;  %v27234_v54 = vpack.c.bf16 %v27182_v47, %v27180_v42 }
 0x6a1   :  { %23283 = vmatpush3.bf16.msra.mxu1 %v27058_v56  ;;  %v7958_v40 = vand.u32 4294901760, %v7957_v26  ;;  %v7993_v0 = vand.u32 4294901760, %v7992_v60  ;;  %v27192_v26 = vsub.f32 %v27089_v44, %v7880_v36  ;;  %v29953_v52 = vand.u32 4294901760, %v27182_v47 }
 0x6a2   :  { %23284 = vmatprep.subr.bf16.mxu1 %v25108_v30  ;;  %v29955_v46 = vand.u32 4294901760, %v27195_v3  ;;  %v8465_v32 = vand.u32 4294901760, %v8458_v55  ;;  %v8468_v31 = vand.u32 4294901760, %v8459_v28 }
 0x6a3   :  { %v27144_v48 = vpack.c.bf16 %v7958_v40, %v7951_v62  ;;  %v27186_v53 = vpack.c.bf16 %v8000_v63, %v7993_v0  ;;  %v29922_v8 = vand.u32 4294901760, %v27192_v26  ;;  %v29921_v62 = vand.u32 4294901760, %v27195_v3  ;;  %v17263_v0 = vld [vmem:[#allocation11] ss:$0 sm:$0xff] }
 0x6a4   :  { %v8014_v40 = vand.u32 4294901760, %v8013_v7  ;;  %v27238_v60 = vpack.c.bf16 %v27195_v3, %v27192_v26  ;;  %v27381_v12 = vpack.c.bf16 %v8468_v31, %v8465_v32  ;;  %v8543_v29 = vsub.f32 %v8458_v55, %v8465_v32 }
 0x6a5   :  { %23286 = vmatpush3.bf16.msra.mxu1 %v27068_v37  ;;  %v8020_v18 = vsub.f32 %v27192_v26, %v29922_v8  ;;  %v8027_v44 = vsub.f32 %v27195_v3, %v29921_v62  ;;  %v8550_v45 = vsub.f32 %v8459_v28, %v8468_v31 }
 0x6a6   :  { %23287 = vmatprep.subr.bf16.mxu1 %v25108_v30  ;;  %v27208_v16 = vpack.c.bf16 %v8014_v40, %v8007_v23 }
 0x6a7   :  { %v8021_v36 = vand.u32 4294901760, %v8020_v18  ;;  %v8028_v22 = vand.u32 4294901760, %v8027_v44 }
 0x6a9   :  { %23289 = vmatpush3.bf16.msra.mxu1 %v27078_v13  ;;  %v27210_v15 = vpack.c.bf16 %v8028_v22, %v8021_v36 }
 0x6aa   :  { %23290 = vmatprep.subr.bf16.mxu1 %v25108_v30 }
 0x6ad   :  { %23292 = vmatpush3.bf16.msra.mxu1 %v27104_v9 }
 0x6ae   :  { %23293 = vmatprep.subr.bf16.mxu1 %v25108_v30 }
 0x6b1   :  { %23295 = vmatpush3.bf16.msra.mxu1 %v27111_v5 }
 0x6b2   :  { %23296 = vmatprep.subr.bf16.mxu1 %v25108_v30 }
 0x76b   :  { %v20340_v35 = vpop.f32.mrb[8].mxu0 }
 0x76c   :  { %v24463_v63 = vadd.f32 %v20340_v35, %v26717_v58  ;;  %v7793_v33 = vpop.f32.mrb[9].mxu0 }
 0x76d   :  { %v24464_v7 = vadd.f32 %v7793_v33, %v26719_v57 }
 0x76e   :  { %v27242_v23 = vadd.f32 %v24463_v63, %v17263_v0 }
 0x76f   :  { %v27244_v40 = vadd.f32 %v24464_v7, %v17263_v0 }
 0x770   :  { %v7816_v18 = vsel %vm7815_vm5, %v27242_v23, 0.0 }
 0x771   :  { %v7814_v44 = vsel %vm5258_vm3, %v27244_v40, 0.0 }
 0x772   :  { %v7817_v36 = vadd.f32 %v7816_v18, %v7814_v44 }
 0x774   :  { %v7818_v22 = vrot.slane %v7817_v36, 4 }
 0x776   :  { %v7819_v62 = vadd.f32 %v7818_v22, %v7817_v36 }
 0x778   :  { %v7820_v8 = vrot.slane %v7819_v62, 2 }
 0x77a   :  { %v7821_v61 = vadd.f32 %v7820_v8, %v7819_v62  ;;  %v27387_v8 = vpack.c.bf16 %v8550_v45, %v8543_v29 }
 0x77c   :  { %v7822_v58 = vrot.slane %v7821_v61, 1 }
 0x77e   :  { %v7823_v35 = vadd.f32 %v7822_v58, %v7821_v61 }
 0x780   :  { %v7825_v17 = vmul.f32 0.071428575, %v7823_v35 }
 0x782   :  { %v7841_v57 = vsel %vm5258_vm3, %v7825_v17, 0  ;;  %v27314_v17 = vpack.c.bf16 %v7956_v10, %v7949_v34  ;;  %v27348_v34 = vpack.c.bf16 %v29953_v52, %v29952_v49  ;;  %v29954_v10 = vand.u32 4294901760, %v27192_v26 }
 0x783   :  { %v27251_v63 = vand.u32 4294901760, %v7841_v57 }
 0x784   :  { %v27356_v14 = vpack.c.bf16 %v29955_v46, %v29954_v10 }
 0x785   :  { %v7923_v0 = vsub.f32 %v7841_v57, %v27251_v63 }
 0x787   :  { %v7924_v33 = vand.u32 4294901760, %v7923_v0 }
 0x789   :  { %v7925_v7 = vsub.f32 %v7923_v0, %v7924_v33 }
 0x78b   :  { %v7926_v19 = vand.u32 4294901760, %v7925_v7 }
 0x78d   :  { %20370 = vmatmul.mubr.f32.vlgmr.msra.gmra.mrb[16].mxu1 %v7926_v19  ;;  %v27306_v19 = vpack.c.bf16 %v7942_v59, %v7935_v2  ;;  %v29951_v2 = vand.u32 4294901760, %v27166_v27  ;;  %v8544_v27 = vand.u32 4294901760, %v8543_v29 }
 0x78e   :  { %23298 = vmatpush3.bf16.msra.mxu1 %v27130_v11  ;;  %20400 = vmatprep.mubr.msk.f32.mxu1 %vm25109_vm4, %v25110_v25 }
 0x78f   :  { %23299 = vmatprep.subr.bf16.mxu1 %v25108_v30  ;;  %v27340_v59 = vpack.c.bf16 %v29951_v2, %v7991_v6  ;;  %v8551_v6 = vand.u32 4294901760, %v8550_v45  ;;  %v8545_v42 = vsub.f32 %v8543_v29, %v8544_v27 }
 0x791   :  { %v8552_v47 = vsub.f32 %v8550_v45, %v8551_v6  ;;  %v8546_v61 = vand.u32 4294901760, %v8545_v42  ;;  %v27389_v62 = vpack.c.bf16 %v8551_v6, %v8544_v27 }
 0x792   :  { %23301 = vmatpush3.bf16.msra.mxu1 %v27144_v48 }
 0x793   :  { %23302 = vmatprep.subr.bf16.mxu1 %v25108_v30  ;;  %v8553_v26 = vand.u32 4294901760, %v8552_v47 }
 0x795   :  { %v27385_v3 = vpack.c.bf16 %v8553_v26, %v8546_v61 }
 0x796   :  { %23304 = vmatpush3.bf16.msra.mxu1 %v27168_v20 }
 0x797   :  { %23305 = vmatprep.subr.bf16.mxu1 %v25108_v30 }
 0x79a   :  { %23307 = vmatpush3.bf16.msra.mxu1 %v27172_v4 }
 0x79b   :  { %23308 = vmatprep.subr.bf16.mxu1 %v25108_v30 }
 0x79e   :  { %23310 = vmatpush3.bf16.msra.mxu1 %v27186_v53 }
 0x79f   :  { %23311 = vmatprep.subr.bf16.mxu1 %v25108_v30 }
 0x7a2   :  { %23313 = vmatpush3.bf16.msra.mxu1 %v27208_v16 }
 0x7a3   :  { %23314 = vmatprep.subr.bf16.mxu1 %v25108_v30 }
 0x7a6   :  { %23316 = vmatpush3.bf16.msra.mxu1 %v27210_v15 }
 0x7a7   :  { %23317 = vmatprep.subr.bf16.mxu1 %v25108_v30 }
 0x7a9   :  { %20401 = vmatmul.mubr.f32.vlgmr.msra.gmra.mrb[16].mxu1 %v27251_v63 }
 0x7aa   :  { %23319 = vmatpush3.bf16.msra.mxu1 %v27214_v1  ;;  %20431 = vmatprep.mubr.msk.f32.mxu1 %vm25109_vm4, %v25110_v25 }
 0x7ab   :  { %23320 = vmatprep.subr.bf16.mxu1 %v25108_v30 }
 0x7ae   :  { %23322 = vmatpush3.bf16.msra.mxu1 %v27218_v38 }
 0x7af   :  { %23323 = vmatprep.subr.bf16.mxu1 %v25108_v30 }
 0x7b2   :  { %23325 = vmatpush3.bf16.msra.mxu1 %v27222_v21 }
 0x7b3   :  { %23326 = vmatprep.subr.bf16.mxu1 %v25108_v30 }
 0x7b6   :  { %23328 = vmatpush3.bf16.msra.mxu1 %v27226_v41 }
 0x7b7   :  { %23329 = vmatprep.subr.bf16.mxu1 %v25108_v30 }
 0x7ba   :  { %23331 = vmatpush3.bf16.msra.mxu1 %v27230_v24 }
 0x7bb   :  { %23332 = vmatprep.subr.bf16.mxu1 %v25108_v30 }
 0x7be   :  { %23334 = vmatpush3.bf16.msra.mxu1 %v27234_v54 }
 0x7bf   :  { %23335 = vmatprep.subr.bf16.mxu1 %v25108_v30 }
 0x7c2   :  { %23337 = vmatpush3.bf16.msra.mxu1 %v27238_v60 }
 0x7c3   :  { %23338 = vmatprep.subr.bf16.mxu1 %v25108_v30 }
 0x7c5   :  { %20432 = vmatmul.mubr.f32.vlgmr.msra.gmra.mrb[16].mxu1 %v7923_v0  ;;  %v8923_v0 = vlaneseq }
 0x7c6   :  { %23340 = vmatpush3.bf16.msra.mxu1 %v27036_v43  ;;  %20462 = vmatprep.mubr.msk.f32.mxu1 %vm25109_vm4, %v25110_v25 }
 0x7c7   :  { %23341 = vmatprep.subr.bf16.mxu1 %v25108_v30 }
 0x7ca   :  { %23343 = vmatpush3.bf16.msra.mxu1 %v27048_v51 }
 0x7cb   :  { %23344 = vmatprep.subr.bf16.mxu1 %v25108_v30 }
 0x7ce   :  { %23346 = vmatpush3.bf16.msra.mxu1 %v27058_v56 }
 0x7cf   :  { %23347 = vmatprep.subr.bf16.mxu1 %v25108_v30 }
 0x7d2   :  { %23349 = vmatpush3.bf16.msra.mxu1 %v27068_v37 }
 0x7d3   :  { %23350 = vmatprep.subr.bf16.mxu1 %v25108_v30 }
 0x7d6   :  { %23352 = vmatpush3.bf16.msra.mxu1 %v27078_v13 }
 0x7d7   :  { %23353 = vmatprep.subr.bf16.mxu1 %v25108_v30 }
 0x7da   :  { %23355 = vmatpush3.bf16.msra.mxu1 %v27104_v9 }
 0x7db   :  { %23356 = vmatprep.subr.bf16.mxu1 %v25108_v30 }
 0x7de   :  { %23358 = vmatpush3.bf16.msra.mxu1 %v27111_v5 }
 0x7df   :  { %23359 = vmatprep.subr.bf16.mxu1 %v25108_v30 }
 0x7e1   :  { %20463 = vmatmul.mubr.f32.vlgmr.msra.gmra.mrb[16].mxu1 %v7924_v33  ;;  %v27428_v33 = vshrl.u32 %v8923_v0, 7 }
 0x7e2   :  { %23361 = vmatpush3.bf16.msra.mxu1 %v27306_v19  ;;  %20493 = vmatprep.mubr.msk.f32.mxu1 %vm25109_vm4, %v25110_v25 }
 0x7e3   :  { %23362 = vmatprep.subr.bf16.mxu1 %v25108_v30  ;;  %v8925_v7 = vsub.s32 0, %v27428_v33 }
 0x7e6   :  { %23364 = vmatpush3.bf16.msra.mxu1 %v27314_v17 }
 0x7e7   :  { %23365 = vmatprep.subr.bf16.mxu1 %v25108_v30 }
 0x7ea   :  { %23367 = vmatpush3.bf16.msra.mxu1 %v27324_v50 }
 0x7eb   :  { %23368 = vmatprep.subr.bf16.mxu1 %v25108_v30 }
 0x7ee   :  { %23370 = vmatpush3.bf16.msra.mxu1 %v27332_v39 }
 0x7ef   :  { %23371 = vmatprep.subr.bf16.mxu1 %v25108_v30 }
 0x7f2   :  { %23373 = vmatpush3.bf16.msra.mxu1 %v27340_v59 }
 0x7f3   :  { %23374 = vmatprep.subr.bf16.mxu1 %v25108_v30 }
 0x7f6   :  { %23376 = vmatpush3.bf16.msra.mxu1 %v27348_v34 }
 0x7f7   :  { %23377 = vmatprep.subr.bf16.mxu1 %v25108_v30 }
 0x7fa   :  { %23379 = vmatpush3.bf16.msra.mxu1 %v27356_v14 }
 0x7fb   :  { %23380 = vmatprep.subr.bf16.mxu1 %v25108_v30 }
 0x7fd   :  { %20494 = vmatmul.mubr.f32.vlgmr.msra.gmra.mrb[16].mxu1 %v27251_v63 }
 0x7fe   :  { %23382 = vmatpush3.bf16.msra.mxu1 %v27036_v43  ;;  %20524 = vmatprep.mubr.msk.f32.mxu1 %vm25109_vm4, %v25110_v25 }
 0x7ff   :  { %23383 = vmatprep.subr.bf16.mxu1 %v25108_v30 }
 0x802   :  { %23385 = vmatpush3.bf16.msra.mxu1 %v27048_v51 }
 0x803   :  { %23386 = vmatprep.subr.bf16.mxu1 %v25108_v30 }
 0x806   :  { %23388 = vmatpush3.bf16.msra.mxu1 %v27058_v56 }
 0x807   :  { %23389 = vmatprep.subr.bf16.mxu1 %v25108_v30 }
 0x80a   :  { %23391 = vmatpush3.bf16.msra.mxu1 %v27068_v37 }
 0x80b   :  { %23392 = vmatprep.subr.bf16.mxu1 %v25108_v30 }
 0x80e   :  { %23394 = vmatpush3.bf16.msra.mxu1 %v27078_v13 }
 0x80f   :  { %23395 = vmatprep.subr.bf16.mxu1 %v25108_v30 }
 0x812   :  { %23397 = vmatpush3.bf16.msra.mxu1 %v27104_v9 }
 0x813   :  { %23398 = vmatprep.subr.bf16.mxu1 %v25108_v30 }
 0x816   :  { %23400 = vmatpush3.bf16.msra.mxu1 %v27111_v5 }
 0x817   :  { %23401 = vmatprep.subr.bf16.mxu1 %v25108_v30 }
 0x819   :  { %20525 = vmatmul.mubr.f32.vlgmr.msra.gmra.mrb[16].mxu1 %v27251_v63 }
 0x81a   :  { %20531 = vmatprep.mubr.msk.f32.mxu1 %vm25109_vm4, %v25110_v25  ;;  %23403 = vmatpush3.bf16.msra.mxu1 %v27381_v12 }
 0x81b   :  { %23404 = vmatprep.subr.bf16.mxu1 %v25108_v30 }
 0x8ec   :  { %v8454_v18 = vpop.f32.mrb[16].mxu1 }
 0x8ed   :  { %v8462_v44 = vsel %vm8460_vm6, %v8454_v18, 0  ;;  %v20526_v36 = vpop.f32.mrb[17].mxu1 }
 0x8ee   :  { %v8531_v22 = vand.u32 4294901760, %v8462_v44 }
 0x8f0   :  { %v8532_v58 = vsub.f32 %v8462_v44, %v8531_v22 }
 0x8f2   :  { %v8533_v35 = vand.u32 4294901760, %v8532_v58 }
 0x8f4   :  { %v8534_v57 = vsub.f32 %v8532_v58, %v8533_v35 }
 0x8f6   :  { %v8535_v63 = vand.u32 4294901760, %v8534_v57 }
 0x8f8   :  { %20532 = vmatmul.mubr.f32.vlgmr.msra.gmra.mrb[18].mxu1 %v8535_v63 }
 0x8f9   :  { %23406 = vmatpush3.bf16.msra.mxu1 %v27385_v3  ;;  %20538 = vmatprep.mubr.msk.f32.mxu1 %vm25109_vm4, %v25110_v25 }
 0x8fa   :  { %23407 = vmatprep.subr.bf16.mxu1 %v25108_v30 }
 0x900   :  { %20539 = vmatmul.mubr.f32.vlgmr.msra.gmra.mrb[18].mxu1 %v8531_v22 }
 0x901   :  { %23409 = vmatpush3.bf16.msra.mxu1 %v27387_v8  ;;  %20545 = vmatprep.mubr.msk.f32.mxu1 %vm25109_vm4, %v25110_v25 }
 0x902   :  { %23410 = vmatprep.subr.bf16.mxu1 %v25108_v30 }
 0x908   :  { %20546 = vmatmul.mubr.f32.vlgmr.msra.gmra.mrb[18].mxu1 %v8532_v58 }
 0x909   :  { %23412 = vmatpush3.bf16.msra.mxu1 %v27381_v12  ;;  %20552 = vmatprep.mubr.msk.f32.mxu1 %vm25109_vm4, %v25110_v25 }
 0x90a   :  { %23413 = vmatprep.subr.bf16.mxu1 %v25108_v30 }
 0x910   :  { %20553 = vmatmul.mubr.f32.vlgmr.msra.gmra.mrb[18].mxu1 %v8533_v35 }
 0x911   :  { %23415 = vmatpush3.bf16.msra.mxu1 %v27389_v62  ;;  %20559 = vmatprep.mubr.msk.f32.mxu1 %vm25109_vm4, %v25110_v25 }
 0x912   :  { %23416 = vmatprep.subr.bf16.mxu1 %v25108_v30 }
 0x918   :  { %20560 = vmatmul.mubr.f32.vlgmr.msra.gmra.mrb[18].mxu1 %v8531_v22 }
 0x919   :  { %23418 = vmatpush3.bf16.msra.mxu1 %v27381_v12  ;;  %20566 = vmatprep.mubr.msk.f32.mxu1 %vm25109_vm4, %v25110_v25 }
 0x91a   :  { %23419 = vmatprep.subr.bf16.mxu1 %v25108_v30 }
 0x920   :  { %20567 = vmatmul.mubr.f32.vlgmr.msra.gmra.mrb[18].mxu1 %v8531_v22 }
 0x921   :  { %23421 = vmatpush3.bf16.msra.mxu1 %v27036_v43  ;;  %20597 = vmatprep.mubr.msk.f32.mxu1 %vm25109_vm4, %v25110_v25 }
 0x922   :  { %23422 = vmatprep.subr.bf16.mxu1 %v25108_v30 }
 0x925   :  { %23424 = vmatpush3.bf16.msra.mxu1 %v27048_v51 }
 0x926   :  { %23425 = vmatprep.subr.bf16.mxu1 %v25108_v30 }
 0x929   :  { %23427 = vmatpush3.bf16.msra.mxu1 %v27058_v56 }
 0x92a   :  { %23428 = vmatprep.subr.bf16.mxu1 %v25108_v30 }
 0x92d   :  { %23430 = vmatpush3.bf16.msra.mxu1 %v27068_v37 }
 0x92e   :  { %23431 = vmatprep.subr.bf16.mxu1 %v25108_v30 }
 0x931   :  { %23433 = vmatpush3.bf16.msra.mxu1 %v27078_v13 }
 0x932   :  { %23434 = vmatprep.subr.bf16.mxu1 %v25108_v30 }
 0x935   :  { %23436 = vmatpush3.bf16.msra.mxu1 %v27104_v9 }
 0x936   :  { %23437 = vmatprep.subr.bf16.mxu1 %v25108_v30 }
 0x939   :  { %23439 = vmatpush3.bf16.msra.mxu1 %v27111_v5 }
 0x93a   :  { %23440 = vmatprep.subr.bf16.mxu1 %v25108_v30 }
 0x9f3   :  { %v8919_v2 = vpop.f32.mrb[18].mxu1 }
 0x9f4   :  { %v8926_v49 = vrot.slane %v8919_v2, %v8925_v7  ;;  %v20568_v52 = vpop.f32.mrb[19].mxu1 }
 0x9f6   :  { %v27434_v10 = vsub.f32 %v27244_v40, %v8926_v49  ;;  %v27437_v46 = vsub.f32 %v27242_v23, %v8926_v49 }
 0x9f8   :  { %v8929_v55 = vmul.f32 %v27434_v10, %v27434_v10  ;;  %v8930_v28 = vmul.f32 %v27437_v46, %v27437_v46 }
 0x9fa   :  { %v8931_v32 = vsel %vm5258_vm3, %v8929_v55, 0.0  ;;  %v8932_v31 = vsel %vm7815_vm5, %v8930_v28, 0.0  ;;  %v17266_v55 = vld [vmem:[%s29897_s11 + $0x8] sm:$0x3f] }
 0x9fb   :  { %v8933_v29 = vadd.f32 %v8932_v31, %v8931_v32  ;;  %v10533_v28 = vsel %vm10049_vm7, %v17266_v55, 0 }
 0x9fc   :  { %v10602_v31 = vand.u32 4294901760, %v10533_v28 }
 0x9fd   :  { %v8934_v45 = vrot.slane %v8933_v29, 4 }
 0x9ff   :  { %v8935_v27 = vadd.f32 %v8934_v45, %v8933_v29  ;;  %v10603_v29 = vsub.f32 %v10533_v28, %v10602_v31  ;;  %v27725_v28 = vld [vmem:[%s29898_s12 + $0xc8] sm:$0xff] }
 0xa01   :  { %v8936_v6 = vrot.slane %v8935_v27, 2  ;;  %v10604_v45 = vand.u32 4294901760, %v10603_v29 }
 0xa03   :  { %v8937_v42 = vadd.f32 %v8936_v6, %v8935_v27  ;;  %v10605_v27 = vsub.f32 %v10603_v29, %v10604_v45 }
 0xa05   :  { %v8938_v40 = vrot.slane %v8937_v42, 1  ;;  %v10606_v6 = vand.u32 4294901760, %v10605_v27 }
 0xa07   :  { %v8939_v47 = vadd.f32 %v8938_v40, %v8937_v42  ;;  %v17267_v42 = vld [vmem:[%s29898_s12 + $0x70] sm:$0xff]  ;;  %v17268_v40 = vld [vmem:[%s29898_s12 + $0x78] sm:$0xff] }
 0xa09   :  { %v8940_v61 = vmul.f32 0.071428575, %v8939_v47  ;;  %v11013_v47 = vand.u32 4294901760, %v17267_v42 }
 0xa0b   :  { %v8942_v23 = vsel %vm5258_vm3, %v8940_v61, 0  ;;  %v11016_v61 = vand.u32 4294901760, %v17268_v40 }
 0xa0c   :  { %v27446_v26 = vand.u32 4294901760, %v8942_v23 }
 0xa0e   :  { %v9024_v18 = vsub.f32 %v8942_v23, %v27446_v26  ;;  %v17269_v23 = vld [vmem:[%s29898_s12 + $0x80] sm:$0xff] }
 0xa10   :  { %v9025_v44 = vand.u32 4294901760, %v9024_v18 }
 0xa12   :  { %v9026_v36 = vsub.f32 %v9024_v18, %v9025_v44 }
 0xa14   :  { %v9027_v22 = vand.u32 4294901760, %v9026_v36  ;;  %v27645_v36 = vsub.f32 %v17268_v40, %v11016_v61 }
 0xa16   :  { %20598 = vmatmul.mubr.f32.vlgmr.msra.gmra.mrb[20].mxu1 %v9027_v22  ;;  %v11019_v22 = vand.u32 4294901760, %v17269_v23 }
 0xa17   :  { %23442 = vmatpush3.bf16.msra.mxu1 %v27130_v11  ;;  %20628 = vmatprep.mubr.msk.f32.mxu1 %vm25109_vm4, %v25110_v25 }
 0xa18   :  { %23443 = vmatprep.subr.bf16.mxu1 %v25108_v30 }
 0xa1b   :  { %23445 = vmatpush3.bf16.msra.mxu1 %v27144_v48 }
 0xa1c   :  { %23446 = vmatprep.subr.bf16.mxu1 %v25108_v30 }
 0xa1f   :  { %23448 = vmatpush3.bf16.msra.mxu1 %v27168_v20 }
 0xa20   :  { %23449 = vmatprep.subr.bf16.mxu1 %v25108_v30 }
 0xa23   :  { %23451 = vmatpush3.bf16.msra.mxu1 %v27172_v4 }
 0xa24   :  { %23452 = vmatprep.subr.bf16.mxu1 %v25108_v30 }
 0xa27   :  { %23454 = vmatpush3.bf16.msra.mxu1 %v27186_v53  ;;  %v10048_v53 = vld [vmem:[%s29897_s11] sm:$0x3f] }
 0xa28   :  { %23455 = vmatprep.subr.bf16.mxu1 %v25108_v30 }
 0xa2b   :  { %23457 = vmatpush3.bf16.msra.mxu1 %v27208_v16  ;;  %v10051_v16 = vsel %vm10049_vm7, %v10048_v53, 0 }
 0xa2c   :  { %23458 = vmatprep.subr.bf16.mxu1 %v25108_v30 }
 0xa2f   :  { %23460 = vmatpush3.bf16.msra.mxu1 %v27210_v15  ;;  %v10124_v15 = vand.u32 4294901760, %v10051_v16 }
 0xa30   :  { %23461 = vmatprep.subr.bf16.mxu1 %v25108_v30 }
 0xa32   :  { %20629 = vmatmul.mubr.f32.vlgmr.msra.gmra.mrb[20].mxu1 %v27446_v26 }
 0xa33   :  { %23463 = vmatpush3.bf16.msra.mxu1 %v27214_v1  ;;  %20659 = vmatprep.mubr.msk.f32.mxu1 %vm25109_vm4, %v25110_v25 }
 0xa34   :  { %23464 = vmatprep.subr.bf16.mxu1 %v25108_v30 }
 0xa37   :  { %23466 = vmatpush3.bf16.msra.mxu1 %v27218_v38 }
 0xa38   :  { %23467 = vmatprep.subr.bf16.mxu1 %v25108_v30 }
 0xa3b   :  { %23469 = vmatpush3.bf16.msra.mxu1 %v27222_v21  ;;  %v17264_v21 = vld [vmem:[#allocation13] ss:$0 sm:$0xff] }
 0xa3c   :  { %23470 = vmatprep.subr.bf16.mxu1 %v25108_v30 }
 0xa3f   :  { %23472 = vmatpush3.bf16.msra.mxu1 %v27226_v41 }
 0xa40   :  { %23473 = vmatprep.subr.bf16.mxu1 %v25108_v30 }
 0xa43   :  { %23475 = vmatpush3.bf16.msra.mxu1 %v27230_v24 }
 0xa44   :  { %23476 = vmatprep.subr.bf16.mxu1 %v25108_v30 }
 0xa47   :  { %23478 = vmatpush3.bf16.msra.mxu1 %v27234_v54  ;;  %v10125_v54 = vsub.f32 %v10051_v16, %v10124_v15 }
 0xa48   :  { %23479 = vmatprep.subr.bf16.mxu1 %v25108_v30 }
 0xa4b   :  { %23481 = vmatpush3.bf16.msra.mxu1 %v27238_v60  ;;  %v17265_v60 = vld [vmem:[#allocation14] ss:$0 sm:$0xff] }
 0xa4c   :  { %23482 = vmatprep.subr.bf16.mxu1 %v25108_v30 }
 0xa4e   :  { %20660 = vmatmul.mubr.f32.vlgmr.msra.gmra.mrb[20].mxu1 %v9024_v18  ;;  %v17271_v18 = vld [vmem:[%s29898_s12 + $0x90] sm:$0xff] }
 0xa4f   :  { %23484 = vmatpush3.bf16.msra.mxu1 %v27036_v43  ;;  %20690 = vmatprep.mubr.msk.f32.mxu1 %vm25109_vm4, %v25110_v25 }
 0xa50   :  { %23485 = vmatprep.subr.bf16.mxu1 %v25108_v30 }
 0xa53   :  { %23487 = vmatpush3.bf16.msra.mxu1 %v27048_v51 }
 0xa54   :  { %23488 = vmatprep.subr.bf16.mxu1 %v25108_v30 }
 0xa57   :  { %23490 = vmatpush3.bf16.msra.mxu1 %v27058_v56 }
 0xa58   :  { %23491 = vmatprep.subr.bf16.mxu1 %v25108_v30 }
 0xa5b   :  { %23493 = vmatpush3.bf16.msra.mxu1 %v27068_v37 }
 0xa5c   :  { %23494 = vmatprep.subr.bf16.mxu1 %v25108_v30 }
 0xa5f   :  { %23496 = vmatpush3.bf16.msra.mxu1 %v27078_v13 }
 0xa60   :  { %23497 = vmatprep.subr.bf16.mxu1 %v25108_v30 }
 0xa63   :  { %23499 = vmatpush3.bf16.msra.mxu1 %v27104_v9 }
 0xa64   :  { %23500 = vmatprep.subr.bf16.mxu1 %v25108_v30 }
 0xa67   :  { %23502 = vmatpush3.bf16.msra.mxu1 %v27111_v5 }
 0xa68   :  { %23503 = vmatprep.subr.bf16.mxu1 %v25108_v30 }
 0xa6a   :  { %20691 = vmatmul.mubr.f32.vlgmr.msra.gmra.mrb[20].mxu1 %v9025_v44  ;;  %v27643_v44 = vsub.f32 %v17267_v42, %v11013_v47 }
 0xa6b   :  { %23505 = vmatpush3.bf16.msra.mxu1 %v27306_v19  ;;  %20721 = vmatprep.mubr.msk.f32.mxu1 %vm25109_vm4, %v25110_v25 }
 0xa6c   :  { %23506 = vmatprep.subr.bf16.mxu1 %v25108_v30 }
 0xa6f   :  { %23508 = vmatpush3.bf16.msra.mxu1 %v27314_v17 }
 0xa70   :  { %23509 = vmatprep.subr.bf16.mxu1 %v25108_v30 }
 0xa73   :  { %23511 = vmatpush3.bf16.msra.mxu1 %v27324_v50 }
 0xa74   :  { %23512 = vmatprep.subr.bf16.mxu1 %v25108_v30 }
 0xa77   :  { %23514 = vmatpush3.bf16.msra.mxu1 %v27332_v39 }
 0xa78   :  { %23515 = vmatprep.subr.bf16.mxu1 %v25108_v30 }
 0xa7b   :  { %23517 = vmatpush3.bf16.msra.mxu1 %v27340_v59  ;;  %v10126_v59 = vand.u32 4294901760, %v10125_v54 }
 0xa7c   :  { %23518 = vmatprep.subr.bf16.mxu1 %v25108_v30 }
 0xa7f   :  { %23520 = vmatpush3.bf16.msra.mxu1 %v27348_v34 }
 0xa80   :  { %23521 = vmatprep.subr.bf16.mxu1 %v25108_v30 }
 0xa83   :  { %23523 = vmatpush3.bf16.msra.mxu1 %v27356_v14 }
 0xa84   :  { %23524 = vmatprep.subr.bf16.mxu1 %v25108_v30 }
 0xa86   :  { %20722 = vmatmul.mubr.f32.vlgmr.msra.gmra.mrb[20].mxu1 %v27446_v26 }
 0xa87   :  { %23526 = vmatpush3.bf16.msra.mxu1 %v27036_v43  ;;  %20752 = vmatprep.mubr.msk.f32.mxu1 %vm25109_vm4, %v25110_v25 }
 0xa88   :  { %23527 = vmatprep.subr.bf16.mxu1 %v25108_v30 }
 0xa8b   :  { %23529 = vmatpush3.bf16.msra.mxu1 %v27048_v51 }
 0xa8c   :  { %23530 = vmatprep.subr.bf16.mxu1 %v25108_v30 }
 0xa8f   :  { %23532 = vmatpush3.bf16.msra.mxu1 %v27058_v56 }
 0xa90   :  { %23533 = vmatprep.subr.bf16.mxu1 %v25108_v30 }
 0xa93   :  { %23535 = vmatpush3.bf16.msra.mxu1 %v27068_v37 }
 0xa94   :  { %23536 = vmatprep.subr.bf16.mxu1 %v25108_v30 }
 0xa97   :  { %23538 = vmatpush3.bf16.msra.mxu1 %v27078_v13 }
 0xa98   :  { %23539 = vmatprep.subr.bf16.mxu1 %v25108_v30 }
 0xa9b   :  { %23541 = vmatpush3.bf16.msra.mxu1 %v27104_v9 }
 0xa9c   :  { %23542 = vmatprep.subr.bf16.mxu1 %v25108_v30 }
 0xa9f   :  { %23544 = vmatpush3.bf16.msra.mxu1 %v27111_v5 }
 0xaa0   :  { %23545 = vmatprep.subr.bf16.mxu1 %v25108_v30 }
 0xaa2   :  { %20753 = vmatmul.mubr.f32.vlgmr.msra.gmra.mrb[20].mxu1 %v27446_v26  ;;  %v17270_v26 = vld [vmem:[%s29898_s12 + $0x88] sm:$0xff] }
 0xaa3   :  { %23547 = vmatpush3.bf16.msra.mxu1 %v27381_v12  ;;  %20759 = vmatprep.mubr.msk.f32.mxu1 %vm25109_vm4, %v25110_v25 }
 0xaa4   :  { %23548 = vmatprep.subr.bf16.mxu1 %v25108_v30 }
 0xb75   :  { %v9555_v43 = vpop.f32.mrb[20].mxu1 }
 0xb76   :  { %v9560_v51 = vsel %vm8460_vm6, %v9555_v43, 0  ;;  %v20754_v56 = vpop.f32.mrb[21].mxu1  ;;  %v11022_v43 = vand.u32 4294901760, %v17270_v26 }
 0xb77   :  { %v9629_v37 = vand.u32 4294901760, %v9560_v51  ;;  %v17273_v56 = vld [vmem:[%s29898_s12 + $0xa0] sm:$0xff] }
 0xb78   :  { %v27662_v53 = vsub.f32 %v17270_v26, %v11022_v43 }
 0xb79   :  { %v9630_v13 = vsub.f32 %v9560_v51, %v9629_v37  ;;  %v17272_v51 = vld [vmem:[%s29898_s12 + $0x98] sm:$0xff] }
 0xb7b   :  { %v9631_v9 = vand.u32 4294901760, %v9630_v13 }
 0xb7d   :  { %v9632_v11 = vsub.f32 %v9630_v13, %v9631_v9 }
 0xb7f   :  { %v9633_v5 = vand.u32 4294901760, %v9632_v11  ;;  %v11028_v11 = vand.u32 4294901760, %v17272_v51 }
 0xb81   :  { %20760 = vmatmul.mubr.f32.vlgmr.msra.gmra.mrb[22].mxu1 %v9633_v5  ;;  %v11031_v5 = vand.u32 4294901760, %v17273_v56 }
 0xb82   :  { %23550 = vmatpush3.bf16.msra.mxu1 %v27385_v3  ;;  %20766 = vmatprep.mubr.msk.f32.mxu1 %vm25109_vm4, %v25110_v25 }
 0xb83   :  { %23551 = vmatprep.subr.bf16.mxu1 %v25108_v30 }
 0xb89   :  { %20767 = vmatmul.mubr.f32.vlgmr.msra.gmra.mrb[22].mxu1 %v9629_v37 }
 0xb8a   :  { %23553 = vmatpush3.bf16.msra.mxu1 %v27387_v8  ;;  %20773 = vmatprep.mubr.msk.f32.mxu1 %vm25109_vm4, %v25110_v25  ;;  %v10127_v8 = vsub.f32 %v10125_v54, %v10126_v59 }
 0xb8b   :  { %23554 = vmatprep.subr.bf16.mxu1 %v25108_v30 }
 0xb8c   :  { %v10128_v63 = vand.u32 4294901760, %v10127_v8 }
 0xb91   :  { %20774 = vmatmul.mubr.f32.vlgmr.msra.gmra.mrb[22].mxu1 %v9630_v13  ;;  %v27656_v13 = vpack.c.bf16 %v11016_v61, %v11013_v47  ;;  %v11046_v61 = vand.u32 4294901760, %v27725_v28 }
 0xb92   :  { %23556 = vmatpush3.bf16.msra.mxu1 %v27381_v12  ;;  %20780 = vmatprep.mubr.msk.f32.mxu1 %vm25109_vm4, %v25110_v25 }
 0xb93   :  { %23557 = vmatprep.subr.bf16.mxu1 %v25108_v30  ;;  %23601 = vmatpush3.bf16.msra.mxu0 %v27656_v13 }
 0xb94   :  { %23602 = vmatprep.subr.bf16.mxu0 %v25108_v30 }
 0xb99   :  { %20781 = vmatmul.mubr.f32.vlgmr.msra.gmra.mrb[22].mxu1 %v9631_v9  ;;  %v11025_v9 = vand.u32 4294901760, %v17271_v18 }
 0xb9a   :  { %23559 = vmatpush3.bf16.msra.mxu1 %v27389_v62  ;;  %20787 = vmatprep.mubr.msk.f32.mxu1 %vm25109_vm4, %v25110_v25 }
 0xb9b   :  { %23560 = vmatprep.subr.bf16.mxu1 %v25108_v30  ;;  %v27665_v16 = vsub.f32 %v17271_v18, %v11025_v9 }
 0xba1   :  { %20788 = vmatmul.mubr.f32.vlgmr.msra.gmra.mrb[22].mxu1 %v9629_v37 }
 0xba2   :  { %23562 = vmatpush3.bf16.msra.mxu1 %v27381_v12  ;;  %20794 = vmatprep.mubr.msk.f32.mxu1 %vm25109_vm4, %v25110_v25 }
 0xba3   :  { %23563 = vmatprep.subr.bf16.mxu1 %v25108_v30 }
 0xba9   :  { %20795 = vmatmul.mubr.f32.vlgmr.msra.gmra.mrb[22].mxu1 %v9629_v37  ;;  %v17274_v37 = vld [vmem:[%s29898_s12 + $0xa8] sm:$0xff] }
 0xbaa   :  { %20801 = vmatprep.mubr.msk.f32.mxu1 %vm25109_vm4, %v25110_v25 }
 0xc7c   :  { %v10017_v48 = vpop.f32.mrb[22].mxu1 }
 0xc7d   :  { %v24465_v20 = vadd.f32 1e-05, %v10017_v48  ;;  %v20796_v4 = vpop.f32.mrb[23].mxu1  ;;  %v11104_v48 = vand.u32 4294901760, %v27643_v44 }
 0xc7e   :  { %v27660_v4 = vsub.f32 %v17269_v23, %v11019_v22 }
 0xc7f   :  { %24786 = vrsqrt.f32 %v24465_v20  ;;  %v11111_v20 = vand.u32 4294901760, %v27645_v36 }
 0xc89   :  { %v24787_v1 = vpop.eup %24786 }
 0xc8a   :  { %v10025_v38 = vrot.slane %v24787_v1, %v8925_v7  ;;  %v27669_v1 = vpack.c.bf16 %v11022_v43, %v11019_v22 }
 0xc8c   :  { %v10026_v41 = vmul.f32 %v10025_v38, %v27434_v10  ;;  %v10027_v24 = vmul.f32 %v10025_v38, %v27437_v46  ;;  %v11034_v38 = vand.u32 4294901760, %v17274_v37  ;;  %23604 = vmatpush3.bf16.msra.mxu0 %v27669_v1 }
 0xc8d   :  { %23605 = vmatprep.subr.bf16.mxu0 %v25108_v30 }
 0xc8e   :  { %v10035_v19 = vmul.f32 %v17264_v21, %v10026_v41  ;;  %v10036_v17 = vmul.f32 %v17264_v21, %v10027_v24  ;;  %v11105_v21 = vsub.f32 %v27643_v44, %v11104_v48  ;;  %v11112_v41 = vsub.f32 %v27645_v36, %v11111_v20 }
 0xc8f   :  { %v11118_v24 = vand.u32 4294901760, %v27660_v4 }
 0xc90   :  { %v10044_v50 = vadd.f32 %v17265_v60, %v10035_v19  ;;  %v10045_v39 = vadd.f32 %v17265_v60, %v10036_v17  ;;  %v11132_v60 = vand.u32 4294901760, %v27665_v16  ;;  %v27682_v17 = vsub.f32 %v17273_v56, %v11031_v5 }
 0xc91   :  { %v27751_v56 = vsub.f32 %v27725_v28, %v11046_v61 }
 0xc92   :  { %v10046_v34 = vmax.f32 %v10044_v50, 0.0  ;;  %v10047_v14 = vmax.f32 %v10045_v39, 0.0  ;;  %v27684_v50 = vsub.f32 %v17274_v37, %v11034_v38  ;;  %v11106_v39 = vand.u32 4294901760, %v11105_v21 }
 0xc93   :  { %v11146_v8 = vand.u32 4294901760, %v27682_v17 }
 0xc94   :  { %v10055_v12 = vsel %vm10053_vm8, %v10047_v14, 0  ;;  %v10058_v3 = vand.u32 4294901760, %v10046_v34 }
 0xc95   :  { %v10061_v62 = vand.u32 4294901760, %v10055_v12  ;;  %v11147_v55 = vsub.f32 %v27682_v17, %v11146_v8 }
 0xc96   :  { %v10136_v58 = vsub.f32 %v10046_v34, %v10058_v3  ;;  %v11119_v34 = vsub.f32 %v27660_v4, %v11118_v24 }
 0xc97   :  { %v27568_v35 = vpack.c.bf16 %v10061_v62, %v10058_v3  ;;  %v10143_v57 = vsub.f32 %v10055_v12, %v10061_v62  ;;  %v11133_v12 = vsub.f32 %v27665_v16, %v11132_v60  ;;  %v11153_v62 = vand.u32 4294901760, %v27684_v50 }
 0xc98   :  { %v10137_v0 = vand.u32 4294901760, %v10136_v58  ;;  %v11148_v26 = vand.u32 4294901760, %v11147_v55 }
 0xc99   :  { %23565 = vmatpush3.bf16.msra.mxu1 %v27568_v35  ;;  %v10144_v33 = vand.u32 4294901760, %v10143_v57  ;;  %v27578_v46 = vpack.c.bf16 %v10143_v57, %v10136_v58 }
 0xc9a   :  { %23566 = vmatprep.subr.bf16.mxu1 %v25108_v30  ;;  %v10138_v7 = vsub.f32 %v10136_v58, %v10137_v0  ;;  %v27704_v58 = vld [vmem:[%s29898_s12 + $0xb0] sm:$0xff] }
 0xc9b   :  { %v10145_v2 = vsub.f32 %v10143_v57, %v10144_v33  ;;  %v27592_v32 = vpack.c.bf16 %v10144_v33, %v10137_v0  ;;  %v27709_v57 = vld [vmem:[%s29898_s12 + $0xb8] sm:$0xff]  ;;  %v11120_v0 = vand.u32 4294901760, %v11119_v34 }
 0xc9c   :  { %20802 = vmatmul.mubr.f32.vlgmr.msra.gmra.mrb[24].mxu1 %v10128_v63  ;;  %v10139_v49 = vand.u32 4294901760, %v10138_v7  ;;  %v27712_v7 = vpack.c.bf16 %v11028_v11, %v11025_v9  ;;  %v11040_v27 = vand.u32 4294901760, %v27709_v57 }
 0xc9d   :  { %v10146_v52 = vand.u32 4294901760, %v10145_v2  ;;  %20808 = vmatprep.mubr.msk.f32.mxu1 %vm25109_vm4, %v25110_v25  ;;  %v27717_v2 = vld [vmem:[%s29898_s12 + $0xc0] sm:$0xff] }
 0xc9e   :  { %23607 = vmatpush3.bf16.msra.mxu0 %v27712_v7  ;;  %v11043_v42 = vand.u32 4294901760, %v27717_v2  ;;  %v27741_v47 = vsub.f32 %v27709_v57, %v11040_v27 }
 0xc9f   :  { %v27574_v10 = vpack.c.bf16 %v10146_v52, %v10139_v49  ;;  %v11134_v49 = vand.u32 4294901760, %v11133_v12  ;;  %23608 = vmatprep.subr.bf16.mxu0 %v25108_v30  ;;  %v17280_v12 = vld [vmem:[%s29898_s12 + $0xd8] sm:$0xff] }
 0xca0   :  { %v27746_v18 = vsub.f32 %v27717_v2, %v11043_v42 }
 0xca1   :  { %23568 = vmatpush3.bf16.msra.mxu1 %v27574_v10 }
 0xca2   :  { %23569 = vmatprep.subr.bf16.mxu1 %v25108_v30  ;;  %v11174_v37 = vand.u32 4294901760, %v27746_v18 }
 0xca4   :  { %20809 = vmatmul.mubr.f32.vlgmr.msra.gmra.mrb[24].mxu1 %v10124_v15 }
 0xca5   :  { %23571 = vmatpush3.bf16.msra.mxu1 %v27578_v46  ;;  %20815 = vmatprep.mubr.msk.f32.mxu1 %vm25109_vm4, %v25110_v25 }
 0xca6   :  { %23572 = vmatprep.subr.bf16.mxu1 %v25108_v30 }
 0xcac   :  { %20816 = vmatmul.mubr.f32.vlgmr.msra.gmra.mrb[24].mxu1 %v10125_v54  ;;  %v11125_v54 = vand.u32 4294901760, %v27662_v53 }
 0xcad   :  { %23574 = vmatpush3.bf16.msra.mxu1 %v27568_v35  ;;  %20822 = vmatprep.mubr.msk.f32.mxu1 %vm25109_vm4, %v25110_v25 }
 0xcae   :  { %23575 = vmatprep.subr.bf16.mxu1 %v25108_v30  ;;  %v11126_v14 = vsub.f32 %v27662_v53, %v11125_v54 }
 0xcb0   :  { %v11127_v33 = vand.u32 4294901760, %v11126_v14  ;;  %v17279_v14 = vld [vmem:[%s29898_s12 + $0xd0] sm:$0xff] }
 0xcb1   :  { %v11049_v57 = vand.u32 4294901760, %v17279_v14 }
 0xcb4   :  { %20823 = vmatmul.mubr.f32.vlgmr.msra.gmra.mrb[24].mxu1 %v10126_v59  ;;  %v11113_v59 = vand.u32 4294901760, %v11112_v41 }
 0xcb5   :  { %23577 = vmatpush3.bf16.msra.mxu1 %v27592_v32  ;;  %20829 = vmatprep.mubr.msk.f32.mxu1 %vm25109_vm4, %v25110_v25 }
 0xcb6   :  { %23578 = vmatprep.subr.bf16.mxu1 %v25108_v30  ;;  %v23621_v63 = vpack.c.bf16 %v11113_v59, %v11106_v39 }
 0xcbc   :  { %20830 = vmatmul.mubr.f32.vlgmr.msra.gmra.mrb[24].mxu1 %v10124_v15 }
 0xcbd   :  { %23580 = vmatpush3.bf16.msra.mxu1 %v27568_v35  ;;  %20836 = vmatprep.mubr.msk.f32.mxu1 %vm25109_vm4, %v25110_v25 }
 0xcbe   :  { %23581 = vmatprep.subr.bf16.mxu1 %v25108_v30 }
 0xcc4   :  { %20837 = vmatmul.mubr.f32.vlgmr.msra.gmra.mrb[24].mxu1 %v10124_v15  ;;  %v27667_v15 = vsub.f32 %v17272_v51, %v11028_v11  ;;  %v11167_v51 = vand.u32 4294901760, %v27741_v47 }
 0xcc5   :  { %23583 = vmatpush3.bf16.msra.mxu1 %v27568_v35  ;;  %20843 = vmatprep.mubr.msk.f32.mxu1 %vm25109_vm4, %v25110_v25 }
 0xcc6   :  { %23584 = vmatprep.subr.bf16.mxu1 %v25108_v30  ;;  %v11139_v19 = vand.u32 4294901760, %v27667_v15  ;;  %v11168_v11 = vsub.f32 %v27741_v47, %v11167_v51 }
 0xcc8   :  { %20844 = vmatmul.mubr.f32.vlgmr.msra.gmra.mrb[26].mxu1 %v10606_v6  ;;  %v11140_v3 = vsub.f32 %v27667_v15, %v11139_v19  ;;  %v27734_v6 = vpack.c.bf16 %v11034_v38, %v11031_v5  ;;  %v11181_v5 = vand.u32 4294901760, %v27751_v56  ;;  %v11175_v38 = vsub.f32 %v27746_v18, %v11174_v37 }
 0xcc9   :  { %23586 = vmatpush3.bf16.msra.mxu1 %v27574_v10  ;;  %20850 = vmatprep.mubr.msk.f32.mxu1 %vm25109_vm4, %v25110_v25  ;;  %v11169_v39 = vand.u32 4294901760, %v11168_v11 }
 0xcca   :  { %23587 = vmatprep.subr.bf16.mxu1 %v25108_v30  ;;  %v11141_v52 = vand.u32 4294901760, %v11140_v3  ;;  %23610 = vmatpush3.bf16.msra.mxu0 %v27734_v6  ;;  %v11182_v59 = vsub.f32 %v27751_v56, %v11181_v5  ;;  %v11176_v34 = vand.u32 4294901760, %v11175_v38  ;;  %v23657_v38 = vpack.c.bf16 %v27751_v56, %v27746_v18  ;;  %v28054_v18 = vld [vmem:[%s29898_s12 + $0x68] sm:$0xff] }
 0xccb   :  { %23611 = vmatprep.subr.bf16.mxu0 %v25108_v30 }
 0xccc   :  { %v23627_v23 = vpack.c.bf16 %v11141_v52, %v11134_v49 }
 0xcd0   :  { %20851 = vmatmul.mubr.f32.vlgmr.msra.gmra.mrb[26].mxu1 %v10602_v31 }
 0xcd1   :  { %23589 = vmatpush3.bf16.msra.mxu1 %v27578_v46  ;;  %20857 = vmatprep.mubr.msk.f32.mxu1 %vm25109_vm4, %v25110_v25 }
 0xcd2   :  { %23590 = vmatprep.subr.bf16.mxu1 %v25108_v30 }
 0xcd8   :  { %20858 = vmatmul.mubr.f32.vlgmr.msra.gmra.mrb[26].mxu1 %v10603_v29  ;;  %v11154_v29 = vsub.f32 %v27684_v50, %v11153_v62 }
 0xcd9   :  { %23592 = vmatpush3.bf16.msra.mxu1 %v27568_v35  ;;  %20864 = vmatprep.mubr.msk.f32.mxu1 %vm25109_vm4, %v25110_v25 }
 0xcda   :  { %23593 = vmatprep.subr.bf16.mxu1 %v25108_v30  ;;  %v11155_v22 = vand.u32 4294901760, %v11154_v29 }
 0xcdc   :  { %v23630_v21 = vpack.c.bf16 %v11155_v22, %v11148_v26  ;;  %v27797_v22 = vpack.c.bf16 %v11046_v61, %v11043_v42  ;;  %v23648_v42 = vpack.c.bf16 %v27667_v15, %v27665_v16  ;;  %v23651_v61 = vpack.c.bf16 %v27684_v50, %v27682_v17  ;;  %v27978_v17 = vld [vmem:[%s29898_s12 + $0x48] sm:$0xff] }
 0xce0   :  { %20865 = vmatmul.mubr.f32.vlgmr.msra.gmra.mrb[26].mxu1 %v10604_v45  ;;  %v11037_v45 = vand.u32 4294901760, %v27704_v58 }
 0xce1   :  { %23595 = vmatpush3.bf16.msra.mxu1 %v27592_v32  ;;  %20871 = vmatprep.mubr.msk.f32.mxu1 %vm25109_vm4, %v25110_v25 }
 0xce2   :  { %23596 = vmatprep.subr.bf16.mxu1 %v25108_v30  ;;  %v27738_v40 = vsub.f32 %v27704_v58, %v11037_v45  ;;  %v11183_v58 = vand.u32 4294901760, %v11182_v59 }
 0xce4   :  { %v11160_v43 = vand.u32 4294901760, %v27738_v40  ;;  %v23636_v2 = vpack.c.bf16 %v11183_v58, %v11176_v34  ;;  %v23654_v11 = vpack.c.bf16 %v27741_v47, %v27738_v40 }
 0xce6   :  { %v11161_v9 = vsub.f32 %v27738_v40, %v11160_v43 }
 0xce8   :  { %20872 = vmatmul.mubr.f32.vlgmr.msra.gmra.mrb[26].mxu1 %v10602_v31  ;;  %v11162_v41 = vand.u32 4294901760, %v11161_v9 }
 0xce9   :  { %23598 = vmatpush3.bf16.msra.mxu1 %v27568_v35  ;;  %20878 = vmatprep.mubr.msk.f32.mxu1 %vm25109_vm4, %v25110_v25 }
 0xcea   :  { %23620 = vmatprep.subr.bf16.mxu1 %v25108_v30  ;;  %v23633_v3 = vpack.c.bf16 %v11169_v39, %v11162_v41 }
 0xcf0   :  { %20879 = vmatmul.mubr.f32.vlgmr.msra.gmra.mrb[26].mxu1 %v10602_v31  ;;  %v23624_v31 = vpack.c.bf16 %v11127_v33, %v11120_v0  ;;  %v27778_v0 = vsub.f32 %v17279_v14, %v11049_v57 }
 0xcf1   :  { %20940 = vmatprep.mubr.msk.f32.mxu1 %vm25109_vm4, %v25110_v25  ;;  %23622 = vmatpush3.bf16.msra.mxu1 %v23621_v63  ;;  %v11052_v63 = vand.u32 4294901760, %v17280_v12 }
 0xcf2   :  { %23623 = vmatprep.subr.bf16.mxu1 %v25108_v30  ;;  %v11188_v49 = vand.u32 4294901760, %v27778_v0 }
 0xcf3   :  { %v27780_v33 = vsub.f32 %v17280_v12, %v11052_v63  ;;  %v27801_v9 = vpack.c.bf16 %v11052_v63, %v11049_v57 }
 0xcf4   :  { %v11189_v55 = vsub.f32 %v27778_v0, %v11188_v49 }
 0xcf5   :  { %23625 = vmatpush3.bf16.msra.mxu1 %v23624_v31  ;;  %v11195_v52 = vand.u32 4294901760, %v27780_v33 }
 0xcf6   :  { %23626 = vmatprep.subr.bf16.mxu1 %v25108_v30  ;;  %v11190_v31 = vand.u32 4294901760, %v11189_v55  ;;  %v27860_v55 = vld [vmem:[%s29898_s12 + $0x8] sm:$0xff] }
 0xcf7   :  { %v11196_v28 = vsub.f32 %v27780_v33, %v11195_v52  ;;  %v23702_v56 = vpack.c.bf16 %v11195_v52, %v11188_v49 }
 0xcf9   :  { %23628 = vmatpush3.bf16.msra.mxu1 %v23627_v23  ;;  %v11197_v29 = vand.u32 4294901760, %v11196_v28  ;;  %v27792_v23 = vpack.c.bf16 %v11040_v27, %v11037_v45  ;;  %v23642_v45 = vpack.c.bf16 %v27645_v36, %v27643_v44  ;;  %v23645_v27 = vpack.c.bf16 %v27662_v53, %v27660_v4  ;;  %v27872_v28 = vld [vmem:[%s29898_s12 + $0x18] sm:$0xff]  ;;  %v27888_v44 = vld [vmem:[%s29898_s12 + $0x20] sm:$0xff]  ;;  %v27893_v36 = vld [vmem:[%s29898_s12 + $0x28] sm:$0xff] }
 0xcfa   :  { %23629 = vmatprep.subr.bf16.mxu1 %v25108_v30 }
 0xcfb   :  { %v23639_v26 = vpack.c.bf16 %v11197_v29, %v11190_v31  ;;  %23613 = vmatpush3.bf16.msra.mxu0 %v27792_v23  ;;  %v23684_v31 = vpack.c.bf16 %v11111_v20, %v11104_v48  ;;  %v23687_v48 = vpack.c.bf16 %v11125_v54, %v11118_v24  ;;  %v11643_v24 = vand.u32 4294901760, %v27888_v44 }
 0xcfc   :  { %23614 = vmatprep.subr.bf16.mxu0 %v25108_v30  ;;  %v11646_v54 = vand.u32 4294901760, %v27893_v36 }
 0xcfd   :  { %23631 = vmatpush3.bf16.msra.mxu1 %v23630_v21  ;;  %v23660_v21 = vpack.c.bf16 %v27780_v33, %v27778_v0 }
 0xcfe   :  { %23632 = vmatprep.subr.bf16.mxu1 %v25108_v30 }
 0xcff   :  { %23616 = vmatpush3.bf16.msra.mxu0 %v27797_v22 }
 0xd00   :  { %23617 = vmatprep.subr.bf16.mxu0 %v25108_v30 }
 0xd01   :  { %23634 = vmatpush3.bf16.msra.mxu1 %v23633_v3 }
 0xd02   :  { %23635 = vmatprep.subr.bf16.mxu1 %v25108_v30 }
 0xd03   :  { %23619 = vmatpush3.bf16.msra.mxu0 %v27801_v9 }
 0xd04   :  { %23641 = vmatprep.subr.bf16.mxu0 %v25108_v30 }
 0xd05   :  { %23637 = vmatpush3.bf16.msra.mxu1 %v23636_v2  ;;  %v27855_v2 = vld [vmem:[%s29898_s12] sm:$0xff] }
 0xd06   :  { %23638 = vmatprep.subr.bf16.mxu1 %v25108_v30  ;;  %v11631_v29 = vand.u32 4294901760, %v27855_v2 }
 0xd08   :  { %v27903_v20 = vsub.f32 %v27855_v2, %v11631_v29 }
 0xd09   :  { %23640 = vmatpush3.bf16.msra.mxu1 %v23639_v26  ;;  %v11634_v26 = vand.u32 4294901760, %v27860_v55 }
 0xd0a   :  { %23662 = vmatprep.subr.bf16.mxu1 %v25108_v30 }
 0xd97   :  { %v27819_v41 = vpop.f32.mrb[24].mxu1 }
 0xd98   :  { %v20838_v39 = vpop.f32.mrb[25].mxu1 }
 0xd99   :  { %v23693_v39 = vpack.c.bf16 %v11153_v62, %v11146_v8 }
 0xdc3   :  { %v10990_v59 = vpop.f32.mrb[26].mxu1 }
 0xdc4   :  { %v11010_v34 = vsel %vm5258_vm3, %v10990_v59, 0  ;;  %v20880_v14 = vpop.f32.mrb[27].mxu1 }
 0xdc5   :  { %v27822_v12 = vand.u32 4294901760, %v11010_v34  ;;  %v27973_v14 = vld [vmem:[%s29898_s12 + $0x40] sm:$0xff] }
 0xdc7   :  { %v11092_v3 = vsub.f32 %v11010_v34, %v27822_v12  ;;  %20941 = vmatmul.mubr.f32.vlgmr.msra.gmra.mrb[28].mxu1 %v27822_v12 }
 0xdc8   :  { %23664 = vmatpush3.bf16.msra.mxu1 %v27656_v13  ;;  %21002 = vmatprep.mubr.msk.f32.mxu1 %vm25109_vm4, %v25110_v25 }
 0xdc9   :  { %v11093_v58 = vand.u32 4294901760, %v11092_v3  ;;  %23665 = vmatprep.subr.bf16.mxu1 %v25108_v30 }
 0xdcb   :  { %v11094_v57 = vsub.f32 %v11092_v3, %v11093_v58 }
 0xdcc   :  { %23667 = vmatpush3.bf16.msra.mxu1 %v27669_v1 }
 0xdcd   :  { %v11095_v63 = vand.u32 4294901760, %v11094_v57  ;;  %23668 = vmatprep.subr.bf16.mxu1 %v25108_v30  ;;  %v11655_v57 = vand.u32 4294901760, %v27973_v14 }
 0xdcf   :  { %20910 = vmatmul.mubr.f32.vlgmr.msra.gmra.mrb[10].mxu0 %v11095_v63  ;;  %v11658_v63 = vand.u32 4294901760, %v27978_v17 }
 0xdd0   :  { %23643 = vmatpush3.bf16.msra.mxu0 %v23642_v45  ;;  %23670 = vmatpush3.bf16.msra.mxu1 %v27712_v7 }
 0xdd1   :  { %23644 = vmatprep.subr.bf16.mxu0 %v25108_v30  ;;  %23671 = vmatprep.subr.bf16.mxu1 %v25108_v30 }
 0xdd2   :  { %20971 = vmatprep.mubr.msk.f32.mxu0 %vm25109_vm4, %v25110_v25 }
 0xdd4   :  { %23646 = vmatpush3.bf16.msra.mxu0 %v23645_v27  ;;  %23673 = vmatpush3.bf16.msra.mxu1 %v27734_v6  ;;  %v11640_v27 = vand.u32 4294901760, %v27872_v28 }
 0xdd5   :  { %23647 = vmatprep.subr.bf16.mxu0 %v25108_v30  ;;  %23674 = vmatprep.subr.bf16.mxu1 %v25108_v30 }
 0xdd6   :  { %v27920_v53 = vsub.f32 %v27872_v28, %v11640_v27 }
 0xdd8   :  { %23649 = vmatpush3.bf16.msra.mxu0 %v23648_v42  ;;  %23676 = vmatpush3.bf16.msra.mxu1 %v27792_v23  ;;  %v11722_v42 = vand.u32 4294901760, %v27903_v20  ;;  %v29926_v15 = vand.u32 4294901760, %v27920_v53 }
 0xdd9   :  { %23650 = vmatprep.subr.bf16.mxu0 %v25108_v30  ;;  %23677 = vmatprep.subr.bf16.mxu1 %v25108_v30 }
 0xdda   :  { %v11723_v59 = vsub.f32 %v27903_v20, %v11722_v42  ;;  %v11744_v8 = vsub.f32 %v27920_v53, %v29926_v15  ;;  %v28012_v15 = vld [vmem:[%s29898_s12 + $0x50] sm:$0xff] }
 0xddc   :  { %23652 = vmatpush3.bf16.msra.mxu0 %v23651_v61  ;;  %23679 = vmatpush3.bf16.msra.mxu1 %v27797_v22 }
 0xddd   :  { %23653 = vmatprep.subr.bf16.mxu0 %v25108_v30  ;;  %23680 = vmatprep.subr.bf16.mxu1 %v25108_v30 }
 0xde0   :  { %23655 = vmatpush3.bf16.msra.mxu0 %v23654_v11  ;;  %23682 = vmatpush3.bf16.msra.mxu1 %v27801_v9  ;;  %v27936_v11 = vld [vmem:[%s29898_s12 + $0x30] sm:$0xff] }
 0xde1   :  { %23656 = vmatprep.subr.bf16.mxu0 %v25108_v30  ;;  %23704 = vmatprep.subr.bf16.mxu1 %v25108_v30 }
 0xde3   :  { %21003 = vmatmul.mubr.f32.vlgmr.msra.gmra.mrb[30].mxu1 %v11093_v58 }
 0xde4   :  { %23658 = vmatpush3.bf16.msra.mxu0 %v23657_v38  ;;  %23706 = vmatpush3.bf16.msra.mxu1 %v27656_v13  ;;  %v27867_v13 = vld [vmem:[%s29898_s12 + $0x10] sm:$0xff]  ;;  %v27941_v38 = vld [vmem:[%s29898_s12 + $0x38] sm:$0xff] }
 0xde5   :  { %23659 = vmatprep.subr.bf16.mxu0 %v25108_v30  ;;  %23707 = vmatprep.subr.bf16.mxu1 %v25108_v30  ;;  %v11637_v45 = vand.u32 4294901760, %v27867_v13 }
 0xde6   :  { %21064 = vmatprep.mubr.msk.f32.mxu1 %vm25109_vm4, %v25110_v25 }
 0xde7   :  { %v27915_v4 = vsub.f32 %v27867_v13, %v11637_v45 }
 0xde8   :  { %23661 = vmatpush3.bf16.msra.mxu0 %v23660_v21  ;;  %23709 = vmatpush3.bf16.msra.mxu1 %v27669_v1  ;;  %v27908_v1 = vsub.f32 %v27860_v55, %v11634_v26  ;;  %v11652_v21 = vand.u32 4294901760, %v27941_v38 }
 0xde9   :  { %23683 = vmatprep.subr.bf16.mxu0 %v25108_v30  ;;  %23710 = vmatprep.subr.bf16.mxu1 %v25108_v30  ;;  %v29929_v16 = vand.u32 4294901760, %v27915_v4 }
 0xdea   :  { %v29930_v61 = vand.u32 4294901760, %v27908_v1  ;;  %v27998_v58 = vsub.f32 %v27941_v38, %v11652_v21 }
 0xdeb   :  { %20972 = vmatmul.mubr.f32.vlgmr.msra.gmra.mrb[12].mxu0 %v11092_v3  ;;  %v11737_v50 = vsub.f32 %v27915_v4, %v29929_v16 }
 0xdec   :  { %23685 = vmatpush3.bf16.msra.mxu0 %v23684_v31  ;;  %23712 = vmatpush3.bf16.msra.mxu1 %v27712_v7  ;;  %v23690_v7 = vpack.c.bf16 %v11139_v19, %v11132_v60  ;;  %v27950_v60 = vsub.f32 %v27888_v44, %v11643_v24  ;;  %v27955_v19 = vsub.f32 %v27893_v36, %v11646_v54  ;;  %v11628_v44 = vsel %vm5258_vm3, %v27819_v41, 0 }
 0xded   :  { %23686 = vmatprep.subr.bf16.mxu0 %v25108_v30  ;;  %23713 = vmatprep.subr.bf16.mxu1 %v25108_v30  ;;  %v11730_v34 = vsub.f32 %v27908_v1, %v29930_v61  ;;  %v23696_v31 = vpack.c.bf16 %v11167_v51, %v11160_v43  ;;  %v11738_v40 = vand.u32 4294901760, %v11737_v50  ;;  %v28035_v50 = vsub.f32 %v27978_v17, %v11658_v63 }
 0xdee   :  { %21033 = vmatprep.mubr.msk.f32.mxu0 %vm25109_vm4, %v25110_v25  ;;  %v29928_v62 = vand.u32 4294901760, %v27950_v60  ;;  %v28164_v41 = vpack.c.bf16 %v11658_v63, %v11655_v57 }
 0xdef   :  { %v11785_v0 = vand.u32 4294901760, %v28035_v50 }
 0xdf0   :  { %23688 = vmatpush3.bf16.msra.mxu0 %v23687_v48  ;;  %23715 = vmatpush3.bf16.msra.mxu1 %v27734_v6  ;;  %v11649_v6 = vand.u32 4294901760, %v27936_v11  ;;  %v11724_v48 = vand.u32 4294901760, %v11723_v59  ;;  %v11751_v47 = vsub.f32 %v27950_v60, %v29928_v62  ;;  %v29931_v59 = vand.u32 4294901760, %v27998_v58 }
 0xdf1   :  { %23689 = vmatprep.subr.bf16.mxu0 %v25108_v30  ;;  %23716 = vmatprep.subr.bf16.mxu1 %v25108_v30  ;;  %v11661_v62 = vand.u32 4294901760, %v28012_v15 }
 0xdf2   :  { %v27993_v3 = vsub.f32 %v27936_v11, %v11649_v6  ;;  %v28153_v36 = vpack.c.bf16 %v11652_v21, %v11649_v6 }
 0xdf3   :  { %v28072_v33 = vsub.f32 %v28012_v15, %v11661_v62 }
 0xdf4   :  { %23691 = vmatpush3.bf16.msra.mxu0 %v23690_v7  ;;  %23718 = vmatpush3.bf16.msra.mxu1 %v27792_v23  ;;  %v29927_v23 = vand.u32 4294901760, %v27955_v19  ;;  %v11731_v7 = vand.u32 4294901760, %v11730_v34  ;;  %v11764_v51 = vand.u32 4294901760, %v27993_v3  ;;  %v28030_v34 = vsub.f32 %v27973_v14, %v11655_v57 }
 0xdf5   :  { %23692 = vmatprep.subr.bf16.mxu0 %v25108_v30  ;;  %23719 = vmatprep.subr.bf16.mxu1 %v25108_v30  ;;  %v11792_v2 = vand.u32 4294901760, %v28072_v33  ;;  %v23774_v57 = vpack.c.bf16 %v27955_v19, %v27950_v60  ;;  %v23777_v63 = vpack.c.bf16 %v27998_v58, %v27993_v3 }
 0xdf6   :  { %v11758_v43 = vsub.f32 %v27955_v19, %v29927_v23  ;;  %v23747_v23 = vpack.c.bf16 %v11731_v7, %v11724_v48  ;;  %v11765_v48 = vsub.f32 %v27993_v3, %v11764_v51  ;;  %v11772_v7 = vsub.f32 %v27998_v58, %v29931_v59 }
 0xdf7   :  { %v11778_v61 = vand.u32 4294901760, %v28030_v34  ;;  %v11786_v59 = vsub.f32 %v28035_v50, %v11785_v0 }
 0xdf8   :  { %23694 = vmatpush3.bf16.msra.mxu0 %v23693_v39  ;;  %23721 = vmatpush3.bf16.msra.mxu1 %v27797_v22  ;;  %v28017_v22 = vld [vmem:[%s29898_s12 + $0x58] sm:$0xff]  ;;  %v11745_v39 = vand.u32 4294901760, %v11744_v8  ;;  %v23699_v8 = vpack.c.bf16 %v11181_v5, %v11174_v37  ;;  %v11752_v5 = vand.u32 4294901760, %v11751_v47  ;;  %v11766_v47 = vand.u32 4294901760, %v11765_v48 }
 0xdf9   :  { %23695 = vmatprep.subr.bf16.mxu0 %v25108_v30  ;;  %23722 = vmatprep.subr.bf16.mxu1 %v25108_v30  ;;  %v11664_v16 = vand.u32 4294901760, %v28017_v22  ;;  %v11793_v48 = vsub.f32 %v28072_v33, %v11792_v2 }
 0xdfa   :  { %v23750_v37 = vpack.c.bf16 %v11745_v39, %v11738_v40  ;;  %v11670_v40 = vand.u32 4294901760, %v28054_v18 }
 0xdfb   :  { %v28077_v49 = vsub.f32 %v28017_v22, %v11664_v16  ;;  %v28174_v6 = vpack.c.bf16 %v11664_v16, %v11661_v62  ;;  %v23768_v16 = vpack.c.bf16 %v27908_v1, %v27903_v20  ;;  %v23771_v62 = vpack.c.bf16 %v27920_v53, %v27915_v4 }
 0xdfc   :  { %23697 = vmatpush3.bf16.msra.mxu0 %v23696_v31  ;;  %23724 = vmatpush3.bf16.msra.mxu1 %v27801_v9  ;;  %v28049_v31 = vld [vmem:[%s29898_s12 + $0x60] sm:$0xff]  ;;  %v11759_v9 = vand.u32 4294901760, %v11758_v43  ;;  %v11773_v43 = vand.u32 4294901760, %v11772_v7  ;;  %v23780_v22 = vpack.c.bf16 %v28035_v50, %v28030_v34  ;;  %v29959_v20 = vand.u32 4294901760, %v27950_v60 }
 0xdfd   :  { %23698 = vmatprep.subr.bf16.mxu0 %v25108_v30  ;;  %23746 = vmatprep.subr.bf16.mxu1 %v25108_v30  ;;  %v11667_v52 = vand.u32 4294901760, %v28049_v31  ;;  %v11799_v55 = vand.u32 4294901760, %v28077_v49 }
 0xdfe   :  { %v23753_v39 = vpack.c.bf16 %v11759_v9, %v11752_v5  ;;  %v11787_v9 = vand.u32 4294901760, %v11786_v59  ;;  %v11794_v59 = vand.u32 4294901760, %v11793_v48 }
 0xdff   :  { %21065 = vmatmul.mubr.f32.vlgmr.msra.gmra.mrb[32].mxu1 %v27822_v12  ;;  %v28185_v15 = vpack.c.bf16 %v11670_v40, %v11667_v52 }
 0xe00   :  { %23700 = vmatpush3.bf16.msra.mxu0 %v23699_v8  ;;  %23748 = vmatpush3.bf16.msra.mxu1 %v23747_v23  ;;  %v28087_v23 = vpack.c.bf16 %v11634_v26, %v11631_v29  ;;  %v11779_v8 = vsub.f32 %v28030_v34, %v11778_v61  ;;  %v28102_v29 = vsub.f32 %v28049_v31, %v11667_v52  ;;  %v29956_v52 = vand.u32 4294901760, %v27908_v1 }
 0xe01   :  { %23701 = vmatprep.subr.bf16.mxu0 %v25108_v30  ;;  %23749 = vmatprep.subr.bf16.mxu1 %v25108_v30  ;;  %v28107_v26 = vsub.f32 %v28054_v18, %v11670_v40  ;;  %v23783_v31 = vpack.c.bf16 %v28077_v49, %v28072_v33  ;;  %v29960_v1 = vand.u32 4294901760, %v27955_v19 }
 0xe02   :  { %21126 = vmatprep.mubr.msk.f32.mxu1 %vm25109_vm4, %v25110_v25  ;;  %v11780_v5 = vand.u32 4294901760, %v11779_v8  ;;  %v11806_v13 = vand.u32 4294901760, %v28102_v29  ;;  %v28155_v8 = vand.u32 4294901760, %v11628_v44  ;;  %v23810_v40 = vpack.c.bf16 %v29956_v52, %v11722_v42 }
 0xe03   :  { %v11813_v28 = vand.u32 4294901760, %v28107_v26  ;;  %v23786_v18 = vpack.c.bf16 %v28107_v26, %v28102_v29  ;;  %v23816_v42 = vpack.c.bf16 %v29960_v1, %v29959_v20 }
 0xe04   :  { %23703 = vmatpush3.bf16.msra.mxu0 %v23702_v56  ;;  %23751 = vmatpush3.bf16.msra.mxu1 %v23750_v37  ;;  %v28116_v56 = vpack.c.bf16 %v11640_v27, %v11637_v45  ;;  %v23756_v37 = vpack.c.bf16 %v11773_v43, %v11766_v47  ;;  %v28135_v45 = vpack.c.bf16 %v11646_v54, %v11643_v24 }
 0xe05   :  { %23725 = vmatprep.subr.bf16.mxu0 %v25108_v30  ;;  %23752 = vmatprep.subr.bf16.mxu1 %v25108_v30  ;;  %v23759_v27 = vpack.c.bf16 %v11787_v9, %v11780_v5  ;;  %v11814_v47 = vsub.f32 %v28107_v26, %v11813_v28  ;;  %v11710_v38 = vsub.f32 %v11628_v44, %v28155_v8  ;;  %v17285_v26 = vld [vmem:[%s29898_s12 + $0xf8] sm:$0xff] }
 0xe06   :  { %v23822_v9 = vpack.c.bf16 %v11785_v0, %v11778_v61 }
 0xe07   :  { %21034 = vmatmul.mubr.f32.vlgmr.msra.gmra.mrb[14].mxu0 %v27822_v12  ;;  %v11800_v12 = vsub.f32 %v28077_v49, %v11799_v55  ;;  %v11815_v43 = vand.u32 4294901760, %v11814_v47  ;;  %v11711_v21 = vand.u32 4294901760, %v11710_v38  ;;  %v17282_v49 = vld [vmem:[%s29898_s12 + $0xe0] sm:$0xff] }
 0xe08   :  { %23727 = vmatpush3.bf16.msra.mxu0 %v28087_v23  ;;  %23754 = vmatpush3.bf16.msra.mxu1 %v23753_v39  ;;  %v11807_v39 = vsub.f32 %v28102_v29, %v11806_v13 }
 0xe09   :  { %23728 = vmatprep.subr.bf16.mxu0 %v25108_v30  ;;  %23755 = vmatprep.subr.bf16.mxu1 %v25108_v30  ;;  %v11801_v7 = vand.u32 4294901760, %v11800_v12  ;;  %v11712_v14 = vsub.f32 %v11710_v38, %v11711_v21  ;;  %v17286_v12 = vld [vmem:[%s29898_s12 + $0x100] sm:$0xff] }
 0xe0a   :  { %21095 = vmatprep.mubr.msk.f32.mxu0 %vm25109_vm4, %v25110_v25  ;;  %v11808_v54 = vand.u32 4294901760, %v11807_v39 }
 0xe0b   :  { %v23762_v24 = vpack.c.bf16 %v11801_v7, %v11794_v59  ;;  %v11713_v17 = vand.u32 4294901760, %v11712_v14  ;;  %v17288_v59 = vld [vmem:[%s29898_s12 + $0x110] sm:$0xff] }
 0xe0c   :  { %23730 = vmatpush3.bf16.msra.mxu0 %v28116_v56  ;;  %23757 = vmatpush3.bf16.msra.mxu1 %v23756_v37  ;;  %v23765_v11 = vpack.c.bf16 %v11815_v43, %v11808_v54  ;;  %v29958_v37 = vand.u32 4294901760, %v27920_v53  ;;  %v29961_v53 = vand.u32 4294901760, %v27998_v58  ;;  %v23825_v58 = vpack.c.bf16 %v11799_v55, %v11792_v2  ;;  %v17284_v2 = vld [vmem:[%s29898_s12 + $0xf0] sm:$0xff] }
 0xe0d   :  { %23731 = vmatprep.subr.bf16.mxu0 %v25108_v30  ;;  %23758 = vmatprep.subr.bf16.mxu1 %v25108_v30  ;;  %v12728_v55 = vand.u32 4294901760, %v17282_v49  ;;  %v12734_v48 = vand.u32 4294901760, %v17284_v2 }
 0xe0f   :  { %v28338_v7 = vsub.f32 %v17282_v49, %v12728_v55  ;;  %v28342_v47 = vsub.f32 %v17284_v2, %v12734_v48 }
 0xe10   :  { %23733 = vmatpush3.bf16.msra.mxu0 %v28135_v45  ;;  %23760 = vmatpush3.bf16.msra.mxu1 %v23759_v27 }
 0xe11   :  { %23734 = vmatprep.subr.bf16.mxu0 %v25108_v30  ;;  %23761 = vmatprep.subr.bf16.mxu1 %v25108_v30 }
 0xe14   :  { %23736 = vmatpush3.bf16.msra.mxu0 %v28153_v36  ;;  %23763 = vmatpush3.bf16.msra.mxu1 %v23762_v24 }
 0xe15   :  { %23737 = vmatprep.subr.bf16.mxu0 %v25108_v30  ;;  %23764 = vmatprep.subr.bf16.mxu1 %v25108_v30 }
 0xe18   :  { %23739 = vmatpush3.bf16.msra.mxu0 %v28164_v41  ;;  %23766 = vmatpush3.bf16.msra.mxu1 %v23765_v11  ;;  %v12819_v11 = vand.u32 4294901760, %v28338_v7 }
 0xe19   :  { %23740 = vmatprep.subr.bf16.mxu0 %v25108_v30  ;;  %23788 = vmatprep.subr.bf16.mxu1 %v25108_v30 }
 0xe1b   :  { %21127 = vmatmul.mubr.f32.vlgmr.msra.gmra.mrb[34].mxu1 %v28155_v8 }
 0xe1c   :  { %23742 = vmatpush3.bf16.msra.mxu0 %v28174_v6  ;;  %23790 = vmatpush3.bf16.msra.mxu1 %v28087_v23 }
 0xe1d   :  { %23743 = vmatprep.subr.bf16.mxu0 %v25108_v30  ;;  %23791 = vmatprep.subr.bf16.mxu1 %v25108_v30 }
 0xe1e   :  { %21188 = vmatprep.mubr.msk.f32.mxu1 %vm25109_vm4, %v25110_v25 }
 0xe20   :  { %23745 = vmatpush3.bf16.msra.mxu0 %v28185_v15  ;;  %23793 = vmatpush3.bf16.msra.mxu1 %v28116_v56 }
 0xe21   :  { %23767 = vmatprep.subr.bf16.mxu0 %v25108_v30  ;;  %23794 = vmatprep.subr.bf16.mxu1 %v25108_v30 }
 0xe23   :  { %21096 = vmatmul.mubr.f32.vlgmr.msra.gmra.mrb[16].mxu0 %v11713_v17 }
 0xe24   :  { %23769 = vmatpush3.bf16.msra.mxu0 %v23768_v16  ;;  %23796 = vmatpush3.bf16.msra.mxu1 %v28135_v45 }
 0xe25   :  { %23770 = vmatprep.subr.bf16.mxu0 %v25108_v30  ;;  %23797 = vmatprep.subr.bf16.mxu1 %v25108_v30 }
 0xe26   :  { %21157 = vmatprep.mubr.msk.f32.mxu0 %vm25109_vm4, %v25110_v25 }
 0xe28   :  { %23772 = vmatpush3.bf16.msra.mxu0 %v23771_v62  ;;  %23799 = vmatpush3.bf16.msra.mxu1 %v28153_v36 }
 0xe29   :  { %23773 = vmatprep.subr.bf16.mxu0 %v25108_v30  ;;  %23800 = vmatprep.subr.bf16.mxu1 %v25108_v30 }
 0xe2c   :  { %23775 = vmatpush3.bf16.msra.mxu0 %v23774_v57  ;;  %23802 = vmatpush3.bf16.msra.mxu1 %v28164_v41  ;;  %v12820_v57 = vsub.f32 %v28338_v7, %v12819_v11 }
 0xe2d   :  { %23776 = vmatprep.subr.bf16.mxu0 %v25108_v30  ;;  %23803 = vmatprep.subr.bf16.mxu1 %v25108_v30 }
 0xe30   :  { %23778 = vmatpush3.bf16.msra.mxu0 %v23777_v63  ;;  %23805 = vmatpush3.bf16.msra.mxu1 %v28174_v6 }
 0xe31   :  { %23779 = vmatprep.subr.bf16.mxu0 %v25108_v30  ;;  %23806 = vmatprep.subr.bf16.mxu1 %v25108_v30 }
 0xe34   :  { %23781 = vmatpush3.bf16.msra.mxu0 %v23780_v22  ;;  %23808 = vmatpush3.bf16.msra.mxu1 %v28185_v15 }
 0xe35   :  { %23782 = vmatprep.subr.bf16.mxu0 %v25108_v30  ;;  %23830 = vmatprep.subr.bf16.mxu1 %v25108_v30 }
 0xe37   :  { %21189 = vmatmul.mubr.f32.vlgmr.msra.gmra.mrb[36].mxu1 %v11711_v21  ;;  %v12746_v21 = vand.u32 4294901760, %v17288_v59 }
 0xe38   :  { %23784 = vmatpush3.bf16.msra.mxu0 %v23783_v31  ;;  %23832 = vmatpush3.bf16.msra.mxu1 %v28087_v23  ;;  %v29957_v23 = vand.u32 4294901760, %v27915_v4  ;;  %v17281_v4 = vld [vmem:[%s29897_s11 + $0x10] sm:$0x3f] }
 0xe39   :  { %23785 = vmatprep.subr.bf16.mxu0 %v25108_v30  ;;  %23833 = vmatprep.subr.bf16.mxu1 %v25108_v30  ;;  %v12248_v60 = vsel %vm10049_vm7, %v17281_v4, 0  ;;  %v28374_v31 = vsub.f32 %v17288_v59, %v12746_v21  ;;  %v28397_v4 = vld [vmem:[%s29898_s12 + $0x128] sm:$0xff] }
 0xe3a   :  { %21250 = vmatprep.mubr.msk.f32.mxu1 %vm25109_vm4, %v25110_v25  ;;  %v23813_v5 = vpack.c.bf16 %v29958_v37, %v29957_v23  ;;  %v12317_v19 = vand.u32 4294901760, %v12248_v60  ;;  %v28390_v37 = vld [vmem:[%s29898_s12 + $0x120] sm:$0xff] }
 0xe3c   :  { %23787 = vmatpush3.bf16.msra.mxu0 %v23786_v18  ;;  %23835 = vmatpush3.bf16.msra.mxu1 %v28116_v56  ;;  %v23819_v56 = vpack.c.bf16 %v29961_v53, %v11764_v51  ;;  %v12318_v3 = vsub.f32 %v12248_v60, %v12317_v19  ;;  %v23828_v51 = vpack.c.bf16 %v11813_v28, %v11806_v13  ;;  %v17287_v13 = vld [vmem:[%s29898_s12 + $0x108] sm:$0xff]  ;;  %v12737_v28 = vand.u32 4294901760, %v17285_v26  ;;  %v28404_v60 = vld [vmem:[%s29898_s12 + $0x130] sm:$0xff] }
 0xe3d   :  { %23809 = vmatprep.subr.bf16.mxu0 %v25108_v30  ;;  %23836 = vmatprep.subr.bf16.mxu1 %v25108_v30  ;;  %v12743_v27 = vand.u32 4294901760, %v17287_v13 }
 0xe3e   :  { %v12319_v61 = vand.u32 4294901760, %v12318_v3  ;;  %v28349_v24 = vsub.f32 %v17285_v26, %v12737_v28 }
 0xe3f   :  { %21158 = vmatmul.mubr.f32.vlgmr.msra.gmra.mrb[18].mxu0 %v11710_v38  ;;  %v28353_v43 = vsub.f32 %v17287_v13, %v12743_v27 }
 0xe40   :  { %23811 = vmatpush3.bf16.msra.mxu0 %v23810_v40  ;;  %23838 = vmatpush3.bf16.msra.mxu1 %v28135_v45  ;;  %v12320_v34 = vsub.f32 %v12318_v3, %v12319_v61  ;;  %v12740_v45 = vand.u32 4294901760, %v17286_v12  ;;  %v12840_v14 = vand.u32 4294901760, %v28349_v24 }
 0xe41   :  { %23812 = vmatprep.subr.bf16.mxu0 %v25108_v30  ;;  %23839 = vmatprep.subr.bf16.mxu1 %v25108_v30  ;;  %v12854_v17 = vand.u32 4294901760, %v28353_v43 }
 0xe42   :  { %21219 = vmatprep.mubr.msk.f32.mxu0 %vm25109_vm4, %v25110_v25  ;;  %v12321_v50 = vand.u32 4294901760, %v12320_v34  ;;  %v28351_v54 = vsub.f32 %v17286_v12, %v12740_v45  ;;  %v12841_v18 = vsub.f32 %v28349_v24, %v12840_v14 }
 0xe43   :  { %v12855_v40 = vsub.f32 %v28353_v43, %v12854_v17 }
 0xe44   :  { %23814 = vmatpush3.bf16.msra.mxu0 %v23813_v5  ;;  %23841 = vmatpush3.bf16.msra.mxu1 %v28153_v36  ;;  %v17289_v36 = vld [vmem:[%s29898_s12 + $0x118] sm:$0xff]  ;;  %v12847_v16 = vand.u32 4294901760, %v28351_v54  ;;  %v12821_v5 = vand.u32 4294901760, %v12820_v57  ;;  %v12842_v53 = vand.u32 4294901760, %v12841_v18 }
 0xe45   :  { %23815 = vmatprep.subr.bf16.mxu0 %v25108_v30  ;;  %23842 = vmatprep.subr.bf16.mxu1 %v25108_v30  ;;  %v12749_v62 = vand.u32 4294901760, %v17289_v36  ;;  %v12856_v34 = vand.u32 4294901760, %v12855_v40 }
 0xe46   :  { %v12848_v52 = vsub.f32 %v28351_v54, %v12847_v16 }
 0xe47   :  { %v28385_v23 = vsub.f32 %v17289_v36, %v12749_v62  ;;  %v28427_v49 = vpack.c.bf16 %v12749_v62, %v12746_v21 }
 0xe48   :  { %23817 = vmatpush3.bf16.msra.mxu0 %v23816_v42  ;;  %23844 = vmatpush3.bf16.msra.mxu1 %v28164_v41  ;;  %v12861_v42 = vand.u32 4294901760, %v28374_v31 }
 0xe49   :  { %23818 = vmatprep.subr.bf16.mxu0 %v25108_v30  ;;  %23845 = vmatprep.subr.bf16.mxu1 %v25108_v30 }
 0xe4c   :  { %23820 = vmatpush3.bf16.msra.mxu0 %v23819_v56  ;;  %23847 = vmatpush3.bf16.msra.mxu1 %v28174_v6  ;;  %v12833_v6 = vand.u32 4294901760, %v28342_v47  ;;  %v12868_v56 = vand.u32 4294901760, %v28385_v23 }
 0xe4d   :  { %23821 = vmatprep.subr.bf16.mxu0 %v25108_v30  ;;  %23848 = vmatprep.subr.bf16.mxu1 %v25108_v30 }
 0xe4e   :  { %v12834_v22 = vsub.f32 %v28342_v47, %v12833_v6 }
 0xe50   :  { %23823 = vmatpush3.bf16.msra.mxu0 %v23822_v9  ;;  %23850 = vmatpush3.bf16.msra.mxu1 %v28185_v15  ;;  %v12835_v1 = vand.u32 4294901760, %v12834_v22  ;;  %v12862_v9 = vsub.f32 %v28374_v31, %v12861_v42 }
 0xe51   :  { %23824 = vmatprep.subr.bf16.mxu0 %v25108_v30  ;;  %23869 = vmatprep.subr.bf16.mxu1 %v25108_v30 }
 0xe53   :  { %21251 = vmatmul.mubr.f32.vlgmr.msra.gmra.mrb[38].mxu1 %v28155_v8 }
 0xe54   :  { %23826 = vmatpush3.bf16.msra.mxu0 %v23825_v58  ;;  %21323 = vmatprep.mubr.msk.f32.mxu1 %vm25109_vm4, %v25110_v25  ;;  %v12752_v58 = vand.u32 4294901760, %v28390_v37 }
 0xe55   :  { %23827 = vmatprep.subr.bf16.mxu0 %v25108_v30 }
 0xe58   :  { %23829 = vmatpush3.bf16.msra.mxu0 %v23828_v51  ;;  %v12849_v51 = vand.u32 4294901760, %v12848_v52 }
 0xe59   :  { %23851 = vmatprep.subr.bf16.mxu0 %v25108_v30 }
 0xe5a   :  { %v23897_v59 = vpack.c.bf16 %v12856_v34, %v12849_v51 }
 0xe5b   :  { %21220 = vmatmul.mubr.f32.vlgmr.msra.gmra.mrb[20].mxu0 %v28155_v8  ;;  %v28355_v8 = vpack.c.bf16 %v12737_v28, %v12734_v48  ;;  %v12863_v48 = vand.u32 4294901760, %v12862_v9 }
 0xe5c   :  { %23853 = vmatpush3.bf16.msra.mxu0 %v27568_v35  ;;  %21257 = vmatprep.mubr.msk.f32.mxu0 %vm25109_vm4, %v25110_v25 }
 0xe5d   :  { %23854 = vmatprep.subr.bf16.mxu0 %v25108_v30 }
 0xe5f   :  { %21258 = vmatmul.mubr.f32.vlgmr.msra.gmra.mrb[22].mxu0 %v12321_v50  ;;  %v12869_v50 = vsub.f32 %v28385_v23, %v12868_v56 }
 0xe60   :  { %23856 = vmatpush3.bf16.msra.mxu0 %v27574_v10  ;;  %21264 = vmatprep.mubr.msk.f32.mxu0 %vm25109_vm4, %v25110_v25 }
 0xe61   :  { %23857 = vmatprep.subr.bf16.mxu0 %v25108_v30 }
 0xe67   :  { %21265 = vmatmul.mubr.f32.vlgmr.msra.gmra.mrb[22].mxu0 %v12317_v19 }
 0xe68   :  { %23859 = vmatpush3.bf16.msra.mxu0 %v27578_v46  ;;  %21271 = vmatprep.mubr.msk.f32.mxu0 %vm25109_vm4, %v25110_v25 }
 0xe69   :  { %23860 = vmatprep.subr.bf16.mxu0 %v25108_v30 }
 0xe6f   :  { %21272 = vmatmul.mubr.f32.vlgmr.msra.gmra.mrb[22].mxu0 %v12318_v3  ;;  %v28409_v3 = vpack.c.bf16 %v12743_v27, %v12740_v45 }
 0xe70   :  { %23862 = vmatpush3.bf16.msra.mxu0 %v27568_v35  ;;  %21278 = vmatprep.mubr.msk.f32.mxu0 %vm25109_vm4, %v25110_v25 }
 0xe71   :  { %23863 = vmatprep.subr.bf16.mxu0 %v25108_v30 }
 0xe77   :  { %21279 = vmatmul.mubr.f32.vlgmr.msra.gmra.mrb[22].mxu0 %v12319_v61  ;;  %v28415_v61 = vld [vmem:[%s29898_s12 + $0x138] sm:$0xff] }
 0xe78   :  { %23865 = vmatpush3.bf16.msra.mxu0 %v27592_v32  ;;  %21285 = vmatprep.mubr.msk.f32.mxu0 %vm25109_vm4, %v25110_v25  ;;  %v12761_v26 = vand.u32 4294901760, %v28415_v61 }
 0xe79   :  { %23866 = vmatprep.subr.bf16.mxu0 %v25108_v30 }
 0xe7a   :  { %v28445_v27 = vsub.f32 %v28415_v61, %v12761_v26 }
 0xe7f   :  { %21286 = vmatmul.mubr.f32.vlgmr.msra.gmra.mrb[22].mxu0 %v12317_v19 }
 0xe80   :  { %23868 = vmatpush3.bf16.msra.mxu0 %v27568_v35  ;;  %21292 = vmatprep.mubr.msk.f32.mxu0 %vm25109_vm4, %v25110_v25  ;;  %v17283_v35 = vld [vmem:[%s29898_s12 + $0xe8] sm:$0xff] }
 0xe81   :  { %23890 = vmatprep.subr.bf16.mxu0 %v25108_v30  ;;  %v12731_v29 = vand.u32 4294901760, %v17283_v35 }
 0xe83   :  { %v28340_v39 = vsub.f32 %v17283_v35, %v12731_v29  ;;  %v28344_v44 = vpack.c.bf16 %v12731_v29, %v12728_v55  ;;  %v12758_v35 = vand.u32 4294901760, %v28404_v60 }
 0xe85   :  { %v12826_v38 = vand.u32 4294901760, %v28340_v39  ;;  %23871 = vmatpush3.bf16.msra.mxu1 %v28344_v44  ;;  %v28441_v13 = vsub.f32 %v28404_v60, %v12758_v35  ;;  %v23918_v60 = vpack.c.bf16 %v28353_v43, %v28351_v54 }
 0xe86   :  { %23872 = vmatprep.subr.bf16.mxu1 %v25108_v30 }
 0xe87   :  { %21293 = vmatmul.mubr.f32.vlgmr.msra.gmra.mrb[22].mxu0 %v12317_v19  ;;  %v12827_v63 = vsub.f32 %v28340_v39, %v12826_v38  ;;  %v12889_v21 = vand.u32 4294901760, %v28441_v13 }
 0xe88   :  { %21354 = vmatprep.mubr.msk.f32.mxu0 %vm25109_vm4, %v25110_v25 }
 0xe89   :  { %v12828_v20 = vand.u32 4294901760, %v12827_v63  ;;  %23874 = vmatpush3.bf16.msra.mxu1 %v28355_v8  ;;  %v12890_v22 = vsub.f32 %v28441_v13, %v12889_v21 }
 0xe8a   :  { %23875 = vmatprep.subr.bf16.mxu1 %v25108_v30 }
 0xe8b   :  { %v23891_v19 = vpack.c.bf16 %v12828_v20, %v12821_v5  ;;  %v12891_v40 = vand.u32 4294901760, %v12890_v22 }
 0xe8d   :  { %23892 = vmatpush3.bf16.msra.mxu0 %v23891_v19  ;;  %23877 = vmatpush3.bf16.msra.mxu1 %v28409_v3 }
 0xe8e   :  { %23893 = vmatprep.subr.bf16.mxu0 %v25108_v30  ;;  %23878 = vmatprep.subr.bf16.mxu1 %v25108_v30 }
 0xe91   :  { %23880 = vmatpush3.bf16.msra.mxu1 %v28427_v49 }
 0xe92   :  { %23881 = vmatprep.subr.bf16.mxu1 %v25108_v30 }
 0xe9a   :  { %v11238_v10 = vpop.f32.mrb[28].mxu1 }
 0xe9b   :  { %v20942_v46 = vpop.f32.mrb[29].mxu1 }
 0xea2   :  { %v11097_v32 = vpop.f32.mrb[10].mxu0 }
 0xea3   :  { %v28315_v0 = vadd.f32 %v11238_v10, %v11097_v32  ;;  %v20911_v33 = vpop.f32.mrb[11].mxu0  ;;  %v12755_v10 = vand.u32 4294901760, %v28397_v4  ;;  %v23894_v32 = vpack.c.bf16 %v12842_v53, %v12835_v1  ;;  %v17294_v1 = vld [vmem:[%s29898_s12 + $0x140] sm:$0xff] }
 0xea4   :  { %v28425_v33 = vsub.f32 %v28390_v37, %v12752_v58  ;;  %v12764_v53 = vand.u32 4294901760, %v17294_v1 }
 0xea5   :  { %v28433_v29 = vsub.f32 %v28397_v4, %v12755_v10  ;;  %23895 = vmatpush3.bf16.msra.mxu0 %v23894_v32  ;;  %v17295_v4 = vld [vmem:[%s29898_s12 + $0x148] sm:$0xff] }
 0xea6   :  { %v12875_v12 = vand.u32 4294901760, %v28425_v33  ;;  %23896 = vmatprep.subr.bf16.mxu0 %v25108_v30  ;;  %v12767_v19 = vand.u32 4294901760, %v17295_v4  ;;  %v28473_v9 = vsub.f32 %v17294_v1, %v12764_v53 }
 0xea7   :  { %v12882_v45 = vand.u32 4294901760, %v28433_v29  ;;  %v23924_v22 = vpack.c.bf16 %v28433_v29, %v28425_v33 }
 0xea8   :  { %v12876_v36 = vsub.f32 %v28425_v33, %v12875_v12  ;;  %v28475_v61 = vsub.f32 %v17295_v4, %v12767_v19  ;;  %v28499_v37 = vpack.c.bf16 %v12767_v19, %v12764_v53 }
 0xea9   :  { %23898 = vmatpush3.bf16.msra.mxu0 %v23897_v59 }
 0xeaa   :  { %v12877_v57 = vand.u32 4294901760, %v12876_v36  ;;  %23899 = vmatprep.subr.bf16.mxu0 %v25108_v30  ;;  %v23930_v1 = vpack.c.bf16 %v28475_v61, %v28473_v9 }
 0xeb6   :  { %v11425_v41 = vpop.f32.mrb[30].mxu1 }
 0xeb7   :  { %v21004_v15 = vpop.f32.mrb[31].mxu1 }
 0xeb8   :  { %v12896_v15 = vand.u32 4294901760, %v28445_v27 }
 0xeba   :  { %v12897_v18 = vsub.f32 %v28445_v27, %v12896_v15 }
 0xebc   :  { %v12898_v5 = vand.u32 4294901760, %v12897_v18 }
 0xebe   :  { %v11338_v46 = vpop.f32.mrb[12].mxu0  ;;  %v23906_v20 = vpack.c.bf16 %v12898_v5, %v12891_v40 }
 0xebf   :  { %v11339_v2 = vadd.f32 %v11338_v46, %v28315_v0  ;;  %v20973_v55 = vpop.f32.mrb[13].mxu0  ;;  %v12870_v0 = vand.u32 4294901760, %v12869_v50  ;;  %v12903_v50 = vand.u32 4294901760, %v28473_v9  ;;  %v12910_v46 = vand.u32 4294901760, %v28475_v61 }
 0xec1   :  { %v11426_v28 = vadd.f32 %v11425_v41, %v11339_v2  ;;  %v12883_v41 = vsub.f32 %v28433_v29, %v12882_v45  ;;  %v23900_v62 = vpack.c.bf16 %v12870_v0, %v12863_v48  ;;  %v12904_v32 = vsub.f32 %v28473_v9, %v12903_v50 }
 0xec2   :  { %v12911_v2 = vsub.f32 %v28475_v61, %v12910_v46  ;;  %v28488_v0 = vpack.c.bf16 %v12755_v10, %v12752_v58  ;;  %v23912_v58 = vpack.c.bf16 %v28340_v39, %v28338_v7  ;;  %v23915_v10 = vpack.c.bf16 %v28349_v24, %v28342_v47 }
 0xec3   :  { %v12884_v63 = vand.u32 4294901760, %v12883_v41  ;;  %23901 = vmatpush3.bf16.msra.mxu0 %v23900_v62  ;;  %v12905_v55 = vand.u32 4294901760, %v12904_v32  ;;  %v23960_v7 = vpack.c.bf16 %v12854_v17, %v12847_v16  ;;  %v23963_v39 = vpack.c.bf16 %v12868_v56, %v12861_v42  ;;  %v13352_v56 = vld [vmem:[#allocation19] sm:$0x3] }
 0xec4   :  { %23902 = vmatprep.subr.bf16.mxu0 %v25108_v30  ;;  %v12912_v48 = vand.u32 4294901760, %v12911_v2  ;;  %23883 = vmatpush3.bf16.msra.mxu1 %v28488_v0  ;;  %v23966_v47 = vpack.c.bf16 %v12882_v45, %v12875_v12  ;;  %v23969_v24 = vpack.c.bf16 %v12896_v15, %v12889_v21  ;;  %v23972_v54 = vpack.c.bf16 %v12910_v46, %v12903_v50 }
 0xec5   :  { %v23903_v52 = vpack.c.bf16 %v12884_v63, %v12877_v57  ;;  %23884 = vmatprep.subr.bf16.mxu1 %v25108_v30  ;;  %v28495_v63 = vpack.c.bf16 %v12761_v26, %v12758_v35 }
 0xec6   :  { %v23909_v59 = vpack.c.bf16 %v12912_v48, %v12905_v55 }
 0xec7   :  { %23904 = vmatpush3.bf16.msra.mxu0 %v23903_v52 }
 0xec8   :  { %23905 = vmatprep.subr.bf16.mxu0 %v25108_v30  ;;  %23886 = vmatpush3.bf16.msra.mxu1 %v28495_v63 }
 0xec9   :  { %23887 = vmatprep.subr.bf16.mxu1 %v25108_v30 }
 0xecb   :  { %23907 = vmatpush3.bf16.msra.mxu0 %v23906_v20  ;;  %v23927_v20 = vpack.c.bf16 %v28445_v27, %v28441_v13 }
 0xecc   :  { %23908 = vmatprep.subr.bf16.mxu0 %v25108_v30  ;;  %23889 = vmatpush3.bf16.msra.mxu1 %v28499_v37 }
 0xecd   :  { %23911 = vmatprep.subr.bf16.mxu1 %v25108_v30 }
 0xecf   :  { %23910 = vmatpush3.bf16.msra.mxu0 %v23909_v59 }
 0xed0   :  { %23932 = vmatprep.subr.bf16.mxu0 %v25108_v30 }
 0xed2   :  { %v11623_v51 = vpop.f32.mrb[32].mxu1 }
 0xed3   :  { %v21066_v34 = vpop.f32.mrb[33].mxu1 }
 0xeda   :  { %v11538_v36 = vpop.f32.mrb[14].mxu0 }
 0xedb   :  { %v11539_v41 = vadd.f32 %v11538_v36, %v11426_v28  ;;  %v21035_v62 = vpop.f32.mrb[15].mxu0  ;;  %v23921_v28 = vpack.c.bf16 %v28385_v23, %v28374_v31 }
 0xedd   :  { %v11624_v57 = vadd.f32 %v11623_v51, %v11539_v41 }
 0xeee   :  { %v11856_v35 = vpop.f32.mrb[34].mxu1 }
 0xeef   :  { %v21128_v26 = vpop.f32.mrb[35].mxu1 }
 0xef6   :  { %v11715_v18 = vpop.f32.mrb[16].mxu0 }
 0xef7   :  { %v11716_v52 = vadd.f32 %v11715_v18, %v11624_v57  ;;  %v21097_v40 = vpop.f32.mrb[17].mxu0 }
 0xef9   :  { %v11857_v5 = vadd.f32 %v11856_v35, %v11716_v52 }
 0xf0a   :  { %v12043_v4 = vpop.f32.mrb[36].mxu1 }
 0xf0b   :  { %v21190_v53 = vpop.f32.mrb[37].mxu1 }
 0xf12   :  { %v11956_v19 = vpop.f32.mrb[18].mxu0 }
 0xf13   :  { %v11957_v51 = vadd.f32 %v11956_v19, %v11857_v5  ;;  %v21159_v34 = vpop.f32.mrb[19].mxu0 }
 0xf15   :  { %v12044_v32 = vadd.f32 %v12043_v4, %v11957_v51 }
 0xf26   :  { %v12241_v2 = vpop.f32.mrb[38].mxu1 }
 0xf27   :  { %v21252_v55 = vpop.f32.mrb[39].mxu1 }
 0xf28   :  { %v28664_v55 = vld [vmem:[%s29901_s15 + $0x68] sm:$0xff] }
 0xf2e   :  { %v12156_v48 = vpop.f32.mrb[20].mxu0 }
 0xf2f   :  { %v12157_v59 = vadd.f32 %v12156_v48, %v12044_v32  ;;  %v21221_v36 = vpop.f32.mrb[21].mxu0 }
 0xf30   :  { %v28676_v36 = vld [vmem:[%s29901_s15 + $0x70] sm:$0xff] }
 0xf31   :  { %v28517_v41 = vadd.f32 %v12241_v2, %v12157_v59  ;;  %v28659_v2 = vld [vmem:[%s29901_s15 + $0x60] sm:$0xff]  ;;  %v14290_v59 = vand.u32 4294901760, %v28664_v55 }
 0xf32   :  { %v14287_v48 = vand.u32 4294901760, %v28659_v2 }
 0xf5a   :  { %v12705_v62 = vpop.f32.mrb[22].mxu0 }
 0xf5b   :  { %v12725_v57 = vsel %vm5258_vm3, %v12705_v62, 0  ;;  %v21294_v35 = vpop.f32.mrb[23].mxu0  ;;  %v28688_v62 = vsub.f32 %v28659_v2, %v14287_v48 }
 0xf5c   :  { %v28520_v26 = vand.u32 4294901760, %v12725_v57  ;;  %v14293_v35 = vand.u32 4294901760, %v28676_v36 }
 0xf5e   :  { %v12807_v18 = vsub.f32 %v12725_v57, %v28520_v26  ;;  %21355 = vmatmul.mubr.f32.vlgmr.msra.gmra.mrb[24].mxu0 %v28520_v26  ;;  %v28691_v57 = vsub.f32 %v28664_v55, %v14290_v59 }
 0xf5f   :  { %23934 = vmatpush3.bf16.msra.mxu0 %v28344_v44  ;;  %21416 = vmatprep.mubr.msk.f32.mxu0 %vm25109_vm4, %v25110_v25 }
 0xf60   :  { %v12808_v52 = vand.u32 4294901760, %v12807_v18  ;;  %23935 = vmatprep.subr.bf16.mxu0 %v25108_v30 }
 0xf62   :  { %v12809_v40 = vsub.f32 %v12807_v18, %v12808_v52 }
 0xf63   :  { %23937 = vmatpush3.bf16.msra.mxu0 %v28355_v8 }
 0xf64   :  { %v12810_v5 = vand.u32 4294901760, %v12809_v40  ;;  %23938 = vmatprep.subr.bf16.mxu0 %v25108_v30  ;;  %v14376_v40 = vand.u32 4294901760, %v28688_v62 }
 0xf66   :  { %21324 = vmatmul.mubr.f32.vlgmr.msra.gmra.mrb[40].mxu1 %v12810_v5  ;;  %v14383_v5 = vand.u32 4294901760, %v28691_v57 }
 0xf67   :  { %23913 = vmatpush3.bf16.msra.mxu1 %v23912_v58  ;;  %23940 = vmatpush3.bf16.msra.mxu0 %v28409_v3  ;;  %v23954_v58 = vpack.c.bf16 %v12826_v38, %v12819_v11 }
 0xf68   :  { %23914 = vmatprep.subr.bf16.mxu1 %v25108_v30  ;;  %23941 = vmatprep.subr.bf16.mxu0 %v25108_v30 }
 0xf69   :  { %21385 = vmatprep.mubr.msk.f32.mxu1 %vm25109_vm4, %v25110_v25 }
 0xf6b   :  { %23916 = vmatpush3.bf16.msra.mxu1 %v23915_v10  ;;  %23943 = vmatpush3.bf16.msra.mxu0 %v28427_v49 }
 0xf6c   :  { %23917 = vmatprep.subr.bf16.mxu1 %v25108_v30  ;;  %23944 = vmatprep.subr.bf16.mxu0 %v25108_v30 }
 0xf6f   :  { %23919 = vmatpush3.bf16.msra.mxu1 %v23918_v60  ;;  %23946 = vmatpush3.bf16.msra.mxu0 %v28488_v0 }
 0xf70   :  { %23920 = vmatprep.subr.bf16.mxu1 %v25108_v30  ;;  %23947 = vmatprep.subr.bf16.mxu0 %v25108_v30 }
 0xf73   :  { %23922 = vmatpush3.bf16.msra.mxu1 %v23921_v28  ;;  %23949 = vmatpush3.bf16.msra.mxu0 %v28495_v63 }
 0xf74   :  { %23923 = vmatprep.subr.bf16.mxu1 %v25108_v30  ;;  %23950 = vmatprep.subr.bf16.mxu0 %v25108_v30 }
 0xf77   :  { %23925 = vmatpush3.bf16.msra.mxu1 %v23924_v22  ;;  %23952 = vmatpush3.bf16.msra.mxu0 %v28499_v37 }
 0xf78   :  { %23926 = vmatprep.subr.bf16.mxu1 %v25108_v30  ;;  %23974 = vmatprep.subr.bf16.mxu0 %v25108_v30 }
 0xf7a   :  { %21417 = vmatmul.mubr.f32.vlgmr.msra.gmra.mrb[26].mxu0 %v12808_v52  ;;  %v28703_v52 = vld [vmem:[%s29901_s15 + $0x88] sm:$0xff] }
 0xf7b   :  { %23928 = vmatpush3.bf16.msra.mxu1 %v23927_v20  ;;  %23976 = vmatpush3.bf16.msra.mxu0 %v28344_v44  ;;  %v23957_v44 = vpack.c.bf16 %v12840_v14, %v12833_v6 }
 0xf7c   :  { %23929 = vmatprep.subr.bf16.mxu1 %v25108_v30  ;;  %23977 = vmatprep.subr.bf16.mxu0 %v25108_v30 }
 0xf7d   :  { %21478 = vmatprep.mubr.msk.f32.mxu0 %vm25109_vm4, %v25110_v25 }
 0xf7f   :  { %23931 = vmatpush3.bf16.msra.mxu1 %v23930_v1  ;;  %23979 = vmatpush3.bf16.msra.mxu0 %v28355_v8 }
 0xf80   :  { %23953 = vmatprep.subr.bf16.mxu1 %v25108_v30  ;;  %23980 = vmatprep.subr.bf16.mxu0 %v25108_v30 }
 0xf82   :  { %21386 = vmatmul.mubr.f32.vlgmr.msra.gmra.mrb[42].mxu1 %v12807_v18  ;;  %v28698_v18 = vld [vmem:[%s29901_s15 + $0x80] sm:$0xff] }
 0xf83   :  { %23955 = vmatpush3.bf16.msra.mxu1 %v23954_v58  ;;  %23982 = vmatpush3.bf16.msra.mxu0 %v28409_v3  ;;  %v13819_v3 = vld [vmem:[#allocation19 + $0x2] sm:$0x3]  ;;  %v28711_v58 = vsub.f32 %v28676_v36, %v14293_v35 }
 0xf84   :  { %23956 = vmatprep.subr.bf16.mxu1 %v25108_v30  ;;  %23983 = vmatprep.subr.bf16.mxu0 %v25108_v30  ;;  %v13821_v29 = vsel %vm13353_vm9, %v13819_v3, 0 }
 0xf85   :  { %21447 = vmatprep.mubr.msk.f32.mxu1 %vm25109_vm4, %v25110_v25  ;;  %v28612_v45 = vand.u32 4294901760, %v13821_v29 }
 0xf87   :  { %23958 = vmatpush3.bf16.msra.mxu1 %v23957_v44  ;;  %23985 = vmatpush3.bf16.msra.mxu0 %v28427_v49  ;;  %v13355_v49 = vsel %vm13353_vm9, %v13352_v56, 0  ;;  %v28616_v21 = vsub.f32 %v13821_v29, %v28612_v45 }
 0xf88   :  { %23959 = vmatprep.subr.bf16.mxu1 %v25108_v30  ;;  %23986 = vmatprep.subr.bf16.mxu0 %v25108_v30  ;;  %v28610_v13 = vand.u32 4294901760, %v13355_v49 }
 0xf8a   :  { %v13427_v27 = vsub.f32 %v13355_v49, %v28610_v13 }
 0xf8b   :  { %23961 = vmatpush3.bf16.msra.mxu1 %v23960_v7  ;;  %23988 = vmatpush3.bf16.msra.mxu0 %v28488_v0  ;;  %v13891_v0 = vand.u32 4294901760, %v28616_v21  ;;  %v14299_v7 = vand.u32 4294901760, %v28698_v18 }
 0xf8c   :  { %23962 = vmatprep.subr.bf16.mxu1 %v25108_v30  ;;  %23989 = vmatprep.subr.bf16.mxu0 %v25108_v30  ;;  %v13428_v46 = vand.u32 4294901760, %v13427_v27 }
 0xf8d   :  { %v13892_v28 = vsub.f32 %v28616_v21, %v13891_v0 }
 0xf8e   :  { %v13429_v60 = vsub.f32 %v13427_v27, %v13428_v46 }
 0xf8f   :  { %23964 = vmatpush3.bf16.msra.mxu1 %v23963_v39  ;;  %23991 = vmatpush3.bf16.msra.mxu0 %v28495_v63  ;;  %v17296_v63 = vld [vmem:[#allocation17] ss:$0 sm:$0xff]  ;;  %v13893_v4 = vand.u32 4294901760, %v13892_v28  ;;  %v14302_v39 = vand.u32 4294901760, %v28703_v52 }
 0xf90   :  { %23965 = vmatprep.subr.bf16.mxu1 %v25108_v30  ;;  %23992 = vmatprep.subr.bf16.mxu0 %v25108_v30  ;;  %v13430_v1 = vand.u32 4294901760, %v13429_v60 }
 0xf91   :  { %v28845_v55 = vpack.c.bf16 %v14302_v39, %v14299_v7 }
 0xf93   :  { %23967 = vmatpush3.bf16.msra.mxu1 %v23966_v47  ;;  %23994 = vmatpush3.bf16.msra.mxu0 %v28499_v37  ;;  %v28729_v47 = vld [vmem:[%s29901_s15 + $0x90] sm:$0xff] }
 0xf94   :  { %23968 = vmatprep.subr.bf16.mxu1 %v25108_v30  ;;  %21511 = vmatprep.subr.mxu0 %v25110_v25 }
 0xf96   :  { %21479 = vmatmul.mubr.f32.vlgmr.msra.gmra.mrb[28].mxu0 %v28520_v26 }
 0xf97   :  { %23970 = vmatpush3.bf16.msra.mxu1 %v23969_v24  ;;  %21513 = vmatprep.mubr.msk.f32.mxu0 %vm25109_vm4, %v25110_v25  ;;  %v28734_v24 = vld [vmem:[%s29901_s15 + $0x98] sm:$0xff] }
 0xf98   :  { %23971 = vmatprep.subr.bf16.mxu1 %v25108_v30 }
 0xf9b   :  { %23973 = vmatpush3.bf16.msra.mxu1 %v23972_v54  ;;  %v14377_v54 = vsub.f32 %v28688_v62, %v14376_v40 }
 0xf9c   :  { %21481 = vmatprep.subr.mxu1 %v25110_v25 }
 0xf9e   :  { %21448 = vmatmul.mubr.f32.vlgmr.msra.gmra.mrb[44].mxu1 %v28520_v26 }
 0xf9f   :  { %21483 = vmatprep.mubr.msk.f32.mxu1 %vm25109_vm4, %v25110_v25 }
0x1031   :  { %v12953_v43 = vpop.f32.mrb[24].mxu0 }
0x1032   :  { %v21356_v8 = vpop.f32.mrb[25].mxu0 }
0x1033   :  { %v14390_v8 = vand.u32 4294901760, %v28711_v58 }
0x1035   :  { %v14391_v56 = vsub.f32 %v28711_v58, %v14390_v8 }
0x1039   :  { %v12812_v11 = vpop.f32.mrb[40].mxu1 }
0x103a   :  { %v12954_v38 = vadd.f32 %v12953_v43, %v12812_v11  ;;  %v21325_v6 = vpop.f32.mrb[41].mxu1  ;;  %v14384_v43 = vsub.f32 %v28691_v57, %v14383_v5 }
0x103b   :  { %v28753_v6 = vsub.f32 %v28703_v52, %v14302_v39  ;;  %v17308_v39 = vld [vmem:[%s29901_s15 + $0xb8] sm:$0xff] }
0x103d   :  { %v14411_v49 = vand.u32 4294901760, %v28753_v6 }
0x104d   :  { %v13140_v14 = vpop.f32.mrb[26].mxu0 }
0x104e   :  { %v21418_v16 = vpop.f32.mrb[27].mxu0 }
0x104f   :  { %v14308_v16 = vand.u32 4294901760, %v28734_v24 }
0x1055   :  { %v13053_v17 = vpop.f32.mrb[42].mxu1 }
0x1056   :  { %v13054_v31 = vadd.f32 %v13053_v17, %v12954_v38  ;;  %v21387_v23 = vpop.f32.mrb[43].mxu1  ;;  %v28748_v38 = vsub.f32 %v28698_v18, %v14299_v7  ;;  %v28760_v17 = vld [vmem:[%s29901_s15 + $0xa0] sm:$0xff]  ;;  %v17307_v7 = vld [vmem:[%s29901_s15 + $0xb0] sm:$0xff] }
0x1057   :  { %v14378_v23 = vand.u32 4294901760, %v14377_v54  ;;  %v14317_v54 = vand.u32 4294901760, %v17307_v7 }
0x1058   :  { %v13141_v42 = vadd.f32 %v13140_v14, %v13054_v31  ;;  %v14305_v14 = vand.u32 4294901760, %v28729_v47  ;;  %v28765_v31 = vld [vmem:[%s29901_s15 + $0xa8] sm:$0xff] }
0x105a   :  { %v28784_v29 = vsub.f32 %v28729_v47, %v14305_v14 }
0x1069   :  { %v13338_v33 = vpop.f32.mrb[28].mxu0 }
0x106a   :  { %v21480_v12 = vpop.f32.mrb[29].mxu0 }
0x106b   :  { %v28789_v12 = vsub.f32 %v28734_v24, %v14308_v16 }
0x1071   :  { %v13253_v15 = vpop.f32.mrb[44].mxu1 }
0x1072   :  { %v13254_v9 = vadd.f32 %v13253_v15, %v13141_v42  ;;  %v21449_v61 = vpop.f32.mrb[45].mxu1  ;;  %v14385_v42 = vand.u32 4294901760, %v14384_v43  ;;  %v14320_v43 = vand.u32 4294901760, %v17308_v39 }
0x1073   :  { %v14392_v61 = vand.u32 4294901760, %v14391_v56 }
0x1074   :  { %v13339_v50 = vadd.f32 %v13338_v33, %v13254_v9  ;;  %v14404_v33 = vand.u32 4294901760, %v28748_v38  ;;  %v24014_v15 = vpack.c.bf16 %v14385_v42, %v14378_v23  ;;  %v28797_v9 = vpack.c.bf16 %v14290_v59, %v14287_v48 }
0x1075   :  { %v28866_v23 = vsub.f32 %v17307_v7, %v14317_v54  ;;  %v28868_v42 = vsub.f32 %v17308_v39, %v14320_v43  ;;  %v28891_v47 = vpack.c.bf16 %v14320_v43, %v14317_v54  ;;  %v28951_v54 = vld [vmem:[%s29901_s15 + $0x10] sm:$0xff]  ;;  %v28956_v43 = vld [vmem:[%s29901_s15 + $0x18] sm:$0xff] }
0x1076   :  { %v13342_v37 = vadd.f32 %v13339_v50, %v28517_v41  ;;  %v28681_v41 = vld [vmem:[%s29901_s15 + $0x78] sm:$0xff] }
0x1077   :  { %v14296_v26 = vand.u32 4294901760, %v28681_v41  ;;  %v14446_v56 = vand.u32 4294901760, %v28866_v23  ;;  %v24047_v24 = vpack.c.bf16 %v28868_v42, %v28866_v23 }
0x1078   :  { %v13350_v10 = vadd.f32 %v17296_v63, %v13342_v37  ;;  %v14418_v63 = vand.u32 4294901760, %v28784_v29  ;;  %v14425_v37 = vand.u32 4294901760, %v28789_v12 }
0x1079   :  { %v28716_v44 = vsub.f32 %v28681_v41, %v14296_v26 }
0x107a   :  { %v13351_v22 = vmax.f32 %v13350_v10, 0.0 }
0x107b   :  { %v14397_v11 = vand.u32 4294901760, %v28716_v44 }
0x107c   :  { %v13358_v20 = vsel %vm10053_vm8, %v13351_v22, 0 }
0x107d   :  { %v28622_v53 = vand.u32 4294901760, %v13358_v20  ;;  %v14398_v3 = vsub.f32 %v28716_v44, %v14397_v11 }
0x107f   :  { %v28625_v19 = vsub.f32 %v13358_v20, %v28622_v53  ;;  %21482 = vmatpush3.msra.mxu1 %v28622_v53  ;;  %21512 = vmatpush3.msra.mxu0 %v28622_v53  ;;  %v14399_v50 = vand.u32 4294901760, %v14398_v3  ;;  %v14453_v3 = vand.u32 4294901760, %v28868_v42 }
0x1080   :  { %21484 = vmatmul.mubr.f32.vlgmr.msra.gmra.mrb[46].mxu1 %v13430_v1  ;;  %21514 = vmatmul.mubr.f32.vlgmr.msra.gmra.mrb[30].mxu0 %v13893_v4  ;;  %v28824_v1 = vpack.c.bf16 %v14296_v26, %v14293_v35 }
0x1081   :  { %21486 = vmatprep.subr.mxu1 %v25110_v25  ;;  %21516 = vmatprep.subr.mxu0 %v25110_v25  ;;  %v28632_v51 = vand.u32 4294901760, %v28625_v19  ;;  %v24017_v28 = vpack.c.bf16 %v14399_v50, %v14392_v61  ;;  %v14454_v61 = vsub.f32 %v28868_v42, %v14453_v3 }
0x1082   :  { %21488 = vmatprep.mubr.msk.f32.mxu1 %vm25109_vm4, %v25110_v25  ;;  %21518 = vmatprep.mubr.msk.f32.mxu0 %vm25109_vm4, %v25110_v25 }
0x1083   :  { %v13440_v34 = vsub.f32 %v28625_v19, %v28632_v51 }
0x1085   :  { %v28640_v32 = vand.u32 4294901760, %v13440_v34 }
0x1087   :  { %21487 = vmatpush3.msra.mxu1 %v28640_v32  ;;  %21517 = vmatpush3.msra.mxu0 %v28640_v32 }
0x1088   :  { %21489 = vmatmul.mubr.f32.vlgmr.msra.gmra.mrb[46].mxu1 %v28610_v13  ;;  %21491 = vmatprep.subr.mxu1 %v25110_v25 }
0x1089   :  { %21519 = vmatmul.mubr.f32.vlgmr.msra.gmra.mrb[30].mxu0 %v28612_v45  ;;  %21521 = vmatprep.subr.mxu0 %v25110_v25 }
0x108a   :  { %21492 = vmatpush3.msra.mxu1 %v28625_v19  ;;  %21522 = vmatpush3.msra.mxu0 %v28625_v19 }
0x108b   :  { %21493 = vmatprep.mubr.msk.f32.mxu1 %vm25109_vm4, %v25110_v25  ;;  %21496 = vmatprep.subr.mxu1 %v25110_v25 }
0x108c   :  { %21523 = vmatprep.mubr.msk.f32.mxu0 %vm25109_vm4, %v25110_v25  ;;  %21526 = vmatprep.subr.mxu0 %v25110_v25 }
0x1090   :  { %21494 = vmatmul.mubr.f32.vlgmr.msra.gmra.mrb[46].mxu1 %v13427_v27  ;;  %v14311_v27 = vand.u32 4294901760, %v28760_v17 }
0x1091   :  { %21497 = vmatpush3.msra.mxu1 %v28622_v53  ;;  %21524 = vmatmul.mubr.f32.vlgmr.msra.gmra.mrb[30].mxu0 %v28616_v21  ;;  %v14314_v21 = vand.u32 4294901760, %v28765_v31 }
0x1092   :  { %21527 = vmatpush3.msra.mxu0 %v28622_v53  ;;  %21498 = vmatprep.mubr.msk.f32.mxu1 %vm25109_vm4, %v25110_v25  ;;  %v28810_v10 = vsub.f32 %v28760_v17, %v14311_v27 }
0x1093   :  { %21501 = vmatprep.subr.mxu1 %v25110_v25  ;;  %21528 = vmatprep.mubr.msk.f32.mxu0 %vm25109_vm4, %v25110_v25  ;;  %v28815_v60 = vsub.f32 %v28765_v31, %v14314_v21 }
0x1094   :  { %21531 = vmatprep.subr.mxu0 %v25110_v25  ;;  %v14432_v4 = vand.u32 4294901760, %v28810_v10 }
0x1095   :  { %v14439_v34 = vand.u32 4294901760, %v28815_v60 }
0x1096   :  { %v14433_v36 = vsub.f32 %v28810_v10, %v14432_v4 }
0x1097   :  { %v14440_v41 = vsub.f32 %v28815_v60, %v14439_v34 }
0x1098   :  { %21499 = vmatmul.mubr.f32.vlgmr.msra.gmra.mrb[46].mxu1 %v13428_v46  ;;  %v14405_v46 = vsub.f32 %v28748_v38, %v14404_v33  ;;  %v14434_v26 = vand.u32 4294901760, %v14433_v36  ;;  %v24035_v36 = vpack.c.bf16 %v28716_v44, %v28711_v58 }
0x1099   :  { %21502 = vmatpush3.msra.mxu1 %v28632_v51  ;;  %21529 = vmatmul.mubr.f32.vlgmr.msra.gmra.mrb[30].mxu0 %v13891_v0  ;;  %v14412_v0 = vsub.f32 %v28753_v6, %v14411_v49  ;;  %v14441_v18 = vand.u32 4294901760, %v14440_v41  ;;  %v24038_v41 = vpack.c.bf16 %v28753_v6, %v28748_v38 }
0x109a   :  { %21532 = vmatpush3.msra.mxu0 %v28632_v51  ;;  %21503 = vmatprep.mubr.msk.f32.mxu1 %vm25109_vm4, %v25110_v25  ;;  %v14406_v22 = vand.u32 4294901760, %v14405_v46  ;;  %v14455_v46 = vand.u32 4294901760, %v14454_v61  ;;  %v28988_v61 = vld [vmem:[%s29901_s15 + $0x28] sm:$0xff] }
0x109b   :  { %21506 = vmatprep.subr.mxu1 %v25110_v25  ;;  %21533 = vmatprep.mubr.msk.f32.mxu0 %vm25109_vm4, %v25110_v25  ;;  %v14413_v20 = vand.u32 4294901760, %v14412_v0  ;;  %v24026_v52 = vpack.c.bf16 %v14441_v18, %v14434_v26  ;;  %v28878_v0 = vpack.c.bf16 %v14308_v16, %v14305_v14  ;;  %v28897_v14 = vpack.c.bf16 %v14453_v3, %v14446_v56  ;;  %v28934_v26 = vld [vmem:[%s29901_s15] sm:$0xff]  ;;  %v28939_v18 = vld [vmem:[%s29901_s15 + $0x8] sm:$0xff] }
0x109c   :  { %21536 = vmatprep.subr.mxu0 %v25110_v25  ;;  %v14879_v7 = vand.u32 4294901760, %v28934_v26  ;;  %v14882_v39 = vand.u32 4294901760, %v28939_v18  ;;  %v24068_v3 = vpack.c.bf16 %v14383_v5, %v14376_v40 }
0x109d   :  { %v24020_v2 = vpack.c.bf16 %v14413_v20, %v14406_v22  ;;  %v28887_v22 = vpack.c.bf16 %v14314_v21, %v14311_v27 }
0x109e   :  { %v28971_v42 = vsub.f32 %v28939_v18, %v14882_v39 }
0x10a0   :  { %21504 = vmatmul.mubr.f32.vlgmr.msra.gmra.mrb[46].mxu1 %v28610_v13 }
0x10a1   :  { %21507 = vmatpush3.msra.mxu1 %v28622_v53  ;;  %21534 = vmatmul.mubr.f32.vlgmr.msra.gmra.mrb[30].mxu0 %v28612_v45 }
0x10a2   :  { %21537 = vmatpush3.msra.mxu0 %v28622_v53  ;;  %21538 = vmatprep.mubr.msk.f32.mxu0 %vm25109_vm4, %v25110_v25 }
0x10a3   :  { %21508 = vmatprep.mubr.msk.f32.mxu1 %vm25109_vm4, %v25110_v25  ;;  %24013 = vmatprep.subr.bf16.mxu0 %v25108_v30 }
0x10a4   :  { %23995 = vmatprep.subr.bf16.mxu1 %v25108_v30 }
0x10a8   :  { %21509 = vmatmul.mubr.f32.vlgmr.msra.gmra.mrb[46].mxu1 %v28610_v13  ;;  %v14419_v13 = vsub.f32 %v28784_v29, %v14418_v63 }
0x10a9   :  { %21539 = vmatmul.mubr.f32.vlgmr.msra.gmra.mrb[30].mxu0 %v28612_v45  ;;  %23997 = vmatpush3.bf16.msra.mxu1 %v28797_v9  ;;  %v14426_v45 = vsub.f32 %v28789_v12, %v14425_v37 }
0x10aa   :  { %24015 = vmatpush3.bf16.msra.mxu0 %v24014_v15  ;;  %23998 = vmatprep.subr.bf16.mxu1 %v25108_v30  ;;  %v14420_v48 = vand.u32 4294901760, %v14419_v13  ;;  %v14447_v15 = vsub.f32 %v28866_v23, %v14446_v56  ;;  %v28966_v23 = vsub.f32 %v28934_v26, %v14879_v7  ;;  %v14885_v56 = vand.u32 4294901760, %v28951_v54 }
0x10ab   :  { %24016 = vmatprep.subr.bf16.mxu0 %v25108_v30  ;;  %21592 = vmatprep.mubr.msk.f32.mxu0 %vm25109_vm4, %v25110_v25  ;;  %v14427_v59 = vand.u32 4294901760, %v14426_v45 }
0x10ac   :  { %21565 = vmatprep.mubr.msk.f32.mxu1 %vm25109_vm4, %v25110_v25  ;;  %v14448_v50 = vand.u32 4294901760, %v14447_v15  ;;  %v28983_v15 = vld [vmem:[%s29901_s15 + $0x20] sm:$0xff] }
0x10ad   :  { %24000 = vmatpush3.bf16.msra.mxu1 %v28824_v1  ;;  %v24023_v35 = vpack.c.bf16 %v14427_v59, %v14420_v48  ;;  %v24032_v48 = vpack.c.bf16 %v28691_v57, %v28688_v62  ;;  %v14975_v62 = vand.u32 4294901760, %v28971_v42  ;;  %v28997_v57 = vsub.f32 %v28951_v54, %v14885_v56 }
0x10ae   :  { %24018 = vmatpush3.bf16.msra.mxu0 %v24017_v28  ;;  %24001 = vmatprep.subr.bf16.mxu1 %v25108_v30  ;;  %v24029_v28 = vpack.c.bf16 %v14455_v46, %v14448_v50  ;;  %v14891_v5 = vand.u32 4294901760, %v28983_v15  ;;  %v14894_v50 = vand.u32 4294901760, %v28988_v61  ;;  %v24071_v46 = vpack.c.bf16 %v14397_v11, %v14390_v8 }
0x10af   :  { %24019 = vmatprep.subr.bf16.mxu0 %v25108_v30  ;;  %v14976_v44 = vsub.f32 %v28971_v42, %v14975_v62  ;;  %v14982_v8 = vand.u32 4294901760, %v28997_v57 }
0x10b1   :  { %24003 = vmatpush3.bf16.msra.mxu1 %v28845_v55  ;;  %v14983_v38 = vsub.f32 %v28997_v57, %v14982_v8 }
0x10b2   :  { %24021 = vmatpush3.bf16.msra.mxu0 %v24020_v2  ;;  %24004 = vmatprep.subr.bf16.mxu1 %v25108_v30 }
0x10b3   :  { %24022 = vmatprep.subr.bf16.mxu0 %v25108_v30 }
0x10b5   :  { %24006 = vmatpush3.bf16.msra.mxu1 %v28878_v0 }
0x10b6   :  { %24024 = vmatpush3.bf16.msra.mxu0 %v24023_v35  ;;  %24007 = vmatprep.subr.bf16.mxu1 %v25108_v30  ;;  %v24041_v35 = vpack.c.bf16 %v28789_v12, %v28784_v29  ;;  %v29097_v29 = vld [vmem:[%s29901_s15 + $0x58] sm:$0xff]  ;;  %v24080_v12 = vpack.c.bf16 %v14439_v34, %v14432_v4 }
0x10b7   :  { %24025 = vmatprep.subr.bf16.mxu0 %v25108_v30  ;;  %v14912_v34 = vand.u32 4294901760, %v29097_v29 }
0x10b9   :  { %24009 = vmatpush3.bf16.msra.mxu1 %v28887_v22 }
0x10ba   :  { %24027 = vmatpush3.bf16.msra.mxu0 %v24026_v52  ;;  %24010 = vmatprep.subr.bf16.mxu1 %v25108_v30  ;;  %v24044_v52 = vpack.c.bf16 %v28815_v60, %v28810_v10 }
0x10bb   :  { %24028 = vmatprep.subr.bf16.mxu0 %v25108_v30 }
0x10bd   :  { %24012 = vmatpush3.bf16.msra.mxu1 %v28891_v47 }
0x10be   :  { %24030 = vmatpush3.bf16.msra.mxu0 %v24029_v28  ;;  %24031 = vmatprep.subr.bf16.mxu1 %v25108_v30  ;;  %v29014_v28 = vld [vmem:[%s29901_s15 + $0x30] sm:$0xff] }
0x10bf   :  { %24049 = vmatprep.subr.bf16.mxu0 %v25108_v30 }
0x117b   :  { %v28899_v16 = vpop.f32.mrb[46].mxu1 }
0x117c   :  { %v14265_v17 = vpop.f32.mrb[30].mxu0  ;;  %v21510_v31 = vpop.f32.mrb[47].mxu1  ;;  %v14876_v54 = vsel %vm14282_vm10, %v28899_v16, 0 }
0x117d   :  { %v14284_v27 = vsel %vm14282_vm10, %v14265_v17, 0  ;;  %v21540_v21 = vpop.f32.mrb[31].mxu0  ;;  %v29041_v17 = vsub.f32 %v28988_v61, %v14894_v50  ;;  %v14897_v31 = vand.u32 4294901760, %v29014_v28 }
0x117e   :  { %v28902_v20 = vand.u32 4294901760, %v14284_v27  ;;  %v24074_v21 = vpack.c.bf16 %v14411_v49, %v14404_v33 }
0x117f   :  { %v15003_v49 = vand.u32 4294901760, %v29041_v17 }
0x1180   :  { %v14364_v13 = vsub.f32 %v14284_v27, %v28902_v20  ;;  %21593 = vmatmul.mubr.f32.vlgmr.msra.gmra.mrb[32].mxu0 %v28902_v20 }
0x1181   :  { %24051 = vmatpush3.bf16.msra.mxu0 %v28797_v9  ;;  %21646 = vmatprep.mubr.msk.f32.mxu0 %vm25109_vm4, %v25110_v25 }
0x1182   :  { %v14365_v45 = vand.u32 4294901760, %v14364_v13  ;;  %24052 = vmatprep.subr.bf16.mxu0 %v25108_v30 }
0x1184   :  { %v14366_v2 = vsub.f32 %v14364_v13, %v14365_v45 }
0x1185   :  { %24054 = vmatpush3.bf16.msra.mxu0 %v28824_v1 }
0x1186   :  { %v14367_v59 = vand.u32 4294901760, %v14366_v2  ;;  %24055 = vmatprep.subr.bf16.mxu0 %v25108_v30  ;;  %v14977_v2 = vand.u32 4294901760, %v14976_v44 }
0x1188   :  { %21566 = vmatmul.mubr.f32.vlgmr.msra.gmra.mrb[48].mxu1 %v14367_v59 }
0x1189   :  { %24033 = vmatpush3.bf16.msra.mxu1 %v24032_v48  ;;  %24057 = vmatpush3.bf16.msra.mxu0 %v28845_v55  ;;  %v29073_v48 = vsub.f32 %v29014_v28, %v14897_v31 }
0x118a   :  { %24034 = vmatprep.subr.bf16.mxu1 %v25108_v30  ;;  %24058 = vmatprep.subr.bf16.mxu0 %v25108_v30 }
0x118b   :  { %21619 = vmatprep.mubr.msk.f32.mxu1 %vm25109_vm4, %v25110_v25 }
0x118d   :  { %24036 = vmatpush3.bf16.msra.mxu1 %v24035_v36  ;;  %24060 = vmatpush3.bf16.msra.mxu0 %v28878_v0  ;;  %v24077_v36 = vpack.c.bf16 %v14425_v37, %v14418_v63  ;;  %v14984_v37 = vand.u32 4294901760, %v14983_v38 }
0x118e   :  { %24037 = vmatprep.subr.bf16.mxu1 %v25108_v30  ;;  %24061 = vmatprep.subr.bf16.mxu0 %v25108_v30 }
0x1191   :  { %24039 = vmatpush3.bf16.msra.mxu1 %v24038_v41  ;;  %24063 = vmatpush3.bf16.msra.mxu0 %v28887_v22 }
0x1192   :  { %24040 = vmatprep.subr.bf16.mxu1 %v25108_v30  ;;  %24064 = vmatprep.subr.bf16.mxu0 %v25108_v30 }
0x1195   :  { %24042 = vmatpush3.bf16.msra.mxu1 %v24041_v35  ;;  %24066 = vmatpush3.bf16.msra.mxu0 %v28891_v47 }
0x1196   :  { %24043 = vmatprep.subr.bf16.mxu1 %v25108_v30  ;;  %24085 = vmatprep.subr.bf16.mxu0 %v25108_v30 }
0x1198   :  { %21647 = vmatmul.mubr.f32.vlgmr.msra.gmra.mrb[34].mxu0 %v14365_v45  ;;  %v29060_v45 = vld [vmem:[%s29901_s15 + $0x48] sm:$0xff] }
0x1199   :  { %24045 = vmatpush3.bf16.msra.mxu1 %v24044_v52  ;;  %24087 = vmatpush3.bf16.msra.mxu0 %v28797_v9  ;;  %v14888_v9 = vand.u32 4294901760, %v28956_v43  ;;  %v14906_v35 = vand.u32 4294901760, %v29060_v45  ;;  %v29092_v52 = vld [vmem:[%s29901_s15 + $0x50] sm:$0xff] }
0x119a   :  { %24046 = vmatprep.subr.bf16.mxu1 %v25108_v30  ;;  %24088 = vmatprep.subr.bf16.mxu0 %v25108_v30  ;;  %v14909_v4 = vand.u32 4294901760, %v29092_v52 }
0x119b   :  { %21700 = vmatprep.mubr.msk.f32.mxu0 %vm25109_vm4, %v25110_v25  ;;  %v29002_v40 = vsub.f32 %v28956_v43, %v14888_v9  ;;  %v29120_v60 = vsub.f32 %v29060_v45, %v14906_v35  ;;  %v29191_v43 = vpack.c.bf16 %v14894_v50, %v14891_v5 }
0x119c   :  { %v29223_v28 = vpack.c.bf16 %v14912_v34, %v14909_v4 }
0x119d   :  { %24048 = vmatpush3.bf16.msra.mxu1 %v24047_v24  ;;  %24090 = vmatpush3.bf16.msra.mxu0 %v28824_v1  ;;  %v14968_v1 = vand.u32 4294901760, %v28966_v23  ;;  %v29019_v24 = vld [vmem:[%s29901_s15 + $0x38] sm:$0xff]  ;;  %v14989_v11 = vand.u32 4294901760, %v29002_v40 }
0x119e   :  { %24067 = vmatprep.subr.bf16.mxu1 %v25108_v30  ;;  %24091 = vmatprep.subr.bf16.mxu0 %v25108_v30  ;;  %v14900_v27 = vand.u32 4294901760, %v29019_v24 }
0x119f   :  { %v14969_v58 = vsub.f32 %v28966_v23, %v14968_v1  ;;  %v14990_v6 = vsub.f32 %v29002_v40, %v14989_v11 }
0x11a0   :  { %21620 = vmatmul.mubr.f32.vlgmr.msra.gmra.mrb[50].mxu1 %v14364_v13  ;;  %v29055_v13 = vld [vmem:[%s29901_s15 + $0x40] sm:$0xff]  ;;  %v29078_v59 = vsub.f32 %v29019_v24, %v14900_v27  ;;  %v29202_v16 = vpack.c.bf16 %v14900_v27, %v14897_v31  ;;  %v24140_v31 = vpack.c.bf16 %v28971_v42, %v28966_v23 }
0x11a1   :  { %24069 = vmatpush3.bf16.msra.mxu1 %v24068_v3  ;;  %24093 = vmatpush3.bf16.msra.mxu0 %v28845_v55  ;;  %v29036_v55 = vsub.f32 %v28983_v15, %v14891_v5  ;;  %v14903_v41 = vand.u32 4294901760, %v29055_v13  ;;  %v15468_v23 = vld [vmem:[#allocation19 + $0x4] sm:$0x3] }
0x11a2   :  { %24070 = vmatprep.subr.bf16.mxu1 %v25108_v30  ;;  %24094 = vmatprep.subr.bf16.mxu0 %v25108_v30  ;;  %v29932_v44 = vand.u32 4294901760, %v29078_v59 }
0x11a3   :  { %21673 = vmatprep.mubr.msk.f32.mxu1 %vm25109_vm4, %v25110_v25  ;;  %v14996_v33 = vand.u32 4294901760, %v29036_v55  ;;  %v29115_v10 = vsub.f32 %v29055_v13, %v14903_v41  ;;  %v29212_v5 = vpack.c.bf16 %v14906_v35, %v14903_v41  ;;  %v24143_v13 = vpack.c.bf16 %v29002_v40, %v28997_v57 }
0x11a4   :  { %v15018_v38 = vsub.f32 %v29078_v59, %v29932_v44  ;;  %v24146_v45 = vpack.c.bf16 %v29041_v17, %v29036_v55  ;;  %v24149_v41 = vpack.c.bf16 %v29078_v59, %v29073_v48  ;;  %v29962_v57 = vand.u32 4294901760, %v29073_v48 }
0x11a5   :  { %24072 = vmatpush3.bf16.msra.mxu1 %v24071_v46  ;;  %24096 = vmatpush3.bf16.msra.mxu0 %v28878_v0  ;;  %v14970_v0 = vand.u32 4294901760, %v14969_v58  ;;  %v14997_v3 = vsub.f32 %v29036_v55, %v14996_v33  ;;  %v15004_v46 = vsub.f32 %v29041_v17, %v15003_v49  ;;  %v29933_v58 = vand.u32 4294901760, %v29073_v48 }
0x11a6   :  { %24073 = vmatprep.subr.bf16.mxu1 %v25108_v30  ;;  %24097 = vmatprep.subr.bf16.mxu0 %v25108_v30  ;;  %v24152_v35 = vpack.c.bf16 %v29120_v60, %v29115_v10  ;;  %v24182_v42 = vpack.c.bf16 %v15003_v49, %v14996_v33  ;;  %v29963_v40 = vand.u32 4294901760, %v29078_v59  ;;  %v17310_v59 = vld [vmem:[%s29901_s15 + $0xc8] sm:$0xff] }
0x11a7   :  { %v24122_v63 = vpack.c.bf16 %v14977_v2, %v14970_v0  ;;  %v15005_v0 = vand.u32 4294901760, %v15004_v46  ;;  %v15011_v2 = vsub.f32 %v29073_v48, %v29933_v58  ;;  %v15019_v46 = vand.u32 4294901760, %v15018_v38  ;;  %v17314_v38 = vld [vmem:[%s29901_s15 + $0xe8] sm:$0xff] }
0x11a9   :  { %24075 = vmatpush3.bf16.msra.mxu1 %v24074_v21  ;;  %24099 = vmatpush3.bf16.msra.mxu0 %v28887_v22  ;;  %v14991_v22 = vand.u32 4294901760, %v14990_v6  ;;  %v15024_v6 = vand.u32 4294901760, %v29115_v10 }
0x11aa   :  { %24076 = vmatprep.subr.bf16.mxu1 %v25108_v30  ;;  %24100 = vmatprep.subr.bf16.mxu0 %v25108_v30 }
0x11ab   :  { %v24125_v21 = vpack.c.bf16 %v14991_v22, %v14984_v37  ;;  %v29138_v37 = vsub.f32 %v29092_v52, %v14909_v4  ;;  %v29143_v22 = vsub.f32 %v29097_v29, %v14912_v34  ;;  %v15025_v44 = vsub.f32 %v29115_v10, %v15024_v6  ;;  %v17312_v34 = vld [vmem:[%s29901_s15 + $0xd8] sm:$0xff] }
0x11ac   :  { %v24176_v29 = vpack.c.bf16 %v14975_v62, %v14968_v1  ;;  %v24179_v4 = vpack.c.bf16 %v14989_v11, %v14982_v8  ;;  %v15470_v1 = vsel %vm13353_vm9, %v15468_v23, 0  ;;  %v24185_v8 = vpack.c.bf16 %v29963_v40, %v29962_v57 }
0x11ad   :  { %24078 = vmatpush3.bf16.msra.mxu1 %v24077_v36  ;;  %24102 = vmatpush3.bf16.msra.mxu0 %v28891_v47  ;;  %v14998_v47 = vand.u32 4294901760, %v14997_v3  ;;  %v15031_v36 = vand.u32 4294901760, %v29120_v60  ;;  %v15012_v3 = vand.u32 4294901760, %v15011_v2  ;;  %v15038_v26 = vand.u32 4294901760, %v29138_v37  ;;  %v17313_v2 = vld [vmem:[%s29901_s15 + $0xe0] sm:$0xff] }
0x11ae   :  { %24079 = vmatprep.subr.bf16.mxu1 %v25108_v30  ;;  %24121 = vmatprep.subr.bf16.mxu0 %v25108_v30  ;;  %v15045_v18 = vand.u32 4294901760, %v29143_v22  ;;  %v24155_v52 = vpack.c.bf16 %v29143_v22, %v29138_v37  ;;  %v15538_v62 = vand.u32 4294901760, %v15470_v1 }
0x11af   :  { %v15032_v58 = vsub.f32 %v29120_v60, %v15031_v36  ;;  %v24188_v55 = vpack.c.bf16 %v15031_v36, %v15024_v6  ;;  %v15938_v60 = vand.u32 4294901760, %v17310_v59  ;;  %v15944_v6 = vand.u32 4294901760, %v17312_v34 }
0x11b0   :  { %21701 = vmatmul.mubr.f32.vlgmr.msra.gmra.mrb[36].mxu0 %v28902_v20  ;;  %v15539_v11 = vsub.f32 %v15470_v1, %v15538_v62  ;;  %v24191_v33 = vpack.c.bf16 %v15045_v18, %v15038_v26  ;;  %v15947_v36 = vand.u32 4294901760, %v17313_v2 }
0x11b1   :  { %24081 = vmatpush3.bf16.msra.mxu1 %v24080_v12  ;;  %24123 = vmatpush3.bf16.msra.mxu0 %v24122_v63  ;;  %v29153_v12 = vpack.c.bf16 %v14882_v39, %v14879_v7  ;;  %v24128_v63 = vpack.c.bf16 %v15005_v0, %v14998_v47  ;;  %v24131_v7 = vpack.c.bf16 %v15019_v46, %v15012_v3  ;;  %v15026_v39 = vand.u32 4294901760, %v15025_v44 }
0x11b2   :  { %24082 = vmatprep.subr.bf16.mxu1 %v25108_v30  ;;  %24124 = vmatprep.subr.bf16.mxu0 %v25108_v30  ;;  %v15039_v47 = vsub.f32 %v29138_v37, %v15038_v26  ;;  %v29193_v44 = vand.u32 4294901760, %v14876_v54  ;;  %v15540_v17 = vand.u32 4294901760, %v15539_v11  ;;  %v15950_v37 = vand.u32 4294901760, %v17314_v38 }
0x11b3   :  { %21754 = vmatprep.mubr.msk.f32.mxu0 %vm25109_vm4, %v25110_v25  ;;  %v29369_v26 = vsub.f32 %v17312_v34, %v15944_v6 }
0x11b4   :  { %v14956_v61 = vsub.f32 %v14876_v54, %v29193_v44  ;;  %v15541_v49 = vsub.f32 %v15539_v11, %v15540_v17 }
0x11b5   :  { %24084 = vmatpush3.bf16.msra.mxu1 %v28897_v14  ;;  %24126 = vmatpush3.bf16.msra.mxu0 %v24125_v21  ;;  %v29171_v14 = vpack.c.bf16 %v14888_v9, %v14885_v56  ;;  %v15033_v21 = vand.u32 4294901760, %v15032_v58  ;;  %v15040_v9 = vand.u32 4294901760, %v15039_v47 }
0x11b6   :  { %24103 = vmatprep.subr.bf16.mxu1 %v25108_v30  ;;  %24127 = vmatprep.subr.bf16.mxu0 %v25108_v30  ;;  %v14957_v50 = vand.u32 4294901760, %v14956_v61  ;;  %v15542_v48 = vand.u32 4294901760, %v15541_v49 }
0x11b7   :  { %v24134_v56 = vpack.c.bf16 %v15033_v21, %v15026_v39  ;;  %v29380_v39 = vld [vmem:[%s29901_s15 + $0xf8] sm:$0xff] }
0x11b8   :  { %21674 = vmatmul.mubr.f32.vlgmr.msra.gmra.mrb[52].mxu1 %v28902_v20  ;;  %v15046_v20 = vsub.f32 %v29143_v22, %v15045_v18  ;;  %v14958_v24 = vsub.f32 %v14956_v61, %v14957_v50  ;;  %v29359_v22 = vld [vmem:[%s29901_s15 + $0xf0] sm:$0xff]  ;;  %v29371_v18 = vsub.f32 %v17313_v2, %v15947_v36 }
0x11b9   :  { %24105 = vmatpush3.bf16.msra.mxu1 %v29153_v12  ;;  %24129 = vmatpush3.bf16.msra.mxu0 %v24128_v63  ;;  %v29363_v63 = vsub.f32 %v17310_v59, %v15938_v60 }
0x11ba   :  { %24106 = vmatprep.subr.bf16.mxu1 %v25108_v30  ;;  %24130 = vmatprep.subr.bf16.mxu0 %v25108_v30  ;;  %v15047_v58 = vand.u32 4294901760, %v15046_v20  ;;  %v14959_v27 = vand.u32 4294901760, %v14958_v24 }
0x11bb   :  { %21727 = vmatprep.mubr.msk.f32.mxu1 %vm25109_vm4, %v25110_v25  ;;  %v16031_v20 = vand.u32 4294901760, %v29363_v63 }
0x11bc   :  { %v24137_v15 = vpack.c.bf16 %v15047_v58, %v15040_v9  ;;  %v16045_v58 = vand.u32 4294901760, %v29369_v26 }
0x11bd   :  { %24108 = vmatpush3.bf16.msra.mxu1 %v29171_v14  ;;  %24132 = vmatpush3.bf16.msra.mxu0 %v24131_v7 }
0x11be   :  { %24109 = vmatprep.subr.bf16.mxu1 %v25108_v30  ;;  %24133 = vmatprep.subr.bf16.mxu0 %v25108_v30 }
0x11c1   :  { %24111 = vmatpush3.bf16.msra.mxu1 %v29191_v43  ;;  %24135 = vmatpush3.bf16.msra.mxu0 %v24134_v56 }
0x11c2   :  { %24112 = vmatprep.subr.bf16.mxu1 %v25108_v30  ;;  %24136 = vmatprep.subr.bf16.mxu0 %v25108_v30 }
0x11c5   :  { %24114 = vmatpush3.bf16.msra.mxu1 %v29202_v16  ;;  %24138 = vmatpush3.bf16.msra.mxu0 %v24137_v15 }
0x11c6   :  { %24115 = vmatprep.subr.bf16.mxu1 %v25108_v30  ;;  %24157 = vmatprep.subr.bf16.mxu0 %v25108_v30 }
0x11c8   :  { %21755 = vmatmul.mubr.f32.vlgmr.msra.gmra.mrb[38].mxu0 %v29193_v44 }
0x11c9   :  { %24117 = vmatpush3.bf16.msra.mxu1 %v29212_v5  ;;  %24159 = vmatpush3.bf16.msra.mxu0 %v29153_v12 }
0x11ca   :  { %24118 = vmatprep.subr.bf16.mxu1 %v25108_v30  ;;  %24160 = vmatprep.subr.bf16.mxu0 %v25108_v30 }
0x11cb   :  { %21808 = vmatprep.mubr.msk.f32.mxu0 %vm25109_vm4, %v25110_v25 }
0x11cd   :  { %24120 = vmatpush3.bf16.msra.mxu1 %v29223_v28  ;;  %24162 = vmatpush3.bf16.msra.mxu0 %v29171_v14 }
0x11ce   :  { %24139 = vmatprep.subr.bf16.mxu1 %v25108_v30  ;;  %24163 = vmatprep.subr.bf16.mxu0 %v25108_v30 }
0x11d0   :  { %21728 = vmatmul.mubr.f32.vlgmr.msra.gmra.mrb[54].mxu1 %v14959_v27 }
0x11d1   :  { %24141 = vmatpush3.bf16.msra.mxu1 %v24140_v31  ;;  %24165 = vmatpush3.bf16.msra.mxu0 %v29191_v43 }
0x11d2   :  { %24142 = vmatprep.subr.bf16.mxu1 %v25108_v30  ;;  %24166 = vmatprep.subr.bf16.mxu0 %v25108_v30 }
0x11d3   :  { %21781 = vmatprep.mubr.msk.f32.mxu1 %vm25109_vm4, %v25110_v25 }
0x11d5   :  { %24144 = vmatpush3.bf16.msra.mxu1 %v24143_v13  ;;  %24168 = vmatpush3.bf16.msra.mxu0 %v29202_v16  ;;  %v29420_v13 = vld [vmem:[%s29901_s15 + $0x100] sm:$0xff] }
0x11d6   :  { %24145 = vmatprep.subr.bf16.mxu1 %v25108_v30  ;;  %24169 = vmatprep.subr.bf16.mxu0 %v25108_v30  ;;  %v15959_v57 = vand.u32 4294901760, %v29420_v13 }
0x11d8   :  { %v29448_v49 = vsub.f32 %v29420_v13, %v15959_v57 }
0x11d9   :  { %24147 = vmatpush3.bf16.msra.mxu1 %v24146_v45  ;;  %24171 = vmatpush3.bf16.msra.mxu0 %v29212_v5 }
0x11da   :  { %24148 = vmatprep.subr.bf16.mxu1 %v25108_v30  ;;  %24172 = vmatprep.subr.bf16.mxu0 %v25108_v30 }
0x11dd   :  { %24150 = vmatpush3.bf16.msra.mxu1 %v24149_v41  ;;  %24174 = vmatpush3.bf16.msra.mxu0 %v29223_v28 }
0x11de   :  { %24151 = vmatprep.subr.bf16.mxu1 %v25108_v30  ;;  %24193 = vmatprep.subr.bf16.mxu0 %v25108_v30 }
0x11e0   :  { %21809 = vmatmul.mubr.f32.vlgmr.msra.gmra.mrb[40].mxu0 %v14957_v50  ;;  %v15956_v50 = vand.u32 4294901760, %v29380_v39 }
0x11e1   :  { %24153 = vmatpush3.bf16.msra.mxu1 %v24152_v35  ;;  %24195 = vmatpush3.bf16.msra.mxu0 %v29153_v12 }
0x11e2   :  { %24154 = vmatprep.subr.bf16.mxu1 %v25108_v30  ;;  %24196 = vmatprep.subr.bf16.mxu0 %v25108_v30 }
0x11e3   :  { %21862 = vmatprep.mubr.msk.f32.mxu0 %vm25109_vm4, %v25110_v25 }
0x11e5   :  { %24156 = vmatpush3.bf16.msra.mxu1 %v24155_v52  ;;  %24198 = vmatpush3.bf16.msra.mxu0 %v29171_v14  ;;  %v29373_v14 = vsub.f32 %v17314_v38, %v15950_v37  ;;  %v29426_v52 = vsub.f32 %v29380_v39, %v15956_v50 }
0x11e6   :  { %24175 = vmatprep.subr.bf16.mxu1 %v25108_v30  ;;  %24199 = vmatprep.subr.bf16.mxu0 %v25108_v30 }
0x11e7   :  { %v16073_v1 = vand.u32 4294901760, %v29426_v52 }
0x11e8   :  { %21782 = vmatmul.mubr.f32.vlgmr.msra.gmra.mrb[56].mxu1 %v14956_v61  ;;  %v16032_v61 = vsub.f32 %v29363_v63, %v16031_v20 }
0x11e9   :  { %24177 = vmatpush3.bf16.msra.mxu1 %v24176_v29  ;;  %24201 = vmatpush3.bf16.msra.mxu0 %v29191_v43  ;;  %v15953_v43 = vand.u32 4294901760, %v29359_v22  ;;  %v29431_v29 = vld [vmem:[%s29901_s15 + $0x108] sm:$0xff] }
0x11ea   :  { %24178 = vmatprep.subr.bf16.mxu1 %v25108_v30  ;;  %24202 = vmatprep.subr.bf16.mxu0 %v25108_v30  ;;  %v16033_v41 = vand.u32 4294901760, %v16032_v61 }
0x11eb   :  { %21835 = vmatprep.mubr.msk.f32.mxu1 %vm25109_vm4, %v25110_v25  ;;  %v29415_v27 = vsub.f32 %v29359_v22, %v15953_v43 }
0x11ed   :  { %24180 = vmatpush3.bf16.msra.mxu1 %v24179_v4  ;;  %24204 = vmatpush3.bf16.msra.mxu0 %v29202_v16  ;;  %v16059_v16 = vand.u32 4294901760, %v29373_v14  ;;  %v16066_v23 = vand.u32 4294901760, %v29415_v27 }
0x11ee   :  { %24181 = vmatprep.subr.bf16.mxu1 %v25108_v30  ;;  %24205 = vmatprep.subr.bf16.mxu0 %v25108_v30 }
0x11ef   :  { %v16060_v31 = vsub.f32 %v29373_v14, %v16059_v16 }
0x11f1   :  { %24183 = vmatpush3.bf16.msra.mxu1 %v24182_v42  ;;  %24207 = vmatpush3.bf16.msra.mxu0 %v29212_v5 }
0x11f2   :  { %24184 = vmatprep.subr.bf16.mxu1 %v25108_v30  ;;  %24208 = vmatprep.subr.bf16.mxu0 %v25108_v30 }
0x11f5   :  { %24186 = vmatpush3.bf16.msra.mxu1 %v24185_v8  ;;  %24210 = vmatpush3.bf16.msra.mxu0 %v29223_v28  ;;  %v16046_v28 = vsub.f32 %v29369_v26, %v16045_v58 }
0x11f6   :  { %24187 = vmatprep.subr.bf16.mxu1 %v25108_v30  ;;  %24211 = vmatprep.subr.bf16.mxu0 %v25108_v30 }
0x11f7   :  { %v16047_v4 = vand.u32 4294901760, %v16046_v28 }
0x11f8   :  { %21863 = vmatmul.mubr.f32.vlgmr.msra.gmra.mrb[42].mxu0 %v29193_v44 }
0x11f9   :  { %24189 = vmatpush3.bf16.msra.mxu1 %v24188_v55  ;;  %21919 = vmatprep.mubr.msk.f32.mxu0 %vm25109_vm4, %v25110_v25  ;;  %v16061_v55 = vand.u32 4294901760, %v16060_v31 }
0x11fa   :  { %24190 = vmatprep.subr.bf16.mxu1 %v25108_v30 }
0x11fd   :  { %24192 = vmatpush3.bf16.msra.mxu1 %v24191_v33  ;;  %v16074_v33 = vsub.f32 %v29426_v52, %v16073_v1 }
0x11fe   :  { %21865 = vmatprep.subr.mxu1 %v25110_v25 }
0x1200   :  { %21836 = vmatmul.mubr.f32.vlgmr.msra.gmra.mrb[58].mxu1 %v29193_v44  ;;  %v16052_v44 = vand.u32 4294901760, %v29371_v18 }
0x1201   :  { %21866 = vmatpush3.msra.mxu1 %v28622_v53  ;;  %21867 = vmatprep.mubr.msk.f32.mxu1 %vm25109_vm4, %v25110_v25 }
0x1202   :  { %21870 = vmatprep.subr.mxu1 %v25110_v25  ;;  %v16053_v24 = vsub.f32 %v29371_v18, %v16052_v44 }
0x1204   :  { %21868 = vmatmul.mubr.f32.vlgmr.msra.gmra.mrb[60].mxu1 %v15542_v48  ;;  %v16054_v8 = vand.u32 4294901760, %v16053_v24 }
0x1205   :  { %21871 = vmatpush3.msra.mxu1 %v28640_v32  ;;  %21872 = vmatprep.mubr.msk.f32.mxu1 %vm25109_vm4, %v25110_v25 }
0x1206   :  { %21875 = vmatprep.subr.mxu1 %v25110_v25 }
0x120c   :  { %21873 = vmatmul.mubr.f32.vlgmr.msra.gmra.mrb[60].mxu1 %v15538_v62 }
0x120d   :  { %21876 = vmatpush3.msra.mxu1 %v28625_v19  ;;  %21877 = vmatprep.mubr.msk.f32.mxu1 %vm25109_vm4, %v25110_v25 }
0x120e   :  { %21880 = vmatprep.subr.mxu1 %v25110_v25 }
0x1214   :  { %21878 = vmatmul.mubr.f32.vlgmr.msra.gmra.mrb[60].mxu1 %v15539_v11  ;;  %v15962_v11 = vand.u32 4294901760, %v29431_v29 }
0x1215   :  { %21881 = vmatpush3.msra.mxu1 %v28622_v53  ;;  %21882 = vmatprep.mubr.msk.f32.mxu1 %vm25109_vm4, %v25110_v25 }
0x1216   :  { %21885 = vmatprep.subr.mxu1 %v25110_v25  ;;  %v29452_v48 = vsub.f32 %v29431_v29, %v15962_v11 }
0x121c   :  { %21883 = vmatmul.mubr.f32.vlgmr.msra.gmra.mrb[60].mxu1 %v15540_v17  ;;  %v16067_v17 = vsub.f32 %v29415_v27, %v16066_v23 }
0x121d   :  { %21886 = vmatpush3.msra.mxu1 %v28632_v51  ;;  %21887 = vmatprep.mubr.msk.f32.mxu1 %vm25109_vm4, %v25110_v25  ;;  %v17309_v51 = vld [vmem:[%s29901_s15 + $0xc0] sm:$0xff] }
0x121e   :  { %21890 = vmatprep.subr.mxu1 %v25110_v25  ;;  %v15935_v10 = vand.u32 4294901760, %v17309_v51  ;;  %v16068_v59 = vand.u32 4294901760, %v16067_v17 }
0x1220   :  { %v29361_v12 = vsub.f32 %v17309_v51, %v15935_v10  ;;  %v29367_v46 = vpack.c.bf16 %v15938_v60, %v15935_v10  ;;  %v24236_v51 = vpack.c.bf16 %v16061_v55, %v16054_v8  ;;  %v29491_v8 = vpack.c.bf16 %v15962_v11, %v15959_v57 }
0x1222   :  { %v16024_v47 = vand.u32 4294901760, %v29361_v12  ;;  %24213 = vmatpush3.bf16.msra.mxu0 %v29367_v46  ;;  %v24248_v39 = vpack.c.bf16 %v29363_v63, %v29361_v12  ;;  %v24293_v63 = vpack.c.bf16 %v16073_v1, %v16066_v23 }
0x1223   :  { %24214 = vmatprep.subr.bf16.mxu0 %v25108_v30 }
0x1224   :  { %21888 = vmatmul.mubr.f32.vlgmr.msra.gmra.mrb[60].mxu1 %v15538_v62  ;;  %v16025_v15 = vsub.f32 %v29361_v12, %v16024_v47  ;;  %v24290_v12 = vpack.c.bf16 %v16059_v16, %v16052_v44  ;;  %v16538_v16 = vld [vmem:[%s29903_s17 + $0x28] sm:$0xff] }
0x1225   :  { %21891 = vmatpush3.msra.mxu1 %v28622_v53  ;;  %21892 = vmatprep.mubr.msk.f32.mxu1 %vm25109_vm4, %v25110_v25  ;;  %v17311_v53 = vld [vmem:[%s29901_s15 + $0xd0] sm:$0xff] }
0x1226   :  { %24229 = vmatprep.subr.bf16.mxu1 %v25108_v30  ;;  %v15941_v0 = vand.u32 4294901760, %v17311_v53  ;;  %v16026_v45 = vand.u32 4294901760, %v16025_v15 }
0x1228   :  { %v29365_v3 = vsub.f32 %v17311_v53, %v15941_v0  ;;  %v29375_v7 = vpack.c.bf16 %v15944_v6, %v15941_v0  ;;  %v24230_v42 = vpack.c.bf16 %v16033_v41, %v16026_v45  ;;  %v16075_v53 = vand.u32 4294901760, %v16074_v33 }
0x122a   :  { %v16038_v54 = vand.u32 4294901760, %v29365_v3  ;;  %24216 = vmatpush3.bf16.msra.mxu0 %v29375_v7  ;;  %v24239_v0 = vpack.c.bf16 %v16075_v53, %v16068_v59  ;;  %v24251_v57 = vpack.c.bf16 %v29369_v26, %v29365_v3  ;;  %v24257_v59 = vpack.c.bf16 %v29426_v52, %v29415_v27  ;;  %v16533_v26 = vld [vmem:[%s29903_s17] sm:$0xff] }
0x122b   :  { %24217 = vmatprep.subr.bf16.mxu0 %v25108_v30  ;;  %v24260_v53 = vpack.c.bf16 %v29452_v48, %v29448_v49 }
0x122c   :  { %21893 = vmatmul.mubr.f32.vlgmr.msra.gmra.mrb[60].mxu1 %v15538_v62  ;;  %v16039_v5 = vsub.f32 %v29365_v3, %v16038_v54  ;;  %v29436_v62 = vpack.c.bf16 %v15950_v37, %v15947_v36 }
0x122d   :  { %21946 = vmatprep.mubr.msk.f32.mxu1 %vm25109_vm4, %v25110_v25  ;;  %24231 = vmatpush3.bf16.msra.mxu1 %v24230_v42  ;;  %v29486_v42 = vpack.c.bf16 %v15956_v50, %v15953_v43 }
0x122e   :  { %v16040_v35 = vand.u32 4294901760, %v16039_v5  ;;  %24219 = vmatpush3.bf16.msra.mxu0 %v29436_v62  ;;  %24232 = vmatprep.subr.bf16.mxu1 %v25108_v30 }
0x122f   :  { %24220 = vmatprep.subr.bf16.mxu0 %v25108_v30 }
0x1230   :  { %v24233_v40 = vpack.c.bf16 %v16047_v4, %v16040_v35 }
0x1232   :  { %24234 = vmatpush3.bf16.msra.mxu1 %v24233_v40  ;;  %24222 = vmatpush3.bf16.msra.mxu0 %v29486_v42 }
0x1233   :  { %24235 = vmatprep.subr.bf16.mxu1 %v25108_v30  ;;  %24223 = vmatprep.subr.bf16.mxu0 %v25108_v30 }
0x1236   :  { %24237 = vmatpush3.bf16.msra.mxu1 %v24236_v51  ;;  %24225 = vmatpush3.bf16.msra.mxu0 %v29491_v8  ;;  %v24254_v51 = vpack.c.bf16 %v29373_v14, %v29371_v18  ;;  %v16534_v18 = vld [vmem:[%s29903_s17 + $0x8] sm:$0xff]  ;;  %v16557_v14 = vand.u32 4294901760, %v16533_v26 }
0x1237   :  { %24238 = vmatprep.subr.bf16.mxu1 %v25108_v30  ;;  %24226 = vmatprep.subr.bf16.mxu0 %v25108_v30 }
0x1238   :  { %v29609_v52 = vsub.f32 %v16533_v26, %v16557_v14 }
0x123a   :  { %24240 = vmatpush3.bf16.msra.mxu1 %v24239_v0 }
0x123b   :  { %24241 = vmatprep.subr.bf16.mxu1 %v25108_v30 }
0x1253   :  { %v14500_v19 = vpop.f32.mrb[32].mxu0 }
0x1254   :  { %v21594_v32 = vpop.f32.mrb[33].mxu0 }
0x1255   :  { %v16087_v32 = vand.u32 4294901760, %v29452_v48 }
0x1257   :  { %v16088_v60 = vsub.f32 %v29452_v48, %v16087_v32 }
0x1259   :  { %v16089_v38 = vand.u32 4294901760, %v16088_v60 }
0x125b   :  { %v14369_v21 = vpop.f32.mrb[48].mxu1 }
0x125c   :  { %v29387_v56 = vadd.f32 %v14500_v19, %v14369_v21  ;;  %v21567_v9 = vpop.f32.mrb[49].mxu1  ;;  %v16080_v19 = vand.u32 4294901760, %v29448_v49  ;;  %v17319_v21 = vld [vmem:[%s29901_s15 + $0x110] sm:$0xff] }
0x125d   :  { %v17320_v9 = vld [vmem:[%s29901_s15 + $0x118] sm:$0xff]  ;;  %v15965_v5 = vand.u32 4294901760, %v17319_v21 }
0x125e   :  { %v16081_v10 = vsub.f32 %v29448_v49, %v16080_v19  ;;  %v15968_v28 = vand.u32 4294901760, %v17320_v9  ;;  %v24296_v3 = vpack.c.bf16 %v16087_v32, %v16080_v19 }
0x125f   :  { %v29474_v31 = vsub.f32 %v17319_v21, %v15965_v5 }
0x1260   :  { %v16082_v2 = vand.u32 4294901760, %v16081_v10  ;;  %v29476_v13 = vsub.f32 %v17320_v9, %v15968_v28  ;;  %v29495_v22 = vpack.c.bf16 %v15968_v28, %v15965_v5 }
0x1261   :  { %v16094_v45 = vand.u32 4294901760, %v29474_v31 }
0x1262   :  { %v24242_v36 = vpack.c.bf16 %v16089_v38, %v16082_v2  ;;  %v16101_v41 = vand.u32 4294901760, %v29476_v13  ;;  %24228 = vmatpush3.bf16.msra.mxu0 %v29495_v22 }
0x1263   :  { %v16095_v35 = vsub.f32 %v29474_v31, %v16094_v45  ;;  %24247 = vmatprep.subr.bf16.mxu0 %v25108_v30 }
0x1264   :  { %24243 = vmatpush3.bf16.msra.mxu1 %v24242_v36  ;;  %v16102_v29 = vsub.f32 %v29476_v13, %v16101_v41  ;;  %v29511_v21 = vpack.c.bf16 %v16101_v41, %v16094_v45 }
0x1265   :  { %24244 = vmatprep.subr.bf16.mxu1 %v25108_v30  ;;  %v16096_v4 = vand.u32 4294901760, %v16095_v35 }
0x126b   :  { %v14681_v34 = vpop.f32.mrb[34].mxu0 }
0x126c   :  { %v21648_v6 = vpop.f32.mrb[35].mxu0 }
0x1273   :  { %v14596_v37 = vpop.f32.mrb[50].mxu1 }
0x1274   :  { %v14597_v15 = vadd.f32 %v14596_v37, %v29387_v56  ;;  %v21621_v61 = vpop.f32.mrb[51].mxu1  ;;  %v16103_v56 = vand.u32 4294901760, %v16102_v29 }
0x1276   :  { %v14682_v24 = vadd.f32 %v14681_v34, %v14597_v15  ;;  %v24245_v40 = vpack.c.bf16 %v16103_v56, %v16096_v4  ;;  %v24263_v34 = vpack.c.bf16 %v29476_v13, %v29474_v31 }
0x1278   :  { %24246 = vmatpush3.bf16.msra.mxu1 %v24245_v40 }
0x1279   :  { %24265 = vmatprep.subr.bf16.mxu1 %v25108_v30 }
0x1283   :  { %v14871_v55 = vpop.f32.mrb[36].mxu0 }
0x1284   :  { %v21702_v17 = vpop.f32.mrb[37].mxu0 }
0x128b   :  { %v14788_v43 = vpop.f32.mrb[52].mxu1 }
0x128c   :  { %v14789_v50 = vadd.f32 %v14788_v43, %v14682_v24  ;;  %v21675_v33 = vpop.f32.mrb[53].mxu1 }
0x128d   :  { %v16540_v33 = vld [vmem:[%s29903_s17 + $0x38] sm:$0xff] }
0x128e   :  { %v14872_v11 = vadd.f32 %v14871_v55, %v14789_v50  ;;  %v16539_v50 = vld [vmem:[%s29903_s17 + $0x30] sm:$0xff] }
0x129b   :  { %v15092_v10 = vpop.f32.mrb[38].mxu0 }
0x129c   :  { %v21756_v60 = vpop.f32.mrb[39].mxu0 }
0x129d   :  { %v16542_v60 = vld [vmem:[%s29903_s17 + $0x48] sm:$0xff] }
0x12a3   :  { %v14961_v0 = vpop.f32.mrb[54].mxu1 }
0x12a4   :  { %v14962_v2 = vadd.f32 %v14961_v0, %v14872_v11  ;;  %v21729_v38 = vpop.f32.mrb[55].mxu1  ;;  %v16578_v11 = vand.u32 4294901760, %v16540_v33 }
0x12a5   :  { %v16584_v38 = vand.u32 4294901760, %v16542_v60 }
0x12a6   :  { %v15093_v6 = vadd.f32 %v15092_v10, %v14962_v2  ;;  %v16541_v10 = vld [vmem:[%s29903_s17 + $0x40] sm:$0xff] }
0x12a7   :  { %v16581_v2 = vand.u32 4294901760, %v16541_v10 }
0x12b3   :  { %v15273_v36 = vpop.f32.mrb[40].mxu0 }
0x12b4   :  { %v21810_v37 = vpop.f32.mrb[41].mxu0 }
0x12b5   :  { %v16543_v37 = vld [vmem:[%s29903_s17 + $0x50] sm:$0xff] }
0x12bb   :  { %v15188_v9 = vpop.f32.mrb[56].mxu1 }
0x12bc   :  { %v15189_v15 = vadd.f32 %v15188_v9, %v15093_v6  ;;  %v21783_v61 = vpop.f32.mrb[57].mxu1  ;;  %v29658_v6 = vsub.f32 %v16541_v10, %v16581_v2 }
0x12be   :  { %v15274_v5 = vadd.f32 %v15273_v36, %v15189_v15  ;;  %v29660_v36 = vsub.f32 %v16542_v60, %v16584_v38  ;;  %v16587_v15 = vand.u32 4294901760, %v16543_v37 }
0x12c0   :  { %v24380_v9 = vpack.c.bf16 %v29660_v36, %v29658_v6 }
0x12cb   :  { %v15463_v28 = vpop.f32.mrb[42].mxu0 }
0x12cc   :  { %v21864_v24 = vpop.f32.mrb[43].mxu0 }
0x12d3   :  { %v15380_v35 = vpop.f32.mrb[58].mxu1 }
0x12d4   :  { %v15381_v29 = vadd.f32 %v15380_v35, %v15274_v5  ;;  %v21837_v4 = vpop.f32.mrb[59].mxu1  ;;  %v16545_v35 = vld [vmem:[%s29903_s17 + $0x60] sm:$0xff] }
0x12d6   :  { %v29513_v56 = vadd.f32 %v15463_v28, %v15381_v29  ;;  %v29675_v28 = vsub.f32 %v16543_v37, %v16587_v15  ;;  %v16546_v29 = vld [vmem:[%s29903_s17 + $0x68] sm:$0xff] }
0x12ff   :  { %v15914_v31 = vpop.f32.mrb[60].mxu1 }
0x1300   :  { %v15932_v13 = vsel %vm14282_vm10, %v15914_v31, 0  ;;  %v21894_v40 = vpop.f32.mrb[61].mxu1  ;;  %v16593_v31 = vand.u32 4294901760, %v16545_v35 }
0x1301   :  { %v29516_v55 = vand.u32 4294901760, %v15932_v13  ;;  %v29690_v40 = vpack.c.bf16 %v16584_v38, %v16581_v2 }
0x1303   :  { %v16012_v45 = vsub.f32 %v15932_v13, %v29516_v55  ;;  %21947 = vmatmul.mubr.f32.vlgmr.msra.gmra.mrb[62].mxu1 %v29516_v55  ;;  %v16596_v13 = vand.u32 4294901760, %v16546_v29 }
0x1304   :  { %24267 = vmatpush3.bf16.msra.mxu1 %v29367_v46  ;;  %22000 = vmatprep.mubr.msk.f32.mxu1 %vm25109_vm4, %v25110_v25 }
0x1305   :  { %v16013_v41 = vand.u32 4294901760, %v16012_v45  ;;  %24268 = vmatprep.subr.bf16.mxu1 %v25108_v30 }
0x1307   :  { %v16014_v17 = vsub.f32 %v16012_v45, %v16013_v41 }
0x1308   :  { %24270 = vmatpush3.bf16.msra.mxu1 %v29375_v7 }
0x1309   :  { %v16015_v43 = vand.u32 4294901760, %v16014_v17  ;;  %24271 = vmatprep.subr.bf16.mxu1 %v25108_v30  ;;  %v16548_v17 = vld [vmem:[%s29903_s17 + $0x78] sm:$0xff] }
0x130b   :  { %21920 = vmatmul.mubr.f32.vlgmr.msra.gmra.mrb[44].mxu0 %v16015_v43 }
0x130c   :  { %24249 = vmatpush3.bf16.msra.mxu0 %v24248_v39  ;;  %24273 = vmatpush3.bf16.msra.mxu1 %v29436_v62  ;;  %v24284_v39 = vpack.c.bf16 %v16031_v20, %v16024_v47  ;;  %v16535_v47 = vld [vmem:[%s29903_s17 + $0x10] sm:$0xff]  ;;  %v16536_v20 = vld [vmem:[%s29903_s17 + $0x18] sm:$0xff] }
0x130d   :  { %24250 = vmatprep.subr.bf16.mxu0 %v25108_v30  ;;  %24274 = vmatprep.subr.bf16.mxu1 %v25108_v30  ;;  %v16566_v44 = vand.u32 4294901760, %v16536_v20 }
0x130e   :  { %21973 = vmatprep.mubr.msk.f32.mxu0 %vm25109_vm4, %v25110_v25 }
0x130f   :  { %v29617_v48 = vsub.f32 %v16536_v20, %v16566_v44 }
0x1310   :  { %24252 = vmatpush3.bf16.msra.mxu0 %v24251_v57  ;;  %24276 = vmatpush3.bf16.msra.mxu1 %v29486_v42  ;;  %v16575_v57 = vand.u32 4294901760, %v16539_v50 }
0x1311   :  { %24253 = vmatprep.subr.bf16.mxu0 %v25108_v30  ;;  %24277 = vmatprep.subr.bf16.mxu1 %v25108_v30 }
0x1312   :  { %v29673_v5 = vpack.c.bf16 %v16578_v11, %v16575_v57 }
0x1314   :  { %24255 = vmatpush3.bf16.msra.mxu0 %v24254_v51  ;;  %24279 = vmatpush3.bf16.msra.mxu1 %v29491_v8 }
0x1315   :  { %24256 = vmatprep.subr.bf16.mxu0 %v25108_v30  ;;  %24280 = vmatprep.subr.bf16.mxu1 %v25108_v30 }
0x1318   :  { %24258 = vmatpush3.bf16.msra.mxu0 %v24257_v59  ;;  %24282 = vmatpush3.bf16.msra.mxu1 %v29495_v22  ;;  %v29641_v59 = vsub.f32 %v16539_v50, %v16575_v57 }
0x1319   :  { %24259 = vmatprep.subr.bf16.mxu0 %v25108_v30  ;;  %24301 = vmatprep.subr.bf16.mxu1 %v25108_v30 }
0x131b   :  { %22001 = vmatmul.mubr.f32.vlgmr.msra.gmra.mrb[64].mxu1 %v16013_v41  ;;  %v16547_v41 = vld [vmem:[%s29903_s17 + $0x70] sm:$0xff] }
0x131c   :  { %24261 = vmatpush3.bf16.msra.mxu0 %v24260_v53  ;;  %24303 = vmatpush3.bf16.msra.mxu1 %v29367_v46  ;;  %v24287_v46 = vpack.c.bf16 %v16045_v58, %v16038_v54  ;;  %v16537_v54 = vld [vmem:[%s29903_s17 + $0x20] sm:$0xff]  ;;  %v16563_v58 = vand.u32 4294901760, %v16535_v47  ;;  %v29643_v53 = vsub.f32 %v16540_v33, %v16578_v11 }
0x131d   :  { %24262 = vmatprep.subr.bf16.mxu0 %v25108_v30  ;;  %24304 = vmatprep.subr.bf16.mxu1 %v25108_v30  ;;  %v16569_v27 = vand.u32 4294901760, %v16537_v54 }
0x131e   :  { %22054 = vmatprep.mubr.msk.f32.mxu1 %vm25109_vm4, %v25110_v25  ;;  %v29615_v49 = vsub.f32 %v16535_v47, %v16563_v58  ;;  %v29639_v51 = vpack.c.bf16 %v16566_v44, %v16563_v58 }
0x1320   :  { %24264 = vmatpush3.bf16.msra.mxu0 %v24263_v34  ;;  %24306 = vmatpush3.bf16.msra.mxu1 %v29375_v7  ;;  %v16560_v7 = vand.u32 4294901760, %v16534_v18  ;;  %v24371_v32 = vpack.c.bf16 %v29617_v48, %v29615_v49  ;;  %v24377_v34 = vpack.c.bf16 %v29643_v53, %v29641_v59 }
0x1321   :  { %24283 = vmatprep.subr.bf16.mxu0 %v25108_v30  ;;  %24307 = vmatprep.subr.bf16.mxu1 %v25108_v30 }
0x1322   :  { %v29611_v23 = vsub.f32 %v16534_v18, %v16560_v7  ;;  %v29613_v1 = vpack.c.bf16 %v16560_v7, %v16557_v14  ;;  %v29718_v18 = vpack.c.bf16 %v16596_v13, %v16593_v31  ;;  %v16650_v14 = vand.u32 4294901760, %v29609_v52 }
0x1323   :  { %21974 = vmatmul.mubr.f32.vlgmr.msra.gmra.mrb[46].mxu0 %v16012_v45  ;;  %v29694_v45 = vsub.f32 %v16546_v29, %v16596_v13 }
0x1324   :  { %24285 = vmatpush3.bf16.msra.mxu0 %v24284_v39  ;;  %24309 = vmatpush3.bf16.msra.mxu1 %v29436_v62  ;;  %v16572_v62 = vand.u32 4294901760, %v16538_v16  ;;  %v24368_v19 = vpack.c.bf16 %v29611_v23, %v29609_v52  ;;  %v16599_v39 = vand.u32 4294901760, %v16547_v41  ;;  %v16657_v7 = vand.u32 4294901760, %v29611_v23 }
0x1325   :  { %24286 = vmatprep.subr.bf16.mxu0 %v25108_v30  ;;  %24310 = vmatprep.subr.bf16.mxu1 %v25108_v30  ;;  %v16651_v20 = vsub.f32 %v29609_v52, %v16650_v14 }
0x1326   :  { %22027 = vmatprep.mubr.msk.f32.mxu0 %vm25109_vm4, %v25110_v25  ;;  %v29655_v0 = vpack.c.bf16 %v16572_v62, %v16569_v27 }
0x1327   :  { %v16652_v58 = vand.u32 4294901760, %v16651_v20 }
0x1328   :  { %24288 = vmatpush3.bf16.msra.mxu0 %v24287_v46  ;;  %24312 = vmatpush3.bf16.msra.mxu1 %v29486_v42  ;;  %v29625_v42 = vsub.f32 %v16537_v54, %v16569_v27  ;;  %v16602_v46 = vand.u32 4294901760, %v16548_v17  ;;  %v16658_v54 = vsub.f32 %v29611_v23, %v16657_v7  ;;  %v16671_v27 = vand.u32 4294901760, %v29617_v48 }
0x1329   :  { %24289 = vmatprep.subr.bf16.mxu0 %v25108_v30  ;;  %24313 = vmatprep.subr.bf16.mxu1 %v25108_v30 }
0x132a   :  { %v29725_v47 = vpack.c.bf16 %v16602_v46, %v16599_v39  ;;  %v16659_v44 = vand.u32 4294901760, %v16658_v54  ;;  %v16678_v23 = vand.u32 4294901760, %v29625_v42 }
0x132c   :  { %24291 = vmatpush3.bf16.msra.mxu0 %v24290_v12  ;;  %24315 = vmatpush3.bf16.msra.mxu1 %v29491_v8  ;;  %v29627_v8 = vsub.f32 %v16538_v16, %v16572_v62  ;;  %v16664_v16 = vand.u32 4294901760, %v29615_v49  ;;  %v29733_v62 = vpack.c.bf16 %v16659_v44, %v16652_v58  ;;  %v16679_v57 = vsub.f32 %v29625_v42, %v16678_v23 }
0x132d   :  { %24292 = vmatprep.subr.bf16.mxu0 %v25108_v30  ;;  %24316 = vmatprep.subr.bf16.mxu1 %v25108_v30 }
0x132e   :  { %v16685_v50 = vand.u32 4294901760, %v29627_v8  ;;  %v16680_v10 = vand.u32 4294901760, %v16679_v57 }
0x1330   :  { %24294 = vmatpush3.bf16.msra.mxu0 %v24293_v63  ;;  %24318 = vmatpush3.bf16.msra.mxu1 %v29495_v22  ;;  %v24374_v22 = vpack.c.bf16 %v29627_v8, %v29625_v42  ;;  %v29709_v63 = vsub.f32 %v16547_v41, %v16599_v39  ;;  %v16686_v11 = vsub.f32 %v29627_v8, %v16685_v50  ;;  %v16713_v42 = vand.u32 4294901760, %v29660_v36 }
0x1331   :  { %24295 = vmatprep.subr.bf16.mxu0 %v25108_v30  ;;  %24319 = vmatprep.subr.bf16.mxu1 %v25108_v30 }
0x1332   :  { %v16687_v60 = vand.u32 4294901760, %v16686_v11  ;;  %v16748_v54 = vand.u32 4294901760, %v29709_v63 }
0x1333   :  { %22055 = vmatmul.mubr.f32.vlgmr.msra.gmra.mrb[66].mxu1 %v29516_v55 }
0x1334   :  { %24297 = vmatpush3.bf16.msra.mxu0 %v24296_v3  ;;  %22089 = vmatprep.mubr.msk.f32.mxu1 %vm25109_vm4, %v25110_v25  ;;  %v29711_v3 = vsub.f32 %v16548_v17, %v16602_v46  ;;  %v29745_v2 = vpack.c.bf16 %v16687_v60, %v16680_v10 }
0x1335   :  { %24298 = vmatprep.subr.bf16.mxu0 %v25108_v30  ;;  %24321 = vmatpush3.bf16.msra.mxu1 %v29613_v1 }
0x1336   :  { %24322 = vmatprep.subr.bf16.mxu1 %v25108_v30  ;;  %v24389_v26 = vpack.c.bf16 %v29711_v3, %v29709_v63 }
0x1338   :  { %24300 = vmatpush3.bf16.msra.mxu0 %v29511_v21  ;;  %v16544_v21 = vld [vmem:[%s29903_s17 + $0x58] sm:$0xff] }
0x1339   :  { %24367 = vmatprep.subr.bf16.mxu0 %v25108_v30  ;;  %24324 = vmatpush3.bf16.msra.mxu1 %v29639_v51  ;;  %v16590_v61 = vand.u32 4294901760, %v16544_v21 }
0x133a   :  { %24325 = vmatprep.subr.bf16.mxu1 %v25108_v30 }
0x133b   :  { %22028 = vmatmul.mubr.f32.vlgmr.msra.gmra.mrb[48].mxu0 %v29516_v55  ;;  %v29677_v24 = vsub.f32 %v16544_v21, %v16590_v61  ;;  %v29692_v55 = vsub.f32 %v16545_v35, %v16593_v31  ;;  %v29707_v12 = vpack.c.bf16 %v16590_v61, %v16587_v15  ;;  %v16714_v61 = vsub.f32 %v29660_v36, %v16713_v42 }
0x133c   :  { %22159 = vmatprep.mubr.msk.f32.mxu0 %vm25109_vm4, %v25110_v25  ;;  %24369 = vmatpush3.bf16.msra.mxu0 %v24368_v19  ;;  %v16665_v19 = vsub.f32 %v29615_v49, %v16664_v16  ;;  %v16699_v49 = vand.u32 4294901760, %v29643_v53 }
0x133d   :  { %24370 = vmatprep.subr.bf16.mxu0 %v25108_v30  ;;  %24327 = vmatpush3.bf16.msra.mxu1 %v29655_v0  ;;  %v24383_v4 = vpack.c.bf16 %v29677_v24, %v29675_v28  ;;  %v24386_v43 = vpack.c.bf16 %v29694_v45, %v29692_v55  ;;  %v16715_v29 = vand.u32 4294901760, %v16714_v61 }
0x133e   :  { %24328 = vmatprep.subr.bf16.mxu1 %v25108_v30  ;;  %v16700_v38 = vsub.f32 %v29643_v53, %v16699_v49 }
0x1340   :  { %24372 = vmatpush3.bf16.msra.mxu0 %v24371_v32  ;;  %v16672_v32 = vsub.f32 %v29617_v48, %v16671_v27  ;;  %v16701_v21 = vand.u32 4294901760, %v16700_v38 }
0x1341   :  { %24373 = vmatprep.subr.bf16.mxu0 %v25108_v30  ;;  %24330 = vmatpush3.bf16.msra.mxu1 %v29673_v5 }
0x1342   :  { %24331 = vmatprep.subr.bf16.mxu1 %v25108_v30  ;;  %v16673_v52 = vand.u32 4294901760, %v16672_v32 }
0x1344   :  { %24375 = vmatpush3.bf16.msra.mxu0 %v24374_v22  ;;  %v16666_v22 = vand.u32 4294901760, %v16665_v19  ;;  %v29773_v19 = vpack.c.bf16 %v16657_v7, %v16650_v14 }
0x1345   :  { %24376 = vmatprep.subr.bf16.mxu0 %v25108_v30  ;;  %24333 = vmatpush3.bf16.msra.mxu1 %v29690_v40 }
0x1346   :  { %24334 = vmatprep.subr.bf16.mxu1 %v25108_v30  ;;  %v29739_v33 = vpack.c.bf16 %v16673_v52, %v16666_v22 }
0x1348   :  { %24378 = vmatpush3.bf16.msra.mxu0 %v24377_v34  ;;  %v16692_v34 = vand.u32 4294901760, %v29641_v59 }
0x1349   :  { %24379 = vmatprep.subr.bf16.mxu0 %v25108_v30  ;;  %24336 = vmatpush3.bf16.msra.mxu1 %v29707_v12 }
0x134a   :  { %24337 = vmatprep.subr.bf16.mxu1 %v25108_v30  ;;  %v16693_v48 = vsub.f32 %v29641_v59, %v16692_v34  ;;  %v16727_v59 = vand.u32 4294901760, %v29677_v24  ;;  %v29781_v57 = vpack.c.bf16 %v16699_v49, %v16692_v34 }
0x134c   :  { %24381 = vmatpush3.bf16.msra.mxu0 %v24380_v9  ;;  %v16694_v37 = vand.u32 4294901760, %v16693_v48  ;;  %v16706_v9 = vand.u32 4294901760, %v29658_v6  ;;  %v16728_v13 = vsub.f32 %v29677_v24, %v16727_v59  ;;  %v16749_v24 = vsub.f32 %v29709_v63, %v16748_v54 }
0x134d   :  { %24382 = vmatprep.subr.bf16.mxu0 %v25108_v30  ;;  %24339 = vmatpush3.bf16.msra.mxu1 %v29718_v18 }
0x134e   :  { %24340 = vmatprep.subr.bf16.mxu1 %v25108_v30  ;;  %v29751_v15 = vpack.c.bf16 %v16701_v21, %v16694_v37  ;;  %v16707_v8 = vsub.f32 %v29658_v6, %v16706_v9  ;;  %v16729_v17 = vand.u32 4294901760, %v16728_v13  ;;  %v16741_v6 = vand.u32 4294901760, %v29694_v45 }
0x134f   :  { %v16750_v32 = vand.u32 4294901760, %v16749_v24  ;;  %v29783_v11 = vpack.c.bf16 %v16713_v42, %v16706_v9 }
0x1350   :  { %24384 = vmatpush3.bf16.msra.mxu0 %v24383_v4  ;;  %v16708_v35 = vand.u32 4294901760, %v16707_v8  ;;  %v16720_v4 = vand.u32 4294901760, %v29675_v28  ;;  %v16742_v46 = vsub.f32 %v29694_v45, %v16741_v6  ;;  %v29779_v45 = vpack.c.bf16 %v16685_v50, %v16678_v23 }
0x1351   :  { %24385 = vmatprep.subr.bf16.mxu0 %v25108_v30  ;;  %24342 = vmatpush3.bf16.msra.mxu1 %v29725_v47 }
0x1352   :  { %24343 = vmatprep.subr.bf16.mxu1 %v25108_v30  ;;  %v29757_v31 = vpack.c.bf16 %v16715_v29, %v16708_v35  ;;  %v16721_v53 = vsub.f32 %v29675_v28, %v16720_v4  ;;  %v16743_v20 = vand.u32 4294901760, %v16742_v46  ;;  %v16755_v28 = vand.u32 4294901760, %v29711_v3  ;;  %v17321_v35 = vld [vmem:[#allocation20] ss:$0 sm:$0xff] }
0x1353   :  { %v29785_v10 = vpack.c.bf16 %v16727_v59, %v16720_v4 }
0x1354   :  { %24387 = vmatpush3.bf16.msra.mxu0 %v24386_v43  ;;  %v16722_v41 = vand.u32 4294901760, %v16721_v53  ;;  %v16734_v43 = vand.u32 4294901760, %v29692_v55  ;;  %v16756_v44 = vsub.f32 %v29711_v3, %v16755_v28  ;;  %v29789_v14 = vpack.c.bf16 %v16755_v28, %v16748_v54 }
0x1355   :  { %24388 = vmatprep.subr.bf16.mxu0 %v25108_v30 }
0x1356   :  { %v29763_v39 = vpack.c.bf16 %v16729_v17, %v16722_v41  ;;  %v16735_v36 = vsub.f32 %v29692_v55, %v16734_v43  ;;  %v16757_v22 = vand.u32 4294901760, %v16756_v44  ;;  %v29777_v55 = vpack.c.bf16 %v16671_v27, %v16664_v16 }
0x1357   :  { %v29787_v60 = vpack.c.bf16 %v16741_v6, %v16734_v43 }
0x1358   :  { %24390 = vmatpush3.bf16.msra.mxu0 %v24389_v26  ;;  %v16736_v26 = vand.u32 4294901760, %v16735_v36  ;;  %v29775_v52 = vpack.c.bf16 %v16757_v22, %v16750_v32 }
0x1359   :  { %24391 = vmatprep.subr.bf16.mxu0 %v25108_v30 }
0x135a   :  { %v29769_v58 = vpack.c.bf16 %v16743_v20, %v16736_v26 }
0x13d6   :  { %v16148_v63 = vpop.f32.mrb[62].mxu1 }
0x13d7   :  { %v21948_v3 = vpop.f32.mrb[63].mxu1 }
0x13de   :  { %v16017_v7 = vpop.f32.mrb[44].mxu0 }
0x13df   :  { %v16149_v48 = vadd.f32 %v16148_v63, %v16017_v7  ;;  %v21921_v38 = vpop.f32.mrb[45].mxu0 }
0x13ee   :  { %v16329_v37 = vpop.f32.mrb[64].mxu1 }
0x13ef   :  { %v22002_v16 = vpop.f32.mrb[65].mxu1 }
0x13f6   :  { %v16244_v27 = vpop.f32.mrb[46].mxu0 }
0x13f7   :  { %v16245_v23 = vadd.f32 %v16244_v27, %v16149_v48  ;;  %v21975_v50 = vpop.f32.mrb[47].mxu0 }
0x13f9   :  { %v16330_v34 = vadd.f32 %v16329_v37, %v16245_v23 }
0x1406   :  { %v16519_v49 = vpop.f32.mrb[66].mxu1 }
0x1407   :  { %v22056_v21 = vpop.f32.mrb[67].mxu1 }
0x140e   :  { %v16436_v9 = vpop.f32.mrb[48].mxu0 }
0x140f   :  { %v16437_v42 = vadd.f32 %v16436_v9, %v16330_v34  ;;  %v22029_v8 = vpop.f32.mrb[49].mxu0 }
0x1411   :  { %v16520_v61 = vadd.f32 %v16519_v49, %v16437_v42 }
0x1413   :  { %v16523_v29 = vadd.f32 %v16520_v61, %v29513_v56 }
0x1415   :  { %v16531_v4 = vadd.f32 %v17321_v35, %v16523_v29 }
0x1417   :  { %v16532_v59 = vmax.f32 %v16531_v4, 0.0 }
0x1419   :  { %v29792_v53 = vand.u32 4294901760, %v16532_v59 }
0x141b   :  { %v16638_v13 = vsub.f32 %v16532_v59, %v29792_v53 }
0x141d   :  { %22160 = vmatmul.mubr.f32.vlgmr.msra.gmra.mrb[50].mxu0 %v16638_v13  ;;  %v16639_v41 = vand.u32 4294901760, %v16638_v13 }
0x141e   :  { %24393 = vmatpush3.bf16.msra.mxu0 %v29613_v1  ;;  %22194 = vmatprep.mubr.msk.f32.mxu0 %vm25109_vm4, %v25110_v25 }
0x141f   :  { %24394 = vmatprep.subr.bf16.mxu0 %v25108_v30  ;;  %v16640_v17 = vsub.f32 %v16638_v13, %v16639_v41 }
0x1421   :  { %v16641_v43 = vand.u32 4294901760, %v16640_v17 }
0x1422   :  { %24396 = vmatpush3.bf16.msra.mxu0 %v29639_v51 }
0x1423   :  { %22090 = vmatmul.mubr.f32.vlgmr.msra.gmra.mrb[68].mxu1 %v16641_v43  ;;  %24397 = vmatprep.subr.bf16.mxu0 %v25108_v30 }
0x1424   :  { %24345 = vmatpush3.bf16.msra.mxu1 %v29733_v62  ;;  %22124 = vmatprep.mubr.msk.f32.mxu1 %vm25109_vm4, %v25110_v25 }
0x1425   :  { %24346 = vmatprep.subr.bf16.mxu1 %v25108_v30 }
0x1426   :  { %24399 = vmatpush3.bf16.msra.mxu0 %v29655_v0 }
0x1427   :  { %24400 = vmatprep.subr.bf16.mxu0 %v25108_v30 }
0x1428   :  { %24348 = vmatpush3.bf16.msra.mxu1 %v29739_v33 }
0x1429   :  { %24349 = vmatprep.subr.bf16.mxu1 %v25108_v30 }
0x142a   :  { %24402 = vmatpush3.bf16.msra.mxu0 %v29673_v5 }
0x142b   :  { %24403 = vmatprep.subr.bf16.mxu0 %v25108_v30 }
0x142c   :  { %24351 = vmatpush3.bf16.msra.mxu1 %v29745_v2 }
0x142d   :  { %24352 = vmatprep.subr.bf16.mxu1 %v25108_v30 }
0x142e   :  { %24405 = vmatpush3.bf16.msra.mxu0 %v29690_v40 }
0x142f   :  { %24406 = vmatprep.subr.bf16.mxu0 %v25108_v30 }
0x1430   :  { %24354 = vmatpush3.bf16.msra.mxu1 %v29751_v15 }
0x1431   :  { %24355 = vmatprep.subr.bf16.mxu1 %v25108_v30 }
0x1432   :  { %24408 = vmatpush3.bf16.msra.mxu0 %v29707_v12 }
0x1433   :  { %24409 = vmatprep.subr.bf16.mxu0 %v25108_v30 }
0x1434   :  { %24357 = vmatpush3.bf16.msra.mxu1 %v29757_v31 }
0x1435   :  { %24358 = vmatprep.subr.bf16.mxu1 %v25108_v30 }
0x1436   :  { %24411 = vmatpush3.bf16.msra.mxu0 %v29718_v18 }
0x1437   :  { %24412 = vmatprep.subr.bf16.mxu0 %v25108_v30 }
0x1438   :  { %24360 = vmatpush3.bf16.msra.mxu1 %v29763_v39 }
0x1439   :  { %24361 = vmatprep.subr.bf16.mxu1 %v25108_v30 }
0x143a   :  { %24414 = vmatpush3.bf16.msra.mxu0 %v29725_v47 }
0x143b   :  { %24415 = vmatprep.subr.bf16.mxu0 %v25108_v30 }
0x143c   :  { %24363 = vmatpush3.bf16.msra.mxu1 %v29769_v58 }
0x143d   :  { %22195 = vmatmul.mubr.f32.vlgmr.msra.gmra.mrb[50].mxu0 %v16639_v41  ;;  %24364 = vmatprep.subr.bf16.mxu1 %v25108_v30 }
0x143e   :  { %24417 = vmatpush3.bf16.msra.mxu0 %v29773_v19  ;;  %22229 = vmatprep.mubr.msk.f32.mxu0 %vm25109_vm4, %v25110_v25 }
0x143f   :  { %24418 = vmatprep.subr.bf16.mxu0 %v25108_v30 }
0x1440   :  { %24366 = vmatpush3.bf16.msra.mxu1 %v29775_v52 }
0x1442   :  { %24420 = vmatpush3.bf16.msra.mxu0 %v29777_v55 }
0x1443   :  { %22125 = vmatmul.mubr.f32.vlgmr.msra.gmra.mrb[68].mxu1 %v29792_v53  ;;  %24421 = vmatprep.subr.bf16.mxu0 %v25108_v30 }
0x1446   :  { %24423 = vmatpush3.bf16.msra.mxu0 %v29779_v45 }
0x1447   :  { %24424 = vmatprep.subr.bf16.mxu0 %v25108_v30 }
0x144a   :  { %24426 = vmatpush3.bf16.msra.mxu0 %v29781_v57 }
0x144b   :  { %24427 = vmatprep.subr.bf16.mxu0 %v25108_v30 }
0x144e   :  { %24429 = vmatpush3.bf16.msra.mxu0 %v29783_v11 }
0x144f   :  { %24430 = vmatprep.subr.bf16.mxu0 %v25108_v30 }
0x1452   :  { %24432 = vmatpush3.bf16.msra.mxu0 %v29785_v10 }
0x1453   :  { %24433 = vmatprep.subr.bf16.mxu0 %v25108_v30 }
0x1456   :  { %24435 = vmatpush3.bf16.msra.mxu0 %v29787_v60 }
0x1457   :  { %24436 = vmatprep.subr.bf16.mxu0 %v25108_v30 }
0x145a   :  { %24438 = vmatpush3.bf16.msra.mxu0 %v29789_v14 }
0x145b   :  { %24439 = vmatprep.subr.bf16.mxu0 %v25108_v30 }
0x145d   :  { %22230 = vmatmul.mubr.f32.vlgmr.msra.gmra.mrb[50].mxu0 %v29792_v53 }
0x145e   :  { %24441 = vmatpush3.bf16.msra.mxu0 %v29613_v1  ;;  %22264 = vmatprep.mubr.msk.f32.mxu0 %vm25109_vm4, %v25110_v25  ;;  %v17322_v1 = vld [vmem:[%s29904_s18] ss:$0 sm:$0xff]  ;;  %s25111_s18 = smov [#allocation22]  }
0x145f   :  { %24442 = vmatprep.subr.bf16.mxu0 %v25108_v30  ;;  %s17219_s25 = sshll.u32 %s25111_s18, 4  ;;  %s17220_s25 = int_to_ptr.vmem [resolvable:$true] %s17219_s25 }
0x1460   :  { %s25054_s2 = scalar_lea.vmem %s17220_s25, 32  ;;  %p25059_p13 = scmp.lt.s32.totalorder %s17220_s25, %s17220_s25 }
0x1461   :  { %p25055_p12 = scmp.ne.s32.totalorder %s17220_s25, %s25054_s2  ;;  %p25060_p0 = scmp.lt.s32.totalorder %s25054_s2, %s25054_s2 }
0x1462   :  { %24444 = vmatpush3.bf16.msra.mxu0 %v29639_v51 }
0x1463   :  { %24445 = vmatprep.subr.bf16.mxu0 %v25108_v30  ;;  %p25061_p1 = por %p25060_p0, %p25059_p13 }
0x1465   :  { %p25062_p2 = pnand %p25061_p1, %p25055_p12 }
0x1466   :  { %24447 = vmatpush3.bf16.msra.mxu0 %v29655_v0 }
0x1467   :  { %24448 = vmatprep.subr.bf16.mxu0 %v25108_v30 }
0x146a   :  { %24450 = vmatpush3.bf16.msra.mxu0 %v29673_v5 }
0x146b   :  { %24451 = vmatprep.subr.bf16.mxu0 %v25108_v30 }
0x146e   :  { %24453 = vmatpush3.bf16.msra.mxu0 %v29690_v40 }
0x146f   :  { %24454 = vmatprep.subr.bf16.mxu0 %v25108_v30 }
0x1472   :  { %24456 = vmatpush3.bf16.msra.mxu0 %v29707_v12 }
0x1473   :  { %24457 = vmatprep.subr.bf16.mxu0 %v25108_v30 }
0x1476   :  { %24459 = vmatpush3.bf16.msra.mxu0 %v29718_v18 }
0x1477   :  { %24460 = vmatprep.subr.bf16.mxu0 %v25108_v30 }
0x147a   :  { %24462 = vmatpush3.bf16.msra.mxu0 %v29725_v47 }
0x147d   :  { %22265 = vmatmul.mubr.f32.vlgmr.msra.gmra.mrb[50].mxu0 %v29792_v53 }
0x1516   :  { %v16794_v25 = vpop.f32.mrb[68].mxu1 }
0x1517   :  { %v22126_v56 = vpop.f32.mrb[69].mxu1  ;;  %v24466_v51 = vadd.f32 %v17322_v1, %v16794_v25 }
0x1550   :  { %v17193_v0 = vpop.f32.mrb[50].mxu0 }
0x1551   :  { %v24467_v5 = vadd.f32 %v24466_v51, %v17193_v0  ;;  %v22266_v40 = vpop.f32.mrb[51].mxu0 }
0x1553   :  { %v17198_v12 = vsel %vm17197_vm11, %v24467_v5, 0.0 }
0x1554   :  { %17199 = vadd.xlane.f32.xlu0 %v17198_v12 }
0x15e1   :  { %v17200_v18 = vpop.xlane.xlu0 %17199 }
0x15e2   :  { %v17202_v30 = vmul.f32 0.0625, %v17200_v18 }
0x15e4   :  { %v17203_v62 = vsub.f32 %v24467_v5, %v17202_v30 }
0x15e6   :  { %v17204_v47 = vmul.f32 %v17203_v62, %v17203_v62 }
0x15e8   :  { %v17205_v33 = vsel %vm17197_vm11, %v17204_v47, 0.0 }
0x15e9   :  { %17206 = vadd.xlane.f32.xlu0 %v17205_v33 }
0x1676   :  { %v17207_v2 = vpop.xlane.xlu0 %17206 }
0x1677   :  { %v17208_v15 = vmul.f32 0.0625, %v17207_v2 }
0x1679   :  { %v17209_v31 = vadd.f32 1e-05, %v17208_v15 }
0x167b   :  { %24788 = vrsqrt.f32 %v17209_v31 }
0x1685   :  { %v24789_v6 = vpop.eup %24788 }
0x1686   :  { %v17211_v39 = vmul.f32 %v24789_v6, %v17203_v62 }
0x1688   :  { %17212 = vst.msk [vmem:[#allocation22] sm:$0x3] %vm17197_vm11, %v17211_v39 }
0x1689   :  { %25065 = shalt.err (!%p25062_p2)
}
0x168a   :  { %s25066_s10 = scalar_lea.hbm %s29905_s19, 32 }
0x168b   :  { %p25067_p3 = scmp.ne.s32.totalorder %s29905_s19, %s25066_s10  ;;  %p25070_p4 = scmp.lt.u32.totalorder %s25066_s10, %s29905_s19 }
0x168d   :  { %p25072_p5 = pnand %p25070_p4, %p25067_p3 }
0x168f   :  { %25075 = shalt.err (!%p25072_p5)
}
0x1690   :  { %17222 = dma.vmem_to_hbm [thread:$0]  %s17220_s25, 32, %s29905_s19, [#allocation4]  }
0x1691   :  { %25090 = dma.done.wait [#allocation4], 32  }
0x1692   :  { %25091 = vsyncadd [#allocation4], 4294967264 }
0x1693   :  { %17226 = vsyncpa [#allocation3], 1 }
0x1694   :  { %17227 = vsyncpa [#allocation6], 1 }
0x1695   :  { %17228 = vsyncpa [#allocation9], 1 }
0x1696   :  { %17229 = vsyncpa [#allocation12], 1 }
0x1697   :  { %17230 = vsyncpa [#allocation15], 1 }
0x1698   :  { %17231 = vsyncpa [#allocation18], 1 }
0x1699   :  { %17232 = vsyncpa [#allocation21], 1 }
0x169a   :  { %17233 = vsyncpa [#allocation4], 1 }

</bundles_post_ra>
